<compile_context>
chip_gen: v7x
topology: tpu7x:2x2x1
jax: 0.10.0
libtpu: 0.0.40
codegen_flags: <defaults>
</compile_context>

<pallas_src>
from itertools import product

import jax
import jax.numpy as jnp
from jax.experimental import pallas as pl
from jax.experimental.pallas import tpu as pltpu

_BN_EPS = 1e-5
_LANES = 128                       # pad channel / matmul-N dim to full lanes
_VMEM_LIMIT = 32 * 1024 * 1024     # explicit scoped-VMEM budget (safe v5e/v6e/v7x)

# version-robust handle on the Mosaic compiler-params dataclass
_CompilerParams = getattr(pltpu, "CompilerParams", None) or getattr(
    pltpu, "TPUCompilerParams")


def _mosaic_params():
    return _CompilerParams(dimension_semantics=("parallel",),
                           vmem_limit_bytes=_VMEM_LIMIT)


def _row_tile(nrows, target):
    """Largest divisor of nrows that is <= target and a multiple of 8
    (falls back to the always-legal full extent)."""
    for t in range(min(nrows, target), 7, -1):
        if t % 8 == 0 and nrows % t == 0:
            return t
    return nrows


# ----------------------------- Pallas kernels -----------------------------

def _pair_max_kernel(x_ref, o_ref):
    # x_ref: (TM, 2, G) -- axis 1 holds the two pooling partners.
    # o_ref: (TM, 1, G).  Sub-window loads keep everything within-tile.
    o_ref[...] = jnp.maximum(x_ref[:, 0:1, :], x_ref[:, 1:2, :])


def _conv_stats_kernel(p_ref, w_ref, y_ref, s_ref):
    # p_ref: (TM, K) im2col patch rows; w_ref: (K, 128) resident weights.
    # Writes the conv-output tile plus this tile's per-channel sum / sum-sq
    # partials (conv bias omitted: cancelled exactly by the BN mean subtract).
    y = jnp.dot(p_ref[...], w_ref[...], preferred_element_type=jnp.float32)
    y_ref[...] = y
    s_ref[0:1, :] = jnp.sum(y, axis=0, keepdims=True)
    s_ref[1:2, :] = jnp.sum(y * y, axis=0, keepdims=True)


def _scale_shift_relu_kernel(y_ref, sc_ref, sh_ref, o_ref):
    # y_ref: (TM, 128); sc/sh: resident (1, 128) folded BN scale / shift.
    o_ref[...] = jnp.maximum(y_ref[...] * sc_ref[...] + sh_ref[...], 0.0)


# ----------------------------- pallas_call wrappers -----------------------------

def _pair_max(x3, row_target=512):
    R, _, G = x3.shape
    tm = _row_tile(R, row_target)
    out = pl.pallas_call(
        _pair_max_kernel,
        out_shape=jax.ShapeDtypeStruct((R, 1, G), x3.dtype),
        grid=(R // tm,),
        in_specs=[pl.BlockSpec((tm, 2, G), lambda i: (i, 0, 0))],
        out_specs=pl.BlockSpec((tm, 1, G), lambda i: (i, 0, 0)),
        compiler_params=_mosaic_params(),
    )(x3)
    return out.reshape(R, G)


def _conv_stats(patches, w_pad, tm):
    M, K = patches.shape
    L = w_pad.shape[1]
    n_tiles = M // tm
    return pl.pallas_call(
        _conv_stats_kernel,
        out_shape=(jax.ShapeDtypeStruct((M, L), jnp.float32),
                   jax.ShapeDtypeStruct((n_tiles, 2, L), jnp.float32)),
        grid=(n_tiles,),
        in_specs=[pl.BlockSpec((tm, K), lambda i: (i, 0)),
                  pl.BlockSpec((K, L), lambda i: (0, 0))],      # resident weights
        out_specs=(pl.BlockSpec((tm, L), lambda i: (i, 0)),
                   pl.BlockSpec((None, 2, L), lambda i: (i, 0, 0))),
        compiler_params=_mosaic_params(),
    )(patches, w_pad)


def _scale_shift_relu(y, scale, shift, tm):
    M, L = y.shape
    return pl.pallas_call(
        _scale_shift_relu_kernel,
        out_shape=jax.ShapeDtypeStruct((M, L), jnp.float32),
        grid=(M // tm,),
        in_specs=[pl.BlockSpec((tm, L), lambda i: (i, 0)),
                  pl.BlockSpec((1, L), lambda i: (0, 0)),       # resident scale
                  pl.BlockSpec((1, L), lambda i: (0, 0))],      # resident shift
        out_specs=pl.BlockSpec((tm, L), lambda i: (i, 0)),
        compiler_params=_mosaic_params(),
    )(y, scale, shift)


# ----------------------------- glue (reshapes / im2col) -----------------------------

def _maxpool3d_2(xc):
    # xc: (N, D, H, W, C) channels-last.  2x2x2 max as three pairwise maxima
    # over lane-contiguous views (all reshapes are free row-major splits/merges).
    N, D, H, W, C = xc.shape
    Dh, Hh, Wh = D // 2, H // 2, W // 2
    y = _pair_max(xc.reshape(N * Dh, 2, H * W * C))            # pool D (lane-dense)
    y = _pair_max(y.reshape(N * Dh * Hh, 2, W * C))            # pool H
    y = _pair_max(y.reshape(N * Dh * Hh * Wh, 2, C))           # pool W
    return y.reshape(N, Dh, Hh, Wh, C)


def _im2col(x):
    # x: (N, D, H, W, C) -> (N*D*H*W, 27*C), column order (kd, kh, kw, c).
    # TODO(synk): replace with an in-kernel halo-DMA gather to avoid the 27x
    # HBM materialization.
    N, D, H, W, C = x.shape
    xp = jnp.pad(x, ((0, 0), (1, 1), (1, 1), (1, 1), (0, 0)))
    cols = [xp[:, kd:kd + D, kh:kh + H, kw:kw + W, :]
            for kd, kh, kw in product(range(3), range(3), range(3))]
    return jnp.concatenate(cols, axis=-1).reshape(N * D * H * W, 27 * C)


def _conv_bn_relu_block(h, w, gamma, beta, *, m_target=512):
    # h: (N, D, H, W, Cin) channels-last; w: (Cout, Cin, 3, 3, 3).
    N, D, H, W, cin = h.shape
    cout = w.shape[0]
    M = N * D * H * W
    K = 27 * cin
    tm = _row_tile(M, m_target)

    patches = _im2col(h)                                             # (M, K)
    w_mat = jnp.transpose(w, (2, 3, 4, 1, 0)).reshape(K, cout)
    w_pad = jnp.pad(w_mat, ((0, 0), (0, _LANES - cout)))             # (K, 128)

    # pass 1: tiled matmul + per-tile batch-stat partials
    y, part = _conv_stats(patches, w_pad, tm)                        # (M,128),(T,2,128)
    s = jnp.sum(part, axis=0)                                        # (2, 128)
    mean = s[0] / M
    var = s[1] / M - mean * mean                                     # biased variance
    g = jnp.pad(gamma, (0, _LANES - cout))
    b = jnp.pad(beta, (0, _LANES - cout))
    scale = g * jax.lax.rsqrt(var + _BN_EPS)
    shift = b - mean * scale

    # pass 2: tiled normalize + ReLU with resident scale/shift vectors
    out = _scale_shift_relu(y, scale.reshape(1, _LANES).astype(jnp.float32),
                            shift.reshape(1, _LANES).astype(jnp.float32), tm)
    return out[:, :cout].reshape(N, D, H, W, cout)


def down3d_forward(x, params):
    """x: (N, Cin, D, H, W) float32 -> (N, Cout, D//2, H//2, W//2)."""
    xc = jnp.transpose(x, (0, 2, 3, 4, 1))                           # NDHWC
    p = _maxpool3d_2(xc)
    y = _conv_bn_relu_block(p, params['w1'], params['g1'], params['be1'])
    y = _conv_bn_relu_block(y, params['w2'], params['g2'], params['be2'])
    return jnp.transpose(y, (0, 4, 1, 2, 3))                         # back to NCDHW


# ----------------------------- pure-JAX reference -----------------------------

def _reference_down3d(x, params):
    p = jax.lax.reduce_window(x, -jnp.inf, jax.lax.max,
                              (1, 1, 2, 2, 2), (1, 1, 2, 2, 2), 'VALID')

    def block(h, w, b, g, be):
        y = jax.lax.conv_general_dilated(
            h, w, window_strides=(1, 1, 1),
            padding=((1, 1), (1, 1), (1, 1)),
            dimension_numbers=('NCDHW', 'OIDHW', 'NCDHW'),
            precision=jax.lax.Precision.HIGHEST)
        y = y + b.reshape(1, -1, 1, 1, 1)
        mean = jnp.mean(y, axis=(0, 2, 3, 4), keepdims=True)
        var = jnp.mean((y - mean) ** 2, axis=(0, 2, 3, 4), keepdims=True)
        y = (y - mean) / jnp.sqrt(var + _BN_EPS)
        y = y * g.reshape(1, -1, 1, 1, 1) + be.reshape(1, -1, 1, 1, 1)
        return jnp.maximum(y, 0.0)

    y = block(p, params['w1'], params['b1'], params['g1'], params['be1'])
    y = block(y, params['w2'], params['b2'], params['g2'], params['be2'])
    return y


# ----------------------------- main -----------------------------

if __name__ == "__main__":
    N, Cin, Cout, S = 2, 4, 8, 16                     # input (2, 4, 16, 16, 16)
    key = jax.random.PRNGKey(0)
    ks = jax.random.split(key, 9)
    x = jax.random.normal(ks[0], (N, Cin, S, S, S), jnp.float32)

    params = {
        'w1': 0.1 * jax.random.normal(ks[1], (Cout, Cin, 3, 3, 3), jnp.float32),
        'b1': 0.1 * jax.random.normal(ks[2], (Cout,), jnp.float32),
        'g1': 1.0 + 0.1 * jax.random.normal(ks[3], (Cout,), jnp.float32),
        'be1': 0.1 * jax.random.normal(ks[4], (Cout,), jnp.float32),
        'w2': 0.1 * jax.random.normal(ks[5], (Cout, Cout, 3, 3, 3), jnp.float32),
        'b2': 0.1 * jax.random.normal(ks[6], (Cout,), jnp.float32),
        'g2': 1.0 + 0.1 * jax.random.normal(ks[7], (Cout,), jnp.float32),
        'be2': 0.1 * jax.random.normal(ks[8], (Cout,), jnp.float32),
    }

    out = jax.block_until_ready(jax.jit(down3d_forward)(x, params))
    ref = jax.block_until_ready(jax.jit(_reference_down3d)(x, params))

    assert out.shape == (N, Cout, S // 2, S // 2, S // 2), out.shape
    assert out.dtype == jnp.float32
    # tolerance covers default-precision MXU matmul vs Precision.HIGHEST reference
    assert jnp.allclose(out, ref, atol=2e-2, rtol=2e-2), \
        float(jnp.max(jnp.abs(out - ref)))
    print("KERNEL_OK")
</pallas_src>

<mosaic_0001>
module attributes {stable_mosaic.version = 11 : i64} {
  func.func @_pair_max_kernel(%arg0: i32, %arg1: memref<16x2x1024xf32, #tpu.memory_space<vmem>>, %arg2: memref<16x1x1024xf32, #tpu.memory_space<vmem>>) attributes {dimension_semantics = [#tpu.dimension_semantics<parallel>], iteration_bounds = array<i64: 1>, scalar_prefetch = 0 : i64, scratch_operands = 0 : i64, tpu.core_type = #tpu.core_type<tc>, window_params = [{transform_indices = @transform_0, window_bounds = array<i64: 16, 2, 1024>}, {transform_indices = @transform_1, window_bounds = array<i64: 16, 1, 1024>}]} {
    %c0 = arith.constant 0 : index
    %c0_0 = arith.constant 0 : index
    %c0_1 = arith.constant 0 : index
    %0 = vector.load %arg1[%c0, %c0_0, %c0_1] : memref<16x2x1024xf32, #tpu.memory_space<vmem>>, vector<16x1x1024xf32>
    %c0_2 = arith.constant 0 : index
    %c1 = arith.constant 1 : index
    %c0_3 = arith.constant 0 : index
    %1 = vector.load %arg1[%c0_2, %c1, %c0_3] : memref<16x2x1024xf32, #tpu.memory_space<vmem>>, vector<16x1x1024xf32>
    %2 = arith.maximumf %0, %1 : vector<16x1x1024xf32>
    %c0_4 = arith.constant 0 : index
    %c0_5 = arith.constant 0 : index
    %c0_6 = arith.constant 0 : index
    %3 = vector.load %arg2[%c0_4, %c0_5, %c0_6] : memref<16x1x1024xf32, #tpu.memory_space<vmem>>, vector<16x1x1024xf32>
    tpu.vector_store %arg2[%c0_4, %c0_5, %c0_6], %2 {strides = array<i32>} : memref<16x1x1024xf32, #tpu.memory_space<vmem>>, vector<16x1x1024xf32>,
    return
  }
  func.func @transform_0(%arg0: i32) -> (i32, i32, i32) {
    %c0_i32 = arith.constant 0 : i32
    %c0_i32_0 = arith.constant 0 : i32
    %c0_i32_1 = arith.constant 0 : i32
    return %arg0, %c0_i32, %c0_i32_0 : i32, i32, i32
  }
  func.func @transform_1(%arg0: i32) -> (i32, i32, i32) {
    %c0_i32 = arith.constant 0 : i32
    %c0_i32_0 = arith.constant 0 : i32
    %c0_i32_1 = arith.constant 0 : i32
    return %arg0, %c0_i32, %c0_i32_0 : i32, i32, i32
  }
}

module attributes {stable_mosaic.version = 11 : i64} {
  func.func @_pair_max_kernel(%arg0: i32, %arg1: memref<128x2x64xf32, #tpu.memory_space<vmem>>, %arg2: memref<128x1x64xf32, #tpu.memory_space<vmem>>) attributes {dimension_semantics = [#tpu.dimension_semantics<parallel>], iteration_bounds = array<i64: 1>, scalar_prefetch = 0 : i64, scratch_operands = 0 : i64, tpu.core_type = #tpu.core_type<tc>, window_params = [{transform_indices = @transform_0, window_bounds = array<i64: 128, 2, 64>}, {transform_indices = @transform_1, window_bounds = array<i64: 128, 1, 64>}]} {
    %c0 = arith.constant 0 : index
    %c0_0 = arith.constant 0 : index
    %c0_1 = arith.constant 0 : index
    %0 = vector.load %arg1[%c0, %c0_0, %c0_1] : memref<128x2x64xf32, #tpu.memory_space<vmem>>, vector<128x1x64xf32>
    %c0_2 = arith.constant 0 : index
    %c1 = arith.constant 1 : index
    %c0_3 = arith.constant 0 : index
    %1 = vector.load %arg1[%c0_2, %c1, %c0_3] : memref<128x2x64xf32, #tpu.memory_space<vmem>>, vector<128x1x64xf32>
    %2 = arith.maximumf %0, %1 : vector<128x1x64xf32>
    %c0_4 = arith.constant 0 : index
    %c0_5 = arith.constant 0 : index
    %c0_6 = arith.constant 0 : index
    %3 = vector.load %arg2[%c0_4, %c0_5, %c0_6] : memref<128x1x64xf32, #tpu.memory_space<vmem>>, vector<128x1x64xf32>
    tpu.vector_store %arg2[%c0_4, %c0_5, %c0_6], %2 {strides = array<i32>} : memref<128x1x64xf32, #tpu.memory_space<vmem>>, vector<128x1x64xf32>,
    return
  }
  func.func @transform_0(%arg0: i32) -> (i32, i32, i32) {
    %c0_i32 = arith.constant 0 : i32
    %c0_i32_0 = arith.constant 0 : i32
    %c0_i32_1 = arith.constant 0 : i32
    return %arg0, %c0_i32, %c0_i32_0 : i32, i32, i32
  }
  func.func @transform_1(%arg0: i32) -> (i32, i32, i32) {
    %c0_i32 = arith.constant 0 : i32
    %c0_i32_0 = arith.constant 0 : i32
    %c0_i32_1 = arith.constant 0 : i32
    return %arg0, %c0_i32, %c0_i32_0 : i32, i32, i32
  }
}

module attributes {stable_mosaic.version = 11 : i64} {
  func.func @_pair_max_kernel(%arg0: i32, %arg1: memref<512x2x4xf32, #tpu.memory_space<vmem>>, %arg2: memref<512x1x4xf32, #tpu.memory_space<vmem>>) attributes {dimension_semantics = [#tpu.dimension_semantics<parallel>], iteration_bounds = array<i64: 2>, scalar_prefetch = 0 : i64, scratch_operands = 0 : i64, tpu.core_type = #tpu.core_type<tc>, window_params = [{transform_indices = @transform_0, window_bounds = array<i64: 512, 2, 4>}, {transform_indices = @transform_1, window_bounds = array<i64: 512, 1, 4>}]} {
    %c0 = arith.constant 0 : index
    %c0_0 = arith.constant 0 : index
    %c0_1 = arith.constant 0 : index
    %0 = vector.load %arg1[%c0, %c0_0, %c0_1] : memref<512x2x4xf32, #tpu.memory_space<vmem>>, vector<512x1x4xf32>
    %c0_2 = arith.constant 0 : index
    %c1 = arith.constant 1 : index
    %c0_3 = arith.constant 0 : index
    %1 = vector.load %arg1[%c0_2, %c1, %c0_3] : memref<512x2x4xf32, #tpu.memory_space<vmem>>, vector<512x1x4xf32>
    %2 = arith.maximumf %0, %1 : vector<512x1x4xf32>
    %c0_4 = arith.constant 0 : index
    %c0_5 = arith.constant 0 : index
    %c0_6 = arith.constant 0 : index
    %3 = vector.load %arg2[%c0_4, %c0_5, %c0_6] : memref<512x1x4xf32, #tpu.memory_space<vmem>>, vector<512x1x4xf32>
    tpu.vector_store %arg2[%c0_4, %c0_5, %c0_6], %2 {strides = array<i32>} : memref<512x1x4xf32, #tpu.memory_space<vmem>>, vector<512x1x4xf32>,
    return
  }
  func.func @transform_0(%arg0: i32) -> (i32, i32, i32) {
    %c0_i32 = arith.constant 0 : i32
    %c0_i32_0 = arith.constant 0 : i32
    %c0_i32_1 = arith.constant 0 : i32
    return %arg0, %c0_i32, %c0_i32_0 : i32, i32, i32
  }
  func.func @transform_1(%arg0: i32) -> (i32, i32, i32) {
    %c0_i32 = arith.constant 0 : i32
    %c0_i32_0 = arith.constant 0 : i32
    %c0_i32_1 = arith.constant 0 : i32
    return %arg0, %c0_i32, %c0_i32_0 : i32, i32, i32
  }
}

module attributes {stable_mosaic.version = 11 : i64} {
  func.func @_conv_stats_kernel(%arg0: i32, %arg1: memref<512x108xf32, #tpu.memory_space<vmem>>, %arg2: memref<108x128xf32, #tpu.memory_space<vmem>>, %arg3: memref<512x128xf32, #tpu.memory_space<vmem>>, %arg4: memref<1x2x128xf32, #tpu.memory_space<vmem>>) attributes {dimension_semantics = [#tpu.dimension_semantics<parallel>], iteration_bounds = array<i64: 2>, scalar_prefetch = 0 : i64, scratch_operands = 0 : i64, tpu.core_type = #tpu.core_type<tc>, window_params = [{transform_indices = @transform_0, window_bounds = array<i64: 512, 108>}, {pipeline_mode = #tpu.pipeline_mode<synchronous>, transform_indices = @transform_1, window_bounds = array<i64: 108, 128>}, {transform_indices = @transform_2, window_bounds = array<i64: 512, 128>}, {transform_indices = @transform_3, window_bounds = array<i64: 1, 2, 128>}]} {
    %c0 = arith.constant 0 : index
    %c0_0 = arith.constant 0 : index
    %0 = vector.load %arg1[%c0, %c0_0] : memref<512x108xf32, #tpu.memory_space<vmem>>, vector<512x108xf32>
    %c0_1 = arith.constant 0 : index
    %c0_2 = arith.constant 0 : index
    %1 = vector.load %arg2[%c0_1, %c0_2] : memref<108x128xf32, #tpu.memory_space<vmem>>, vector<108x128xf32>
    %cst = arith.constant dense<0.000000e+00> : vector<512x128xf32>
    %2 = tpu.matmul %0, %1, %cst {dimension_numbers = #tpu.dot_dimension_numbers<[1], [0], [0], [1], [0, 0, 1, 1], [], []>} : vector<512x108xf32>, vector<108x128xf32>, vector<512x128xf32> -> vector<512x128xf32>
    %c0_3 = arith.constant 0 : index
    %c0_4 = arith.constant 0 : index
    %3 = vector.load %arg3[%c0_3, %c0_4] : memref<512x128xf32, #tpu.memory_space<vmem>>, vector<512x128xf32>
    tpu.vector_store %arg3[%c0_3, %c0_4], %2 {strides = array<i32>} : memref<512x128xf32, #tpu.memory_space<vmem>>, vector<512x128xf32>,
    %cst_5 = arith.constant dense<0.000000e+00> : vector<128xf32>
    %4 = vector.multi_reduction <add>, %2, %cst_5 [0] : vector<512x128xf32> to vector<128xf32>
    %5 = vector.shape_cast %4 : vector<128xf32> to vector<1x128xf32>
    %c0_6 = arith.constant 0 : index
    %c0_7 = arith.constant 0 : index
    %c0_8 = arith.constant 0 : index
    %6 = vector.load %arg4[%c0_6, %c0_7, %c0_8] : memref<1x2x128xf32, #tpu.memory_space<vmem>>, vector<1x1x128xf32>
    %7 = vector.shape_cast %6 : vector<1x1x128xf32> to vector<1x128xf32>
    %8 = vector.shape_cast %5 : vector<1x128xf32> to vector<1x1x128xf32>
    tpu.vector_store %arg4[%c0_6, %c0_7, %c0_8], %8 {strides = array<i32>} : memref<1x2x128xf32, #tpu.memory_space<vmem>>, vector<1x1x128xf32>,
    %9 = arith.mulf %2, %2 : vector<512x128xf32>
    %cst_9 = arith.constant dense<0.000000e+00> : vector<128xf32>
    %10 = vector.multi_reduction <add>, %9, %cst_9 [0] : vector<512x128xf32> to vector<128xf32>
    %11 = vector.shape_cast %10 : vector<128xf32> to vector<1x128xf32>
    %c0_10 = arith.constant 0 : index
    %c1 = arith.constant 1 : index
    %c0_11 = arith.constant 0 : index
    %12 = vector.load %arg4[%c0_10, %c1, %c0_11] : memref<1x2x128xf32, #tpu.memory_space<vmem>>, vector<1x1x128xf32>
    %13 = vector.shape_cast %12 : vector<1x1x128xf32> to vector<1x128xf32>
    %14 = vector.shape_cast %11 : vector<1x128xf32> to vector<1x1x128xf32>
    tpu.vector_store %arg4[%c0_10, %c1, %c0_11], %14 {strides = array<i32>} : memref<1x2x128xf32, #tpu.memory_space<vmem>>, vector<1x1x128xf32>,
    return
  }
  func.func @transform_0(%arg0: i32) -> (i32, i32) {
    %c0_i32 = arith.constant 0 : i32
    %c0_i32_0 = arith.constant 0 : i32
    return %arg0, %c0_i32 : i32, i32
  }
  func.func @transform_1(%arg0: i32) -> (i32, i32) {
    %c0_i32 = arith.constant 0 : i32
    %c0_i32_0 = arith.constant 0 : i32
    %c0_i32_1 = arith.constant 0 : i32
    return %c0_i32, %c0_i32_0 : i32, i32
  }
  func.func @transform_2(%arg0: i32) -> (i32, i32) {
    %c0_i32 = arith.constant 0 : i32
    %c0_i32_0 = arith.constant 0 : i32
    return %arg0, %c0_i32 : i32, i32
  }
  func.func @transform_3(%arg0: i32) -> (i32, i32, i32) {
    %c0_i32 = arith.constant 0 : i32
    %c0_i32_0 = arith.constant 0 : i32
    %c0_i32_1 = arith.constant 0 : i32
    return %arg0, %c0_i32, %c0_i32_0 : i32, i32, i32
  }
}

module attributes {stable_mosaic.version = 11 : i64} {
  func.func @_scale_shift_relu_kernel(%arg0: i32, %arg1: memref<512x128xf32, #tpu.memory_space<vmem>>, %arg2: memref<1x128xf32, #tpu.memory_space<vmem>>, %arg3: memref<1x128xf32, #tpu.memory_space<vmem>>, %arg4: memref<512x128xf32, #tpu.memory_space<vmem>>) attributes {dimension_semantics = [#tpu.dimension_semantics<parallel>], iteration_bounds = array<i64: 2>, scalar_prefetch = 0 : i64, scratch_operands = 0 : i64, tpu.core_type = #tpu.core_type<tc>, window_params = [{transform_indices = @transform_0, window_bounds = array<i64: 512, 128>}, {pipeline_mode = #tpu.pipeline_mode<synchronous>, transform_indices = @transform_1, window_bounds = array<i64: 1, 128>}, {pipeline_mode = #tpu.pipeline_mode<synchronous>, transform_indices = @transform_2, window_bounds = array<i64: 1, 128>}, {transform_indices = @transform_3, window_bounds = array<i64: 512, 128>}]} {
    %c0 = arith.constant 0 : index
    %c0_0 = arith.constant 0 : index
    %0 = vector.load %arg1[%c0, %c0_0] : memref<512x128xf32, #tpu.memory_space<vmem>>, vector<512x128xf32>
    %c0_1 = arith.constant 0 : index
    %c0_2 = arith.constant 0 : index
    %1 = vector.load %arg2[%c0_1, %c0_2] : memref<1x128xf32, #tpu.memory_space<vmem>>, vector<1x128xf32>
    %2 = vector.broadcast %1 : vector<1x128xf32> to vector<512x128xf32>
    %3 = arith.mulf %0, %2 : vector<512x128xf32>
    %c0_3 = arith.constant 0 : index
    %c0_4 = arith.constant 0 : index
    %4 = vector.load %arg3[%c0_3, %c0_4] : memref<1x128xf32, #tpu.memory_space<vmem>>, vector<1x128xf32>
    %5 = vector.broadcast %4 : vector<1x128xf32> to vector<512x128xf32>
    %6 = arith.addf %3, %5 : vector<512x128xf32>
    %cst = arith.constant 0.000000e+00 : f32
    %7 = vector.broadcast %cst : f32 to vector<512x128xf32>
    %8 = arith.maximumf %6, %7 : vector<512x128xf32>
    %c0_5 = arith.constant 0 : index
    %c0_6 = arith.constant 0 : index
    %9 = vector.load %arg4[%c0_5, %c0_6] : memref<512x128xf32, #tpu.memory_space<vmem>>, vector<512x128xf32>
    tpu.vector_store %arg4[%c0_5, %c0_6], %8 {strides = array<i32>} : memref<512x128xf32, #tpu.memory_space<vmem>>, vector<512x128xf32>,
    return
  }
  func.func @transform_0(%arg0: i32) -> (i32, i32) {
    %c0_i32 = arith.constant 0 : i32
    %c0_i32_0 = arith.constant 0 : i32
    return %arg0, %c0_i32 : i32, i32
  }
  func.func @transform_1(%arg0: i32) -> (i32, i32) {
    %c0_i32 = arith.constant 0 : i32
    %c0_i32_0 = arith.constant 0 : i32
    %c0_i32_1 = arith.constant 0 : i32
    return %c0_i32, %c0_i32_0 : i32, i32
  }
  func.func @transform_2(%arg0: i32) -> (i32, i32) {
    %c0_i32 = arith.constant 0 : i32
    %c0_i32_0 = arith.constant 0 : i32
    %c0_i32_1 = arith.constant 0 : i32
    return %c0_i32, %c0_i32_0 : i32, i32
  }
  func.func @transform_3(%arg0: i32) -> (i32, i32) {
    %c0_i32 = arith.constant 0 : i32
    %c0_i32_0 = arith.constant 0 : i32
    return %arg0, %c0_i32 : i32, i32
  }
}

module attributes {stable_mosaic.version = 11 : i64} {
  func.func @_conv_stats_kernel(%arg0: i32, %arg1: memref<512x216xf32, #tpu.memory_space<vmem>>, %arg2: memref<216x128xf32, #tpu.memory_space<vmem>>, %arg3: memref<512x128xf32, #tpu.memory_space<vmem>>, %arg4: memref<1x2x128xf32, #tpu.memory_space<vmem>>) attributes {dimension_semantics = [#tpu.dimension_semantics<parallel>], iteration_bounds = array<i64: 2>, scalar_prefetch = 0 : i64, scratch_operands = 0 : i64, tpu.core_type = #tpu.core_type<tc>, window_params = [{transform_indices = @transform_0, window_bounds = array<i64: 512, 216>}, {pipeline_mode = #tpu.pipeline_mode<synchronous>, transform_indices = @transform_1, window_bounds = array<i64: 216, 128>}, {transform_indices = @transform_2, window_bounds = array<i64: 512, 128>}, {transform_indices = @transform_3, window_bounds = array<i64: 1, 2, 128>}]} {
    %c0 = arith.constant 0 : index
    %c0_0 = arith.constant 0 : index
    %0 = vector.load %arg1[%c0, %c0_0] : memref<512x216xf32, #tpu.memory_space<vmem>>, vector<512x216xf32>
    %c0_1 = arith.constant 0 : index
    %c0_2 = arith.constant 0 : index
    %1 = vector.load %arg2[%c0_1, %c0_2] : memref<216x128xf32, #tpu.memory_space<vmem>>, vector<216x128xf32>
    %cst = arith.constant dense<0.000000e+00> : vector<512x128xf32>
    %2 = tpu.matmul %0, %1, %cst {dimension_numbers = #tpu.dot_dimension_numbers<[1], [0], [0], [1], [0, 0, 1, 1], [], []>} : vector<512x216xf32>, vector<216x128xf32>, vector<512x128xf32> -> vector<512x128xf32>
    %c0_3 = arith.constant 0 : index
    %c0_4 = arith.constant 0 : index
    %3 = vector.load %arg3[%c0_3, %c0_4] : memref<512x128xf32, #tpu.memory_space<vmem>>, vector<512x128xf32>
    tpu.vector_store %arg3[%c0_3, %c0_4], %2 {strides = array<i32>} : memref<512x128xf32, #tpu.memory_space<vmem>>, vector<512x128xf32>,
    %cst_5 = arith.constant dense<0.000000e+00> : vector<128xf32>
    %4 = vector.multi_reduction <add>, %2, %cst_5 [0] : vector<512x128xf32> to vector<128xf32>
    %5 = vector.shape_cast %4 : vector<128xf32> to vector<1x128xf32>
    %c0_6 = arith.constant 0 : index
    %c0_7 = arith.constant 0 : index
    %c0_8 = arith.constant 0 : index
    %6 = vector.load %arg4[%c0_6, %c0_7, %c0_8] : memref<1x2x128xf32, #tpu.memory_space<vmem>>, vector<1x1x128xf32>
    %7 = vector.shape_cast %6 : vector<1x1x128xf32> to vector<1x128xf32>
    %8 = vector.shape_cast %5 : vector<1x128xf32> to vector<1x1x128xf32>
    tpu.vector_store %arg4[%c0_6, %c0_7, %c0_8], %8 {strides = array<i32>} : memref<1x2x128xf32, #tpu.memory_space<vmem>>, vector<1x1x128xf32>,
    %9 = arith.mulf %2, %2 : vector<512x128xf32>
    %cst_9 = arith.constant dense<0.000000e+00> : vector<128xf32>
    %10 = vector.multi_reduction <add>, %9, %cst_9 [0] : vector<512x128xf32> to vector<128xf32>
    %11 = vector.shape_cast %10 : vector<128xf32> to vector<1x128xf32>
    %c0_10 = arith.constant 0 : index
    %c1 = arith.constant 1 : index
    %c0_11 = arith.constant 0 : index
    %12 = vector.load %arg4[%c0_10, %c1, %c0_11] : memref<1x2x128xf32, #tpu.memory_space<vmem>>, vector<1x1x128xf32>
    %13 = vector.shape_cast %12 : vector<1x1x128xf32> to vector<1x128xf32>
    %14 = vector.shape_cast %11 : vector<1x128xf32> to vector<1x1x128xf32>
    tpu.vector_store %arg4[%c0_10, %c1, %c0_11], %14 {strides = array<i32>} : memref<1x2x128xf32, #tpu.memory_space<vmem>>, vector<1x1x128xf32>,
    return
  }
  func.func @transform_0(%arg0: i32) -> (i32, i32) {
    %c0_i32 = arith.constant 0 : i32
    %c0_i32_0 = arith.constant 0 : i32
    return %arg0, %c0_i32 : i32, i32
  }
  func.func @transform_1(%arg0: i32) -> (i32, i32) {
    %c0_i32 = arith.constant 0 : i32
    %c0_i32_0 = arith.constant 0 : i32
    %c0_i32_1 = arith.constant 0 : i32
    return %c0_i32, %c0_i32_0 : i32, i32
  }
  func.func @transform_2(%arg0: i32) -> (i32, i32) {
    %c0_i32 = arith.constant 0 : i32
    %c0_i32_0 = arith.constant 0 : i32
    return %arg0, %c0_i32 : i32, i32
  }
  func.func @transform_3(%arg0: i32) -> (i32, i32, i32) {
    %c0_i32 = arith.constant 0 : i32
    %c0_i32_0 = arith.constant 0 : i32
    %c0_i32_1 = arith.constant 0 : i32
    return %arg0, %c0_i32, %c0_i32_0 : i32, i32, i32
  }
}

</mosaic_0001>

<bundles_post_ra>
// kernel: down3d_forward.7
= control target key start
LH: loop header
LB: loop body
LE: loop exit
PB: predicated region body
PF: predicated region fallthrough
CT: control target
= control target key end

     0   :  { %s292_s0 = inlined_call_operand.vmem [shape: f32[16,2,1024], index: 0, kind: input, shape index: {}]   ;;  %s293_s1 = inlined_call_operand.vmem [shape: f32[16,1,1024], index: 1, kind: output, shape index: {}]  }
   0x1   :  { %v8_v0 = vld [vmem:[%s292_s0] ss:$2 sm:$0xff]  ;;  %v122_v1 = vld [vmem:[%s292_s0 + $0x1] ss:$2 sm:$0xff]  ;;  %v107_v2 = vld [vmem:[%s292_s0 + $0x10] ss:$2 sm:$0xff] }
   0x2   :  { %v71_v3 = vmax.f32 %v8_v0, %v122_v1  ;;  %v123_v4 = vld [vmem:[%s292_s0 + $0x11] ss:$2 sm:$0xff]  ;;  %v108_v5 = vld [vmem:[%s292_s0 + $0x20] ss:$2 sm:$0xff]  ;;  %v124_v6 = vld [vmem:[%s292_s0 + $0x21] ss:$2 sm:$0xff] }
   0x3   :  { %v72_v7 = vmax.f32 %v107_v2, %v123_v4  ;;  %v73_v8 = vmax.f32 %v108_v5, %v124_v6  ;;  %v109_v9 = vld [vmem:[%s292_s0 + $0x30] ss:$2 sm:$0xff]  ;;  %v125_v10 = vld [vmem:[%s292_s0 + $0x31] ss:$2 sm:$0xff]  ;;  %v110_v11 = vld [vmem:[%s292_s0 + $0x40] ss:$2 sm:$0xff] }
   0x4   :  { %87 = vst [vmem:[%s293_s1] sm:$0xff] %v71_v3  ;;  %v74_v12 = vmax.f32 %v109_v9, %v125_v10  ;;  %v126_v13 = vld [vmem:[%s292_s0 + $0x41] ss:$2 sm:$0xff]  ;;  %v111_v14 = vld [vmem:[%s292_s0 + $0x50] ss:$2 sm:$0xff]  ;;  %v127_v15 = vld [vmem:[%s292_s0 + $0x51] ss:$2 sm:$0xff] }
   0x5   :  { %88 = vst [vmem:[%s293_s1 + $0x8] sm:$0xff] %v72_v7  ;;  %89 = vst [vmem:[%s293_s1 + $0x10] sm:$0xff] %v73_v8  ;;  %v75_v16 = vmax.f32 %v110_v11, %v126_v13  ;;  %v76_v17 = vmax.f32 %v111_v14, %v127_v15  ;;  %v112_v18 = vld [vmem:[%s292_s0 + $0x60] ss:$2 sm:$0xff]  ;;  %v128_v19 = vld [vmem:[%s292_s0 + $0x61] ss:$2 sm:$0xff] }
   0x6   :  { %v113_v20 = vld [vmem:[%s292_s0 + $0x70] ss:$2 sm:$0xff]  ;;  %90 = vst [vmem:[%s293_s1 + $0x18] sm:$0xff] %v74_v12  ;;  %v77_v21 = vmax.f32 %v112_v18, %v128_v19  ;;  %v129_v22 = vld [vmem:[%s292_s0 + $0x71] ss:$2 sm:$0xff] }
   0x7   :  { %v114_v23 = vld [vmem:[%s292_s0 + $0x80] ss:$2 sm:$0xff]  ;;  %v130_v24 = vld [vmem:[%s292_s0 + $0x81] ss:$2 sm:$0xff]  ;;  %91 = vst [vmem:[%s293_s1 + $0x20] sm:$0xff] %v75_v16  ;;  %92 = vst [vmem:[%s293_s1 + $0x28] sm:$0xff] %v76_v17  ;;  %v78_v25 = vmax.f32 %v113_v20, %v129_v22 }
   0x8   :  { %v79_v26 = vmax.f32 %v114_v23, %v130_v24  ;;  %v115_v27 = vld [vmem:[%s292_s0 + $0x90] ss:$2 sm:$0xff]  ;;  %v131_v28 = vld [vmem:[%s292_s0 + $0x91] ss:$2 sm:$0xff]  ;;  %v116_v29 = vld [vmem:[%s292_s0 + $0xa0] ss:$2 sm:$0xff] }
   0x9   :  { %93 = vst [vmem:[%s293_s1 + $0x30] sm:$0xff] %v77_v21  ;;  %v80_v30 = vmax.f32 %v115_v27, %v131_v28  ;;  %v132_v31 = vld [vmem:[%s292_s0 + $0xa1] ss:$2 sm:$0xff]  ;;  %v117_v32 = vld [vmem:[%s292_s0 + $0xb0] ss:$2 sm:$0xff]  ;;  %94 = vst [vmem:[%s293_s1 + $0x38] sm:$0xff] %v78_v25 }
   0xa   :  { %v133_v33 = vld [vmem:[%s292_s0 + $0xb1] ss:$2 sm:$0xff]  ;;  %95 = vst [vmem:[%s293_s1 + $0x40] sm:$0xff] %v79_v26  ;;  %v81_v34 = vmax.f32 %v116_v29, %v132_v31  ;;  %v118_v36 = vld [vmem:[%s292_s0 + $0xc0] ss:$2 sm:$0xff] }
   0xb   :  { %v82_v35 = vmax.f32 %v117_v32, %v133_v33  ;;  %v134_v37 = vld [vmem:[%s292_s0 + $0xc1] ss:$2 sm:$0xff]  ;;  %v119_v38 = vld [vmem:[%s292_s0 + $0xd0] ss:$2 sm:$0xff]  ;;  %96 = vst [vmem:[%s293_s1 + $0x48] sm:$0xff] %v80_v30 }
   0xc   :  { %v83_v39 = vmax.f32 %v118_v36, %v134_v37  ;;  %v135_v40 = vld [vmem:[%s292_s0 + $0xd1] ss:$2 sm:$0xff]  ;;  %v120_v41 = vld [vmem:[%s292_s0 + $0xe0] ss:$2 sm:$0xff]  ;;  %v136_v42 = vld [vmem:[%s292_s0 + $0xe1] ss:$2 sm:$0xff] }
   0xd   :  { %97 = vst [vmem:[%s293_s1 + $0x50] sm:$0xff] %v81_v34  ;;  %98 = vst [vmem:[%s293_s1 + $0x58] sm:$0xff] %v82_v35  ;;  %v84_v43 = vmax.f32 %v119_v38, %v135_v40  ;;  %v85_v44 = vmax.f32 %v120_v41, %v136_v42  ;;  %v121_v45 = vld [vmem:[%s292_s0 + $0xf0] ss:$2 sm:$0xff]  ;;  %v137_v46 = vld [vmem:[%s292_s0 + $0xf1] ss:$2 sm:$0xff] }
   0xe   :  { %99 = vst [vmem:[%s293_s1 + $0x60] sm:$0xff] %v83_v39  ;;  %v86_v47 = vmax.f32 %v121_v45, %v137_v46 }
   0xf   :  { %100 = vst [vmem:[%s293_s1 + $0x68] sm:$0xff] %v84_v43  ;;  %101 = vst [vmem:[%s293_s1 + $0x70] sm:$0xff] %v85_v44 }
  0x10   :  { %102 = vst [vmem:[%s293_s1 + $0x78] sm:$0xff] %v86_v47 }

// kernel: down3d_forward.8
= control target key start
LH: loop header
LB: loop body
LE: loop exit
PB: predicated region body
PF: predicated region fallthrough
CT: control target
= control target key end

     0   :  { %vm392_vm0 = vcmask 516096   ;;  %s1815_s0 = inlined_call_operand.vmem [shape: f32[128,2,64], index: 0, kind: input, shape index: {}]   ;;  %s1816_s1 = inlined_call_operand.vmem [shape: f32[128,1,64], index: 1, kind: output, shape index: {}]  }
   0x1   :  { %v8_v0 = vld [vmem:[%s1815_s0] sm:$0x1]  ;;  %v136_v1 = vld [vmem:[%s1815_s0 + $0x1] sm:$0x1]  ;;  %v9_v2 = vld [vmem:[%s1815_s0 + $0x2] sm:$0x1] }
   0x2   :  { %v264_v3 = vmax.f32 %v8_v0, %v136_v1  ;;  %v137_v4 = vld [vmem:[%s1815_s0 + $0x3] sm:$0x1]  ;;  %v10_v5 = vld [vmem:[%s1815_s0 + $0x4] sm:$0x1]  ;;  %v138_v6 = vld [vmem:[%s1815_s0 + $0x5] sm:$0x1] }
   0x3   :  { %v265_v7 = vmax.f32 %v9_v2, %v137_v4  ;;  %v266_v8 = vmax.f32 %v10_v5, %v138_v6  ;;  %v11_v9 = vld [vmem:[%s1815_s0 + $0x6] sm:$0x1]  ;;  %v139_v10 = vld [vmem:[%s1815_s0 + $0x7] sm:$0x1]  ;;  %v12_v11 = vld [vmem:[%s1815_s0 + $0x8] sm:$0x1] }
   0x4   :  { %393 = vst.msk [vmem:[%s1816_s1] sm:$0x1] %vm392_vm0, %v264_v3  ;;  %v267_v12 = vmax.f32 %v11_v9, %v139_v10  ;;  %v140_v13 = vld [vmem:[%s1815_s0 + $0x9] sm:$0x1]  ;;  %v13_v14 = vld [vmem:[%s1815_s0 + $0xa] sm:$0x1] }
   0x5   :  { %v141_v15 = vld [vmem:[%s1815_s0 + $0xb] sm:$0x1]  ;;  %394 = vst.msk [vmem:[%s1816_s1 + $0x1] sm:$0x1] %vm392_vm0, %v265_v7  ;;  %395 = vst.msk [vmem:[%s1816_s1 + $0x2] sm:$0x1] %vm392_vm0, %v266_v8  ;;  %v268_v16 = vmax.f32 %v12_v11, %v140_v13 }
   0x6   :  { %v269_v17 = vmax.f32 %v13_v14, %v141_v15  ;;  %v14_v18 = vld [vmem:[%s1815_s0 + $0xc] sm:$0x1]  ;;  %v142_v19 = vld [vmem:[%s1815_s0 + $0xd] sm:$0x1]  ;;  %v15_v20 = vld [vmem:[%s1815_s0 + $0xe] sm:$0x1] }
   0x7   :  { %396 = vst.msk [vmem:[%s1816_s1 + $0x3] sm:$0x1] %vm392_vm0, %v267_v12  ;;  %v270_v21 = vmax.f32 %v14_v18, %v142_v19  ;;  %v143_v22 = vld [vmem:[%s1815_s0 + $0xf] sm:$0x1]  ;;  %v16_v23 = vld [vmem:[%s1815_s0 + $0x10] sm:$0x1] }
   0x8   :  { %v144_v24 = vld [vmem:[%s1815_s0 + $0x11] sm:$0x1]  ;;  %397 = vst.msk [vmem:[%s1816_s1 + $0x4] sm:$0x1] %vm392_vm0, %v268_v16  ;;  %398 = vst.msk [vmem:[%s1816_s1 + $0x5] sm:$0x1] %vm392_vm0, %v269_v17  ;;  %v271_v25 = vmax.f32 %v15_v20, %v143_v22 }
   0x9   :  { %v272_v26 = vmax.f32 %v16_v23, %v144_v24  ;;  %v17_v27 = vld [vmem:[%s1815_s0 + $0x12] sm:$0x1]  ;;  %v145_v28 = vld [vmem:[%s1815_s0 + $0x13] sm:$0x1]  ;;  %v18_v29 = vld [vmem:[%s1815_s0 + $0x14] sm:$0x1] }
   0xa   :  { %399 = vst.msk [vmem:[%s1816_s1 + $0x6] sm:$0x1] %vm392_vm0, %v270_v21  ;;  %v273_v30 = vmax.f32 %v17_v27, %v145_v28  ;;  %v146_v31 = vld [vmem:[%s1815_s0 + $0x15] sm:$0x1]  ;;  %v19_v32 = vld [vmem:[%s1815_s0 + $0x16] sm:$0x1] }
   0xb   :  { %v147_v33 = vld [vmem:[%s1815_s0 + $0x17] sm:$0x1]  ;;  %400 = vst.msk [vmem:[%s1816_s1 + $0x7] sm:$0x1] %vm392_vm0, %v271_v25  ;;  %401 = vst.msk [vmem:[%s1816_s1 + $0x8] sm:$0x1] %vm392_vm0, %v272_v26  ;;  %v274_v34 = vmax.f32 %v18_v29, %v146_v31 }
   0xc   :  { %v275_v35 = vmax.f32 %v19_v32, %v147_v33  ;;  %v20_v36 = vld [vmem:[%s1815_s0 + $0x18] sm:$0x1]  ;;  %v148_v37 = vld [vmem:[%s1815_s0 + $0x19] sm:$0x1]  ;;  %v21_v38 = vld [vmem:[%s1815_s0 + $0x1a] sm:$0x1] }
   0xd   :  { %402 = vst.msk [vmem:[%s1816_s1 + $0x9] sm:$0x1] %vm392_vm0, %v273_v30  ;;  %v276_v39 = vmax.f32 %v20_v36, %v148_v37  ;;  %v149_v40 = vld [vmem:[%s1815_s0 + $0x1b] sm:$0x1]  ;;  %v22_v41 = vld [vmem:[%s1815_s0 + $0x1c] sm:$0x1] }
   0xe   :  { %v150_v42 = vld [vmem:[%s1815_s0 + $0x1d] sm:$0x1]  ;;  %403 = vst.msk [vmem:[%s1816_s1 + $0xa] sm:$0x1] %vm392_vm0, %v274_v34  ;;  %404 = vst.msk [vmem:[%s1816_s1 + $0xb] sm:$0x1] %vm392_vm0, %v275_v35  ;;  %v277_v43 = vmax.f32 %v21_v38, %v149_v40 }
   0xf   :  { %v278_v44 = vmax.f32 %v22_v41, %v150_v42  ;;  %v23_v45 = vld [vmem:[%s1815_s0 + $0x1e] sm:$0x1]  ;;  %v151_v46 = vld [vmem:[%s1815_s0 + $0x1f] sm:$0x1]  ;;  %v24_v47 = vld [vmem:[%s1815_s0 + $0x20] sm:$0x1] }
  0x10   :  { %405 = vst.msk [vmem:[%s1816_s1 + $0xc] sm:$0x1] %vm392_vm0, %v276_v39  ;;  %v279_v48 = vmax.f32 %v23_v45, %v151_v46  ;;  %v152_v49 = vld [vmem:[%s1815_s0 + $0x21] sm:$0x1]  ;;  %v25_v50 = vld [vmem:[%s1815_s0 + $0x22] sm:$0x1] }
  0x11   :  { %v153_v51 = vld [vmem:[%s1815_s0 + $0x23] sm:$0x1]  ;;  %406 = vst.msk [vmem:[%s1816_s1 + $0xd] sm:$0x1] %vm392_vm0, %v277_v43  ;;  %407 = vst.msk [vmem:[%s1816_s1 + $0xe] sm:$0x1] %vm392_vm0, %v278_v44  ;;  %v280_v52 = vmax.f32 %v24_v47, %v152_v49 }
  0x12   :  { %v281_v53 = vmax.f32 %v25_v50, %v153_v51  ;;  %v26_v54 = vld [vmem:[%s1815_s0 + $0x24] sm:$0x1]  ;;  %v154_v55 = vld [vmem:[%s1815_s0 + $0x25] sm:$0x1]  ;;  %v27_v56 = vld [vmem:[%s1815_s0 + $0x26] sm:$0x1] }
  0x13   :  { %408 = vst.msk [vmem:[%s1816_s1 + $0xf] sm:$0x1] %vm392_vm0, %v279_v48  ;;  %v282_v57 = vmax.f32 %v26_v54, %v154_v55  ;;  %v155_v58 = vld [vmem:[%s1815_s0 + $0x27] sm:$0x1]  ;;  %v28_v59 = vld [vmem:[%s1815_s0 + $0x28] sm:$0x1] }
  0x14   :  { %v156_v60 = vld [vmem:[%s1815_s0 + $0x29] sm:$0x1]  ;;  %409 = vst.msk [vmem:[%s1816_s1 + $0x10] sm:$0x1] %vm392_vm0, %v280_v52  ;;  %410 = vst.msk [vmem:[%s1816_s1 + $0x11] sm:$0x1] %vm392_vm0, %v281_v53  ;;  %v283_v61 = vmax.f32 %v27_v56, %v155_v58 }
  0x15   :  { %v284_v62 = vmax.f32 %v28_v59, %v156_v60  ;;  %v29_v63 = vld [vmem:[%s1815_s0 + $0x2a] sm:$0x1]  ;;  %v157_v0 = vld [vmem:[%s1815_s0 + $0x2b] sm:$0x1]  ;;  %v30_v1 = vld [vmem:[%s1815_s0 + $0x2c] sm:$0x1] }
  0x16   :  { %411 = vst.msk [vmem:[%s1816_s1 + $0x12] sm:$0x1] %vm392_vm0, %v282_v57  ;;  %v285_v2 = vmax.f32 %v29_v63, %v157_v0  ;;  %v158_v3 = vld [vmem:[%s1815_s0 + $0x2d] sm:$0x1]  ;;  %v31_v4 = vld [vmem:[%s1815_s0 + $0x2e] sm:$0x1] }
  0x17   :  { %v159_v5 = vld [vmem:[%s1815_s0 + $0x2f] sm:$0x1]  ;;  %412 = vst.msk [vmem:[%s1816_s1 + $0x13] sm:$0x1] %vm392_vm0, %v283_v61  ;;  %413 = vst.msk [vmem:[%s1816_s1 + $0x14] sm:$0x1] %vm392_vm0, %v284_v62  ;;  %v286_v6 = vmax.f32 %v30_v1, %v158_v3 }
  0x18   :  { %v287_v7 = vmax.f32 %v31_v4, %v159_v5  ;;  %v32_v8 = vld [vmem:[%s1815_s0 + $0x30] sm:$0x1]  ;;  %v160_v9 = vld [vmem:[%s1815_s0 + $0x31] sm:$0x1]  ;;  %v33_v10 = vld [vmem:[%s1815_s0 + $0x32] sm:$0x1] }
  0x19   :  { %414 = vst.msk [vmem:[%s1816_s1 + $0x15] sm:$0x1] %vm392_vm0, %v285_v2  ;;  %v288_v11 = vmax.f32 %v32_v8, %v160_v9  ;;  %v161_v12 = vld [vmem:[%s1815_s0 + $0x33] sm:$0x1]  ;;  %v34_v13 = vld [vmem:[%s1815_s0 + $0x34] sm:$0x1] }
  0x1a   :  { %v162_v14 = vld [vmem:[%s1815_s0 + $0x35] sm:$0x1]  ;;  %415 = vst.msk [vmem:[%s1816_s1 + $0x16] sm:$0x1] %vm392_vm0, %v286_v6  ;;  %416 = vst.msk [vmem:[%s1816_s1 + $0x17] sm:$0x1] %vm392_vm0, %v287_v7  ;;  %v289_v15 = vmax.f32 %v33_v10, %v161_v12 }
  0x1b   :  { %v290_v16 = vmax.f32 %v34_v13, %v162_v14  ;;  %v35_v17 = vld [vmem:[%s1815_s0 + $0x36] sm:$0x1]  ;;  %v163_v18 = vld [vmem:[%s1815_s0 + $0x37] sm:$0x1]  ;;  %v36_v19 = vld [vmem:[%s1815_s0 + $0x38] sm:$0x1] }
  0x1c   :  { %417 = vst.msk [vmem:[%s1816_s1 + $0x18] sm:$0x1] %vm392_vm0, %v288_v11  ;;  %v291_v20 = vmax.f32 %v35_v17, %v163_v18  ;;  %v164_v21 = vld [vmem:[%s1815_s0 + $0x39] sm:$0x1]  ;;  %v37_v22 = vld [vmem:[%s1815_s0 + $0x3a] sm:$0x1] }
  0x1d   :  { %v165_v23 = vld [vmem:[%s1815_s0 + $0x3b] sm:$0x1]  ;;  %418 = vst.msk [vmem:[%s1816_s1 + $0x19] sm:$0x1] %vm392_vm0, %v289_v15  ;;  %419 = vst.msk [vmem:[%s1816_s1 + $0x1a] sm:$0x1] %vm392_vm0, %v290_v16  ;;  %v292_v24 = vmax.f32 %v36_v19, %v164_v21 }
  0x1e   :  { %v293_v25 = vmax.f32 %v37_v22, %v165_v23  ;;  %v38_v26 = vld [vmem:[%s1815_s0 + $0x3c] sm:$0x1]  ;;  %v166_v27 = vld [vmem:[%s1815_s0 + $0x3d] sm:$0x1]  ;;  %v39_v28 = vld [vmem:[%s1815_s0 + $0x3e] sm:$0x1] }
  0x1f   :  { %420 = vst.msk [vmem:[%s1816_s1 + $0x1b] sm:$0x1] %vm392_vm0, %v291_v20  ;;  %v294_v29 = vmax.f32 %v38_v26, %v166_v27  ;;  %v167_v30 = vld [vmem:[%s1815_s0 + $0x3f] sm:$0x1]  ;;  %v40_v31 = vld [vmem:[%s1815_s0 + $0x40] sm:$0x1] }
  0x20   :  { %v168_v32 = vld [vmem:[%s1815_s0 + $0x41] sm:$0x1]  ;;  %421 = vst.msk [vmem:[%s1816_s1 + $0x1c] sm:$0x1] %vm392_vm0, %v292_v24  ;;  %422 = vst.msk [vmem:[%s1816_s1 + $0x1d] sm:$0x1] %vm392_vm0, %v293_v25  ;;  %v295_v33 = vmax.f32 %v39_v28, %v167_v30 }
  0x21   :  { %v296_v34 = vmax.f32 %v40_v31, %v168_v32  ;;  %v41_v35 = vld [vmem:[%s1815_s0 + $0x42] sm:$0x1]  ;;  %v169_v36 = vld [vmem:[%s1815_s0 + $0x43] sm:$0x1]  ;;  %v42_v37 = vld [vmem:[%s1815_s0 + $0x44] sm:$0x1] }
  0x22   :  { %423 = vst.msk [vmem:[%s1816_s1 + $0x1e] sm:$0x1] %vm392_vm0, %v294_v29  ;;  %v297_v38 = vmax.f32 %v41_v35, %v169_v36  ;;  %v170_v39 = vld [vmem:[%s1815_s0 + $0x45] sm:$0x1]  ;;  %v43_v40 = vld [vmem:[%s1815_s0 + $0x46] sm:$0x1] }
  0x23   :  { %v171_v41 = vld [vmem:[%s1815_s0 + $0x47] sm:$0x1]  ;;  %424 = vst.msk [vmem:[%s1816_s1 + $0x1f] sm:$0x1] %vm392_vm0, %v295_v33  ;;  %425 = vst.msk [vmem:[%s1816_s1 + $0x20] sm:$0x1] %vm392_vm0, %v296_v34  ;;  %v298_v42 = vmax.f32 %v42_v37, %v170_v39 }
  0x24   :  { %v299_v43 = vmax.f32 %v43_v40, %v171_v41  ;;  %v44_v44 = vld [vmem:[%s1815_s0 + $0x48] sm:$0x1]  ;;  %v172_v45 = vld [vmem:[%s1815_s0 + $0x49] sm:$0x1]  ;;  %v45_v46 = vld [vmem:[%s1815_s0 + $0x4a] sm:$0x1] }
  0x25   :  { %426 = vst.msk [vmem:[%s1816_s1 + $0x21] sm:$0x1] %vm392_vm0, %v297_v38  ;;  %v300_v47 = vmax.f32 %v44_v44, %v172_v45  ;;  %v173_v48 = vld [vmem:[%s1815_s0 + $0x4b] sm:$0x1]  ;;  %v46_v49 = vld [vmem:[%s1815_s0 + $0x4c] sm:$0x1] }
  0x26   :  { %v174_v50 = vld [vmem:[%s1815_s0 + $0x4d] sm:$0x1]  ;;  %427 = vst.msk [vmem:[%s1816_s1 + $0x22] sm:$0x1] %vm392_vm0, %v298_v42  ;;  %428 = vst.msk [vmem:[%s1816_s1 + $0x23] sm:$0x1] %vm392_vm0, %v299_v43  ;;  %v301_v51 = vmax.f32 %v45_v46, %v173_v48 }
  0x27   :  { %v302_v52 = vmax.f32 %v46_v49, %v174_v50  ;;  %v47_v53 = vld [vmem:[%s1815_s0 + $0x4e] sm:$0x1]  ;;  %v175_v54 = vld [vmem:[%s1815_s0 + $0x4f] sm:$0x1]  ;;  %v48_v55 = vld [vmem:[%s1815_s0 + $0x50] sm:$0x1] }
  0x28   :  { %429 = vst.msk [vmem:[%s1816_s1 + $0x24] sm:$0x1] %vm392_vm0, %v300_v47  ;;  %v303_v56 = vmax.f32 %v47_v53, %v175_v54  ;;  %v176_v57 = vld [vmem:[%s1815_s0 + $0x51] sm:$0x1]  ;;  %v49_v58 = vld [vmem:[%s1815_s0 + $0x52] sm:$0x1] }
  0x29   :  { %v177_v59 = vld [vmem:[%s1815_s0 + $0x53] sm:$0x1]  ;;  %430 = vst.msk [vmem:[%s1816_s1 + $0x25] sm:$0x1] %vm392_vm0, %v301_v51  ;;  %431 = vst.msk [vmem:[%s1816_s1 + $0x26] sm:$0x1] %vm392_vm0, %v302_v52  ;;  %v304_v60 = vmax.f32 %v48_v55, %v176_v57 }
  0x2a   :  { %v305_v61 = vmax.f32 %v49_v58, %v177_v59  ;;  %v50_v62 = vld [vmem:[%s1815_s0 + $0x54] sm:$0x1]  ;;  %v178_v63 = vld [vmem:[%s1815_s0 + $0x55] sm:$0x1]  ;;  %v51_v0 = vld [vmem:[%s1815_s0 + $0x56] sm:$0x1] }
  0x2b   :  { %432 = vst.msk [vmem:[%s1816_s1 + $0x27] sm:$0x1] %vm392_vm0, %v303_v56  ;;  %v306_v1 = vmax.f32 %v50_v62, %v178_v63  ;;  %v179_v2 = vld [vmem:[%s1815_s0 + $0x57] sm:$0x1]  ;;  %v52_v3 = vld [vmem:[%s1815_s0 + $0x58] sm:$0x1] }
  0x2c   :  { %v180_v4 = vld [vmem:[%s1815_s0 + $0x59] sm:$0x1]  ;;  %433 = vst.msk [vmem:[%s1816_s1 + $0x28] sm:$0x1] %vm392_vm0, %v304_v60  ;;  %434 = vst.msk [vmem:[%s1816_s1 + $0x29] sm:$0x1] %vm392_vm0, %v305_v61  ;;  %v307_v5 = vmax.f32 %v51_v0, %v179_v2 }
  0x2d   :  { %v308_v6 = vmax.f32 %v52_v3, %v180_v4  ;;  %v53_v7 = vld [vmem:[%s1815_s0 + $0x5a] sm:$0x1]  ;;  %v181_v8 = vld [vmem:[%s1815_s0 + $0x5b] sm:$0x1]  ;;  %v54_v9 = vld [vmem:[%s1815_s0 + $0x5c] sm:$0x1] }
  0x2e   :  { %435 = vst.msk [vmem:[%s1816_s1 + $0x2a] sm:$0x1] %vm392_vm0, %v306_v1  ;;  %v309_v10 = vmax.f32 %v53_v7, %v181_v8  ;;  %v182_v11 = vld [vmem:[%s1815_s0 + $0x5d] sm:$0x1]  ;;  %v55_v12 = vld [vmem:[%s1815_s0 + $0x5e] sm:$0x1] }
  0x2f   :  { %v183_v13 = vld [vmem:[%s1815_s0 + $0x5f] sm:$0x1]  ;;  %436 = vst.msk [vmem:[%s1816_s1 + $0x2b] sm:$0x1] %vm392_vm0, %v307_v5  ;;  %437 = vst.msk [vmem:[%s1816_s1 + $0x2c] sm:$0x1] %vm392_vm0, %v308_v6  ;;  %v310_v14 = vmax.f32 %v54_v9, %v182_v11 }
  0x30   :  { %v311_v15 = vmax.f32 %v55_v12, %v183_v13  ;;  %v56_v16 = vld [vmem:[%s1815_s0 + $0x60] sm:$0x1]  ;;  %v184_v17 = vld [vmem:[%s1815_s0 + $0x61] sm:$0x1]  ;;  %v57_v18 = vld [vmem:[%s1815_s0 + $0x62] sm:$0x1] }
  0x31   :  { %438 = vst.msk [vmem:[%s1816_s1 + $0x2d] sm:$0x1] %vm392_vm0, %v309_v10  ;;  %v312_v19 = vmax.f32 %v56_v16, %v184_v17  ;;  %v185_v20 = vld [vmem:[%s1815_s0 + $0x63] sm:$0x1]  ;;  %v58_v21 = vld [vmem:[%s1815_s0 + $0x64] sm:$0x1] }
  0x32   :  { %v186_v22 = vld [vmem:[%s1815_s0 + $0x65] sm:$0x1]  ;;  %439 = vst.msk [vmem:[%s1816_s1 + $0x2e] sm:$0x1] %vm392_vm0, %v310_v14  ;;  %440 = vst.msk [vmem:[%s1816_s1 + $0x2f] sm:$0x1] %vm392_vm0, %v311_v15  ;;  %v313_v23 = vmax.f32 %v57_v18, %v185_v20 }
  0x33   :  { %v314_v24 = vmax.f32 %v58_v21, %v186_v22  ;;  %v59_v25 = vld [vmem:[%s1815_s0 + $0x66] sm:$0x1]  ;;  %v187_v26 = vld [vmem:[%s1815_s0 + $0x67] sm:$0x1]  ;;  %v60_v27 = vld [vmem:[%s1815_s0 + $0x68] sm:$0x1] }
  0x34   :  { %441 = vst.msk [vmem:[%s1816_s1 + $0x30] sm:$0x1] %vm392_vm0, %v312_v19  ;;  %v315_v28 = vmax.f32 %v59_v25, %v187_v26  ;;  %v188_v29 = vld [vmem:[%s1815_s0 + $0x69] sm:$0x1]  ;;  %v61_v30 = vld [vmem:[%s1815_s0 + $0x6a] sm:$0x1] }
  0x35   :  { %v189_v31 = vld [vmem:[%s1815_s0 + $0x6b] sm:$0x1]  ;;  %442 = vst.msk [vmem:[%s1816_s1 + $0x31] sm:$0x1] %vm392_vm0, %v313_v23  ;;  %443 = vst.msk [vmem:[%s1816_s1 + $0x32] sm:$0x1] %vm392_vm0, %v314_v24  ;;  %v316_v32 = vmax.f32 %v60_v27, %v188_v29 }
  0x36   :  { %v317_v33 = vmax.f32 %v61_v30, %v189_v31  ;;  %v62_v34 = vld [vmem:[%s1815_s0 + $0x6c] sm:$0x1]  ;;  %v190_v35 = vld [vmem:[%s1815_s0 + $0x6d] sm:$0x1]  ;;  %v63_v36 = vld [vmem:[%s1815_s0 + $0x6e] sm:$0x1] }
  0x37   :  { %444 = vst.msk [vmem:[%s1816_s1 + $0x33] sm:$0x1] %vm392_vm0, %v315_v28  ;;  %v318_v37 = vmax.f32 %v62_v34, %v190_v35  ;;  %v191_v38 = vld [vmem:[%s1815_s0 + $0x6f] sm:$0x1]  ;;  %v64_v39 = vld [vmem:[%s1815_s0 + $0x70] sm:$0x1] }
  0x38   :  { %v192_v40 = vld [vmem:[%s1815_s0 + $0x71] sm:$0x1]  ;;  %445 = vst.msk [vmem:[%s1816_s1 + $0x34] sm:$0x1] %vm392_vm0, %v316_v32  ;;  %446 = vst.msk [vmem:[%s1816_s1 + $0x35] sm:$0x1] %vm392_vm0, %v317_v33  ;;  %v319_v41 = vmax.f32 %v63_v36, %v191_v38 }
  0x39   :  { %v320_v42 = vmax.f32 %v64_v39, %v192_v40  ;;  %v65_v43 = vld [vmem:[%s1815_s0 + $0x72] sm:$0x1]  ;;  %v193_v44 = vld [vmem:[%s1815_s0 + $0x73] sm:$0x1]  ;;  %v66_v45 = vld [vmem:[%s1815_s0 + $0x74] sm:$0x1] }
  0x3a   :  { %447 = vst.msk [vmem:[%s1816_s1 + $0x36] sm:$0x1] %vm392_vm0, %v318_v37  ;;  %v321_v46 = vmax.f32 %v65_v43, %v193_v44  ;;  %v194_v47 = vld [vmem:[%s1815_s0 + $0x75] sm:$0x1]  ;;  %v67_v48 = vld [vmem:[%s1815_s0 + $0x76] sm:$0x1] }
  0x3b   :  { %v195_v49 = vld [vmem:[%s1815_s0 + $0x77] sm:$0x1]  ;;  %448 = vst.msk [vmem:[%s1816_s1 + $0x37] sm:$0x1] %vm392_vm0, %v319_v41  ;;  %449 = vst.msk [vmem:[%s1816_s1 + $0x38] sm:$0x1] %vm392_vm0, %v320_v42  ;;  %v322_v50 = vmax.f32 %v66_v45, %v194_v47 }
  0x3c   :  { %v323_v51 = vmax.f32 %v67_v48, %v195_v49  ;;  %v68_v52 = vld [vmem:[%s1815_s0 + $0x78] sm:$0x1]  ;;  %v196_v53 = vld [vmem:[%s1815_s0 + $0x79] sm:$0x1]  ;;  %v69_v54 = vld [vmem:[%s1815_s0 + $0x7a] sm:$0x1] }
  0x3d   :  { %450 = vst.msk [vmem:[%s1816_s1 + $0x39] sm:$0x1] %vm392_vm0, %v321_v46  ;;  %v324_v55 = vmax.f32 %v68_v52, %v196_v53  ;;  %v197_v56 = vld [vmem:[%s1815_s0 + $0x7b] sm:$0x1]  ;;  %v70_v57 = vld [vmem:[%s1815_s0 + $0x7c] sm:$0x1] }
  0x3e   :  { %v198_v58 = vld [vmem:[%s1815_s0 + $0x7d] sm:$0x1]  ;;  %451 = vst.msk [vmem:[%s1816_s1 + $0x3a] sm:$0x1] %vm392_vm0, %v322_v50  ;;  %452 = vst.msk [vmem:[%s1816_s1 + $0x3b] sm:$0x1] %vm392_vm0, %v323_v51  ;;  %v325_v59 = vmax.f32 %v69_v54, %v197_v56 }
  0x3f   :  { %v326_v60 = vmax.f32 %v70_v57, %v198_v58  ;;  %v71_v61 = vld [vmem:[%s1815_s0 + $0x7e] sm:$0x1]  ;;  %v199_v62 = vld [vmem:[%s1815_s0 + $0x7f] sm:$0x1]  ;;  %v72_v63 = vld [vmem:[%s1815_s0 + $0x80] sm:$0x1] }
  0x40   :  { %453 = vst.msk [vmem:[%s1816_s1 + $0x3c] sm:$0x1] %vm392_vm0, %v324_v55  ;;  %v327_v0 = vmax.f32 %v71_v61, %v199_v62  ;;  %v200_v1 = vld [vmem:[%s1815_s0 + $0x81] sm:$0x1]  ;;  %v73_v2 = vld [vmem:[%s1815_s0 + $0x82] sm:$0x1] }
  0x41   :  { %v201_v3 = vld [vmem:[%s1815_s0 + $0x83] sm:$0x1]  ;;  %454 = vst.msk [vmem:[%s1816_s1 + $0x3d] sm:$0x1] %vm392_vm0, %v325_v59  ;;  %455 = vst.msk [vmem:[%s1816_s1 + $0x3e] sm:$0x1] %vm392_vm0, %v326_v60  ;;  %v328_v4 = vmax.f32 %v72_v63, %v200_v1 }
  0x42   :  { %v329_v5 = vmax.f32 %v73_v2, %v201_v3  ;;  %v74_v6 = vld [vmem:[%s1815_s0 + $0x84] sm:$0x1]  ;;  %v202_v7 = vld [vmem:[%s1815_s0 + $0x85] sm:$0x1]  ;;  %v75_v8 = vld [vmem:[%s1815_s0 + $0x86] sm:$0x1] }
  0x43   :  { %456 = vst.msk [vmem:[%s1816_s1 + $0x3f] sm:$0x1] %vm392_vm0, %v327_v0  ;;  %v330_v9 = vmax.f32 %v74_v6, %v202_v7  ;;  %v203_v10 = vld [vmem:[%s1815_s0 + $0x87] sm:$0x1]  ;;  %v76_v11 = vld [vmem:[%s1815_s0 + $0x88] sm:$0x1] }
  0x44   :  { %v204_v12 = vld [vmem:[%s1815_s0 + $0x89] sm:$0x1]  ;;  %457 = vst.msk [vmem:[%s1816_s1 + $0x40] sm:$0x1] %vm392_vm0, %v328_v4  ;;  %458 = vst.msk [vmem:[%s1816_s1 + $0x41] sm:$0x1] %vm392_vm0, %v329_v5  ;;  %v331_v13 = vmax.f32 %v75_v8, %v203_v10 }
  0x45   :  { %v332_v14 = vmax.f32 %v76_v11, %v204_v12  ;;  %v77_v15 = vld [vmem:[%s1815_s0 + $0x8a] sm:$0x1]  ;;  %v205_v16 = vld [vmem:[%s1815_s0 + $0x8b] sm:$0x1]  ;;  %v78_v17 = vld [vmem:[%s1815_s0 + $0x8c] sm:$0x1] }
  0x46   :  { %459 = vst.msk [vmem:[%s1816_s1 + $0x42] sm:$0x1] %vm392_vm0, %v330_v9  ;;  %v333_v18 = vmax.f32 %v77_v15, %v205_v16  ;;  %v206_v19 = vld [vmem:[%s1815_s0 + $0x8d] sm:$0x1]  ;;  %v79_v20 = vld [vmem:[%s1815_s0 + $0x8e] sm:$0x1] }
  0x47   :  { %v207_v21 = vld [vmem:[%s1815_s0 + $0x8f] sm:$0x1]  ;;  %460 = vst.msk [vmem:[%s1816_s1 + $0x43] sm:$0x1] %vm392_vm0, %v331_v13  ;;  %461 = vst.msk [vmem:[%s1816_s1 + $0x44] sm:$0x1] %vm392_vm0, %v332_v14  ;;  %v334_v22 = vmax.f32 %v78_v17, %v206_v19 }
  0x48   :  { %v335_v23 = vmax.f32 %v79_v20, %v207_v21  ;;  %v80_v24 = vld [vmem:[%s1815_s0 + $0x90] sm:$0x1]  ;;  %v208_v25 = vld [vmem:[%s1815_s0 + $0x91] sm:$0x1]  ;;  %v81_v26 = vld [vmem:[%s1815_s0 + $0x92] sm:$0x1] }
  0x49   :  { %462 = vst.msk [vmem:[%s1816_s1 + $0x45] sm:$0x1] %vm392_vm0, %v333_v18  ;;  %v336_v27 = vmax.f32 %v80_v24, %v208_v25  ;;  %v209_v28 = vld [vmem:[%s1815_s0 + $0x93] sm:$0x1]  ;;  %v82_v29 = vld [vmem:[%s1815_s0 + $0x94] sm:$0x1] }
  0x4a   :  { %v210_v30 = vld [vmem:[%s1815_s0 + $0x95] sm:$0x1]  ;;  %463 = vst.msk [vmem:[%s1816_s1 + $0x46] sm:$0x1] %vm392_vm0, %v334_v22  ;;  %464 = vst.msk [vmem:[%s1816_s1 + $0x47] sm:$0x1] %vm392_vm0, %v335_v23  ;;  %v337_v31 = vmax.f32 %v81_v26, %v209_v28 }
  0x4b   :  { %v338_v32 = vmax.f32 %v82_v29, %v210_v30  ;;  %v83_v33 = vld [vmem:[%s1815_s0 + $0x96] sm:$0x1]  ;;  %v211_v34 = vld [vmem:[%s1815_s0 + $0x97] sm:$0x1]  ;;  %v84_v35 = vld [vmem:[%s1815_s0 + $0x98] sm:$0x1] }
  0x4c   :  { %465 = vst.msk [vmem:[%s1816_s1 + $0x48] sm:$0x1] %vm392_vm0, %v336_v27  ;;  %v339_v36 = vmax.f32 %v83_v33, %v211_v34  ;;  %v212_v37 = vld [vmem:[%s1815_s0 + $0x99] sm:$0x1]  ;;  %v85_v38 = vld [vmem:[%s1815_s0 + $0x9a] sm:$0x1] }
  0x4d   :  { %v213_v39 = vld [vmem:[%s1815_s0 + $0x9b] sm:$0x1]  ;;  %466 = vst.msk [vmem:[%s1816_s1 + $0x49] sm:$0x1] %vm392_vm0, %v337_v31  ;;  %467 = vst.msk [vmem:[%s1816_s1 + $0x4a] sm:$0x1] %vm392_vm0, %v338_v32  ;;  %v340_v40 = vmax.f32 %v84_v35, %v212_v37 }
  0x4e   :  { %v341_v41 = vmax.f32 %v85_v38, %v213_v39  ;;  %v86_v42 = vld [vmem:[%s1815_s0 + $0x9c] sm:$0x1]  ;;  %v214_v43 = vld [vmem:[%s1815_s0 + $0x9d] sm:$0x1]  ;;  %v87_v44 = vld [vmem:[%s1815_s0 + $0x9e] sm:$0x1] }
  0x4f   :  { %468 = vst.msk [vmem:[%s1816_s1 + $0x4b] sm:$0x1] %vm392_vm0, %v339_v36  ;;  %v342_v45 = vmax.f32 %v86_v42, %v214_v43  ;;  %v215_v46 = vld [vmem:[%s1815_s0 + $0x9f] sm:$0x1]  ;;  %v88_v47 = vld [vmem:[%s1815_s0 + $0xa0] sm:$0x1] }
  0x50   :  { %v216_v48 = vld [vmem:[%s1815_s0 + $0xa1] sm:$0x1]  ;;  %469 = vst.msk [vmem:[%s1816_s1 + $0x4c] sm:$0x1] %vm392_vm0, %v340_v40  ;;  %470 = vst.msk [vmem:[%s1816_s1 + $0x4d] sm:$0x1] %vm392_vm0, %v341_v41  ;;  %v343_v49 = vmax.f32 %v87_v44, %v215_v46 }
  0x51   :  { %v344_v50 = vmax.f32 %v88_v47, %v216_v48  ;;  %v89_v51 = vld [vmem:[%s1815_s0 + $0xa2] sm:$0x1]  ;;  %v217_v52 = vld [vmem:[%s1815_s0 + $0xa3] sm:$0x1]  ;;  %v90_v53 = vld [vmem:[%s1815_s0 + $0xa4] sm:$0x1] }
  0x52   :  { %471 = vst.msk [vmem:[%s1816_s1 + $0x4e] sm:$0x1] %vm392_vm0, %v342_v45  ;;  %v345_v54 = vmax.f32 %v89_v51, %v217_v52  ;;  %v218_v55 = vld [vmem:[%s1815_s0 + $0xa5] sm:$0x1]  ;;  %v91_v56 = vld [vmem:[%s1815_s0 + $0xa6] sm:$0x1] }
  0x53   :  { %v219_v57 = vld [vmem:[%s1815_s0 + $0xa7] sm:$0x1]  ;;  %472 = vst.msk [vmem:[%s1816_s1 + $0x4f] sm:$0x1] %vm392_vm0, %v343_v49  ;;  %473 = vst.msk [vmem:[%s1816_s1 + $0x50] sm:$0x1] %vm392_vm0, %v344_v50  ;;  %v346_v58 = vmax.f32 %v90_v53, %v218_v55 }
  0x54   :  { %v347_v59 = vmax.f32 %v91_v56, %v219_v57  ;;  %v92_v60 = vld [vmem:[%s1815_s0 + $0xa8] sm:$0x1]  ;;  %v220_v61 = vld [vmem:[%s1815_s0 + $0xa9] sm:$0x1]  ;;  %v93_v62 = vld [vmem:[%s1815_s0 + $0xaa] sm:$0x1] }
  0x55   :  { %474 = vst.msk [vmem:[%s1816_s1 + $0x51] sm:$0x1] %vm392_vm0, %v345_v54  ;;  %v348_v63 = vmax.f32 %v92_v60, %v220_v61  ;;  %v221_v0 = vld [vmem:[%s1815_s0 + $0xab] sm:$0x1]  ;;  %v94_v1 = vld [vmem:[%s1815_s0 + $0xac] sm:$0x1] }
  0x56   :  { %v222_v2 = vld [vmem:[%s1815_s0 + $0xad] sm:$0x1]  ;;  %475 = vst.msk [vmem:[%s1816_s1 + $0x52] sm:$0x1] %vm392_vm0, %v346_v58  ;;  %476 = vst.msk [vmem:[%s1816_s1 + $0x53] sm:$0x1] %vm392_vm0, %v347_v59  ;;  %v349_v3 = vmax.f32 %v93_v62, %v221_v0 }
  0x57   :  { %v350_v4 = vmax.f32 %v94_v1, %v222_v2  ;;  %v95_v5 = vld [vmem:[%s1815_s0 + $0xae] sm:$0x1]  ;;  %v223_v6 = vld [vmem:[%s1815_s0 + $0xaf] sm:$0x1]  ;;  %v96_v7 = vld [vmem:[%s1815_s0 + $0xb0] sm:$0x1] }
  0x58   :  { %477 = vst.msk [vmem:[%s1816_s1 + $0x54] sm:$0x1] %vm392_vm0, %v348_v63  ;;  %v351_v8 = vmax.f32 %v95_v5, %v223_v6  ;;  %v224_v9 = vld [vmem:[%s1815_s0 + $0xb1] sm:$0x1]  ;;  %v97_v10 = vld [vmem:[%s1815_s0 + $0xb2] sm:$0x1] }
  0x59   :  { %v225_v11 = vld [vmem:[%s1815_s0 + $0xb3] sm:$0x1]  ;;  %478 = vst.msk [vmem:[%s1816_s1 + $0x55] sm:$0x1] %vm392_vm0, %v349_v3  ;;  %479 = vst.msk [vmem:[%s1816_s1 + $0x56] sm:$0x1] %vm392_vm0, %v350_v4  ;;  %v352_v12 = vmax.f32 %v96_v7, %v224_v9 }
  0x5a   :  { %v353_v13 = vmax.f32 %v97_v10, %v225_v11  ;;  %v98_v14 = vld [vmem:[%s1815_s0 + $0xb4] sm:$0x1]  ;;  %v226_v15 = vld [vmem:[%s1815_s0 + $0xb5] sm:$0x1]  ;;  %v99_v16 = vld [vmem:[%s1815_s0 + $0xb6] sm:$0x1] }
  0x5b   :  { %480 = vst.msk [vmem:[%s1816_s1 + $0x57] sm:$0x1] %vm392_vm0, %v351_v8  ;;  %v354_v17 = vmax.f32 %v98_v14, %v226_v15  ;;  %v227_v18 = vld [vmem:[%s1815_s0 + $0xb7] sm:$0x1]  ;;  %v100_v19 = vld [vmem:[%s1815_s0 + $0xb8] sm:$0x1] }
  0x5c   :  { %v228_v20 = vld [vmem:[%s1815_s0 + $0xb9] sm:$0x1]  ;;  %481 = vst.msk [vmem:[%s1816_s1 + $0x58] sm:$0x1] %vm392_vm0, %v352_v12  ;;  %482 = vst.msk [vmem:[%s1816_s1 + $0x59] sm:$0x1] %vm392_vm0, %v353_v13  ;;  %v355_v21 = vmax.f32 %v99_v16, %v227_v18 }
  0x5d   :  { %v356_v22 = vmax.f32 %v100_v19, %v228_v20  ;;  %v101_v23 = vld [vmem:[%s1815_s0 + $0xba] sm:$0x1]  ;;  %v229_v24 = vld [vmem:[%s1815_s0 + $0xbb] sm:$0x1]  ;;  %v102_v25 = vld [vmem:[%s1815_s0 + $0xbc] sm:$0x1] }
  0x5e   :  { %483 = vst.msk [vmem:[%s1816_s1 + $0x5a] sm:$0x1] %vm392_vm0, %v354_v17  ;;  %v357_v26 = vmax.f32 %v101_v23, %v229_v24  ;;  %v230_v27 = vld [vmem:[%s1815_s0 + $0xbd] sm:$0x1]  ;;  %v103_v28 = vld [vmem:[%s1815_s0 + $0xbe] sm:$0x1] }
  0x5f   :  { %v231_v29 = vld [vmem:[%s1815_s0 + $0xbf] sm:$0x1]  ;;  %484 = vst.msk [vmem:[%s1816_s1 + $0x5b] sm:$0x1] %vm392_vm0, %v355_v21  ;;  %485 = vst.msk [vmem:[%s1816_s1 + $0x5c] sm:$0x1] %vm392_vm0, %v356_v22  ;;  %v358_v30 = vmax.f32 %v102_v25, %v230_v27 }
  0x60   :  { %v359_v31 = vmax.f32 %v103_v28, %v231_v29  ;;  %v104_v32 = vld [vmem:[%s1815_s0 + $0xc0] sm:$0x1]  ;;  %v232_v33 = vld [vmem:[%s1815_s0 + $0xc1] sm:$0x1]  ;;  %v105_v34 = vld [vmem:[%s1815_s0 + $0xc2] sm:$0x1] }
  0x61   :  { %486 = vst.msk [vmem:[%s1816_s1 + $0x5d] sm:$0x1] %vm392_vm0, %v357_v26  ;;  %v360_v35 = vmax.f32 %v104_v32, %v232_v33  ;;  %v233_v36 = vld [vmem:[%s1815_s0 + $0xc3] sm:$0x1]  ;;  %v106_v37 = vld [vmem:[%s1815_s0 + $0xc4] sm:$0x1] }
  0x62   :  { %v234_v38 = vld [vmem:[%s1815_s0 + $0xc5] sm:$0x1]  ;;  %487 = vst.msk [vmem:[%s1816_s1 + $0x5e] sm:$0x1] %vm392_vm0, %v358_v30  ;;  %488 = vst.msk [vmem:[%s1816_s1 + $0x5f] sm:$0x1] %vm392_vm0, %v359_v31  ;;  %v361_v39 = vmax.f32 %v105_v34, %v233_v36 }
  0x63   :  { %v362_v40 = vmax.f32 %v106_v37, %v234_v38  ;;  %v107_v41 = vld [vmem:[%s1815_s0 + $0xc6] sm:$0x1]  ;;  %v235_v42 = vld [vmem:[%s1815_s0 + $0xc7] sm:$0x1]  ;;  %v108_v43 = vld [vmem:[%s1815_s0 + $0xc8] sm:$0x1] }
  0x64   :  { %489 = vst.msk [vmem:[%s1816_s1 + $0x60] sm:$0x1] %vm392_vm0, %v360_v35  ;;  %v363_v44 = vmax.f32 %v107_v41, %v235_v42  ;;  %v236_v45 = vld [vmem:[%s1815_s0 + $0xc9] sm:$0x1]  ;;  %v109_v46 = vld [vmem:[%s1815_s0 + $0xca] sm:$0x1] }
  0x65   :  { %v237_v47 = vld [vmem:[%s1815_s0 + $0xcb] sm:$0x1]  ;;  %490 = vst.msk [vmem:[%s1816_s1 + $0x61] sm:$0x1] %vm392_vm0, %v361_v39  ;;  %491 = vst.msk [vmem:[%s1816_s1 + $0x62] sm:$0x1] %vm392_vm0, %v362_v40  ;;  %v364_v48 = vmax.f32 %v108_v43, %v236_v45 }
  0x66   :  { %v365_v49 = vmax.f32 %v109_v46, %v237_v47  ;;  %v110_v50 = vld [vmem:[%s1815_s0 + $0xcc] sm:$0x1]  ;;  %v238_v51 = vld [vmem:[%s1815_s0 + $0xcd] sm:$0x1]  ;;  %v111_v52 = vld [vmem:[%s1815_s0 + $0xce] sm:$0x1] }
  0x67   :  { %492 = vst.msk [vmem:[%s1816_s1 + $0x63] sm:$0x1] %vm392_vm0, %v363_v44  ;;  %v366_v53 = vmax.f32 %v110_v50, %v238_v51  ;;  %v239_v54 = vld [vmem:[%s1815_s0 + $0xcf] sm:$0x1]  ;;  %v112_v55 = vld [vmem:[%s1815_s0 + $0xd0] sm:$0x1] }
  0x68   :  { %v240_v56 = vld [vmem:[%s1815_s0 + $0xd1] sm:$0x1]  ;;  %493 = vst.msk [vmem:[%s1816_s1 + $0x64] sm:$0x1] %vm392_vm0, %v364_v48  ;;  %494 = vst.msk [vmem:[%s1816_s1 + $0x65] sm:$0x1] %vm392_vm0, %v365_v49  ;;  %v367_v57 = vmax.f32 %v111_v52, %v239_v54 }
  0x69   :  { %v368_v58 = vmax.f32 %v112_v55, %v240_v56  ;;  %v113_v59 = vld [vmem:[%s1815_s0 + $0xd2] sm:$0x1]  ;;  %v241_v60 = vld [vmem:[%s1815_s0 + $0xd3] sm:$0x1]  ;;  %v114_v61 = vld [vmem:[%s1815_s0 + $0xd4] sm:$0x1] }
  0x6a   :  { %495 = vst.msk [vmem:[%s1816_s1 + $0x66] sm:$0x1] %vm392_vm0, %v366_v53  ;;  %v369_v62 = vmax.f32 %v113_v59, %v241_v60  ;;  %v242_v63 = vld [vmem:[%s1815_s0 + $0xd5] sm:$0x1]  ;;  %v115_v0 = vld [vmem:[%s1815_s0 + $0xd6] sm:$0x1] }
  0x6b   :  { %v243_v1 = vld [vmem:[%s1815_s0 + $0xd7] sm:$0x1]  ;;  %496 = vst.msk [vmem:[%s1816_s1 + $0x67] sm:$0x1] %vm392_vm0, %v367_v57  ;;  %497 = vst.msk [vmem:[%s1816_s1 + $0x68] sm:$0x1] %vm392_vm0, %v368_v58  ;;  %v370_v2 = vmax.f32 %v114_v61, %v242_v63 }
  0x6c   :  { %v371_v3 = vmax.f32 %v115_v0, %v243_v1  ;;  %v116_v4 = vld [vmem:[%s1815_s0 + $0xd8] sm:$0x1]  ;;  %v244_v5 = vld [vmem:[%s1815_s0 + $0xd9] sm:$0x1]  ;;  %v117_v6 = vld [vmem:[%s1815_s0 + $0xda] sm:$0x1] }
  0x6d   :  { %498 = vst.msk [vmem:[%s1816_s1 + $0x69] sm:$0x1] %vm392_vm0, %v369_v62  ;;  %v372_v7 = vmax.f32 %v116_v4, %v244_v5  ;;  %v245_v8 = vld [vmem:[%s1815_s0 + $0xdb] sm:$0x1]  ;;  %v118_v9 = vld [vmem:[%s1815_s0 + $0xdc] sm:$0x1] }
  0x6e   :  { %v246_v10 = vld [vmem:[%s1815_s0 + $0xdd] sm:$0x1]  ;;  %499 = vst.msk [vmem:[%s1816_s1 + $0x6a] sm:$0x1] %vm392_vm0, %v370_v2  ;;  %500 = vst.msk [vmem:[%s1816_s1 + $0x6b] sm:$0x1] %vm392_vm0, %v371_v3  ;;  %v373_v11 = vmax.f32 %v117_v6, %v245_v8 }
  0x6f   :  { %v374_v12 = vmax.f32 %v118_v9, %v246_v10  ;;  %v119_v13 = vld [vmem:[%s1815_s0 + $0xde] sm:$0x1]  ;;  %v247_v14 = vld [vmem:[%s1815_s0 + $0xdf] sm:$0x1]  ;;  %v120_v15 = vld [vmem:[%s1815_s0 + $0xe0] sm:$0x1] }
  0x70   :  { %501 = vst.msk [vmem:[%s1816_s1 + $0x6c] sm:$0x1] %vm392_vm0, %v372_v7  ;;  %v375_v16 = vmax.f32 %v119_v13, %v247_v14  ;;  %v248_v17 = vld [vmem:[%s1815_s0 + $0xe1] sm:$0x1]  ;;  %v121_v18 = vld [vmem:[%s1815_s0 + $0xe2] sm:$0x1] }
  0x71   :  { %v249_v19 = vld [vmem:[%s1815_s0 + $0xe3] sm:$0x1]  ;;  %502 = vst.msk [vmem:[%s1816_s1 + $0x6d] sm:$0x1] %vm392_vm0, %v373_v11  ;;  %503 = vst.msk [vmem:[%s1816_s1 + $0x6e] sm:$0x1] %vm392_vm0, %v374_v12  ;;  %v376_v20 = vmax.f32 %v120_v15, %v248_v17 }
  0x72   :  { %v377_v21 = vmax.f32 %v121_v18, %v249_v19  ;;  %v122_v22 = vld [vmem:[%s1815_s0 + $0xe4] sm:$0x1]  ;;  %v250_v23 = vld [vmem:[%s1815_s0 + $0xe5] sm:$0x1]  ;;  %v123_v24 = vld [vmem:[%s1815_s0 + $0xe6] sm:$0x1] }
  0x73   :  { %504 = vst.msk [vmem:[%s1816_s1 + $0x6f] sm:$0x1] %vm392_vm0, %v375_v16  ;;  %v378_v25 = vmax.f32 %v122_v22, %v250_v23  ;;  %v251_v26 = vld [vmem:[%s1815_s0 + $0xe7] sm:$0x1]  ;;  %v124_v27 = vld [vmem:[%s1815_s0 + $0xe8] sm:$0x1] }
  0x74   :  { %v252_v28 = vld [vmem:[%s1815_s0 + $0xe9] sm:$0x1]  ;;  %505 = vst.msk [vmem:[%s1816_s1 + $0x70] sm:$0x1] %vm392_vm0, %v376_v20  ;;  %506 = vst.msk [vmem:[%s1816_s1 + $0x71] sm:$0x1] %vm392_vm0, %v377_v21  ;;  %v379_v29 = vmax.f32 %v123_v24, %v251_v26 }
  0x75   :  { %v380_v30 = vmax.f32 %v124_v27, %v252_v28  ;;  %v125_v31 = vld [vmem:[%s1815_s0 + $0xea] sm:$0x1]  ;;  %v253_v32 = vld [vmem:[%s1815_s0 + $0xeb] sm:$0x1]  ;;  %v126_v33 = vld [vmem:[%s1815_s0 + $0xec] sm:$0x1] }
  0x76   :  { %507 = vst.msk [vmem:[%s1816_s1 + $0x72] sm:$0x1] %vm392_vm0, %v378_v25  ;;  %v381_v34 = vmax.f32 %v125_v31, %v253_v32  ;;  %v254_v35 = vld [vmem:[%s1815_s0 + $0xed] sm:$0x1]  ;;  %v127_v36 = vld [vmem:[%s1815_s0 + $0xee] sm:$0x1] }
  0x77   :  { %v255_v37 = vld [vmem:[%s1815_s0 + $0xef] sm:$0x1]  ;;  %508 = vst.msk [vmem:[%s1816_s1 + $0x73] sm:$0x1] %vm392_vm0, %v379_v29  ;;  %509 = vst.msk [vmem:[%s1816_s1 + $0x74] sm:$0x1] %vm392_vm0, %v380_v30  ;;  %v382_v38 = vmax.f32 %v126_v33, %v254_v35 }
  0x78   :  { %v383_v39 = vmax.f32 %v127_v36, %v255_v37  ;;  %v128_v40 = vld [vmem:[%s1815_s0 + $0xf0] sm:$0x1]  ;;  %v256_v41 = vld [vmem:[%s1815_s0 + $0xf1] sm:$0x1]  ;;  %v129_v42 = vld [vmem:[%s1815_s0 + $0xf2] sm:$0x1] }
  0x79   :  { %510 = vst.msk [vmem:[%s1816_s1 + $0x75] sm:$0x1] %vm392_vm0, %v381_v34  ;;  %v384_v43 = vmax.f32 %v128_v40, %v256_v41  ;;  %v257_v44 = vld [vmem:[%s1815_s0 + $0xf3] sm:$0x1]  ;;  %v130_v45 = vld [vmem:[%s1815_s0 + $0xf4] sm:$0x1] }
  0x7a   :  { %v258_v46 = vld [vmem:[%s1815_s0 + $0xf5] sm:$0x1]  ;;  %511 = vst.msk [vmem:[%s1816_s1 + $0x76] sm:$0x1] %vm392_vm0, %v382_v38  ;;  %512 = vst.msk [vmem:[%s1816_s1 + $0x77] sm:$0x1] %vm392_vm0, %v383_v39  ;;  %v385_v47 = vmax.f32 %v129_v42, %v257_v44 }
  0x7b   :  { %v386_v48 = vmax.f32 %v130_v45, %v258_v46  ;;  %v131_v49 = vld [vmem:[%s1815_s0 + $0xf6] sm:$0x1]  ;;  %v259_v50 = vld [vmem:[%s1815_s0 + $0xf7] sm:$0x1]  ;;  %v132_v51 = vld [vmem:[%s1815_s0 + $0xf8] sm:$0x1] }
  0x7c   :  { %513 = vst.msk [vmem:[%s1816_s1 + $0x78] sm:$0x1] %vm392_vm0, %v384_v43  ;;  %v387_v52 = vmax.f32 %v131_v49, %v259_v50  ;;  %v260_v53 = vld [vmem:[%s1815_s0 + $0xf9] sm:$0x1]  ;;  %v133_v54 = vld [vmem:[%s1815_s0 + $0xfa] sm:$0x1] }
  0x7d   :  { %v261_v55 = vld [vmem:[%s1815_s0 + $0xfb] sm:$0x1]  ;;  %514 = vst.msk [vmem:[%s1816_s1 + $0x79] sm:$0x1] %vm392_vm0, %v385_v47  ;;  %515 = vst.msk [vmem:[%s1816_s1 + $0x7a] sm:$0x1] %vm392_vm0, %v386_v48  ;;  %v388_v56 = vmax.f32 %v132_v51, %v260_v53 }
  0x7e   :  { %v389_v57 = vmax.f32 %v133_v54, %v261_v55  ;;  %v134_v58 = vld [vmem:[%s1815_s0 + $0xfc] sm:$0x1]  ;;  %v262_v59 = vld [vmem:[%s1815_s0 + $0xfd] sm:$0x1]  ;;  %v135_v60 = vld [vmem:[%s1815_s0 + $0xfe] sm:$0x1] }
  0x7f   :  { %516 = vst.msk [vmem:[%s1816_s1 + $0x7b] sm:$0x1] %vm392_vm0, %v387_v52  ;;  %v390_v61 = vmax.f32 %v134_v58, %v262_v59  ;;  %v263_v62 = vld [vmem:[%s1815_s0 + $0xff] sm:$0x1]  ;;  %517 = vst.msk [vmem:[%s1816_s1 + $0x7c] sm:$0x1] %vm392_vm0, %v388_v56 }
  0x80   :  { %518 = vst.msk [vmem:[%s1816_s1 + $0x7d] sm:$0x1] %vm392_vm0, %v389_v57  ;;  %v391_v63 = vmax.f32 %v135_v60, %v263_v62 }
  0x81   :  { %519 = vst.msk [vmem:[%s1816_s1 + $0x7e] sm:$0x1] %vm392_vm0, %v390_v61 }
  0x82   :  { %520 = vst.msk [vmem:[%s1816_s1 + $0x7f] sm:$0x1] %vm392_vm0, %v391_v63 }

// kernel: down3d_forward.9
= control target key start
LH: loop header
LB: loop body
LE: loop exit
PB: predicated region body
PF: predicated region fallthrough
CT: control target
= control target key end

     0   :  { %s2253_s6 = smov 0   ;;  %s4322_s0 = inlined_call_operand.vmem [shape: f32[1024,2,4], index: 0, kind: input, shape index: {}]   ;;  %s4323_s1 = inlined_call_operand.vmem [shape: f32[1024,1,4], index: 1, kind: output, shape index: {}]  }
   0x1 LB: > { %s2217_s7 = sadd.s32 4294967295, %s2241_s6   ;;  %p2221_p0 = scmp.ge.s32.totalorder %s2241_s6, 1  ;;  %s2241_s6 = sphi %s2253_s6, %s11_s6  }
   0x2   : > { %p88_p1 = scmp.lt.s32.totalorder %s2241_s6, 3 }
   0x4   : > { %p89_p2 = pnand %p2221_p0, %p88_p1 }
   0x5   : > { %s2222_s8 = sshll.u32 (!%p89_p2), %s2217_s7, 9  ;;  %vm1654_vm0 = vcmask (!%p89_p2), 24576  }
   0x6   : > { %92 = sbr.rel (%p89_p2) target bundleno = 530 (0x212), region = 24  ;;  %p108_p3 = scmp.lt.s32.totalorder (!%p89_p2), %s2222_s8, 1023 }
   0xd   : > { %s4325_s8 = smov (!%p108_p3, %s2222_s8), 1023 }
   0xe   : > { %s2223_s9 = sshll.u32 %s4325_s8, 1  ;;  %s2269_s15 = scalar_lea.vmem %s4323_s1, %s4325_s8 }
   0xf   : > { %s2264_s12 = scalar_lea.vmem %s4322_s0, %s2223_s9 }
  0x10   : > { %v118_v0 = vld [vmem:[%s2264_s12] sm:$0x1]  ;;  %v630_v1 = vld [vmem:[%s2264_s12 + $0x1] sm:$0x1]  ;;  %v119_v2 = vld [vmem:[%s2264_s12 + $0x2] sm:$0x1] }
  0x11   : > { %v1142_v3 = vmax.f32 %v118_v0, %v630_v1  ;;  %v631_v4 = vld [vmem:[%s2264_s12 + $0x3] sm:$0x1]  ;;  %v120_v5 = vld [vmem:[%s2264_s12 + $0x4] sm:$0x1]  ;;  %v632_v6 = vld [vmem:[%s2264_s12 + $0x5] sm:$0x1] }
  0x12   : > { %v1143_v7 = vmax.f32 %v119_v2, %v631_v4  ;;  %v1144_v8 = vmax.f32 %v120_v5, %v632_v6  ;;  %v121_v9 = vld [vmem:[%s2264_s12 + $0x6] sm:$0x1]  ;;  %v633_v10 = vld [vmem:[%s2264_s12 + $0x7] sm:$0x1]  ;;  %v122_v11 = vld [vmem:[%s2264_s12 + $0x8] sm:$0x1] }
  0x13   : > { %1655 = vst.msk [vmem:[%s2269_s15] sm:$0x1] %vm1654_vm0, %v1142_v3  ;;  %v1145_v12 = vmax.f32 %v121_v9, %v633_v10  ;;  %v634_v13 = vld [vmem:[%s2264_s12 + $0x9] sm:$0x1]  ;;  %v123_v14 = vld [vmem:[%s2264_s12 + $0xa] sm:$0x1] }
  0x14   : > { %v635_v15 = vld [vmem:[%s2264_s12 + $0xb] sm:$0x1]  ;;  %1656 = vst.msk [vmem:[%s2269_s15 + $0x1] sm:$0x1] %vm1654_vm0, %v1143_v7  ;;  %1657 = vst.msk [vmem:[%s2269_s15 + $0x2] sm:$0x1] %vm1654_vm0, %v1144_v8  ;;  %v1146_v16 = vmax.f32 %v122_v11, %v634_v13 }
  0x15   : > { %v1147_v17 = vmax.f32 %v123_v14, %v635_v15  ;;  %v124_v18 = vld [vmem:[%s2264_s12 + $0xc] sm:$0x1]  ;;  %v636_v19 = vld [vmem:[%s2264_s12 + $0xd] sm:$0x1]  ;;  %v125_v20 = vld [vmem:[%s2264_s12 + $0xe] sm:$0x1] }
  0x16   : > { %1658 = vst.msk [vmem:[%s2269_s15 + $0x3] sm:$0x1] %vm1654_vm0, %v1145_v12  ;;  %v1148_v21 = vmax.f32 %v124_v18, %v636_v19  ;;  %v637_v22 = vld [vmem:[%s2264_s12 + $0xf] sm:$0x1]  ;;  %v126_v23 = vld [vmem:[%s2264_s12 + $0x10] sm:$0x1] }
  0x17   : > { %v638_v24 = vld [vmem:[%s2264_s12 + $0x11] sm:$0x1]  ;;  %1659 = vst.msk [vmem:[%s2269_s15 + $0x4] sm:$0x1] %vm1654_vm0, %v1146_v16  ;;  %1660 = vst.msk [vmem:[%s2269_s15 + $0x5] sm:$0x1] %vm1654_vm0, %v1147_v17  ;;  %v1149_v25 = vmax.f32 %v125_v20, %v637_v22 }
  0x18   : > { %v1150_v26 = vmax.f32 %v126_v23, %v638_v24  ;;  %v127_v27 = vld [vmem:[%s2264_s12 + $0x12] sm:$0x1]  ;;  %v639_v28 = vld [vmem:[%s2264_s12 + $0x13] sm:$0x1]  ;;  %v128_v29 = vld [vmem:[%s2264_s12 + $0x14] sm:$0x1] }
  0x19   : > { %1661 = vst.msk [vmem:[%s2269_s15 + $0x6] sm:$0x1] %vm1654_vm0, %v1148_v21  ;;  %v1151_v30 = vmax.f32 %v127_v27, %v639_v28  ;;  %v640_v31 = vld [vmem:[%s2264_s12 + $0x15] sm:$0x1]  ;;  %v129_v32 = vld [vmem:[%s2264_s12 + $0x16] sm:$0x1] }
  0x1a   : > { %v641_v33 = vld [vmem:[%s2264_s12 + $0x17] sm:$0x1]  ;;  %1662 = vst.msk [vmem:[%s2269_s15 + $0x7] sm:$0x1] %vm1654_vm0, %v1149_v25  ;;  %1663 = vst.msk [vmem:[%s2269_s15 + $0x8] sm:$0x1] %vm1654_vm0, %v1150_v26  ;;  %v1152_v34 = vmax.f32 %v128_v29, %v640_v31 }
  0x1b   : > { %v1153_v35 = vmax.f32 %v129_v32, %v641_v33  ;;  %v130_v36 = vld [vmem:[%s2264_s12 + $0x18] sm:$0x1]  ;;  %v642_v37 = vld [vmem:[%s2264_s12 + $0x19] sm:$0x1]  ;;  %v131_v38 = vld [vmem:[%s2264_s12 + $0x1a] sm:$0x1] }
  0x1c   : > { %1664 = vst.msk [vmem:[%s2269_s15 + $0x9] sm:$0x1] %vm1654_vm0, %v1151_v30  ;;  %v1154_v39 = vmax.f32 %v130_v36, %v642_v37  ;;  %v643_v40 = vld [vmem:[%s2264_s12 + $0x1b] sm:$0x1]  ;;  %v132_v41 = vld [vmem:[%s2264_s12 + $0x1c] sm:$0x1] }
  0x1d   : > { %v644_v42 = vld [vmem:[%s2264_s12 + $0x1d] sm:$0x1]  ;;  %1665 = vst.msk [vmem:[%s2269_s15 + $0xa] sm:$0x1] %vm1654_vm0, %v1152_v34  ;;  %1666 = vst.msk [vmem:[%s2269_s15 + $0xb] sm:$0x1] %vm1654_vm0, %v1153_v35  ;;  %v1155_v43 = vmax.f32 %v131_v38, %v643_v40 }
  0x1e   : > { %v1156_v44 = vmax.f32 %v132_v41, %v644_v42  ;;  %v133_v45 = vld [vmem:[%s2264_s12 + $0x1e] sm:$0x1]  ;;  %v645_v46 = vld [vmem:[%s2264_s12 + $0x1f] sm:$0x1]  ;;  %v134_v47 = vld [vmem:[%s2264_s12 + $0x20] sm:$0x1] }
  0x1f   : > { %1667 = vst.msk [vmem:[%s2269_s15 + $0xc] sm:$0x1] %vm1654_vm0, %v1154_v39  ;;  %v1157_v48 = vmax.f32 %v133_v45, %v645_v46  ;;  %v646_v49 = vld [vmem:[%s2264_s12 + $0x21] sm:$0x1]  ;;  %v135_v50 = vld [vmem:[%s2264_s12 + $0x22] sm:$0x1] }
  0x20   : > { %v647_v51 = vld [vmem:[%s2264_s12 + $0x23] sm:$0x1]  ;;  %1668 = vst.msk [vmem:[%s2269_s15 + $0xd] sm:$0x1] %vm1654_vm0, %v1155_v43  ;;  %1669 = vst.msk [vmem:[%s2269_s15 + $0xe] sm:$0x1] %vm1654_vm0, %v1156_v44  ;;  %v1158_v52 = vmax.f32 %v134_v47, %v646_v49 }
  0x21   : > { %v1159_v53 = vmax.f32 %v135_v50, %v647_v51  ;;  %v136_v54 = vld [vmem:[%s2264_s12 + $0x24] sm:$0x1]  ;;  %v648_v55 = vld [vmem:[%s2264_s12 + $0x25] sm:$0x1]  ;;  %v137_v56 = vld [vmem:[%s2264_s12 + $0x26] sm:$0x1] }
  0x22   : > { %1670 = vst.msk [vmem:[%s2269_s15 + $0xf] sm:$0x1] %vm1654_vm0, %v1157_v48  ;;  %v1160_v57 = vmax.f32 %v136_v54, %v648_v55  ;;  %v649_v58 = vld [vmem:[%s2264_s12 + $0x27] sm:$0x1]  ;;  %v138_v59 = vld [vmem:[%s2264_s12 + $0x28] sm:$0x1] }
  0x23   : > { %v650_v60 = vld [vmem:[%s2264_s12 + $0x29] sm:$0x1]  ;;  %1671 = vst.msk [vmem:[%s2269_s15 + $0x10] sm:$0x1] %vm1654_vm0, %v1158_v52  ;;  %1672 = vst.msk [vmem:[%s2269_s15 + $0x11] sm:$0x1] %vm1654_vm0, %v1159_v53  ;;  %v1161_v61 = vmax.f32 %v137_v56, %v649_v58 }
  0x24   : > { %v1162_v62 = vmax.f32 %v138_v59, %v650_v60  ;;  %v139_v63 = vld [vmem:[%s2264_s12 + $0x2a] sm:$0x1]  ;;  %v651_v0 = vld [vmem:[%s2264_s12 + $0x2b] sm:$0x1]  ;;  %v140_v1 = vld [vmem:[%s2264_s12 + $0x2c] sm:$0x1] }
  0x25   : > { %1673 = vst.msk [vmem:[%s2269_s15 + $0x12] sm:$0x1] %vm1654_vm0, %v1160_v57  ;;  %v1163_v2 = vmax.f32 %v139_v63, %v651_v0  ;;  %v652_v3 = vld [vmem:[%s2264_s12 + $0x2d] sm:$0x1]  ;;  %v141_v4 = vld [vmem:[%s2264_s12 + $0x2e] sm:$0x1] }
  0x26   : > { %v653_v5 = vld [vmem:[%s2264_s12 + $0x2f] sm:$0x1]  ;;  %1674 = vst.msk [vmem:[%s2269_s15 + $0x13] sm:$0x1] %vm1654_vm0, %v1161_v61  ;;  %1675 = vst.msk [vmem:[%s2269_s15 + $0x14] sm:$0x1] %vm1654_vm0, %v1162_v62  ;;  %v1164_v6 = vmax.f32 %v140_v1, %v652_v3 }
  0x27   : > { %v1165_v7 = vmax.f32 %v141_v4, %v653_v5  ;;  %v142_v8 = vld [vmem:[%s2264_s12 + $0x30] sm:$0x1]  ;;  %v654_v9 = vld [vmem:[%s2264_s12 + $0x31] sm:$0x1]  ;;  %v143_v10 = vld [vmem:[%s2264_s12 + $0x32] sm:$0x1] }
  0x28   : > { %1676 = vst.msk [vmem:[%s2269_s15 + $0x15] sm:$0x1] %vm1654_vm0, %v1163_v2  ;;  %v1166_v11 = vmax.f32 %v142_v8, %v654_v9  ;;  %v655_v12 = vld [vmem:[%s2264_s12 + $0x33] sm:$0x1]  ;;  %v144_v13 = vld [vmem:[%s2264_s12 + $0x34] sm:$0x1] }
  0x29   : > { %v656_v14 = vld [vmem:[%s2264_s12 + $0x35] sm:$0x1]  ;;  %1677 = vst.msk [vmem:[%s2269_s15 + $0x16] sm:$0x1] %vm1654_vm0, %v1164_v6  ;;  %1678 = vst.msk [vmem:[%s2269_s15 + $0x17] sm:$0x1] %vm1654_vm0, %v1165_v7  ;;  %v1167_v15 = vmax.f32 %v143_v10, %v655_v12 }
  0x2a   : > { %v1168_v16 = vmax.f32 %v144_v13, %v656_v14  ;;  %v145_v17 = vld [vmem:[%s2264_s12 + $0x36] sm:$0x1]  ;;  %v657_v18 = vld [vmem:[%s2264_s12 + $0x37] sm:$0x1]  ;;  %v146_v19 = vld [vmem:[%s2264_s12 + $0x38] sm:$0x1] }
  0x2b   : > { %1679 = vst.msk [vmem:[%s2269_s15 + $0x18] sm:$0x1] %vm1654_vm0, %v1166_v11  ;;  %v1169_v20 = vmax.f32 %v145_v17, %v657_v18  ;;  %v658_v21 = vld [vmem:[%s2264_s12 + $0x39] sm:$0x1]  ;;  %v147_v22 = vld [vmem:[%s2264_s12 + $0x3a] sm:$0x1] }
  0x2c   : > { %v659_v23 = vld [vmem:[%s2264_s12 + $0x3b] sm:$0x1]  ;;  %1680 = vst.msk [vmem:[%s2269_s15 + $0x19] sm:$0x1] %vm1654_vm0, %v1167_v15  ;;  %1681 = vst.msk [vmem:[%s2269_s15 + $0x1a] sm:$0x1] %vm1654_vm0, %v1168_v16  ;;  %v1170_v24 = vmax.f32 %v146_v19, %v658_v21 }
  0x2d   : > { %v1171_v25 = vmax.f32 %v147_v22, %v659_v23  ;;  %v148_v26 = vld [vmem:[%s2264_s12 + $0x3c] sm:$0x1]  ;;  %v660_v27 = vld [vmem:[%s2264_s12 + $0x3d] sm:$0x1]  ;;  %v149_v28 = vld [vmem:[%s2264_s12 + $0x3e] sm:$0x1] }
  0x2e   : > { %1682 = vst.msk [vmem:[%s2269_s15 + $0x1b] sm:$0x1] %vm1654_vm0, %v1169_v20  ;;  %v1172_v29 = vmax.f32 %v148_v26, %v660_v27  ;;  %v661_v30 = vld [vmem:[%s2264_s12 + $0x3f] sm:$0x1]  ;;  %v150_v31 = vld [vmem:[%s2264_s12 + $0x40] sm:$0x1] }
  0x2f   : > { %v662_v32 = vld [vmem:[%s2264_s12 + $0x41] sm:$0x1]  ;;  %1683 = vst.msk [vmem:[%s2269_s15 + $0x1c] sm:$0x1] %vm1654_vm0, %v1170_v24  ;;  %1684 = vst.msk [vmem:[%s2269_s15 + $0x1d] sm:$0x1] %vm1654_vm0, %v1171_v25  ;;  %v1173_v33 = vmax.f32 %v149_v28, %v661_v30 }
  0x30   : > { %v1174_v34 = vmax.f32 %v150_v31, %v662_v32  ;;  %v151_v35 = vld [vmem:[%s2264_s12 + $0x42] sm:$0x1]  ;;  %v663_v36 = vld [vmem:[%s2264_s12 + $0x43] sm:$0x1]  ;;  %v152_v37 = vld [vmem:[%s2264_s12 + $0x44] sm:$0x1] }
  0x31   : > { %1685 = vst.msk [vmem:[%s2269_s15 + $0x1e] sm:$0x1] %vm1654_vm0, %v1172_v29  ;;  %v1175_v38 = vmax.f32 %v151_v35, %v663_v36  ;;  %v664_v39 = vld [vmem:[%s2264_s12 + $0x45] sm:$0x1]  ;;  %v153_v40 = vld [vmem:[%s2264_s12 + $0x46] sm:$0x1] }
  0x32   : > { %v665_v41 = vld [vmem:[%s2264_s12 + $0x47] sm:$0x1]  ;;  %1686 = vst.msk [vmem:[%s2269_s15 + $0x1f] sm:$0x1] %vm1654_vm0, %v1173_v33  ;;  %1687 = vst.msk [vmem:[%s2269_s15 + $0x20] sm:$0x1] %vm1654_vm0, %v1174_v34  ;;  %v1176_v42 = vmax.f32 %v152_v37, %v664_v39 }
  0x33   : > { %v1177_v43 = vmax.f32 %v153_v40, %v665_v41  ;;  %v154_v44 = vld [vmem:[%s2264_s12 + $0x48] sm:$0x1]  ;;  %v666_v45 = vld [vmem:[%s2264_s12 + $0x49] sm:$0x1]  ;;  %v155_v46 = vld [vmem:[%s2264_s12 + $0x4a] sm:$0x1] }
  0x34   : > { %1688 = vst.msk [vmem:[%s2269_s15 + $0x21] sm:$0x1] %vm1654_vm0, %v1175_v38  ;;  %v1178_v47 = vmax.f32 %v154_v44, %v666_v45  ;;  %v667_v48 = vld [vmem:[%s2264_s12 + $0x4b] sm:$0x1]  ;;  %v156_v49 = vld [vmem:[%s2264_s12 + $0x4c] sm:$0x1] }
  0x35   : > { %v668_v50 = vld [vmem:[%s2264_s12 + $0x4d] sm:$0x1]  ;;  %1689 = vst.msk [vmem:[%s2269_s15 + $0x22] sm:$0x1] %vm1654_vm0, %v1176_v42  ;;  %1690 = vst.msk [vmem:[%s2269_s15 + $0x23] sm:$0x1] %vm1654_vm0, %v1177_v43  ;;  %v1179_v51 = vmax.f32 %v155_v46, %v667_v48 }
  0x36   : > { %v1180_v52 = vmax.f32 %v156_v49, %v668_v50  ;;  %v157_v53 = vld [vmem:[%s2264_s12 + $0x4e] sm:$0x1]  ;;  %v669_v54 = vld [vmem:[%s2264_s12 + $0x4f] sm:$0x1]  ;;  %v158_v55 = vld [vmem:[%s2264_s12 + $0x50] sm:$0x1] }
  0x37   : > { %1691 = vst.msk [vmem:[%s2269_s15 + $0x24] sm:$0x1] %vm1654_vm0, %v1178_v47  ;;  %v1181_v56 = vmax.f32 %v157_v53, %v669_v54  ;;  %v670_v57 = vld [vmem:[%s2264_s12 + $0x51] sm:$0x1]  ;;  %v159_v58 = vld [vmem:[%s2264_s12 + $0x52] sm:$0x1] }
  0x38   : > { %v671_v59 = vld [vmem:[%s2264_s12 + $0x53] sm:$0x1]  ;;  %1692 = vst.msk [vmem:[%s2269_s15 + $0x25] sm:$0x1] %vm1654_vm0, %v1179_v51  ;;  %1693 = vst.msk [vmem:[%s2269_s15 + $0x26] sm:$0x1] %vm1654_vm0, %v1180_v52  ;;  %v1182_v60 = vmax.f32 %v158_v55, %v670_v57 }
  0x39   : > { %v1183_v61 = vmax.f32 %v159_v58, %v671_v59  ;;  %v160_v62 = vld [vmem:[%s2264_s12 + $0x54] sm:$0x1]  ;;  %v672_v63 = vld [vmem:[%s2264_s12 + $0x55] sm:$0x1]  ;;  %v161_v0 = vld [vmem:[%s2264_s12 + $0x56] sm:$0x1] }
  0x3a   : > { %1694 = vst.msk [vmem:[%s2269_s15 + $0x27] sm:$0x1] %vm1654_vm0, %v1181_v56  ;;  %v1184_v1 = vmax.f32 %v160_v62, %v672_v63  ;;  %v673_v2 = vld [vmem:[%s2264_s12 + $0x57] sm:$0x1]  ;;  %v162_v3 = vld [vmem:[%s2264_s12 + $0x58] sm:$0x1] }
  0x3b   : > { %v674_v4 = vld [vmem:[%s2264_s12 + $0x59] sm:$0x1]  ;;  %1695 = vst.msk [vmem:[%s2269_s15 + $0x28] sm:$0x1] %vm1654_vm0, %v1182_v60  ;;  %1696 = vst.msk [vmem:[%s2269_s15 + $0x29] sm:$0x1] %vm1654_vm0, %v1183_v61  ;;  %v1185_v5 = vmax.f32 %v161_v0, %v673_v2 }
  0x3c   : > { %v1186_v6 = vmax.f32 %v162_v3, %v674_v4  ;;  %v163_v7 = vld [vmem:[%s2264_s12 + $0x5a] sm:$0x1]  ;;  %v675_v8 = vld [vmem:[%s2264_s12 + $0x5b] sm:$0x1]  ;;  %v164_v9 = vld [vmem:[%s2264_s12 + $0x5c] sm:$0x1] }
  0x3d   : > { %1697 = vst.msk [vmem:[%s2269_s15 + $0x2a] sm:$0x1] %vm1654_vm0, %v1184_v1  ;;  %v1187_v10 = vmax.f32 %v163_v7, %v675_v8  ;;  %v676_v11 = vld [vmem:[%s2264_s12 + $0x5d] sm:$0x1]  ;;  %v165_v12 = vld [vmem:[%s2264_s12 + $0x5e] sm:$0x1] }
  0x3e   : > { %v677_v13 = vld [vmem:[%s2264_s12 + $0x5f] sm:$0x1]  ;;  %1698 = vst.msk [vmem:[%s2269_s15 + $0x2b] sm:$0x1] %vm1654_vm0, %v1185_v5  ;;  %1699 = vst.msk [vmem:[%s2269_s15 + $0x2c] sm:$0x1] %vm1654_vm0, %v1186_v6  ;;  %v1188_v14 = vmax.f32 %v164_v9, %v676_v11 }
  0x3f   : > { %v1189_v15 = vmax.f32 %v165_v12, %v677_v13  ;;  %v166_v16 = vld [vmem:[%s2264_s12 + $0x60] sm:$0x1]  ;;  %v678_v17 = vld [vmem:[%s2264_s12 + $0x61] sm:$0x1]  ;;  %v167_v18 = vld [vmem:[%s2264_s12 + $0x62] sm:$0x1] }
  0x40   : > { %1700 = vst.msk [vmem:[%s2269_s15 + $0x2d] sm:$0x1] %vm1654_vm0, %v1187_v10  ;;  %v1190_v19 = vmax.f32 %v166_v16, %v678_v17  ;;  %v679_v20 = vld [vmem:[%s2264_s12 + $0x63] sm:$0x1]  ;;  %v168_v21 = vld [vmem:[%s2264_s12 + $0x64] sm:$0x1] }
  0x41   : > { %v680_v22 = vld [vmem:[%s2264_s12 + $0x65] sm:$0x1]  ;;  %1701 = vst.msk [vmem:[%s2269_s15 + $0x2e] sm:$0x1] %vm1654_vm0, %v1188_v14  ;;  %1702 = vst.msk [vmem:[%s2269_s15 + $0x2f] sm:$0x1] %vm1654_vm0, %v1189_v15  ;;  %v1191_v23 = vmax.f32 %v167_v18, %v679_v20 }
  0x42   : > { %v1192_v24 = vmax.f32 %v168_v21, %v680_v22  ;;  %v169_v25 = vld [vmem:[%s2264_s12 + $0x66] sm:$0x1]  ;;  %v681_v26 = vld [vmem:[%s2264_s12 + $0x67] sm:$0x1]  ;;  %v170_v27 = vld [vmem:[%s2264_s12 + $0x68] sm:$0x1] }
  0x43   : > { %1703 = vst.msk [vmem:[%s2269_s15 + $0x30] sm:$0x1] %vm1654_vm0, %v1190_v19  ;;  %v1193_v28 = vmax.f32 %v169_v25, %v681_v26  ;;  %v682_v29 = vld [vmem:[%s2264_s12 + $0x69] sm:$0x1]  ;;  %v171_v30 = vld [vmem:[%s2264_s12 + $0x6a] sm:$0x1] }
  0x44   : > { %v683_v31 = vld [vmem:[%s2264_s12 + $0x6b] sm:$0x1]  ;;  %1704 = vst.msk [vmem:[%s2269_s15 + $0x31] sm:$0x1] %vm1654_vm0, %v1191_v23  ;;  %1705 = vst.msk [vmem:[%s2269_s15 + $0x32] sm:$0x1] %vm1654_vm0, %v1192_v24  ;;  %v1194_v32 = vmax.f32 %v170_v27, %v682_v29 }
  0x45   : > { %v1195_v33 = vmax.f32 %v171_v30, %v683_v31  ;;  %v172_v34 = vld [vmem:[%s2264_s12 + $0x6c] sm:$0x1]  ;;  %v684_v35 = vld [vmem:[%s2264_s12 + $0x6d] sm:$0x1]  ;;  %v173_v36 = vld [vmem:[%s2264_s12 + $0x6e] sm:$0x1] }
  0x46   : > { %1706 = vst.msk [vmem:[%s2269_s15 + $0x33] sm:$0x1] %vm1654_vm0, %v1193_v28  ;;  %v1196_v37 = vmax.f32 %v172_v34, %v684_v35  ;;  %v685_v38 = vld [vmem:[%s2264_s12 + $0x6f] sm:$0x1]  ;;  %v174_v39 = vld [vmem:[%s2264_s12 + $0x70] sm:$0x1] }
  0x47   : > { %v686_v40 = vld [vmem:[%s2264_s12 + $0x71] sm:$0x1]  ;;  %1707 = vst.msk [vmem:[%s2269_s15 + $0x34] sm:$0x1] %vm1654_vm0, %v1194_v32  ;;  %1708 = vst.msk [vmem:[%s2269_s15 + $0x35] sm:$0x1] %vm1654_vm0, %v1195_v33  ;;  %v1197_v41 = vmax.f32 %v173_v36, %v685_v38 }
  0x48   : > { %v1198_v42 = vmax.f32 %v174_v39, %v686_v40  ;;  %v175_v43 = vld [vmem:[%s2264_s12 + $0x72] sm:$0x1]  ;;  %v687_v44 = vld [vmem:[%s2264_s12 + $0x73] sm:$0x1]  ;;  %v176_v45 = vld [vmem:[%s2264_s12 + $0x74] sm:$0x1] }
  0x49   : > { %1709 = vst.msk [vmem:[%s2269_s15 + $0x36] sm:$0x1] %vm1654_vm0, %v1196_v37  ;;  %v1199_v46 = vmax.f32 %v175_v43, %v687_v44  ;;  %v688_v47 = vld [vmem:[%s2264_s12 + $0x75] sm:$0x1]  ;;  %v177_v48 = vld [vmem:[%s2264_s12 + $0x76] sm:$0x1] }
  0x4a   : > { %v689_v49 = vld [vmem:[%s2264_s12 + $0x77] sm:$0x1]  ;;  %1710 = vst.msk [vmem:[%s2269_s15 + $0x37] sm:$0x1] %vm1654_vm0, %v1197_v41  ;;  %1711 = vst.msk [vmem:[%s2269_s15 + $0x38] sm:$0x1] %vm1654_vm0, %v1198_v42  ;;  %v1200_v50 = vmax.f32 %v176_v45, %v688_v47 }
  0x4b   : > { %v1201_v51 = vmax.f32 %v177_v48, %v689_v49  ;;  %v178_v52 = vld [vmem:[%s2264_s12 + $0x78] sm:$0x1]  ;;  %v690_v53 = vld [vmem:[%s2264_s12 + $0x79] sm:$0x1]  ;;  %v179_v54 = vld [vmem:[%s2264_s12 + $0x7a] sm:$0x1] }
  0x4c   : > { %1712 = vst.msk [vmem:[%s2269_s15 + $0x39] sm:$0x1] %vm1654_vm0, %v1199_v46  ;;  %v1202_v55 = vmax.f32 %v178_v52, %v690_v53  ;;  %v691_v56 = vld [vmem:[%s2264_s12 + $0x7b] sm:$0x1]  ;;  %v180_v57 = vld [vmem:[%s2264_s12 + $0x7c] sm:$0x1] }
  0x4d   : > { %v692_v58 = vld [vmem:[%s2264_s12 + $0x7d] sm:$0x1]  ;;  %1713 = vst.msk [vmem:[%s2269_s15 + $0x3a] sm:$0x1] %vm1654_vm0, %v1200_v50  ;;  %1714 = vst.msk [vmem:[%s2269_s15 + $0x3b] sm:$0x1] %vm1654_vm0, %v1201_v51  ;;  %v1203_v59 = vmax.f32 %v179_v54, %v691_v56 }
  0x4e   : > { %v1204_v60 = vmax.f32 %v180_v57, %v692_v58  ;;  %v181_v61 = vld [vmem:[%s2264_s12 + $0x7e] sm:$0x1]  ;;  %v693_v62 = vld [vmem:[%s2264_s12 + $0x7f] sm:$0x1]  ;;  %v182_v63 = vld [vmem:[%s2264_s12 + $0x80] sm:$0x1] }
  0x4f   : > { %1715 = vst.msk [vmem:[%s2269_s15 + $0x3c] sm:$0x1] %vm1654_vm0, %v1202_v55  ;;  %v1205_v0 = vmax.f32 %v181_v61, %v693_v62  ;;  %v694_v1 = vld [vmem:[%s2264_s12 + $0x81] sm:$0x1]  ;;  %v183_v2 = vld [vmem:[%s2264_s12 + $0x82] sm:$0x1] }
  0x50   : > { %v695_v3 = vld [vmem:[%s2264_s12 + $0x83] sm:$0x1]  ;;  %1716 = vst.msk [vmem:[%s2269_s15 + $0x3d] sm:$0x1] %vm1654_vm0, %v1203_v59  ;;  %1717 = vst.msk [vmem:[%s2269_s15 + $0x3e] sm:$0x1] %vm1654_vm0, %v1204_v60  ;;  %v1206_v4 = vmax.f32 %v182_v63, %v694_v1 }
  0x51   : > { %v1207_v5 = vmax.f32 %v183_v2, %v695_v3  ;;  %v184_v6 = vld [vmem:[%s2264_s12 + $0x84] sm:$0x1]  ;;  %v696_v7 = vld [vmem:[%s2264_s12 + $0x85] sm:$0x1]  ;;  %v185_v8 = vld [vmem:[%s2264_s12 + $0x86] sm:$0x1] }
  0x52   : > { %1718 = vst.msk [vmem:[%s2269_s15 + $0x3f] sm:$0x1] %vm1654_vm0, %v1205_v0  ;;  %v1208_v9 = vmax.f32 %v184_v6, %v696_v7  ;;  %v697_v10 = vld [vmem:[%s2264_s12 + $0x87] sm:$0x1]  ;;  %v186_v11 = vld [vmem:[%s2264_s12 + $0x88] sm:$0x1] }
  0x53   : > { %v698_v12 = vld [vmem:[%s2264_s12 + $0x89] sm:$0x1]  ;;  %1719 = vst.msk [vmem:[%s2269_s15 + $0x40] sm:$0x1] %vm1654_vm0, %v1206_v4  ;;  %1720 = vst.msk [vmem:[%s2269_s15 + $0x41] sm:$0x1] %vm1654_vm0, %v1207_v5  ;;  %v1209_v13 = vmax.f32 %v185_v8, %v697_v10 }
  0x54   : > { %v1210_v14 = vmax.f32 %v186_v11, %v698_v12  ;;  %v187_v15 = vld [vmem:[%s2264_s12 + $0x8a] sm:$0x1]  ;;  %v699_v16 = vld [vmem:[%s2264_s12 + $0x8b] sm:$0x1]  ;;  %v188_v17 = vld [vmem:[%s2264_s12 + $0x8c] sm:$0x1] }
  0x55   : > { %1721 = vst.msk [vmem:[%s2269_s15 + $0x42] sm:$0x1] %vm1654_vm0, %v1208_v9  ;;  %v1211_v18 = vmax.f32 %v187_v15, %v699_v16  ;;  %v700_v19 = vld [vmem:[%s2264_s12 + $0x8d] sm:$0x1]  ;;  %v189_v20 = vld [vmem:[%s2264_s12 + $0x8e] sm:$0x1] }
  0x56   : > { %v701_v21 = vld [vmem:[%s2264_s12 + $0x8f] sm:$0x1]  ;;  %1722 = vst.msk [vmem:[%s2269_s15 + $0x43] sm:$0x1] %vm1654_vm0, %v1209_v13  ;;  %1723 = vst.msk [vmem:[%s2269_s15 + $0x44] sm:$0x1] %vm1654_vm0, %v1210_v14  ;;  %v1212_v22 = vmax.f32 %v188_v17, %v700_v19 }
  0x57   : > { %v1213_v23 = vmax.f32 %v189_v20, %v701_v21  ;;  %v190_v24 = vld [vmem:[%s2264_s12 + $0x90] sm:$0x1]  ;;  %v702_v25 = vld [vmem:[%s2264_s12 + $0x91] sm:$0x1]  ;;  %v191_v26 = vld [vmem:[%s2264_s12 + $0x92] sm:$0x1] }
  0x58   : > { %1724 = vst.msk [vmem:[%s2269_s15 + $0x45] sm:$0x1] %vm1654_vm0, %v1211_v18  ;;  %v1214_v27 = vmax.f32 %v190_v24, %v702_v25  ;;  %v703_v28 = vld [vmem:[%s2264_s12 + $0x93] sm:$0x1]  ;;  %v192_v29 = vld [vmem:[%s2264_s12 + $0x94] sm:$0x1] }
  0x59   : > { %v704_v30 = vld [vmem:[%s2264_s12 + $0x95] sm:$0x1]  ;;  %1725 = vst.msk [vmem:[%s2269_s15 + $0x46] sm:$0x1] %vm1654_vm0, %v1212_v22  ;;  %1726 = vst.msk [vmem:[%s2269_s15 + $0x47] sm:$0x1] %vm1654_vm0, %v1213_v23  ;;  %v1215_v31 = vmax.f32 %v191_v26, %v703_v28 }
  0x5a   : > { %v1216_v32 = vmax.f32 %v192_v29, %v704_v30  ;;  %v193_v33 = vld [vmem:[%s2264_s12 + $0x96] sm:$0x1]  ;;  %v705_v34 = vld [vmem:[%s2264_s12 + $0x97] sm:$0x1]  ;;  %v194_v35 = vld [vmem:[%s2264_s12 + $0x98] sm:$0x1] }
  0x5b   : > { %1727 = vst.msk [vmem:[%s2269_s15 + $0x48] sm:$0x1] %vm1654_vm0, %v1214_v27  ;;  %v1217_v36 = vmax.f32 %v193_v33, %v705_v34  ;;  %v706_v37 = vld [vmem:[%s2264_s12 + $0x99] sm:$0x1]  ;;  %v195_v38 = vld [vmem:[%s2264_s12 + $0x9a] sm:$0x1] }
  0x5c   : > { %v707_v39 = vld [vmem:[%s2264_s12 + $0x9b] sm:$0x1]  ;;  %1728 = vst.msk [vmem:[%s2269_s15 + $0x49] sm:$0x1] %vm1654_vm0, %v1215_v31  ;;  %1729 = vst.msk [vmem:[%s2269_s15 + $0x4a] sm:$0x1] %vm1654_vm0, %v1216_v32  ;;  %v1218_v40 = vmax.f32 %v194_v35, %v706_v37 }
  0x5d   : > { %v1219_v41 = vmax.f32 %v195_v38, %v707_v39  ;;  %v196_v42 = vld [vmem:[%s2264_s12 + $0x9c] sm:$0x1]  ;;  %v708_v43 = vld [vmem:[%s2264_s12 + $0x9d] sm:$0x1]  ;;  %v197_v44 = vld [vmem:[%s2264_s12 + $0x9e] sm:$0x1] }
  0x5e   : > { %1730 = vst.msk [vmem:[%s2269_s15 + $0x4b] sm:$0x1] %vm1654_vm0, %v1217_v36  ;;  %v1220_v45 = vmax.f32 %v196_v42, %v708_v43  ;;  %v709_v46 = vld [vmem:[%s2264_s12 + $0x9f] sm:$0x1]  ;;  %v198_v47 = vld [vmem:[%s2264_s12 + $0xa0] sm:$0x1] }
  0x5f   : > { %v710_v48 = vld [vmem:[%s2264_s12 + $0xa1] sm:$0x1]  ;;  %1731 = vst.msk [vmem:[%s2269_s15 + $0x4c] sm:$0x1] %vm1654_vm0, %v1218_v40  ;;  %1732 = vst.msk [vmem:[%s2269_s15 + $0x4d] sm:$0x1] %vm1654_vm0, %v1219_v41  ;;  %v1221_v49 = vmax.f32 %v197_v44, %v709_v46 }
  0x60   : > { %v1222_v50 = vmax.f32 %v198_v47, %v710_v48  ;;  %v199_v51 = vld [vmem:[%s2264_s12 + $0xa2] sm:$0x1]  ;;  %v711_v52 = vld [vmem:[%s2264_s12 + $0xa3] sm:$0x1]  ;;  %v200_v53 = vld [vmem:[%s2264_s12 + $0xa4] sm:$0x1] }
  0x61   : > { %1733 = vst.msk [vmem:[%s2269_s15 + $0x4e] sm:$0x1] %vm1654_vm0, %v1220_v45  ;;  %v1223_v54 = vmax.f32 %v199_v51, %v711_v52  ;;  %v712_v55 = vld [vmem:[%s2264_s12 + $0xa5] sm:$0x1]  ;;  %v201_v56 = vld [vmem:[%s2264_s12 + $0xa6] sm:$0x1] }
  0x62   : > { %v713_v57 = vld [vmem:[%s2264_s12 + $0xa7] sm:$0x1]  ;;  %1734 = vst.msk [vmem:[%s2269_s15 + $0x4f] sm:$0x1] %vm1654_vm0, %v1221_v49  ;;  %1735 = vst.msk [vmem:[%s2269_s15 + $0x50] sm:$0x1] %vm1654_vm0, %v1222_v50  ;;  %v1224_v58 = vmax.f32 %v200_v53, %v712_v55 }
  0x63   : > { %v1225_v59 = vmax.f32 %v201_v56, %v713_v57  ;;  %v202_v60 = vld [vmem:[%s2264_s12 + $0xa8] sm:$0x1]  ;;  %v714_v61 = vld [vmem:[%s2264_s12 + $0xa9] sm:$0x1]  ;;  %v203_v62 = vld [vmem:[%s2264_s12 + $0xaa] sm:$0x1] }
  0x64   : > { %1736 = vst.msk [vmem:[%s2269_s15 + $0x51] sm:$0x1] %vm1654_vm0, %v1223_v54  ;;  %v1226_v63 = vmax.f32 %v202_v60, %v714_v61  ;;  %v715_v0 = vld [vmem:[%s2264_s12 + $0xab] sm:$0x1]  ;;  %v204_v1 = vld [vmem:[%s2264_s12 + $0xac] sm:$0x1] }
  0x65   : > { %v716_v2 = vld [vmem:[%s2264_s12 + $0xad] sm:$0x1]  ;;  %1737 = vst.msk [vmem:[%s2269_s15 + $0x52] sm:$0x1] %vm1654_vm0, %v1224_v58  ;;  %1738 = vst.msk [vmem:[%s2269_s15 + $0x53] sm:$0x1] %vm1654_vm0, %v1225_v59  ;;  %v1227_v3 = vmax.f32 %v203_v62, %v715_v0 }
  0x66   : > { %v1228_v4 = vmax.f32 %v204_v1, %v716_v2  ;;  %v205_v5 = vld [vmem:[%s2264_s12 + $0xae] sm:$0x1]  ;;  %v717_v6 = vld [vmem:[%s2264_s12 + $0xaf] sm:$0x1]  ;;  %v206_v7 = vld [vmem:[%s2264_s12 + $0xb0] sm:$0x1] }
  0x67   : > { %1739 = vst.msk [vmem:[%s2269_s15 + $0x54] sm:$0x1] %vm1654_vm0, %v1226_v63  ;;  %v1229_v8 = vmax.f32 %v205_v5, %v717_v6  ;;  %v718_v9 = vld [vmem:[%s2264_s12 + $0xb1] sm:$0x1]  ;;  %v207_v10 = vld [vmem:[%s2264_s12 + $0xb2] sm:$0x1] }
  0x68   : > { %v719_v11 = vld [vmem:[%s2264_s12 + $0xb3] sm:$0x1]  ;;  %1740 = vst.msk [vmem:[%s2269_s15 + $0x55] sm:$0x1] %vm1654_vm0, %v1227_v3  ;;  %1741 = vst.msk [vmem:[%s2269_s15 + $0x56] sm:$0x1] %vm1654_vm0, %v1228_v4  ;;  %v1230_v12 = vmax.f32 %v206_v7, %v718_v9 }
  0x69   : > { %v1231_v13 = vmax.f32 %v207_v10, %v719_v11  ;;  %v208_v14 = vld [vmem:[%s2264_s12 + $0xb4] sm:$0x1]  ;;  %v720_v15 = vld [vmem:[%s2264_s12 + $0xb5] sm:$0x1]  ;;  %v209_v16 = vld [vmem:[%s2264_s12 + $0xb6] sm:$0x1] }
  0x6a   : > { %1742 = vst.msk [vmem:[%s2269_s15 + $0x57] sm:$0x1] %vm1654_vm0, %v1229_v8  ;;  %v1232_v17 = vmax.f32 %v208_v14, %v720_v15  ;;  %v721_v18 = vld [vmem:[%s2264_s12 + $0xb7] sm:$0x1]  ;;  %v210_v19 = vld [vmem:[%s2264_s12 + $0xb8] sm:$0x1] }
  0x6b   : > { %v722_v20 = vld [vmem:[%s2264_s12 + $0xb9] sm:$0x1]  ;;  %1743 = vst.msk [vmem:[%s2269_s15 + $0x58] sm:$0x1] %vm1654_vm0, %v1230_v12  ;;  %1744 = vst.msk [vmem:[%s2269_s15 + $0x59] sm:$0x1] %vm1654_vm0, %v1231_v13  ;;  %v1233_v21 = vmax.f32 %v209_v16, %v721_v18 }
  0x6c   : > { %v1234_v22 = vmax.f32 %v210_v19, %v722_v20  ;;  %v211_v23 = vld [vmem:[%s2264_s12 + $0xba] sm:$0x1]  ;;  %v723_v24 = vld [vmem:[%s2264_s12 + $0xbb] sm:$0x1]  ;;  %v212_v25 = vld [vmem:[%s2264_s12 + $0xbc] sm:$0x1] }
  0x6d   : > { %1745 = vst.msk [vmem:[%s2269_s15 + $0x5a] sm:$0x1] %vm1654_vm0, %v1232_v17  ;;  %v1235_v26 = vmax.f32 %v211_v23, %v723_v24  ;;  %v724_v27 = vld [vmem:[%s2264_s12 + $0xbd] sm:$0x1]  ;;  %v213_v28 = vld [vmem:[%s2264_s12 + $0xbe] sm:$0x1] }
  0x6e   : > { %v725_v29 = vld [vmem:[%s2264_s12 + $0xbf] sm:$0x1]  ;;  %1746 = vst.msk [vmem:[%s2269_s15 + $0x5b] sm:$0x1] %vm1654_vm0, %v1233_v21  ;;  %1747 = vst.msk [vmem:[%s2269_s15 + $0x5c] sm:$0x1] %vm1654_vm0, %v1234_v22  ;;  %v1236_v30 = vmax.f32 %v212_v25, %v724_v27 }
  0x6f   : > { %v1237_v31 = vmax.f32 %v213_v28, %v725_v29  ;;  %v214_v32 = vld [vmem:[%s2264_s12 + $0xc0] sm:$0x1]  ;;  %v726_v33 = vld [vmem:[%s2264_s12 + $0xc1] sm:$0x1]  ;;  %v215_v34 = vld [vmem:[%s2264_s12 + $0xc2] sm:$0x1] }
  0x70   : > { %1748 = vst.msk [vmem:[%s2269_s15 + $0x5d] sm:$0x1] %vm1654_vm0, %v1235_v26  ;;  %v1238_v35 = vmax.f32 %v214_v32, %v726_v33  ;;  %v727_v36 = vld [vmem:[%s2264_s12 + $0xc3] sm:$0x1]  ;;  %v216_v37 = vld [vmem:[%s2264_s12 + $0xc4] sm:$0x1] }
  0x71   : > { %v728_v38 = vld [vmem:[%s2264_s12 + $0xc5] sm:$0x1]  ;;  %1749 = vst.msk [vmem:[%s2269_s15 + $0x5e] sm:$0x1] %vm1654_vm0, %v1236_v30  ;;  %1750 = vst.msk [vmem:[%s2269_s15 + $0x5f] sm:$0x1] %vm1654_vm0, %v1237_v31  ;;  %v1239_v39 = vmax.f32 %v215_v34, %v727_v36 }
  0x72   : > { %v1240_v40 = vmax.f32 %v216_v37, %v728_v38  ;;  %v217_v41 = vld [vmem:[%s2264_s12 + $0xc6] sm:$0x1]  ;;  %v729_v42 = vld [vmem:[%s2264_s12 + $0xc7] sm:$0x1]  ;;  %v218_v43 = vld [vmem:[%s2264_s12 + $0xc8] sm:$0x1] }
  0x73   : > { %1751 = vst.msk [vmem:[%s2269_s15 + $0x60] sm:$0x1] %vm1654_vm0, %v1238_v35  ;;  %v1241_v44 = vmax.f32 %v217_v41, %v729_v42  ;;  %v730_v45 = vld [vmem:[%s2264_s12 + $0xc9] sm:$0x1]  ;;  %v219_v46 = vld [vmem:[%s2264_s12 + $0xca] sm:$0x1] }
  0x74   : > { %v731_v47 = vld [vmem:[%s2264_s12 + $0xcb] sm:$0x1]  ;;  %1752 = vst.msk [vmem:[%s2269_s15 + $0x61] sm:$0x1] %vm1654_vm0, %v1239_v39  ;;  %1753 = vst.msk [vmem:[%s2269_s15 + $0x62] sm:$0x1] %vm1654_vm0, %v1240_v40  ;;  %v1242_v48 = vmax.f32 %v218_v43, %v730_v45 }
  0x75   : > { %v1243_v49 = vmax.f32 %v219_v46, %v731_v47  ;;  %v220_v50 = vld [vmem:[%s2264_s12 + $0xcc] sm:$0x1]  ;;  %v732_v51 = vld [vmem:[%s2264_s12 + $0xcd] sm:$0x1]  ;;  %v221_v52 = vld [vmem:[%s2264_s12 + $0xce] sm:$0x1] }
  0x76   : > { %1754 = vst.msk [vmem:[%s2269_s15 + $0x63] sm:$0x1] %vm1654_vm0, %v1241_v44  ;;  %v1244_v53 = vmax.f32 %v220_v50, %v732_v51  ;;  %v733_v54 = vld [vmem:[%s2264_s12 + $0xcf] sm:$0x1]  ;;  %v222_v55 = vld [vmem:[%s2264_s12 + $0xd0] sm:$0x1] }
  0x77   : > { %v734_v56 = vld [vmem:[%s2264_s12 + $0xd1] sm:$0x1]  ;;  %1755 = vst.msk [vmem:[%s2269_s15 + $0x64] sm:$0x1] %vm1654_vm0, %v1242_v48  ;;  %1756 = vst.msk [vmem:[%s2269_s15 + $0x65] sm:$0x1] %vm1654_vm0, %v1243_v49  ;;  %v1245_v57 = vmax.f32 %v221_v52, %v733_v54 }
  0x78   : > { %v1246_v58 = vmax.f32 %v222_v55, %v734_v56  ;;  %v223_v59 = vld [vmem:[%s2264_s12 + $0xd2] sm:$0x1]  ;;  %v735_v60 = vld [vmem:[%s2264_s12 + $0xd3] sm:$0x1]  ;;  %v224_v61 = vld [vmem:[%s2264_s12 + $0xd4] sm:$0x1] }
  0x79   : > { %1757 = vst.msk [vmem:[%s2269_s15 + $0x66] sm:$0x1] %vm1654_vm0, %v1244_v53  ;;  %v1247_v62 = vmax.f32 %v223_v59, %v735_v60  ;;  %v736_v63 = vld [vmem:[%s2264_s12 + $0xd5] sm:$0x1]  ;;  %v225_v0 = vld [vmem:[%s2264_s12 + $0xd6] sm:$0x1] }
  0x7a   : > { %v737_v1 = vld [vmem:[%s2264_s12 + $0xd7] sm:$0x1]  ;;  %1758 = vst.msk [vmem:[%s2269_s15 + $0x67] sm:$0x1] %vm1654_vm0, %v1245_v57  ;;  %1759 = vst.msk [vmem:[%s2269_s15 + $0x68] sm:$0x1] %vm1654_vm0, %v1246_v58  ;;  %v1248_v2 = vmax.f32 %v224_v61, %v736_v63 }
  0x7b   : > { %v1249_v3 = vmax.f32 %v225_v0, %v737_v1  ;;  %v226_v4 = vld [vmem:[%s2264_s12 + $0xd8] sm:$0x1]  ;;  %v738_v5 = vld [vmem:[%s2264_s12 + $0xd9] sm:$0x1]  ;;  %v227_v6 = vld [vmem:[%s2264_s12 + $0xda] sm:$0x1] }
  0x7c   : > { %1760 = vst.msk [vmem:[%s2269_s15 + $0x69] sm:$0x1] %vm1654_vm0, %v1247_v62  ;;  %v1250_v7 = vmax.f32 %v226_v4, %v738_v5  ;;  %v739_v8 = vld [vmem:[%s2264_s12 + $0xdb] sm:$0x1]  ;;  %v228_v9 = vld [vmem:[%s2264_s12 + $0xdc] sm:$0x1] }
  0x7d   : > { %v740_v10 = vld [vmem:[%s2264_s12 + $0xdd] sm:$0x1]  ;;  %1761 = vst.msk [vmem:[%s2269_s15 + $0x6a] sm:$0x1] %vm1654_vm0, %v1248_v2  ;;  %1762 = vst.msk [vmem:[%s2269_s15 + $0x6b] sm:$0x1] %vm1654_vm0, %v1249_v3  ;;  %v1251_v11 = vmax.f32 %v227_v6, %v739_v8 }
  0x7e   : > { %v1252_v12 = vmax.f32 %v228_v9, %v740_v10  ;;  %v229_v13 = vld [vmem:[%s2264_s12 + $0xde] sm:$0x1]  ;;  %v741_v14 = vld [vmem:[%s2264_s12 + $0xdf] sm:$0x1]  ;;  %v230_v15 = vld [vmem:[%s2264_s12 + $0xe0] sm:$0x1] }
  0x7f   : > { %1763 = vst.msk [vmem:[%s2269_s15 + $0x6c] sm:$0x1] %vm1654_vm0, %v1250_v7  ;;  %v1253_v16 = vmax.f32 %v229_v13, %v741_v14  ;;  %v742_v17 = vld [vmem:[%s2264_s12 + $0xe1] sm:$0x1]  ;;  %v231_v18 = vld [vmem:[%s2264_s12 + $0xe2] sm:$0x1] }
  0x80   : > { %v743_v19 = vld [vmem:[%s2264_s12 + $0xe3] sm:$0x1]  ;;  %1764 = vst.msk [vmem:[%s2269_s15 + $0x6d] sm:$0x1] %vm1654_vm0, %v1251_v11  ;;  %1765 = vst.msk [vmem:[%s2269_s15 + $0x6e] sm:$0x1] %vm1654_vm0, %v1252_v12  ;;  %v1254_v20 = vmax.f32 %v230_v15, %v742_v17 }
  0x81   : > { %v1255_v21 = vmax.f32 %v231_v18, %v743_v19  ;;  %v232_v22 = vld [vmem:[%s2264_s12 + $0xe4] sm:$0x1]  ;;  %v744_v23 = vld [vmem:[%s2264_s12 + $0xe5] sm:$0x1]  ;;  %v233_v24 = vld [vmem:[%s2264_s12 + $0xe6] sm:$0x1] }
  0x82   : > { %1766 = vst.msk [vmem:[%s2269_s15 + $0x6f] sm:$0x1] %vm1654_vm0, %v1253_v16  ;;  %v1256_v25 = vmax.f32 %v232_v22, %v744_v23  ;;  %v745_v26 = vld [vmem:[%s2264_s12 + $0xe7] sm:$0x1]  ;;  %v234_v27 = vld [vmem:[%s2264_s12 + $0xe8] sm:$0x1] }
  0x83   : > { %v746_v28 = vld [vmem:[%s2264_s12 + $0xe9] sm:$0x1]  ;;  %1767 = vst.msk [vmem:[%s2269_s15 + $0x70] sm:$0x1] %vm1654_vm0, %v1254_v20  ;;  %1768 = vst.msk [vmem:[%s2269_s15 + $0x71] sm:$0x1] %vm1654_vm0, %v1255_v21  ;;  %v1257_v29 = vmax.f32 %v233_v24, %v745_v26 }
  0x84   : > { %v1258_v30 = vmax.f32 %v234_v27, %v746_v28  ;;  %v235_v31 = vld [vmem:[%s2264_s12 + $0xea] sm:$0x1]  ;;  %v747_v32 = vld [vmem:[%s2264_s12 + $0xeb] sm:$0x1]  ;;  %v236_v33 = vld [vmem:[%s2264_s12 + $0xec] sm:$0x1] }
  0x85   : > { %1769 = vst.msk [vmem:[%s2269_s15 + $0x72] sm:$0x1] %vm1654_vm0, %v1256_v25  ;;  %v1259_v34 = vmax.f32 %v235_v31, %v747_v32  ;;  %v748_v35 = vld [vmem:[%s2264_s12 + $0xed] sm:$0x1]  ;;  %v237_v36 = vld [vmem:[%s2264_s12 + $0xee] sm:$0x1] }
  0x86   : > { %v749_v37 = vld [vmem:[%s2264_s12 + $0xef] sm:$0x1]  ;;  %1770 = vst.msk [vmem:[%s2269_s15 + $0x73] sm:$0x1] %vm1654_vm0, %v1257_v29  ;;  %1771 = vst.msk [vmem:[%s2269_s15 + $0x74] sm:$0x1] %vm1654_vm0, %v1258_v30  ;;  %v1260_v38 = vmax.f32 %v236_v33, %v748_v35 }
  0x87   : > { %v1261_v39 = vmax.f32 %v237_v36, %v749_v37  ;;  %v238_v40 = vld [vmem:[%s2264_s12 + $0xf0] sm:$0x1]  ;;  %v750_v41 = vld [vmem:[%s2264_s12 + $0xf1] sm:$0x1]  ;;  %v239_v42 = vld [vmem:[%s2264_s12 + $0xf2] sm:$0x1] }
  0x88   : > { %1772 = vst.msk [vmem:[%s2269_s15 + $0x75] sm:$0x1] %vm1654_vm0, %v1259_v34  ;;  %v1262_v43 = vmax.f32 %v238_v40, %v750_v41  ;;  %v751_v44 = vld [vmem:[%s2264_s12 + $0xf3] sm:$0x1]  ;;  %v240_v45 = vld [vmem:[%s2264_s12 + $0xf4] sm:$0x1] }
  0x89   : > { %v752_v46 = vld [vmem:[%s2264_s12 + $0xf5] sm:$0x1]  ;;  %1773 = vst.msk [vmem:[%s2269_s15 + $0x76] sm:$0x1] %vm1654_vm0, %v1260_v38  ;;  %1774 = vst.msk [vmem:[%s2269_s15 + $0x77] sm:$0x1] %vm1654_vm0, %v1261_v39  ;;  %v1263_v47 = vmax.f32 %v239_v42, %v751_v44 }
  0x8a   : > { %v1264_v48 = vmax.f32 %v240_v45, %v752_v46  ;;  %v241_v49 = vld [vmem:[%s2264_s12 + $0xf6] sm:$0x1]  ;;  %v753_v50 = vld [vmem:[%s2264_s12 + $0xf7] sm:$0x1]  ;;  %v242_v51 = vld [vmem:[%s2264_s12 + $0xf8] sm:$0x1] }
  0x8b   : > { %1775 = vst.msk [vmem:[%s2269_s15 + $0x78] sm:$0x1] %vm1654_vm0, %v1262_v43  ;;  %v1265_v52 = vmax.f32 %v241_v49, %v753_v50  ;;  %v754_v53 = vld [vmem:[%s2264_s12 + $0xf9] sm:$0x1]  ;;  %v243_v54 = vld [vmem:[%s2264_s12 + $0xfa] sm:$0x1] }
  0x8c   : > { %v755_v55 = vld [vmem:[%s2264_s12 + $0xfb] sm:$0x1]  ;;  %1776 = vst.msk [vmem:[%s2269_s15 + $0x79] sm:$0x1] %vm1654_vm0, %v1263_v47  ;;  %1777 = vst.msk [vmem:[%s2269_s15 + $0x7a] sm:$0x1] %vm1654_vm0, %v1264_v48  ;;  %v1266_v56 = vmax.f32 %v242_v51, %v754_v53 }
  0x8d   : > { %v1267_v57 = vmax.f32 %v243_v54, %v755_v55  ;;  %v244_v58 = vld [vmem:[%s2264_s12 + $0xfc] sm:$0x1]  ;;  %v756_v59 = vld [vmem:[%s2264_s12 + $0xfd] sm:$0x1]  ;;  %v245_v60 = vld [vmem:[%s2264_s12 + $0xfe] sm:$0x1] }
  0x8e   : > { %1778 = vst.msk [vmem:[%s2269_s15 + $0x7b] sm:$0x1] %vm1654_vm0, %v1265_v52  ;;  %v1268_v61 = vmax.f32 %v244_v58, %v756_v59  ;;  %v757_v62 = vld [vmem:[%s2264_s12 + $0xff] sm:$0x1]  ;;  %v246_v63 = vld [vmem:[%s2264_s12 + $0x100] sm:$0x1] }
  0x8f   : > { %v758_v0 = vld [vmem:[%s2264_s12 + $0x101] sm:$0x1]  ;;  %1779 = vst.msk [vmem:[%s2269_s15 + $0x7c] sm:$0x1] %vm1654_vm0, %v1266_v56  ;;  %1780 = vst.msk [vmem:[%s2269_s15 + $0x7d] sm:$0x1] %vm1654_vm0, %v1267_v57  ;;  %v1269_v1 = vmax.f32 %v245_v60, %v757_v62 }
  0x90   : > { %v1270_v2 = vmax.f32 %v246_v63, %v758_v0  ;;  %v247_v3 = vld [vmem:[%s2264_s12 + $0x102] sm:$0x1]  ;;  %v759_v4 = vld [vmem:[%s2264_s12 + $0x103] sm:$0x1]  ;;  %v248_v5 = vld [vmem:[%s2264_s12 + $0x104] sm:$0x1] }
  0x91   : > { %1781 = vst.msk [vmem:[%s2269_s15 + $0x7e] sm:$0x1] %vm1654_vm0, %v1268_v61  ;;  %v1271_v6 = vmax.f32 %v247_v3, %v759_v4  ;;  %v760_v7 = vld [vmem:[%s2264_s12 + $0x105] sm:$0x1]  ;;  %v249_v8 = vld [vmem:[%s2264_s12 + $0x106] sm:$0x1] }
  0x92   : > { %v761_v9 = vld [vmem:[%s2264_s12 + $0x107] sm:$0x1]  ;;  %1782 = vst.msk [vmem:[%s2269_s15 + $0x7f] sm:$0x1] %vm1654_vm0, %v1269_v1  ;;  %1783 = vst.msk [vmem:[%s2269_s15 + $0x80] sm:$0x1] %vm1654_vm0, %v1270_v2  ;;  %v1272_v10 = vmax.f32 %v248_v5, %v760_v7 }
  0x93   : > { %v1273_v11 = vmax.f32 %v249_v8, %v761_v9  ;;  %v250_v12 = vld [vmem:[%s2264_s12 + $0x108] sm:$0x1]  ;;  %v762_v13 = vld [vmem:[%s2264_s12 + $0x109] sm:$0x1]  ;;  %v251_v14 = vld [vmem:[%s2264_s12 + $0x10a] sm:$0x1] }
  0x94   : > { %1784 = vst.msk [vmem:[%s2269_s15 + $0x81] sm:$0x1] %vm1654_vm0, %v1271_v6  ;;  %v1274_v15 = vmax.f32 %v250_v12, %v762_v13  ;;  %v763_v16 = vld [vmem:[%s2264_s12 + $0x10b] sm:$0x1]  ;;  %v252_v17 = vld [vmem:[%s2264_s12 + $0x10c] sm:$0x1] }
  0x95   : > { %v764_v18 = vld [vmem:[%s2264_s12 + $0x10d] sm:$0x1]  ;;  %1785 = vst.msk [vmem:[%s2269_s15 + $0x82] sm:$0x1] %vm1654_vm0, %v1272_v10  ;;  %1786 = vst.msk [vmem:[%s2269_s15 + $0x83] sm:$0x1] %vm1654_vm0, %v1273_v11  ;;  %v1275_v19 = vmax.f32 %v251_v14, %v763_v16 }
  0x96   : > { %v1276_v20 = vmax.f32 %v252_v17, %v764_v18  ;;  %v253_v21 = vld [vmem:[%s2264_s12 + $0x10e] sm:$0x1]  ;;  %v765_v22 = vld [vmem:[%s2264_s12 + $0x10f] sm:$0x1]  ;;  %v254_v23 = vld [vmem:[%s2264_s12 + $0x110] sm:$0x1] }
  0x97   : > { %1787 = vst.msk [vmem:[%s2269_s15 + $0x84] sm:$0x1] %vm1654_vm0, %v1274_v15  ;;  %v1277_v24 = vmax.f32 %v253_v21, %v765_v22  ;;  %v766_v25 = vld [vmem:[%s2264_s12 + $0x111] sm:$0x1]  ;;  %v255_v26 = vld [vmem:[%s2264_s12 + $0x112] sm:$0x1] }
  0x98   : > { %v767_v27 = vld [vmem:[%s2264_s12 + $0x113] sm:$0x1]  ;;  %1788 = vst.msk [vmem:[%s2269_s15 + $0x85] sm:$0x1] %vm1654_vm0, %v1275_v19  ;;  %1789 = vst.msk [vmem:[%s2269_s15 + $0x86] sm:$0x1] %vm1654_vm0, %v1276_v20  ;;  %v1278_v28 = vmax.f32 %v254_v23, %v766_v25 }
  0x99   : > { %v1279_v29 = vmax.f32 %v255_v26, %v767_v27  ;;  %v256_v30 = vld [vmem:[%s2264_s12 + $0x114] sm:$0x1]  ;;  %v768_v31 = vld [vmem:[%s2264_s12 + $0x115] sm:$0x1]  ;;  %v257_v32 = vld [vmem:[%s2264_s12 + $0x116] sm:$0x1] }
  0x9a   : > { %1790 = vst.msk [vmem:[%s2269_s15 + $0x87] sm:$0x1] %vm1654_vm0, %v1277_v24  ;;  %v1280_v33 = vmax.f32 %v256_v30, %v768_v31  ;;  %v769_v34 = vld [vmem:[%s2264_s12 + $0x117] sm:$0x1]  ;;  %v258_v35 = vld [vmem:[%s2264_s12 + $0x118] sm:$0x1] }
  0x9b   : > { %v770_v36 = vld [vmem:[%s2264_s12 + $0x119] sm:$0x1]  ;;  %1791 = vst.msk [vmem:[%s2269_s15 + $0x88] sm:$0x1] %vm1654_vm0, %v1278_v28  ;;  %1792 = vst.msk [vmem:[%s2269_s15 + $0x89] sm:$0x1] %vm1654_vm0, %v1279_v29  ;;  %v1281_v37 = vmax.f32 %v257_v32, %v769_v34 }
  0x9c   : > { %v1282_v38 = vmax.f32 %v258_v35, %v770_v36  ;;  %v259_v39 = vld [vmem:[%s2264_s12 + $0x11a] sm:$0x1]  ;;  %v771_v40 = vld [vmem:[%s2264_s12 + $0x11b] sm:$0x1]  ;;  %v260_v41 = vld [vmem:[%s2264_s12 + $0x11c] sm:$0x1] }
  0x9d   : > { %1793 = vst.msk [vmem:[%s2269_s15 + $0x8a] sm:$0x1] %vm1654_vm0, %v1280_v33  ;;  %v1283_v42 = vmax.f32 %v259_v39, %v771_v40  ;;  %v772_v43 = vld [vmem:[%s2264_s12 + $0x11d] sm:$0x1]  ;;  %v261_v44 = vld [vmem:[%s2264_s12 + $0x11e] sm:$0x1] }
  0x9e   : > { %v773_v45 = vld [vmem:[%s2264_s12 + $0x11f] sm:$0x1]  ;;  %1794 = vst.msk [vmem:[%s2269_s15 + $0x8b] sm:$0x1] %vm1654_vm0, %v1281_v37  ;;  %1795 = vst.msk [vmem:[%s2269_s15 + $0x8c] sm:$0x1] %vm1654_vm0, %v1282_v38  ;;  %v1284_v46 = vmax.f32 %v260_v41, %v772_v43 }
  0x9f   : > { %v1285_v47 = vmax.f32 %v261_v44, %v773_v45  ;;  %v262_v48 = vld [vmem:[%s2264_s12 + $0x120] sm:$0x1]  ;;  %v774_v49 = vld [vmem:[%s2264_s12 + $0x121] sm:$0x1]  ;;  %v263_v50 = vld [vmem:[%s2264_s12 + $0x122] sm:$0x1] }
  0xa0   : > { %1796 = vst.msk [vmem:[%s2269_s15 + $0x8d] sm:$0x1] %vm1654_vm0, %v1283_v42  ;;  %v1286_v51 = vmax.f32 %v262_v48, %v774_v49  ;;  %v775_v52 = vld [vmem:[%s2264_s12 + $0x123] sm:$0x1]  ;;  %v264_v53 = vld [vmem:[%s2264_s12 + $0x124] sm:$0x1] }
  0xa1   : > { %v776_v54 = vld [vmem:[%s2264_s12 + $0x125] sm:$0x1]  ;;  %1797 = vst.msk [vmem:[%s2269_s15 + $0x8e] sm:$0x1] %vm1654_vm0, %v1284_v46  ;;  %1798 = vst.msk [vmem:[%s2269_s15 + $0x8f] sm:$0x1] %vm1654_vm0, %v1285_v47  ;;  %v1287_v55 = vmax.f32 %v263_v50, %v775_v52 }
  0xa2   : > { %v1288_v56 = vmax.f32 %v264_v53, %v776_v54  ;;  %v265_v57 = vld [vmem:[%s2264_s12 + $0x126] sm:$0x1]  ;;  %v777_v58 = vld [vmem:[%s2264_s12 + $0x127] sm:$0x1]  ;;  %v266_v59 = vld [vmem:[%s2264_s12 + $0x128] sm:$0x1] }
  0xa3   : > { %1799 = vst.msk [vmem:[%s2269_s15 + $0x90] sm:$0x1] %vm1654_vm0, %v1286_v51  ;;  %v1289_v60 = vmax.f32 %v265_v57, %v777_v58  ;;  %v778_v61 = vld [vmem:[%s2264_s12 + $0x129] sm:$0x1]  ;;  %v267_v62 = vld [vmem:[%s2264_s12 + $0x12a] sm:$0x1] }
  0xa4   : > { %v779_v63 = vld [vmem:[%s2264_s12 + $0x12b] sm:$0x1]  ;;  %1800 = vst.msk [vmem:[%s2269_s15 + $0x91] sm:$0x1] %vm1654_vm0, %v1287_v55  ;;  %1801 = vst.msk [vmem:[%s2269_s15 + $0x92] sm:$0x1] %vm1654_vm0, %v1288_v56  ;;  %v1290_v0 = vmax.f32 %v266_v59, %v778_v61 }
  0xa5   : > { %v1291_v1 = vmax.f32 %v267_v62, %v779_v63  ;;  %v268_v2 = vld [vmem:[%s2264_s12 + $0x12c] sm:$0x1]  ;;  %v780_v3 = vld [vmem:[%s2264_s12 + $0x12d] sm:$0x1]  ;;  %v269_v4 = vld [vmem:[%s2264_s12 + $0x12e] sm:$0x1] }
  0xa6   : > { %1802 = vst.msk [vmem:[%s2269_s15 + $0x93] sm:$0x1] %vm1654_vm0, %v1289_v60  ;;  %v1292_v5 = vmax.f32 %v268_v2, %v780_v3  ;;  %v781_v6 = vld [vmem:[%s2264_s12 + $0x12f] sm:$0x1]  ;;  %v270_v7 = vld [vmem:[%s2264_s12 + $0x130] sm:$0x1] }
  0xa7   : > { %v782_v8 = vld [vmem:[%s2264_s12 + $0x131] sm:$0x1]  ;;  %1803 = vst.msk [vmem:[%s2269_s15 + $0x94] sm:$0x1] %vm1654_vm0, %v1290_v0  ;;  %1804 = vst.msk [vmem:[%s2269_s15 + $0x95] sm:$0x1] %vm1654_vm0, %v1291_v1  ;;  %v1293_v9 = vmax.f32 %v269_v4, %v781_v6 }
  0xa8   : > { %v1294_v10 = vmax.f32 %v270_v7, %v782_v8  ;;  %v271_v11 = vld [vmem:[%s2264_s12 + $0x132] sm:$0x1]  ;;  %v783_v12 = vld [vmem:[%s2264_s12 + $0x133] sm:$0x1]  ;;  %v272_v13 = vld [vmem:[%s2264_s12 + $0x134] sm:$0x1] }
  0xa9   : > { %1805 = vst.msk [vmem:[%s2269_s15 + $0x96] sm:$0x1] %vm1654_vm0, %v1292_v5  ;;  %v1295_v14 = vmax.f32 %v271_v11, %v783_v12  ;;  %v784_v15 = vld [vmem:[%s2264_s12 + $0x135] sm:$0x1]  ;;  %v273_v16 = vld [vmem:[%s2264_s12 + $0x136] sm:$0x1] }
  0xaa   : > { %v785_v17 = vld [vmem:[%s2264_s12 + $0x137] sm:$0x1]  ;;  %1806 = vst.msk [vmem:[%s2269_s15 + $0x97] sm:$0x1] %vm1654_vm0, %v1293_v9  ;;  %1807 = vst.msk [vmem:[%s2269_s15 + $0x98] sm:$0x1] %vm1654_vm0, %v1294_v10  ;;  %v1296_v18 = vmax.f32 %v272_v13, %v784_v15 }
  0xab   : > { %v1297_v19 = vmax.f32 %v273_v16, %v785_v17  ;;  %v274_v20 = vld [vmem:[%s2264_s12 + $0x138] sm:$0x1]  ;;  %v786_v21 = vld [vmem:[%s2264_s12 + $0x139] sm:$0x1]  ;;  %v275_v22 = vld [vmem:[%s2264_s12 + $0x13a] sm:$0x1] }
  0xac   : > { %1808 = vst.msk [vmem:[%s2269_s15 + $0x99] sm:$0x1] %vm1654_vm0, %v1295_v14  ;;  %v1298_v23 = vmax.f32 %v274_v20, %v786_v21  ;;  %v787_v24 = vld [vmem:[%s2264_s12 + $0x13b] sm:$0x1]  ;;  %v276_v25 = vld [vmem:[%s2264_s12 + $0x13c] sm:$0x1] }
  0xad   : > { %v788_v26 = vld [vmem:[%s2264_s12 + $0x13d] sm:$0x1]  ;;  %1809 = vst.msk [vmem:[%s2269_s15 + $0x9a] sm:$0x1] %vm1654_vm0, %v1296_v18  ;;  %1810 = vst.msk [vmem:[%s2269_s15 + $0x9b] sm:$0x1] %vm1654_vm0, %v1297_v19  ;;  %v1299_v27 = vmax.f32 %v275_v22, %v787_v24 }
  0xae   : > { %v1300_v28 = vmax.f32 %v276_v25, %v788_v26  ;;  %v277_v29 = vld [vmem:[%s2264_s12 + $0x13e] sm:$0x1]  ;;  %v789_v30 = vld [vmem:[%s2264_s12 + $0x13f] sm:$0x1]  ;;  %v278_v31 = vld [vmem:[%s2264_s12 + $0x140] sm:$0x1] }
  0xaf   : > { %1811 = vst.msk [vmem:[%s2269_s15 + $0x9c] sm:$0x1] %vm1654_vm0, %v1298_v23  ;;  %v1301_v32 = vmax.f32 %v277_v29, %v789_v30  ;;  %v790_v33 = vld [vmem:[%s2264_s12 + $0x141] sm:$0x1]  ;;  %v279_v34 = vld [vmem:[%s2264_s12 + $0x142] sm:$0x1] }
  0xb0   : > { %v791_v35 = vld [vmem:[%s2264_s12 + $0x143] sm:$0x1]  ;;  %1812 = vst.msk [vmem:[%s2269_s15 + $0x9d] sm:$0x1] %vm1654_vm0, %v1299_v27  ;;  %1813 = vst.msk [vmem:[%s2269_s15 + $0x9e] sm:$0x1] %vm1654_vm0, %v1300_v28  ;;  %v1302_v36 = vmax.f32 %v278_v31, %v790_v33 }
  0xb1   : > { %v1303_v37 = vmax.f32 %v279_v34, %v791_v35  ;;  %v280_v38 = vld [vmem:[%s2264_s12 + $0x144] sm:$0x1]  ;;  %v792_v39 = vld [vmem:[%s2264_s12 + $0x145] sm:$0x1]  ;;  %v281_v40 = vld [vmem:[%s2264_s12 + $0x146] sm:$0x1] }
  0xb2   : > { %1814 = vst.msk [vmem:[%s2269_s15 + $0x9f] sm:$0x1] %vm1654_vm0, %v1301_v32  ;;  %v1304_v41 = vmax.f32 %v280_v38, %v792_v39  ;;  %v793_v42 = vld [vmem:[%s2264_s12 + $0x147] sm:$0x1]  ;;  %v282_v43 = vld [vmem:[%s2264_s12 + $0x148] sm:$0x1] }
  0xb3   : > { %v794_v44 = vld [vmem:[%s2264_s12 + $0x149] sm:$0x1]  ;;  %1815 = vst.msk [vmem:[%s2269_s15 + $0xa0] sm:$0x1] %vm1654_vm0, %v1302_v36  ;;  %1816 = vst.msk [vmem:[%s2269_s15 + $0xa1] sm:$0x1] %vm1654_vm0, %v1303_v37  ;;  %v1305_v45 = vmax.f32 %v281_v40, %v793_v42 }
  0xb4   : > { %v1306_v46 = vmax.f32 %v282_v43, %v794_v44  ;;  %v283_v47 = vld [vmem:[%s2264_s12 + $0x14a] sm:$0x1]  ;;  %v795_v48 = vld [vmem:[%s2264_s12 + $0x14b] sm:$0x1]  ;;  %v284_v49 = vld [vmem:[%s2264_s12 + $0x14c] sm:$0x1] }
  0xb5   : > { %1817 = vst.msk [vmem:[%s2269_s15 + $0xa2] sm:$0x1] %vm1654_vm0, %v1304_v41  ;;  %v1307_v50 = vmax.f32 %v283_v47, %v795_v48  ;;  %v796_v51 = vld [vmem:[%s2264_s12 + $0x14d] sm:$0x1]  ;;  %v285_v52 = vld [vmem:[%s2264_s12 + $0x14e] sm:$0x1] }
  0xb6   : > { %v797_v53 = vld [vmem:[%s2264_s12 + $0x14f] sm:$0x1]  ;;  %1818 = vst.msk [vmem:[%s2269_s15 + $0xa3] sm:$0x1] %vm1654_vm0, %v1305_v45  ;;  %1819 = vst.msk [vmem:[%s2269_s15 + $0xa4] sm:$0x1] %vm1654_vm0, %v1306_v46  ;;  %v1308_v54 = vmax.f32 %v284_v49, %v796_v51 }
  0xb7   : > { %v1309_v55 = vmax.f32 %v285_v52, %v797_v53  ;;  %v286_v56 = vld [vmem:[%s2264_s12 + $0x150] sm:$0x1]  ;;  %v798_v57 = vld [vmem:[%s2264_s12 + $0x151] sm:$0x1]  ;;  %v287_v58 = vld [vmem:[%s2264_s12 + $0x152] sm:$0x1] }
  0xb8   : > { %1820 = vst.msk [vmem:[%s2269_s15 + $0xa5] sm:$0x1] %vm1654_vm0, %v1307_v50  ;;  %v1310_v59 = vmax.f32 %v286_v56, %v798_v57  ;;  %v799_v60 = vld [vmem:[%s2264_s12 + $0x153] sm:$0x1]  ;;  %v288_v61 = vld [vmem:[%s2264_s12 + $0x154] sm:$0x1] }
  0xb9   : > { %v800_v62 = vld [vmem:[%s2264_s12 + $0x155] sm:$0x1]  ;;  %1821 = vst.msk [vmem:[%s2269_s15 + $0xa6] sm:$0x1] %vm1654_vm0, %v1308_v54  ;;  %1822 = vst.msk [vmem:[%s2269_s15 + $0xa7] sm:$0x1] %vm1654_vm0, %v1309_v55  ;;  %v1311_v63 = vmax.f32 %v287_v58, %v799_v60 }
  0xba   : > { %v1312_v0 = vmax.f32 %v288_v61, %v800_v62  ;;  %v289_v1 = vld [vmem:[%s2264_s12 + $0x156] sm:$0x1]  ;;  %v801_v2 = vld [vmem:[%s2264_s12 + $0x157] sm:$0x1]  ;;  %v290_v3 = vld [vmem:[%s2264_s12 + $0x158] sm:$0x1] }
  0xbb   : > { %1823 = vst.msk [vmem:[%s2269_s15 + $0xa8] sm:$0x1] %vm1654_vm0, %v1310_v59  ;;  %v1313_v4 = vmax.f32 %v289_v1, %v801_v2  ;;  %v802_v5 = vld [vmem:[%s2264_s12 + $0x159] sm:$0x1]  ;;  %v291_v6 = vld [vmem:[%s2264_s12 + $0x15a] sm:$0x1] }
  0xbc   : > { %v803_v7 = vld [vmem:[%s2264_s12 + $0x15b] sm:$0x1]  ;;  %1824 = vst.msk [vmem:[%s2269_s15 + $0xa9] sm:$0x1] %vm1654_vm0, %v1311_v63  ;;  %1825 = vst.msk [vmem:[%s2269_s15 + $0xaa] sm:$0x1] %vm1654_vm0, %v1312_v0  ;;  %v1314_v8 = vmax.f32 %v290_v3, %v802_v5 }
  0xbd   : > { %v1315_v9 = vmax.f32 %v291_v6, %v803_v7  ;;  %v292_v10 = vld [vmem:[%s2264_s12 + $0x15c] sm:$0x1]  ;;  %v804_v11 = vld [vmem:[%s2264_s12 + $0x15d] sm:$0x1]  ;;  %v293_v12 = vld [vmem:[%s2264_s12 + $0x15e] sm:$0x1] }
  0xbe   : > { %1826 = vst.msk [vmem:[%s2269_s15 + $0xab] sm:$0x1] %vm1654_vm0, %v1313_v4  ;;  %v1316_v13 = vmax.f32 %v292_v10, %v804_v11  ;;  %v805_v14 = vld [vmem:[%s2264_s12 + $0x15f] sm:$0x1]  ;;  %v294_v15 = vld [vmem:[%s2264_s12 + $0x160] sm:$0x1] }
  0xbf   : > { %v806_v16 = vld [vmem:[%s2264_s12 + $0x161] sm:$0x1]  ;;  %1827 = vst.msk [vmem:[%s2269_s15 + $0xac] sm:$0x1] %vm1654_vm0, %v1314_v8  ;;  %1828 = vst.msk [vmem:[%s2269_s15 + $0xad] sm:$0x1] %vm1654_vm0, %v1315_v9  ;;  %v1317_v17 = vmax.f32 %v293_v12, %v805_v14 }
  0xc0   : > { %v1318_v18 = vmax.f32 %v294_v15, %v806_v16  ;;  %v295_v19 = vld [vmem:[%s2264_s12 + $0x162] sm:$0x1]  ;;  %v807_v20 = vld [vmem:[%s2264_s12 + $0x163] sm:$0x1]  ;;  %v296_v21 = vld [vmem:[%s2264_s12 + $0x164] sm:$0x1] }
  0xc1   : > { %1829 = vst.msk [vmem:[%s2269_s15 + $0xae] sm:$0x1] %vm1654_vm0, %v1316_v13  ;;  %v1319_v22 = vmax.f32 %v295_v19, %v807_v20  ;;  %v808_v23 = vld [vmem:[%s2264_s12 + $0x165] sm:$0x1]  ;;  %v297_v24 = vld [vmem:[%s2264_s12 + $0x166] sm:$0x1] }
  0xc2   : > { %v809_v25 = vld [vmem:[%s2264_s12 + $0x167] sm:$0x1]  ;;  %1830 = vst.msk [vmem:[%s2269_s15 + $0xaf] sm:$0x1] %vm1654_vm0, %v1317_v17  ;;  %1831 = vst.msk [vmem:[%s2269_s15 + $0xb0] sm:$0x1] %vm1654_vm0, %v1318_v18  ;;  %v1320_v26 = vmax.f32 %v296_v21, %v808_v23 }
  0xc3   : > { %v1321_v27 = vmax.f32 %v297_v24, %v809_v25  ;;  %v298_v28 = vld [vmem:[%s2264_s12 + $0x168] sm:$0x1]  ;;  %v810_v29 = vld [vmem:[%s2264_s12 + $0x169] sm:$0x1]  ;;  %v299_v30 = vld [vmem:[%s2264_s12 + $0x16a] sm:$0x1] }
  0xc4   : > { %1832 = vst.msk [vmem:[%s2269_s15 + $0xb1] sm:$0x1] %vm1654_vm0, %v1319_v22  ;;  %v1322_v31 = vmax.f32 %v298_v28, %v810_v29  ;;  %v811_v32 = vld [vmem:[%s2264_s12 + $0x16b] sm:$0x1]  ;;  %v300_v33 = vld [vmem:[%s2264_s12 + $0x16c] sm:$0x1] }
  0xc5   : > { %v812_v34 = vld [vmem:[%s2264_s12 + $0x16d] sm:$0x1]  ;;  %1833 = vst.msk [vmem:[%s2269_s15 + $0xb2] sm:$0x1] %vm1654_vm0, %v1320_v26  ;;  %1834 = vst.msk [vmem:[%s2269_s15 + $0xb3] sm:$0x1] %vm1654_vm0, %v1321_v27  ;;  %v1323_v35 = vmax.f32 %v299_v30, %v811_v32 }
  0xc6   : > { %v1324_v36 = vmax.f32 %v300_v33, %v812_v34  ;;  %v301_v37 = vld [vmem:[%s2264_s12 + $0x16e] sm:$0x1]  ;;  %v813_v38 = vld [vmem:[%s2264_s12 + $0x16f] sm:$0x1]  ;;  %v302_v39 = vld [vmem:[%s2264_s12 + $0x170] sm:$0x1] }
  0xc7   : > { %1835 = vst.msk [vmem:[%s2269_s15 + $0xb4] sm:$0x1] %vm1654_vm0, %v1322_v31  ;;  %v1325_v40 = vmax.f32 %v301_v37, %v813_v38  ;;  %v814_v41 = vld [vmem:[%s2264_s12 + $0x171] sm:$0x1]  ;;  %v303_v42 = vld [vmem:[%s2264_s12 + $0x172] sm:$0x1] }
  0xc8   : > { %v815_v43 = vld [vmem:[%s2264_s12 + $0x173] sm:$0x1]  ;;  %1836 = vst.msk [vmem:[%s2269_s15 + $0xb5] sm:$0x1] %vm1654_vm0, %v1323_v35  ;;  %1837 = vst.msk [vmem:[%s2269_s15 + $0xb6] sm:$0x1] %vm1654_vm0, %v1324_v36  ;;  %v1326_v44 = vmax.f32 %v302_v39, %v814_v41 }
  0xc9   : > { %v1327_v45 = vmax.f32 %v303_v42, %v815_v43  ;;  %v304_v46 = vld [vmem:[%s2264_s12 + $0x174] sm:$0x1]  ;;  %v816_v47 = vld [vmem:[%s2264_s12 + $0x175] sm:$0x1]  ;;  %v305_v48 = vld [vmem:[%s2264_s12 + $0x176] sm:$0x1] }
  0xca   : > { %1838 = vst.msk [vmem:[%s2269_s15 + $0xb7] sm:$0x1] %vm1654_vm0, %v1325_v40  ;;  %v1328_v49 = vmax.f32 %v304_v46, %v816_v47  ;;  %v817_v50 = vld [vmem:[%s2264_s12 + $0x177] sm:$0x1]  ;;  %v306_v51 = vld [vmem:[%s2264_s12 + $0x178] sm:$0x1] }
  0xcb   : > { %v818_v52 = vld [vmem:[%s2264_s12 + $0x179] sm:$0x1]  ;;  %1839 = vst.msk [vmem:[%s2269_s15 + $0xb8] sm:$0x1] %vm1654_vm0, %v1326_v44  ;;  %1840 = vst.msk [vmem:[%s2269_s15 + $0xb9] sm:$0x1] %vm1654_vm0, %v1327_v45  ;;  %v1329_v53 = vmax.f32 %v305_v48, %v817_v50 }
  0xcc   : > { %v1330_v54 = vmax.f32 %v306_v51, %v818_v52  ;;  %v307_v55 = vld [vmem:[%s2264_s12 + $0x17a] sm:$0x1]  ;;  %v819_v56 = vld [vmem:[%s2264_s12 + $0x17b] sm:$0x1]  ;;  %v308_v57 = vld [vmem:[%s2264_s12 + $0x17c] sm:$0x1] }
  0xcd   : > { %1841 = vst.msk [vmem:[%s2269_s15 + $0xba] sm:$0x1] %vm1654_vm0, %v1328_v49  ;;  %v1331_v58 = vmax.f32 %v307_v55, %v819_v56  ;;  %v820_v59 = vld [vmem:[%s2264_s12 + $0x17d] sm:$0x1]  ;;  %v309_v60 = vld [vmem:[%s2264_s12 + $0x17e] sm:$0x1] }
  0xce   : > { %v821_v61 = vld [vmem:[%s2264_s12 + $0x17f] sm:$0x1]  ;;  %1842 = vst.msk [vmem:[%s2269_s15 + $0xbb] sm:$0x1] %vm1654_vm0, %v1329_v53  ;;  %1843 = vst.msk [vmem:[%s2269_s15 + $0xbc] sm:$0x1] %vm1654_vm0, %v1330_v54  ;;  %v1332_v62 = vmax.f32 %v308_v57, %v820_v59 }
  0xcf   : > { %v1333_v63 = vmax.f32 %v309_v60, %v821_v61  ;;  %v310_v0 = vld [vmem:[%s2264_s12 + $0x180] sm:$0x1]  ;;  %v822_v1 = vld [vmem:[%s2264_s12 + $0x181] sm:$0x1]  ;;  %v311_v2 = vld [vmem:[%s2264_s12 + $0x182] sm:$0x1] }
  0xd0   : > { %1844 = vst.msk [vmem:[%s2269_s15 + $0xbd] sm:$0x1] %vm1654_vm0, %v1331_v58  ;;  %v1334_v3 = vmax.f32 %v310_v0, %v822_v1  ;;  %v823_v4 = vld [vmem:[%s2264_s12 + $0x183] sm:$0x1]  ;;  %v312_v5 = vld [vmem:[%s2264_s12 + $0x184] sm:$0x1] }
  0xd1   : > { %v824_v6 = vld [vmem:[%s2264_s12 + $0x185] sm:$0x1]  ;;  %1845 = vst.msk [vmem:[%s2269_s15 + $0xbe] sm:$0x1] %vm1654_vm0, %v1332_v62  ;;  %1846 = vst.msk [vmem:[%s2269_s15 + $0xbf] sm:$0x1] %vm1654_vm0, %v1333_v63  ;;  %v1335_v7 = vmax.f32 %v311_v2, %v823_v4 }
  0xd2   : > { %v1336_v8 = vmax.f32 %v312_v5, %v824_v6  ;;  %v313_v9 = vld [vmem:[%s2264_s12 + $0x186] sm:$0x1]  ;;  %v825_v10 = vld [vmem:[%s2264_s12 + $0x187] sm:$0x1]  ;;  %v314_v11 = vld [vmem:[%s2264_s12 + $0x188] sm:$0x1] }
  0xd3   : > { %1847 = vst.msk [vmem:[%s2269_s15 + $0xc0] sm:$0x1] %vm1654_vm0, %v1334_v3  ;;  %v1337_v12 = vmax.f32 %v313_v9, %v825_v10  ;;  %v826_v13 = vld [vmem:[%s2264_s12 + $0x189] sm:$0x1]  ;;  %v315_v14 = vld [vmem:[%s2264_s12 + $0x18a] sm:$0x1] }
  0xd4   : > { %v827_v15 = vld [vmem:[%s2264_s12 + $0x18b] sm:$0x1]  ;;  %1848 = vst.msk [vmem:[%s2269_s15 + $0xc1] sm:$0x1] %vm1654_vm0, %v1335_v7  ;;  %1849 = vst.msk [vmem:[%s2269_s15 + $0xc2] sm:$0x1] %vm1654_vm0, %v1336_v8  ;;  %v1338_v16 = vmax.f32 %v314_v11, %v826_v13 }
  0xd5   : > { %v1339_v17 = vmax.f32 %v315_v14, %v827_v15  ;;  %v316_v18 = vld [vmem:[%s2264_s12 + $0x18c] sm:$0x1]  ;;  %v828_v19 = vld [vmem:[%s2264_s12 + $0x18d] sm:$0x1]  ;;  %v317_v20 = vld [vmem:[%s2264_s12 + $0x18e] sm:$0x1] }
  0xd6   : > { %1850 = vst.msk [vmem:[%s2269_s15 + $0xc3] sm:$0x1] %vm1654_vm0, %v1337_v12  ;;  %v1340_v21 = vmax.f32 %v316_v18, %v828_v19  ;;  %v829_v22 = vld [vmem:[%s2264_s12 + $0x18f] sm:$0x1]  ;;  %v318_v23 = vld [vmem:[%s2264_s12 + $0x190] sm:$0x1] }
  0xd7   : > { %v830_v24 = vld [vmem:[%s2264_s12 + $0x191] sm:$0x1]  ;;  %1851 = vst.msk [vmem:[%s2269_s15 + $0xc4] sm:$0x1] %vm1654_vm0, %v1338_v16  ;;  %1852 = vst.msk [vmem:[%s2269_s15 + $0xc5] sm:$0x1] %vm1654_vm0, %v1339_v17  ;;  %v1341_v25 = vmax.f32 %v317_v20, %v829_v22 }
  0xd8   : > { %v1342_v26 = vmax.f32 %v318_v23, %v830_v24  ;;  %v319_v27 = vld [vmem:[%s2264_s12 + $0x192] sm:$0x1]  ;;  %v831_v28 = vld [vmem:[%s2264_s12 + $0x193] sm:$0x1]  ;;  %v320_v29 = vld [vmem:[%s2264_s12 + $0x194] sm:$0x1] }
  0xd9   : > { %1853 = vst.msk [vmem:[%s2269_s15 + $0xc6] sm:$0x1] %vm1654_vm0, %v1340_v21  ;;  %v1343_v30 = vmax.f32 %v319_v27, %v831_v28  ;;  %v832_v31 = vld [vmem:[%s2264_s12 + $0x195] sm:$0x1]  ;;  %v321_v32 = vld [vmem:[%s2264_s12 + $0x196] sm:$0x1] }
  0xda   : > { %v833_v33 = vld [vmem:[%s2264_s12 + $0x197] sm:$0x1]  ;;  %1854 = vst.msk [vmem:[%s2269_s15 + $0xc7] sm:$0x1] %vm1654_vm0, %v1341_v25  ;;  %1855 = vst.msk [vmem:[%s2269_s15 + $0xc8] sm:$0x1] %vm1654_vm0, %v1342_v26  ;;  %v1344_v34 = vmax.f32 %v320_v29, %v832_v31 }
  0xdb   : > { %v1345_v35 = vmax.f32 %v321_v32, %v833_v33  ;;  %v322_v36 = vld [vmem:[%s2264_s12 + $0x198] sm:$0x1]  ;;  %v834_v37 = vld [vmem:[%s2264_s12 + $0x199] sm:$0x1]  ;;  %v323_v38 = vld [vmem:[%s2264_s12 + $0x19a] sm:$0x1] }
  0xdc   : > { %1856 = vst.msk [vmem:[%s2269_s15 + $0xc9] sm:$0x1] %vm1654_vm0, %v1343_v30  ;;  %v1346_v39 = vmax.f32 %v322_v36, %v834_v37  ;;  %v835_v40 = vld [vmem:[%s2264_s12 + $0x19b] sm:$0x1]  ;;  %v324_v41 = vld [vmem:[%s2264_s12 + $0x19c] sm:$0x1] }
  0xdd   : > { %v836_v42 = vld [vmem:[%s2264_s12 + $0x19d] sm:$0x1]  ;;  %1857 = vst.msk [vmem:[%s2269_s15 + $0xca] sm:$0x1] %vm1654_vm0, %v1344_v34  ;;  %1858 = vst.msk [vmem:[%s2269_s15 + $0xcb] sm:$0x1] %vm1654_vm0, %v1345_v35  ;;  %v1347_v43 = vmax.f32 %v323_v38, %v835_v40 }
  0xde   : > { %v1348_v44 = vmax.f32 %v324_v41, %v836_v42  ;;  %v325_v45 = vld [vmem:[%s2264_s12 + $0x19e] sm:$0x1]  ;;  %v837_v46 = vld [vmem:[%s2264_s12 + $0x19f] sm:$0x1]  ;;  %v326_v47 = vld [vmem:[%s2264_s12 + $0x1a0] sm:$0x1] }
  0xdf   : > { %1859 = vst.msk [vmem:[%s2269_s15 + $0xcc] sm:$0x1] %vm1654_vm0, %v1346_v39  ;;  %v1349_v48 = vmax.f32 %v325_v45, %v837_v46  ;;  %v838_v49 = vld [vmem:[%s2264_s12 + $0x1a1] sm:$0x1]  ;;  %v327_v50 = vld [vmem:[%s2264_s12 + $0x1a2] sm:$0x1] }
  0xe0   : > { %v839_v51 = vld [vmem:[%s2264_s12 + $0x1a3] sm:$0x1]  ;;  %1860 = vst.msk [vmem:[%s2269_s15 + $0xcd] sm:$0x1] %vm1654_vm0, %v1347_v43  ;;  %1861 = vst.msk [vmem:[%s2269_s15 + $0xce] sm:$0x1] %vm1654_vm0, %v1348_v44  ;;  %v1350_v52 = vmax.f32 %v326_v47, %v838_v49 }
  0xe1   : > { %v1351_v53 = vmax.f32 %v327_v50, %v839_v51  ;;  %v328_v54 = vld [vmem:[%s2264_s12 + $0x1a4] sm:$0x1]  ;;  %v840_v55 = vld [vmem:[%s2264_s12 + $0x1a5] sm:$0x1]  ;;  %v329_v56 = vld [vmem:[%s2264_s12 + $0x1a6] sm:$0x1] }
  0xe2   : > { %1862 = vst.msk [vmem:[%s2269_s15 + $0xcf] sm:$0x1] %vm1654_vm0, %v1349_v48  ;;  %v1352_v57 = vmax.f32 %v328_v54, %v840_v55  ;;  %v841_v58 = vld [vmem:[%s2264_s12 + $0x1a7] sm:$0x1]  ;;  %v330_v59 = vld [vmem:[%s2264_s12 + $0x1a8] sm:$0x1] }
  0xe3   : > { %v842_v60 = vld [vmem:[%s2264_s12 + $0x1a9] sm:$0x1]  ;;  %1863 = vst.msk [vmem:[%s2269_s15 + $0xd0] sm:$0x1] %vm1654_vm0, %v1350_v52  ;;  %1864 = vst.msk [vmem:[%s2269_s15 + $0xd1] sm:$0x1] %vm1654_vm0, %v1351_v53  ;;  %v1353_v61 = vmax.f32 %v329_v56, %v841_v58 }
  0xe4   : > { %v1354_v62 = vmax.f32 %v330_v59, %v842_v60  ;;  %v331_v63 = vld [vmem:[%s2264_s12 + $0x1aa] sm:$0x1]  ;;  %v843_v0 = vld [vmem:[%s2264_s12 + $0x1ab] sm:$0x1]  ;;  %v332_v1 = vld [vmem:[%s2264_s12 + $0x1ac] sm:$0x1] }
  0xe5   : > { %1865 = vst.msk [vmem:[%s2269_s15 + $0xd2] sm:$0x1] %vm1654_vm0, %v1352_v57  ;;  %v1355_v2 = vmax.f32 %v331_v63, %v843_v0  ;;  %v844_v3 = vld [vmem:[%s2264_s12 + $0x1ad] sm:$0x1]  ;;  %v333_v4 = vld [vmem:[%s2264_s12 + $0x1ae] sm:$0x1] }
  0xe6   : > { %v845_v5 = vld [vmem:[%s2264_s12 + $0x1af] sm:$0x1]  ;;  %1866 = vst.msk [vmem:[%s2269_s15 + $0xd3] sm:$0x1] %vm1654_vm0, %v1353_v61  ;;  %1867 = vst.msk [vmem:[%s2269_s15 + $0xd4] sm:$0x1] %vm1654_vm0, %v1354_v62  ;;  %v1356_v6 = vmax.f32 %v332_v1, %v844_v3 }
  0xe7   : > { %v1357_v7 = vmax.f32 %v333_v4, %v845_v5  ;;  %v334_v8 = vld [vmem:[%s2264_s12 + $0x1b0] sm:$0x1]  ;;  %v846_v9 = vld [vmem:[%s2264_s12 + $0x1b1] sm:$0x1]  ;;  %v335_v10 = vld [vmem:[%s2264_s12 + $0x1b2] sm:$0x1] }
  0xe8   : > { %1868 = vst.msk [vmem:[%s2269_s15 + $0xd5] sm:$0x1] %vm1654_vm0, %v1355_v2  ;;  %v1358_v11 = vmax.f32 %v334_v8, %v846_v9  ;;  %v847_v12 = vld [vmem:[%s2264_s12 + $0x1b3] sm:$0x1]  ;;  %v336_v13 = vld [vmem:[%s2264_s12 + $0x1b4] sm:$0x1] }
  0xe9   : > { %v848_v14 = vld [vmem:[%s2264_s12 + $0x1b5] sm:$0x1]  ;;  %1869 = vst.msk [vmem:[%s2269_s15 + $0xd6] sm:$0x1] %vm1654_vm0, %v1356_v6  ;;  %1870 = vst.msk [vmem:[%s2269_s15 + $0xd7] sm:$0x1] %vm1654_vm0, %v1357_v7  ;;  %v1359_v15 = vmax.f32 %v335_v10, %v847_v12 }
  0xea   : > { %v1360_v16 = vmax.f32 %v336_v13, %v848_v14  ;;  %v337_v17 = vld [vmem:[%s2264_s12 + $0x1b6] sm:$0x1]  ;;  %v849_v18 = vld [vmem:[%s2264_s12 + $0x1b7] sm:$0x1]  ;;  %v338_v19 = vld [vmem:[%s2264_s12 + $0x1b8] sm:$0x1] }
  0xeb   : > { %1871 = vst.msk [vmem:[%s2269_s15 + $0xd8] sm:$0x1] %vm1654_vm0, %v1358_v11  ;;  %v1361_v20 = vmax.f32 %v337_v17, %v849_v18  ;;  %v850_v21 = vld [vmem:[%s2264_s12 + $0x1b9] sm:$0x1]  ;;  %v339_v22 = vld [vmem:[%s2264_s12 + $0x1ba] sm:$0x1] }
  0xec   : > { %v851_v23 = vld [vmem:[%s2264_s12 + $0x1bb] sm:$0x1]  ;;  %1872 = vst.msk [vmem:[%s2269_s15 + $0xd9] sm:$0x1] %vm1654_vm0, %v1359_v15  ;;  %1873 = vst.msk [vmem:[%s2269_s15 + $0xda] sm:$0x1] %vm1654_vm0, %v1360_v16  ;;  %v1362_v24 = vmax.f32 %v338_v19, %v850_v21 }
  0xed   : > { %v1363_v25 = vmax.f32 %v339_v22, %v851_v23  ;;  %v340_v26 = vld [vmem:[%s2264_s12 + $0x1bc] sm:$0x1]  ;;  %v852_v27 = vld [vmem:[%s2264_s12 + $0x1bd] sm:$0x1]  ;;  %v341_v28 = vld [vmem:[%s2264_s12 + $0x1be] sm:$0x1] }
  0xee   : > { %1874 = vst.msk [vmem:[%s2269_s15 + $0xdb] sm:$0x1] %vm1654_vm0, %v1361_v20  ;;  %v1364_v29 = vmax.f32 %v340_v26, %v852_v27  ;;  %v853_v30 = vld [vmem:[%s2264_s12 + $0x1bf] sm:$0x1]  ;;  %v342_v31 = vld [vmem:[%s2264_s12 + $0x1c0] sm:$0x1] }
  0xef   : > { %v854_v32 = vld [vmem:[%s2264_s12 + $0x1c1] sm:$0x1]  ;;  %1875 = vst.msk [vmem:[%s2269_s15 + $0xdc] sm:$0x1] %vm1654_vm0, %v1362_v24  ;;  %1876 = vst.msk [vmem:[%s2269_s15 + $0xdd] sm:$0x1] %vm1654_vm0, %v1363_v25  ;;  %v1365_v33 = vmax.f32 %v341_v28, %v853_v30 }
  0xf0   : > { %v1366_v34 = vmax.f32 %v342_v31, %v854_v32  ;;  %v343_v35 = vld [vmem:[%s2264_s12 + $0x1c2] sm:$0x1]  ;;  %v855_v36 = vld [vmem:[%s2264_s12 + $0x1c3] sm:$0x1]  ;;  %v344_v37 = vld [vmem:[%s2264_s12 + $0x1c4] sm:$0x1] }
  0xf1   : > { %1877 = vst.msk [vmem:[%s2269_s15 + $0xde] sm:$0x1] %vm1654_vm0, %v1364_v29  ;;  %v1367_v38 = vmax.f32 %v343_v35, %v855_v36  ;;  %v856_v39 = vld [vmem:[%s2264_s12 + $0x1c5] sm:$0x1]  ;;  %v345_v40 = vld [vmem:[%s2264_s12 + $0x1c6] sm:$0x1] }
  0xf2   : > { %v857_v41 = vld [vmem:[%s2264_s12 + $0x1c7] sm:$0x1]  ;;  %1878 = vst.msk [vmem:[%s2269_s15 + $0xdf] sm:$0x1] %vm1654_vm0, %v1365_v33  ;;  %1879 = vst.msk [vmem:[%s2269_s15 + $0xe0] sm:$0x1] %vm1654_vm0, %v1366_v34  ;;  %v1368_v42 = vmax.f32 %v344_v37, %v856_v39 }
  0xf3   : > { %v1369_v43 = vmax.f32 %v345_v40, %v857_v41  ;;  %v346_v44 = vld [vmem:[%s2264_s12 + $0x1c8] sm:$0x1]  ;;  %v858_v45 = vld [vmem:[%s2264_s12 + $0x1c9] sm:$0x1]  ;;  %v347_v46 = vld [vmem:[%s2264_s12 + $0x1ca] sm:$0x1] }
  0xf4   : > { %1880 = vst.msk [vmem:[%s2269_s15 + $0xe1] sm:$0x1] %vm1654_vm0, %v1367_v38  ;;  %v1370_v47 = vmax.f32 %v346_v44, %v858_v45  ;;  %v859_v48 = vld [vmem:[%s2264_s12 + $0x1cb] sm:$0x1]  ;;  %v348_v49 = vld [vmem:[%s2264_s12 + $0x1cc] sm:$0x1] }
  0xf5   : > { %v860_v50 = vld [vmem:[%s2264_s12 + $0x1cd] sm:$0x1]  ;;  %1881 = vst.msk [vmem:[%s2269_s15 + $0xe2] sm:$0x1] %vm1654_vm0, %v1368_v42  ;;  %1882 = vst.msk [vmem:[%s2269_s15 + $0xe3] sm:$0x1] %vm1654_vm0, %v1369_v43  ;;  %v1371_v51 = vmax.f32 %v347_v46, %v859_v48 }
  0xf6   : > { %v1372_v52 = vmax.f32 %v348_v49, %v860_v50  ;;  %v349_v53 = vld [vmem:[%s2264_s12 + $0x1ce] sm:$0x1]  ;;  %v861_v54 = vld [vmem:[%s2264_s12 + $0x1cf] sm:$0x1]  ;;  %v350_v55 = vld [vmem:[%s2264_s12 + $0x1d0] sm:$0x1] }
  0xf7   : > { %1883 = vst.msk [vmem:[%s2269_s15 + $0xe4] sm:$0x1] %vm1654_vm0, %v1370_v47  ;;  %v1373_v56 = vmax.f32 %v349_v53, %v861_v54  ;;  %v862_v57 = vld [vmem:[%s2264_s12 + $0x1d1] sm:$0x1]  ;;  %v351_v58 = vld [vmem:[%s2264_s12 + $0x1d2] sm:$0x1] }
  0xf8   : > { %v863_v59 = vld [vmem:[%s2264_s12 + $0x1d3] sm:$0x1]  ;;  %1884 = vst.msk [vmem:[%s2269_s15 + $0xe5] sm:$0x1] %vm1654_vm0, %v1371_v51  ;;  %1885 = vst.msk [vmem:[%s2269_s15 + $0xe6] sm:$0x1] %vm1654_vm0, %v1372_v52  ;;  %v1374_v60 = vmax.f32 %v350_v55, %v862_v57 }
  0xf9   : > { %v1375_v61 = vmax.f32 %v351_v58, %v863_v59  ;;  %v352_v62 = vld [vmem:[%s2264_s12 + $0x1d4] sm:$0x1]  ;;  %v864_v63 = vld [vmem:[%s2264_s12 + $0x1d5] sm:$0x1]  ;;  %v353_v0 = vld [vmem:[%s2264_s12 + $0x1d6] sm:$0x1] }
  0xfa   : > { %1886 = vst.msk [vmem:[%s2269_s15 + $0xe7] sm:$0x1] %vm1654_vm0, %v1373_v56  ;;  %v1376_v1 = vmax.f32 %v352_v62, %v864_v63  ;;  %v865_v2 = vld [vmem:[%s2264_s12 + $0x1d7] sm:$0x1]  ;;  %v354_v3 = vld [vmem:[%s2264_s12 + $0x1d8] sm:$0x1] }
  0xfb   : > { %v866_v4 = vld [vmem:[%s2264_s12 + $0x1d9] sm:$0x1]  ;;  %1887 = vst.msk [vmem:[%s2269_s15 + $0xe8] sm:$0x1] %vm1654_vm0, %v1374_v60  ;;  %1888 = vst.msk [vmem:[%s2269_s15 + $0xe9] sm:$0x1] %vm1654_vm0, %v1375_v61  ;;  %v1377_v5 = vmax.f32 %v353_v0, %v865_v2 }
  0xfc   : > { %v1378_v6 = vmax.f32 %v354_v3, %v866_v4  ;;  %v355_v7 = vld [vmem:[%s2264_s12 + $0x1da] sm:$0x1]  ;;  %v867_v8 = vld [vmem:[%s2264_s12 + $0x1db] sm:$0x1]  ;;  %v356_v9 = vld [vmem:[%s2264_s12 + $0x1dc] sm:$0x1] }
  0xfd   : > { %1889 = vst.msk [vmem:[%s2269_s15 + $0xea] sm:$0x1] %vm1654_vm0, %v1376_v1  ;;  %v1379_v10 = vmax.f32 %v355_v7, %v867_v8  ;;  %v868_v11 = vld [vmem:[%s2264_s12 + $0x1dd] sm:$0x1]  ;;  %v357_v12 = vld [vmem:[%s2264_s12 + $0x1de] sm:$0x1] }
  0xfe   : > { %v869_v13 = vld [vmem:[%s2264_s12 + $0x1df] sm:$0x1]  ;;  %1890 = vst.msk [vmem:[%s2269_s15 + $0xeb] sm:$0x1] %vm1654_vm0, %v1377_v5  ;;  %1891 = vst.msk [vmem:[%s2269_s15 + $0xec] sm:$0x1] %vm1654_vm0, %v1378_v6  ;;  %v1380_v14 = vmax.f32 %v356_v9, %v868_v11 }
  0xff   : > { %v1381_v15 = vmax.f32 %v357_v12, %v869_v13  ;;  %v358_v16 = vld [vmem:[%s2264_s12 + $0x1e0] sm:$0x1]  ;;  %v870_v17 = vld [vmem:[%s2264_s12 + $0x1e1] sm:$0x1]  ;;  %v359_v18 = vld [vmem:[%s2264_s12 + $0x1e2] sm:$0x1] }
 0x100   : > { %1892 = vst.msk [vmem:[%s2269_s15 + $0xed] sm:$0x1] %vm1654_vm0, %v1379_v10  ;;  %v1382_v19 = vmax.f32 %v358_v16, %v870_v17  ;;  %v871_v20 = vld [vmem:[%s2264_s12 + $0x1e3] sm:$0x1]  ;;  %v360_v21 = vld [vmem:[%s2264_s12 + $0x1e4] sm:$0x1] }
 0x101   : > { %v872_v22 = vld [vmem:[%s2264_s12 + $0x1e5] sm:$0x1]  ;;  %1893 = vst.msk [vmem:[%s2269_s15 + $0xee] sm:$0x1] %vm1654_vm0, %v1380_v14  ;;  %1894 = vst.msk [vmem:[%s2269_s15 + $0xef] sm:$0x1] %vm1654_vm0, %v1381_v15  ;;  %v1383_v23 = vmax.f32 %v359_v18, %v871_v20 }
 0x102   : > { %v1384_v24 = vmax.f32 %v360_v21, %v872_v22  ;;  %v361_v25 = vld [vmem:[%s2264_s12 + $0x1e6] sm:$0x1]  ;;  %v873_v26 = vld [vmem:[%s2264_s12 + $0x1e7] sm:$0x1]  ;;  %v362_v27 = vld [vmem:[%s2264_s12 + $0x1e8] sm:$0x1] }
 0x103   : > { %1895 = vst.msk [vmem:[%s2269_s15 + $0xf0] sm:$0x1] %vm1654_vm0, %v1382_v19  ;;  %v1385_v28 = vmax.f32 %v361_v25, %v873_v26  ;;  %v874_v29 = vld [vmem:[%s2264_s12 + $0x1e9] sm:$0x1]  ;;  %v363_v30 = vld [vmem:[%s2264_s12 + $0x1ea] sm:$0x1] }
 0x104   : > { %v875_v31 = vld [vmem:[%s2264_s12 + $0x1eb] sm:$0x1]  ;;  %1896 = vst.msk [vmem:[%s2269_s15 + $0xf1] sm:$0x1] %vm1654_vm0, %v1383_v23  ;;  %1897 = vst.msk [vmem:[%s2269_s15 + $0xf2] sm:$0x1] %vm1654_vm0, %v1384_v24  ;;  %v1386_v32 = vmax.f32 %v362_v27, %v874_v29 }
 0x105   : > { %v1387_v33 = vmax.f32 %v363_v30, %v875_v31  ;;  %v364_v34 = vld [vmem:[%s2264_s12 + $0x1ec] sm:$0x1]  ;;  %v876_v35 = vld [vmem:[%s2264_s12 + $0x1ed] sm:$0x1]  ;;  %v365_v36 = vld [vmem:[%s2264_s12 + $0x1ee] sm:$0x1] }
 0x106   : > { %1898 = vst.msk [vmem:[%s2269_s15 + $0xf3] sm:$0x1] %vm1654_vm0, %v1385_v28  ;;  %v1388_v37 = vmax.f32 %v364_v34, %v876_v35  ;;  %v877_v38 = vld [vmem:[%s2264_s12 + $0x1ef] sm:$0x1]  ;;  %v366_v39 = vld [vmem:[%s2264_s12 + $0x1f0] sm:$0x1] }
 0x107   : > { %v878_v40 = vld [vmem:[%s2264_s12 + $0x1f1] sm:$0x1]  ;;  %1899 = vst.msk [vmem:[%s2269_s15 + $0xf4] sm:$0x1] %vm1654_vm0, %v1386_v32  ;;  %1900 = vst.msk [vmem:[%s2269_s15 + $0xf5] sm:$0x1] %vm1654_vm0, %v1387_v33  ;;  %v1389_v41 = vmax.f32 %v365_v36, %v877_v38 }
 0x108   : > { %v1390_v42 = vmax.f32 %v366_v39, %v878_v40  ;;  %v367_v43 = vld [vmem:[%s2264_s12 + $0x1f2] sm:$0x1]  ;;  %v879_v44 = vld [vmem:[%s2264_s12 + $0x1f3] sm:$0x1]  ;;  %v368_v45 = vld [vmem:[%s2264_s12 + $0x1f4] sm:$0x1] }
 0x109   : > { %1901 = vst.msk [vmem:[%s2269_s15 + $0xf6] sm:$0x1] %vm1654_vm0, %v1388_v37  ;;  %v1391_v46 = vmax.f32 %v367_v43, %v879_v44  ;;  %v880_v47 = vld [vmem:[%s2264_s12 + $0x1f5] sm:$0x1]  ;;  %v369_v48 = vld [vmem:[%s2264_s12 + $0x1f6] sm:$0x1] }
 0x10a   : > { %v881_v49 = vld [vmem:[%s2264_s12 + $0x1f7] sm:$0x1]  ;;  %1902 = vst.msk [vmem:[%s2269_s15 + $0xf7] sm:$0x1] %vm1654_vm0, %v1389_v41  ;;  %1903 = vst.msk [vmem:[%s2269_s15 + $0xf8] sm:$0x1] %vm1654_vm0, %v1390_v42  ;;  %v1392_v50 = vmax.f32 %v368_v45, %v880_v47 }
 0x10b   : > { %v1393_v51 = vmax.f32 %v369_v48, %v881_v49  ;;  %v370_v52 = vld [vmem:[%s2264_s12 + $0x1f8] sm:$0x1]  ;;  %v882_v53 = vld [vmem:[%s2264_s12 + $0x1f9] sm:$0x1]  ;;  %v371_v54 = vld [vmem:[%s2264_s12 + $0x1fa] sm:$0x1] }
 0x10c   : > { %1904 = vst.msk [vmem:[%s2269_s15 + $0xf9] sm:$0x1] %vm1654_vm0, %v1391_v46  ;;  %v1394_v55 = vmax.f32 %v370_v52, %v882_v53  ;;  %v883_v56 = vld [vmem:[%s2264_s12 + $0x1fb] sm:$0x1]  ;;  %v372_v57 = vld [vmem:[%s2264_s12 + $0x1fc] sm:$0x1] }
 0x10d   : > { %v884_v58 = vld [vmem:[%s2264_s12 + $0x1fd] sm:$0x1]  ;;  %1905 = vst.msk [vmem:[%s2269_s15 + $0xfa] sm:$0x1] %vm1654_vm0, %v1392_v50  ;;  %1906 = vst.msk [vmem:[%s2269_s15 + $0xfb] sm:$0x1] %vm1654_vm0, %v1393_v51  ;;  %v1395_v59 = vmax.f32 %v371_v54, %v883_v56 }
 0x10e   : > { %v1396_v60 = vmax.f32 %v372_v57, %v884_v58  ;;  %v373_v61 = vld [vmem:[%s2264_s12 + $0x1fe] sm:$0x1]  ;;  %v885_v62 = vld [vmem:[%s2264_s12 + $0x1ff] sm:$0x1]  ;;  %v374_v63 = vld [vmem:[%s2264_s12 + $0x200] sm:$0x1] }
 0x10f   : > { %1907 = vst.msk [vmem:[%s2269_s15 + $0xfc] sm:$0x1] %vm1654_vm0, %v1394_v55  ;;  %v1397_v0 = vmax.f32 %v373_v61, %v885_v62  ;;  %v886_v1 = vld [vmem:[%s2264_s12 + $0x201] sm:$0x1]  ;;  %v375_v2 = vld [vmem:[%s2264_s12 + $0x202] sm:$0x1] }
 0x110   : > { %v887_v3 = vld [vmem:[%s2264_s12 + $0x203] sm:$0x1]  ;;  %1908 = vst.msk [vmem:[%s2269_s15 + $0xfd] sm:$0x1] %vm1654_vm0, %v1395_v59  ;;  %1909 = vst.msk [vmem:[%s2269_s15 + $0xfe] sm:$0x1] %vm1654_vm0, %v1396_v60  ;;  %v1398_v4 = vmax.f32 %v374_v63, %v886_v1 }
 0x111   : > { %v1399_v5 = vmax.f32 %v375_v2, %v887_v3  ;;  %v376_v6 = vld [vmem:[%s2264_s12 + $0x204] sm:$0x1]  ;;  %v888_v7 = vld [vmem:[%s2264_s12 + $0x205] sm:$0x1]  ;;  %v377_v8 = vld [vmem:[%s2264_s12 + $0x206] sm:$0x1] }
 0x112   : > { %1910 = vst.msk [vmem:[%s2269_s15 + $0xff] sm:$0x1] %vm1654_vm0, %v1397_v0  ;;  %v1400_v9 = vmax.f32 %v376_v6, %v888_v7  ;;  %v889_v10 = vld [vmem:[%s2264_s12 + $0x207] sm:$0x1]  ;;  %v378_v11 = vld [vmem:[%s2264_s12 + $0x208] sm:$0x1] }
 0x113   : > { %v890_v12 = vld [vmem:[%s2264_s12 + $0x209] sm:$0x1]  ;;  %1911 = vst.msk [vmem:[%s2269_s15 + $0x100] sm:$0x1] %vm1654_vm0, %v1398_v4  ;;  %1912 = vst.msk [vmem:[%s2269_s15 + $0x101] sm:$0x1] %vm1654_vm0, %v1399_v5  ;;  %v1401_v13 = vmax.f32 %v377_v8, %v889_v10 }
 0x114   : > { %v1402_v14 = vmax.f32 %v378_v11, %v890_v12  ;;  %v379_v15 = vld [vmem:[%s2264_s12 + $0x20a] sm:$0x1]  ;;  %v891_v16 = vld [vmem:[%s2264_s12 + $0x20b] sm:$0x1]  ;;  %v380_v17 = vld [vmem:[%s2264_s12 + $0x20c] sm:$0x1] }
 0x115   : > { %1913 = vst.msk [vmem:[%s2269_s15 + $0x102] sm:$0x1] %vm1654_vm0, %v1400_v9  ;;  %v1403_v18 = vmax.f32 %v379_v15, %v891_v16  ;;  %v892_v19 = vld [vmem:[%s2264_s12 + $0x20d] sm:$0x1]  ;;  %v381_v20 = vld [vmem:[%s2264_s12 + $0x20e] sm:$0x1] }
 0x116   : > { %v893_v21 = vld [vmem:[%s2264_s12 + $0x20f] sm:$0x1]  ;;  %1914 = vst.msk [vmem:[%s2269_s15 + $0x103] sm:$0x1] %vm1654_vm0, %v1401_v13  ;;  %1915 = vst.msk [vmem:[%s2269_s15 + $0x104] sm:$0x1] %vm1654_vm0, %v1402_v14  ;;  %v1404_v22 = vmax.f32 %v380_v17, %v892_v19 }
 0x117   : > { %v1405_v23 = vmax.f32 %v381_v20, %v893_v21  ;;  %v382_v24 = vld [vmem:[%s2264_s12 + $0x210] sm:$0x1]  ;;  %v894_v25 = vld [vmem:[%s2264_s12 + $0x211] sm:$0x1]  ;;  %v383_v26 = vld [vmem:[%s2264_s12 + $0x212] sm:$0x1] }
 0x118   : > { %1916 = vst.msk [vmem:[%s2269_s15 + $0x105] sm:$0x1] %vm1654_vm0, %v1403_v18  ;;  %v1406_v27 = vmax.f32 %v382_v24, %v894_v25  ;;  %v895_v28 = vld [vmem:[%s2264_s12 + $0x213] sm:$0x1]  ;;  %v384_v29 = vld [vmem:[%s2264_s12 + $0x214] sm:$0x1] }
 0x119   : > { %v896_v30 = vld [vmem:[%s2264_s12 + $0x215] sm:$0x1]  ;;  %1917 = vst.msk [vmem:[%s2269_s15 + $0x106] sm:$0x1] %vm1654_vm0, %v1404_v22  ;;  %1918 = vst.msk [vmem:[%s2269_s15 + $0x107] sm:$0x1] %vm1654_vm0, %v1405_v23  ;;  %v1407_v31 = vmax.f32 %v383_v26, %v895_v28 }
 0x11a   : > { %v1408_v32 = vmax.f32 %v384_v29, %v896_v30  ;;  %v385_v33 = vld [vmem:[%s2264_s12 + $0x216] sm:$0x1]  ;;  %v897_v34 = vld [vmem:[%s2264_s12 + $0x217] sm:$0x1]  ;;  %v386_v35 = vld [vmem:[%s2264_s12 + $0x218] sm:$0x1] }
 0x11b   : > { %1919 = vst.msk [vmem:[%s2269_s15 + $0x108] sm:$0x1] %vm1654_vm0, %v1406_v27  ;;  %v1409_v36 = vmax.f32 %v385_v33, %v897_v34  ;;  %v898_v37 = vld [vmem:[%s2264_s12 + $0x219] sm:$0x1]  ;;  %v387_v38 = vld [vmem:[%s2264_s12 + $0x21a] sm:$0x1] }
 0x11c   : > { %v899_v39 = vld [vmem:[%s2264_s12 + $0x21b] sm:$0x1]  ;;  %1920 = vst.msk [vmem:[%s2269_s15 + $0x109] sm:$0x1] %vm1654_vm0, %v1407_v31  ;;  %1921 = vst.msk [vmem:[%s2269_s15 + $0x10a] sm:$0x1] %vm1654_vm0, %v1408_v32  ;;  %v1410_v40 = vmax.f32 %v386_v35, %v898_v37 }
 0x11d   : > { %v1411_v41 = vmax.f32 %v387_v38, %v899_v39  ;;  %v388_v42 = vld [vmem:[%s2264_s12 + $0x21c] sm:$0x1]  ;;  %v900_v43 = vld [vmem:[%s2264_s12 + $0x21d] sm:$0x1]  ;;  %v389_v44 = vld [vmem:[%s2264_s12 + $0x21e] sm:$0x1] }
 0x11e   : > { %1922 = vst.msk [vmem:[%s2269_s15 + $0x10b] sm:$0x1] %vm1654_vm0, %v1409_v36  ;;  %v1412_v45 = vmax.f32 %v388_v42, %v900_v43  ;;  %v901_v46 = vld [vmem:[%s2264_s12 + $0x21f] sm:$0x1]  ;;  %v390_v47 = vld [vmem:[%s2264_s12 + $0x220] sm:$0x1] }
 0x11f   : > { %v902_v48 = vld [vmem:[%s2264_s12 + $0x221] sm:$0x1]  ;;  %1923 = vst.msk [vmem:[%s2269_s15 + $0x10c] sm:$0x1] %vm1654_vm0, %v1410_v40  ;;  %1924 = vst.msk [vmem:[%s2269_s15 + $0x10d] sm:$0x1] %vm1654_vm0, %v1411_v41  ;;  %v1413_v49 = vmax.f32 %v389_v44, %v901_v46 }
 0x120   : > { %v1414_v50 = vmax.f32 %v390_v47, %v902_v48  ;;  %v391_v51 = vld [vmem:[%s2264_s12 + $0x222] sm:$0x1]  ;;  %v903_v52 = vld [vmem:[%s2264_s12 + $0x223] sm:$0x1]  ;;  %v392_v53 = vld [vmem:[%s2264_s12 + $0x224] sm:$0x1] }
 0x121   : > { %1925 = vst.msk [vmem:[%s2269_s15 + $0x10e] sm:$0x1] %vm1654_vm0, %v1412_v45  ;;  %v1415_v54 = vmax.f32 %v391_v51, %v903_v52  ;;  %v904_v55 = vld [vmem:[%s2264_s12 + $0x225] sm:$0x1]  ;;  %v393_v56 = vld [vmem:[%s2264_s12 + $0x226] sm:$0x1] }
 0x122   : > { %v905_v57 = vld [vmem:[%s2264_s12 + $0x227] sm:$0x1]  ;;  %1926 = vst.msk [vmem:[%s2269_s15 + $0x10f] sm:$0x1] %vm1654_vm0, %v1413_v49  ;;  %1927 = vst.msk [vmem:[%s2269_s15 + $0x110] sm:$0x1] %vm1654_vm0, %v1414_v50  ;;  %v1416_v58 = vmax.f32 %v392_v53, %v904_v55 }
 0x123   : > { %v1417_v59 = vmax.f32 %v393_v56, %v905_v57  ;;  %v394_v60 = vld [vmem:[%s2264_s12 + $0x228] sm:$0x1]  ;;  %v906_v61 = vld [vmem:[%s2264_s12 + $0x229] sm:$0x1]  ;;  %v395_v62 = vld [vmem:[%s2264_s12 + $0x22a] sm:$0x1] }
 0x124   : > { %1928 = vst.msk [vmem:[%s2269_s15 + $0x111] sm:$0x1] %vm1654_vm0, %v1415_v54  ;;  %v1418_v63 = vmax.f32 %v394_v60, %v906_v61  ;;  %v907_v0 = vld [vmem:[%s2264_s12 + $0x22b] sm:$0x1]  ;;  %v396_v1 = vld [vmem:[%s2264_s12 + $0x22c] sm:$0x1] }
 0x125   : > { %v908_v2 = vld [vmem:[%s2264_s12 + $0x22d] sm:$0x1]  ;;  %1929 = vst.msk [vmem:[%s2269_s15 + $0x112] sm:$0x1] %vm1654_vm0, %v1416_v58  ;;  %1930 = vst.msk [vmem:[%s2269_s15 + $0x113] sm:$0x1] %vm1654_vm0, %v1417_v59  ;;  %v1419_v3 = vmax.f32 %v395_v62, %v907_v0 }
 0x126   : > { %v1420_v4 = vmax.f32 %v396_v1, %v908_v2  ;;  %v397_v5 = vld [vmem:[%s2264_s12 + $0x22e] sm:$0x1]  ;;  %v909_v6 = vld [vmem:[%s2264_s12 + $0x22f] sm:$0x1]  ;;  %v398_v7 = vld [vmem:[%s2264_s12 + $0x230] sm:$0x1] }
 0x127   : > { %1931 = vst.msk [vmem:[%s2269_s15 + $0x114] sm:$0x1] %vm1654_vm0, %v1418_v63  ;;  %v1421_v8 = vmax.f32 %v397_v5, %v909_v6  ;;  %v910_v9 = vld [vmem:[%s2264_s12 + $0x231] sm:$0x1]  ;;  %v399_v10 = vld [vmem:[%s2264_s12 + $0x232] sm:$0x1] }
 0x128   : > { %v911_v11 = vld [vmem:[%s2264_s12 + $0x233] sm:$0x1]  ;;  %1932 = vst.msk [vmem:[%s2269_s15 + $0x115] sm:$0x1] %vm1654_vm0, %v1419_v3  ;;  %1933 = vst.msk [vmem:[%s2269_s15 + $0x116] sm:$0x1] %vm1654_vm0, %v1420_v4  ;;  %v1422_v12 = vmax.f32 %v398_v7, %v910_v9 }
 0x129   : > { %v1423_v13 = vmax.f32 %v399_v10, %v911_v11  ;;  %v400_v14 = vld [vmem:[%s2264_s12 + $0x234] sm:$0x1]  ;;  %v912_v15 = vld [vmem:[%s2264_s12 + $0x235] sm:$0x1]  ;;  %v401_v16 = vld [vmem:[%s2264_s12 + $0x236] sm:$0x1] }
 0x12a   : > { %1934 = vst.msk [vmem:[%s2269_s15 + $0x117] sm:$0x1] %vm1654_vm0, %v1421_v8  ;;  %v1424_v17 = vmax.f32 %v400_v14, %v912_v15  ;;  %v913_v18 = vld [vmem:[%s2264_s12 + $0x237] sm:$0x1]  ;;  %v402_v19 = vld [vmem:[%s2264_s12 + $0x238] sm:$0x1] }
 0x12b   : > { %v914_v20 = vld [vmem:[%s2264_s12 + $0x239] sm:$0x1]  ;;  %1935 = vst.msk [vmem:[%s2269_s15 + $0x118] sm:$0x1] %vm1654_vm0, %v1422_v12  ;;  %1936 = vst.msk [vmem:[%s2269_s15 + $0x119] sm:$0x1] %vm1654_vm0, %v1423_v13  ;;  %v1425_v21 = vmax.f32 %v401_v16, %v913_v18 }
 0x12c   : > { %v1426_v22 = vmax.f32 %v402_v19, %v914_v20  ;;  %v403_v23 = vld [vmem:[%s2264_s12 + $0x23a] sm:$0x1]  ;;  %v915_v24 = vld [vmem:[%s2264_s12 + $0x23b] sm:$0x1]  ;;  %v404_v25 = vld [vmem:[%s2264_s12 + $0x23c] sm:$0x1] }
 0x12d   : > { %1937 = vst.msk [vmem:[%s2269_s15 + $0x11a] sm:$0x1] %vm1654_vm0, %v1424_v17  ;;  %v1427_v26 = vmax.f32 %v403_v23, %v915_v24  ;;  %v916_v27 = vld [vmem:[%s2264_s12 + $0x23d] sm:$0x1]  ;;  %v405_v28 = vld [vmem:[%s2264_s12 + $0x23e] sm:$0x1] }
 0x12e   : > { %v917_v29 = vld [vmem:[%s2264_s12 + $0x23f] sm:$0x1]  ;;  %1938 = vst.msk [vmem:[%s2269_s15 + $0x11b] sm:$0x1] %vm1654_vm0, %v1425_v21  ;;  %1939 = vst.msk [vmem:[%s2269_s15 + $0x11c] sm:$0x1] %vm1654_vm0, %v1426_v22  ;;  %v1428_v30 = vmax.f32 %v404_v25, %v916_v27 }
 0x12f   : > { %v1429_v31 = vmax.f32 %v405_v28, %v917_v29  ;;  %v406_v32 = vld [vmem:[%s2264_s12 + $0x240] sm:$0x1]  ;;  %v918_v33 = vld [vmem:[%s2264_s12 + $0x241] sm:$0x1]  ;;  %v407_v34 = vld [vmem:[%s2264_s12 + $0x242] sm:$0x1] }
 0x130   : > { %1940 = vst.msk [vmem:[%s2269_s15 + $0x11d] sm:$0x1] %vm1654_vm0, %v1427_v26  ;;  %v1430_v35 = vmax.f32 %v406_v32, %v918_v33  ;;  %v919_v36 = vld [vmem:[%s2264_s12 + $0x243] sm:$0x1]  ;;  %v408_v37 = vld [vmem:[%s2264_s12 + $0x244] sm:$0x1] }
 0x131   : > { %v920_v38 = vld [vmem:[%s2264_s12 + $0x245] sm:$0x1]  ;;  %1941 = vst.msk [vmem:[%s2269_s15 + $0x11e] sm:$0x1] %vm1654_vm0, %v1428_v30  ;;  %1942 = vst.msk [vmem:[%s2269_s15 + $0x11f] sm:$0x1] %vm1654_vm0, %v1429_v31  ;;  %v1431_v39 = vmax.f32 %v407_v34, %v919_v36 }
 0x132   : > { %v1432_v40 = vmax.f32 %v408_v37, %v920_v38  ;;  %v409_v41 = vld [vmem:[%s2264_s12 + $0x246] sm:$0x1]  ;;  %v921_v42 = vld [vmem:[%s2264_s12 + $0x247] sm:$0x1]  ;;  %v410_v43 = vld [vmem:[%s2264_s12 + $0x248] sm:$0x1] }
 0x133   : > { %1943 = vst.msk [vmem:[%s2269_s15 + $0x120] sm:$0x1] %vm1654_vm0, %v1430_v35  ;;  %v1433_v44 = vmax.f32 %v409_v41, %v921_v42  ;;  %v922_v45 = vld [vmem:[%s2264_s12 + $0x249] sm:$0x1]  ;;  %v411_v46 = vld [vmem:[%s2264_s12 + $0x24a] sm:$0x1] }
 0x134   : > { %v923_v47 = vld [vmem:[%s2264_s12 + $0x24b] sm:$0x1]  ;;  %1944 = vst.msk [vmem:[%s2269_s15 + $0x121] sm:$0x1] %vm1654_vm0, %v1431_v39  ;;  %1945 = vst.msk [vmem:[%s2269_s15 + $0x122] sm:$0x1] %vm1654_vm0, %v1432_v40  ;;  %v1434_v48 = vmax.f32 %v410_v43, %v922_v45 }
 0x135   : > { %v1435_v49 = vmax.f32 %v411_v46, %v923_v47  ;;  %v412_v50 = vld [vmem:[%s2264_s12 + $0x24c] sm:$0x1]  ;;  %v924_v51 = vld [vmem:[%s2264_s12 + $0x24d] sm:$0x1]  ;;  %v413_v52 = vld [vmem:[%s2264_s12 + $0x24e] sm:$0x1] }
 0x136   : > { %1946 = vst.msk [vmem:[%s2269_s15 + $0x123] sm:$0x1] %vm1654_vm0, %v1433_v44  ;;  %v1436_v53 = vmax.f32 %v412_v50, %v924_v51  ;;  %v925_v54 = vld [vmem:[%s2264_s12 + $0x24f] sm:$0x1]  ;;  %v414_v55 = vld [vmem:[%s2264_s12 + $0x250] sm:$0x1] }
 0x137   : > { %v926_v56 = vld [vmem:[%s2264_s12 + $0x251] sm:$0x1]  ;;  %1947 = vst.msk [vmem:[%s2269_s15 + $0x124] sm:$0x1] %vm1654_vm0, %v1434_v48  ;;  %1948 = vst.msk [vmem:[%s2269_s15 + $0x125] sm:$0x1] %vm1654_vm0, %v1435_v49  ;;  %v1437_v57 = vmax.f32 %v413_v52, %v925_v54 }
 0x138   : > { %v1438_v58 = vmax.f32 %v414_v55, %v926_v56  ;;  %v415_v59 = vld [vmem:[%s2264_s12 + $0x252] sm:$0x1]  ;;  %v927_v60 = vld [vmem:[%s2264_s12 + $0x253] sm:$0x1]  ;;  %v416_v61 = vld [vmem:[%s2264_s12 + $0x254] sm:$0x1] }
 0x139   : > { %1949 = vst.msk [vmem:[%s2269_s15 + $0x126] sm:$0x1] %vm1654_vm0, %v1436_v53  ;;  %v1439_v62 = vmax.f32 %v415_v59, %v927_v60  ;;  %v928_v63 = vld [vmem:[%s2264_s12 + $0x255] sm:$0x1]  ;;  %v417_v0 = vld [vmem:[%s2264_s12 + $0x256] sm:$0x1] }
 0x13a   : > { %v929_v1 = vld [vmem:[%s2264_s12 + $0x257] sm:$0x1]  ;;  %1950 = vst.msk [vmem:[%s2269_s15 + $0x127] sm:$0x1] %vm1654_vm0, %v1437_v57  ;;  %1951 = vst.msk [vmem:[%s2269_s15 + $0x128] sm:$0x1] %vm1654_vm0, %v1438_v58  ;;  %v1440_v2 = vmax.f32 %v416_v61, %v928_v63 }
 0x13b   : > { %v1441_v3 = vmax.f32 %v417_v0, %v929_v1  ;;  %v418_v4 = vld [vmem:[%s2264_s12 + $0x258] sm:$0x1]  ;;  %v930_v5 = vld [vmem:[%s2264_s12 + $0x259] sm:$0x1]  ;;  %v419_v6 = vld [vmem:[%s2264_s12 + $0x25a] sm:$0x1] }
 0x13c   : > { %1952 = vst.msk [vmem:[%s2269_s15 + $0x129] sm:$0x1] %vm1654_vm0, %v1439_v62  ;;  %v1442_v7 = vmax.f32 %v418_v4, %v930_v5  ;;  %v931_v8 = vld [vmem:[%s2264_s12 + $0x25b] sm:$0x1]  ;;  %v420_v9 = vld [vmem:[%s2264_s12 + $0x25c] sm:$0x1] }
 0x13d   : > { %v932_v10 = vld [vmem:[%s2264_s12 + $0x25d] sm:$0x1]  ;;  %1953 = vst.msk [vmem:[%s2269_s15 + $0x12a] sm:$0x1] %vm1654_vm0, %v1440_v2  ;;  %1954 = vst.msk [vmem:[%s2269_s15 + $0x12b] sm:$0x1] %vm1654_vm0, %v1441_v3  ;;  %v1443_v11 = vmax.f32 %v419_v6, %v931_v8 }
 0x13e   : > { %v1444_v12 = vmax.f32 %v420_v9, %v932_v10  ;;  %v421_v13 = vld [vmem:[%s2264_s12 + $0x25e] sm:$0x1]  ;;  %v933_v14 = vld [vmem:[%s2264_s12 + $0x25f] sm:$0x1]  ;;  %v422_v15 = vld [vmem:[%s2264_s12 + $0x260] sm:$0x1] }
 0x13f   : > { %1955 = vst.msk [vmem:[%s2269_s15 + $0x12c] sm:$0x1] %vm1654_vm0, %v1442_v7  ;;  %v1445_v16 = vmax.f32 %v421_v13, %v933_v14  ;;  %v934_v17 = vld [vmem:[%s2264_s12 + $0x261] sm:$0x1]  ;;  %v423_v18 = vld [vmem:[%s2264_s12 + $0x262] sm:$0x1] }
 0x140   : > { %v935_v19 = vld [vmem:[%s2264_s12 + $0x263] sm:$0x1]  ;;  %1956 = vst.msk [vmem:[%s2269_s15 + $0x12d] sm:$0x1] %vm1654_vm0, %v1443_v11  ;;  %1957 = vst.msk [vmem:[%s2269_s15 + $0x12e] sm:$0x1] %vm1654_vm0, %v1444_v12  ;;  %v1446_v20 = vmax.f32 %v422_v15, %v934_v17 }
 0x141   : > { %v1447_v21 = vmax.f32 %v423_v18, %v935_v19  ;;  %v424_v22 = vld [vmem:[%s2264_s12 + $0x264] sm:$0x1]  ;;  %v936_v23 = vld [vmem:[%s2264_s12 + $0x265] sm:$0x1]  ;;  %v425_v24 = vld [vmem:[%s2264_s12 + $0x266] sm:$0x1] }
 0x142   : > { %1958 = vst.msk [vmem:[%s2269_s15 + $0x12f] sm:$0x1] %vm1654_vm0, %v1445_v16  ;;  %v1448_v25 = vmax.f32 %v424_v22, %v936_v23  ;;  %v937_v26 = vld [vmem:[%s2264_s12 + $0x267] sm:$0x1]  ;;  %v426_v27 = vld [vmem:[%s2264_s12 + $0x268] sm:$0x1] }
 0x143   : > { %v938_v28 = vld [vmem:[%s2264_s12 + $0x269] sm:$0x1]  ;;  %1959 = vst.msk [vmem:[%s2269_s15 + $0x130] sm:$0x1] %vm1654_vm0, %v1446_v20  ;;  %1960 = vst.msk [vmem:[%s2269_s15 + $0x131] sm:$0x1] %vm1654_vm0, %v1447_v21  ;;  %v1449_v29 = vmax.f32 %v425_v24, %v937_v26 }
 0x144   : > { %v1450_v30 = vmax.f32 %v426_v27, %v938_v28  ;;  %v427_v31 = vld [vmem:[%s2264_s12 + $0x26a] sm:$0x1]  ;;  %v939_v32 = vld [vmem:[%s2264_s12 + $0x26b] sm:$0x1]  ;;  %v428_v33 = vld [vmem:[%s2264_s12 + $0x26c] sm:$0x1] }
 0x145   : > { %1961 = vst.msk [vmem:[%s2269_s15 + $0x132] sm:$0x1] %vm1654_vm0, %v1448_v25  ;;  %v1451_v34 = vmax.f32 %v427_v31, %v939_v32  ;;  %v940_v35 = vld [vmem:[%s2264_s12 + $0x26d] sm:$0x1]  ;;  %v429_v36 = vld [vmem:[%s2264_s12 + $0x26e] sm:$0x1] }
 0x146   : > { %v941_v37 = vld [vmem:[%s2264_s12 + $0x26f] sm:$0x1]  ;;  %1962 = vst.msk [vmem:[%s2269_s15 + $0x133] sm:$0x1] %vm1654_vm0, %v1449_v29  ;;  %1963 = vst.msk [vmem:[%s2269_s15 + $0x134] sm:$0x1] %vm1654_vm0, %v1450_v30  ;;  %v1452_v38 = vmax.f32 %v428_v33, %v940_v35 }
 0x147   : > { %v1453_v39 = vmax.f32 %v429_v36, %v941_v37  ;;  %v430_v40 = vld [vmem:[%s2264_s12 + $0x270] sm:$0x1]  ;;  %v942_v41 = vld [vmem:[%s2264_s12 + $0x271] sm:$0x1]  ;;  %v431_v42 = vld [vmem:[%s2264_s12 + $0x272] sm:$0x1] }
 0x148   : > { %1964 = vst.msk [vmem:[%s2269_s15 + $0x135] sm:$0x1] %vm1654_vm0, %v1451_v34  ;;  %v1454_v43 = vmax.f32 %v430_v40, %v942_v41  ;;  %v943_v44 = vld [vmem:[%s2264_s12 + $0x273] sm:$0x1]  ;;  %v432_v45 = vld [vmem:[%s2264_s12 + $0x274] sm:$0x1] }
 0x149   : > { %v944_v46 = vld [vmem:[%s2264_s12 + $0x275] sm:$0x1]  ;;  %1965 = vst.msk [vmem:[%s2269_s15 + $0x136] sm:$0x1] %vm1654_vm0, %v1452_v38  ;;  %1966 = vst.msk [vmem:[%s2269_s15 + $0x137] sm:$0x1] %vm1654_vm0, %v1453_v39  ;;  %v1455_v47 = vmax.f32 %v431_v42, %v943_v44 }
 0x14a   : > { %v1456_v48 = vmax.f32 %v432_v45, %v944_v46  ;;  %v433_v49 = vld [vmem:[%s2264_s12 + $0x276] sm:$0x1]  ;;  %v945_v50 = vld [vmem:[%s2264_s12 + $0x277] sm:$0x1]  ;;  %v434_v51 = vld [vmem:[%s2264_s12 + $0x278] sm:$0x1] }
 0x14b   : > { %1967 = vst.msk [vmem:[%s2269_s15 + $0x138] sm:$0x1] %vm1654_vm0, %v1454_v43  ;;  %v1457_v52 = vmax.f32 %v433_v49, %v945_v50  ;;  %v946_v53 = vld [vmem:[%s2264_s12 + $0x279] sm:$0x1]  ;;  %v435_v54 = vld [vmem:[%s2264_s12 + $0x27a] sm:$0x1] }
 0x14c   : > { %v947_v55 = vld [vmem:[%s2264_s12 + $0x27b] sm:$0x1]  ;;  %1968 = vst.msk [vmem:[%s2269_s15 + $0x139] sm:$0x1] %vm1654_vm0, %v1455_v47  ;;  %1969 = vst.msk [vmem:[%s2269_s15 + $0x13a] sm:$0x1] %vm1654_vm0, %v1456_v48  ;;  %v1458_v56 = vmax.f32 %v434_v51, %v946_v53 }
 0x14d   : > { %v1459_v57 = vmax.f32 %v435_v54, %v947_v55  ;;  %v436_v58 = vld [vmem:[%s2264_s12 + $0x27c] sm:$0x1]  ;;  %v948_v59 = vld [vmem:[%s2264_s12 + $0x27d] sm:$0x1]  ;;  %v437_v60 = vld [vmem:[%s2264_s12 + $0x27e] sm:$0x1] }
 0x14e   : > { %1970 = vst.msk [vmem:[%s2269_s15 + $0x13b] sm:$0x1] %vm1654_vm0, %v1457_v52  ;;  %v1460_v61 = vmax.f32 %v436_v58, %v948_v59  ;;  %v949_v62 = vld [vmem:[%s2264_s12 + $0x27f] sm:$0x1]  ;;  %v438_v63 = vld [vmem:[%s2264_s12 + $0x280] sm:$0x1] }
 0x14f   : > { %v950_v0 = vld [vmem:[%s2264_s12 + $0x281] sm:$0x1]  ;;  %1971 = vst.msk [vmem:[%s2269_s15 + $0x13c] sm:$0x1] %vm1654_vm0, %v1458_v56  ;;  %1972 = vst.msk [vmem:[%s2269_s15 + $0x13d] sm:$0x1] %vm1654_vm0, %v1459_v57  ;;  %v1461_v1 = vmax.f32 %v437_v60, %v949_v62 }
 0x150   : > { %v1462_v2 = vmax.f32 %v438_v63, %v950_v0  ;;  %v439_v3 = vld [vmem:[%s2264_s12 + $0x282] sm:$0x1]  ;;  %v951_v4 = vld [vmem:[%s2264_s12 + $0x283] sm:$0x1]  ;;  %v440_v5 = vld [vmem:[%s2264_s12 + $0x284] sm:$0x1] }
 0x151   : > { %1973 = vst.msk [vmem:[%s2269_s15 + $0x13e] sm:$0x1] %vm1654_vm0, %v1460_v61  ;;  %v1463_v6 = vmax.f32 %v439_v3, %v951_v4  ;;  %v952_v7 = vld [vmem:[%s2264_s12 + $0x285] sm:$0x1]  ;;  %v441_v8 = vld [vmem:[%s2264_s12 + $0x286] sm:$0x1] }
 0x152   : > { %v953_v9 = vld [vmem:[%s2264_s12 + $0x287] sm:$0x1]  ;;  %1974 = vst.msk [vmem:[%s2269_s15 + $0x13f] sm:$0x1] %vm1654_vm0, %v1461_v1  ;;  %1975 = vst.msk [vmem:[%s2269_s15 + $0x140] sm:$0x1] %vm1654_vm0, %v1462_v2  ;;  %v1464_v10 = vmax.f32 %v440_v5, %v952_v7 }
 0x153   : > { %v1465_v11 = vmax.f32 %v441_v8, %v953_v9  ;;  %v442_v12 = vld [vmem:[%s2264_s12 + $0x288] sm:$0x1]  ;;  %v954_v13 = vld [vmem:[%s2264_s12 + $0x289] sm:$0x1]  ;;  %v443_v14 = vld [vmem:[%s2264_s12 + $0x28a] sm:$0x1] }
 0x154   : > { %1976 = vst.msk [vmem:[%s2269_s15 + $0x141] sm:$0x1] %vm1654_vm0, %v1463_v6  ;;  %v1466_v15 = vmax.f32 %v442_v12, %v954_v13  ;;  %v955_v16 = vld [vmem:[%s2264_s12 + $0x28b] sm:$0x1]  ;;  %v444_v17 = vld [vmem:[%s2264_s12 + $0x28c] sm:$0x1] }
 0x155   : > { %v956_v18 = vld [vmem:[%s2264_s12 + $0x28d] sm:$0x1]  ;;  %1977 = vst.msk [vmem:[%s2269_s15 + $0x142] sm:$0x1] %vm1654_vm0, %v1464_v10  ;;  %1978 = vst.msk [vmem:[%s2269_s15 + $0x143] sm:$0x1] %vm1654_vm0, %v1465_v11  ;;  %v1467_v19 = vmax.f32 %v443_v14, %v955_v16 }
 0x156   : > { %v1468_v20 = vmax.f32 %v444_v17, %v956_v18  ;;  %v445_v21 = vld [vmem:[%s2264_s12 + $0x28e] sm:$0x1]  ;;  %v957_v22 = vld [vmem:[%s2264_s12 + $0x28f] sm:$0x1]  ;;  %v446_v23 = vld [vmem:[%s2264_s12 + $0x290] sm:$0x1] }
 0x157   : > { %1979 = vst.msk [vmem:[%s2269_s15 + $0x144] sm:$0x1] %vm1654_vm0, %v1466_v15  ;;  %v1469_v24 = vmax.f32 %v445_v21, %v957_v22  ;;  %v958_v25 = vld [vmem:[%s2264_s12 + $0x291] sm:$0x1]  ;;  %v447_v26 = vld [vmem:[%s2264_s12 + $0x292] sm:$0x1] }
 0x158   : > { %v959_v27 = vld [vmem:[%s2264_s12 + $0x293] sm:$0x1]  ;;  %1980 = vst.msk [vmem:[%s2269_s15 + $0x145] sm:$0x1] %vm1654_vm0, %v1467_v19  ;;  %1981 = vst.msk [vmem:[%s2269_s15 + $0x146] sm:$0x1] %vm1654_vm0, %v1468_v20  ;;  %v1470_v28 = vmax.f32 %v446_v23, %v958_v25 }
 0x159   : > { %v1471_v29 = vmax.f32 %v447_v26, %v959_v27  ;;  %v448_v30 = vld [vmem:[%s2264_s12 + $0x294] sm:$0x1]  ;;  %v960_v31 = vld [vmem:[%s2264_s12 + $0x295] sm:$0x1]  ;;  %v449_v32 = vld [vmem:[%s2264_s12 + $0x296] sm:$0x1] }
 0x15a   : > { %1982 = vst.msk [vmem:[%s2269_s15 + $0x147] sm:$0x1] %vm1654_vm0, %v1469_v24  ;;  %v1472_v33 = vmax.f32 %v448_v30, %v960_v31  ;;  %v961_v34 = vld [vmem:[%s2264_s12 + $0x297] sm:$0x1]  ;;  %v450_v35 = vld [vmem:[%s2264_s12 + $0x298] sm:$0x1] }
 0x15b   : > { %v962_v36 = vld [vmem:[%s2264_s12 + $0x299] sm:$0x1]  ;;  %1983 = vst.msk [vmem:[%s2269_s15 + $0x148] sm:$0x1] %vm1654_vm0, %v1470_v28  ;;  %1984 = vst.msk [vmem:[%s2269_s15 + $0x149] sm:$0x1] %vm1654_vm0, %v1471_v29  ;;  %v1473_v37 = vmax.f32 %v449_v32, %v961_v34 }
 0x15c   : > { %v1474_v38 = vmax.f32 %v450_v35, %v962_v36  ;;  %v451_v39 = vld [vmem:[%s2264_s12 + $0x29a] sm:$0x1]  ;;  %v963_v40 = vld [vmem:[%s2264_s12 + $0x29b] sm:$0x1]  ;;  %v452_v41 = vld [vmem:[%s2264_s12 + $0x29c] sm:$0x1] }
 0x15d   : > { %1985 = vst.msk [vmem:[%s2269_s15 + $0x14a] sm:$0x1] %vm1654_vm0, %v1472_v33  ;;  %v1475_v42 = vmax.f32 %v451_v39, %v963_v40  ;;  %v964_v43 = vld [vmem:[%s2264_s12 + $0x29d] sm:$0x1]  ;;  %v453_v44 = vld [vmem:[%s2264_s12 + $0x29e] sm:$0x1] }
 0x15e   : > { %v965_v45 = vld [vmem:[%s2264_s12 + $0x29f] sm:$0x1]  ;;  %1986 = vst.msk [vmem:[%s2269_s15 + $0x14b] sm:$0x1] %vm1654_vm0, %v1473_v37  ;;  %1987 = vst.msk [vmem:[%s2269_s15 + $0x14c] sm:$0x1] %vm1654_vm0, %v1474_v38  ;;  %v1476_v46 = vmax.f32 %v452_v41, %v964_v43 }
 0x15f   : > { %v1477_v47 = vmax.f32 %v453_v44, %v965_v45  ;;  %v454_v48 = vld [vmem:[%s2264_s12 + $0x2a0] sm:$0x1]  ;;  %v966_v49 = vld [vmem:[%s2264_s12 + $0x2a1] sm:$0x1]  ;;  %v455_v50 = vld [vmem:[%s2264_s12 + $0x2a2] sm:$0x1] }
 0x160   : > { %1988 = vst.msk [vmem:[%s2269_s15 + $0x14d] sm:$0x1] %vm1654_vm0, %v1475_v42  ;;  %v1478_v51 = vmax.f32 %v454_v48, %v966_v49  ;;  %v967_v52 = vld [vmem:[%s2264_s12 + $0x2a3] sm:$0x1]  ;;  %v456_v53 = vld [vmem:[%s2264_s12 + $0x2a4] sm:$0x1] }
 0x161   : > { %v968_v54 = vld [vmem:[%s2264_s12 + $0x2a5] sm:$0x1]  ;;  %1989 = vst.msk [vmem:[%s2269_s15 + $0x14e] sm:$0x1] %vm1654_vm0, %v1476_v46  ;;  %1990 = vst.msk [vmem:[%s2269_s15 + $0x14f] sm:$0x1] %vm1654_vm0, %v1477_v47  ;;  %v1479_v55 = vmax.f32 %v455_v50, %v967_v52 }
 0x162   : > { %v1480_v56 = vmax.f32 %v456_v53, %v968_v54  ;;  %v457_v57 = vld [vmem:[%s2264_s12 + $0x2a6] sm:$0x1]  ;;  %v969_v58 = vld [vmem:[%s2264_s12 + $0x2a7] sm:$0x1]  ;;  %v458_v59 = vld [vmem:[%s2264_s12 + $0x2a8] sm:$0x1] }
 0x163   : > { %1991 = vst.msk [vmem:[%s2269_s15 + $0x150] sm:$0x1] %vm1654_vm0, %v1478_v51  ;;  %v1481_v60 = vmax.f32 %v457_v57, %v969_v58  ;;  %v970_v61 = vld [vmem:[%s2264_s12 + $0x2a9] sm:$0x1]  ;;  %v459_v62 = vld [vmem:[%s2264_s12 + $0x2aa] sm:$0x1] }
 0x164   : > { %v971_v63 = vld [vmem:[%s2264_s12 + $0x2ab] sm:$0x1]  ;;  %1992 = vst.msk [vmem:[%s2269_s15 + $0x151] sm:$0x1] %vm1654_vm0, %v1479_v55  ;;  %1993 = vst.msk [vmem:[%s2269_s15 + $0x152] sm:$0x1] %vm1654_vm0, %v1480_v56  ;;  %v1482_v0 = vmax.f32 %v458_v59, %v970_v61 }
 0x165   : > { %v1483_v1 = vmax.f32 %v459_v62, %v971_v63  ;;  %v460_v2 = vld [vmem:[%s2264_s12 + $0x2ac] sm:$0x1]  ;;  %v972_v3 = vld [vmem:[%s2264_s12 + $0x2ad] sm:$0x1]  ;;  %v461_v4 = vld [vmem:[%s2264_s12 + $0x2ae] sm:$0x1] }
 0x166   : > { %1994 = vst.msk [vmem:[%s2269_s15 + $0x153] sm:$0x1] %vm1654_vm0, %v1481_v60  ;;  %v1484_v5 = vmax.f32 %v460_v2, %v972_v3  ;;  %v973_v6 = vld [vmem:[%s2264_s12 + $0x2af] sm:$0x1]  ;;  %v462_v7 = vld [vmem:[%s2264_s12 + $0x2b0] sm:$0x1] }
 0x167   : > { %v974_v8 = vld [vmem:[%s2264_s12 + $0x2b1] sm:$0x1]  ;;  %1995 = vst.msk [vmem:[%s2269_s15 + $0x154] sm:$0x1] %vm1654_vm0, %v1482_v0  ;;  %1996 = vst.msk [vmem:[%s2269_s15 + $0x155] sm:$0x1] %vm1654_vm0, %v1483_v1  ;;  %v1485_v9 = vmax.f32 %v461_v4, %v973_v6 }
 0x168   : > { %v1486_v10 = vmax.f32 %v462_v7, %v974_v8  ;;  %v463_v11 = vld [vmem:[%s2264_s12 + $0x2b2] sm:$0x1]  ;;  %v975_v12 = vld [vmem:[%s2264_s12 + $0x2b3] sm:$0x1]  ;;  %v464_v13 = vld [vmem:[%s2264_s12 + $0x2b4] sm:$0x1] }
 0x169   : > { %1997 = vst.msk [vmem:[%s2269_s15 + $0x156] sm:$0x1] %vm1654_vm0, %v1484_v5  ;;  %v1487_v14 = vmax.f32 %v463_v11, %v975_v12  ;;  %v976_v15 = vld [vmem:[%s2264_s12 + $0x2b5] sm:$0x1]  ;;  %v465_v16 = vld [vmem:[%s2264_s12 + $0x2b6] sm:$0x1] }
 0x16a   : > { %v977_v17 = vld [vmem:[%s2264_s12 + $0x2b7] sm:$0x1]  ;;  %1998 = vst.msk [vmem:[%s2269_s15 + $0x157] sm:$0x1] %vm1654_vm0, %v1485_v9  ;;  %1999 = vst.msk [vmem:[%s2269_s15 + $0x158] sm:$0x1] %vm1654_vm0, %v1486_v10  ;;  %v1488_v18 = vmax.f32 %v464_v13, %v976_v15 }
 0x16b   : > { %v1489_v19 = vmax.f32 %v465_v16, %v977_v17  ;;  %v466_v20 = vld [vmem:[%s2264_s12 + $0x2b8] sm:$0x1]  ;;  %v978_v21 = vld [vmem:[%s2264_s12 + $0x2b9] sm:$0x1]  ;;  %v467_v22 = vld [vmem:[%s2264_s12 + $0x2ba] sm:$0x1] }
 0x16c   : > { %2000 = vst.msk [vmem:[%s2269_s15 + $0x159] sm:$0x1] %vm1654_vm0, %v1487_v14  ;;  %v1490_v23 = vmax.f32 %v466_v20, %v978_v21  ;;  %v979_v24 = vld [vmem:[%s2264_s12 + $0x2bb] sm:$0x1]  ;;  %v468_v25 = vld [vmem:[%s2264_s12 + $0x2bc] sm:$0x1] }
 0x16d   : > { %v980_v26 = vld [vmem:[%s2264_s12 + $0x2bd] sm:$0x1]  ;;  %2001 = vst.msk [vmem:[%s2269_s15 + $0x15a] sm:$0x1] %vm1654_vm0, %v1488_v18  ;;  %2002 = vst.msk [vmem:[%s2269_s15 + $0x15b] sm:$0x1] %vm1654_vm0, %v1489_v19  ;;  %v1491_v27 = vmax.f32 %v467_v22, %v979_v24 }
 0x16e   : > { %v1492_v28 = vmax.f32 %v468_v25, %v980_v26  ;;  %v469_v29 = vld [vmem:[%s2264_s12 + $0x2be] sm:$0x1]  ;;  %v981_v30 = vld [vmem:[%s2264_s12 + $0x2bf] sm:$0x1]  ;;  %v470_v31 = vld [vmem:[%s2264_s12 + $0x2c0] sm:$0x1] }
 0x16f   : > { %2003 = vst.msk [vmem:[%s2269_s15 + $0x15c] sm:$0x1] %vm1654_vm0, %v1490_v23  ;;  %v1493_v32 = vmax.f32 %v469_v29, %v981_v30  ;;  %v982_v33 = vld [vmem:[%s2264_s12 + $0x2c1] sm:$0x1]  ;;  %v471_v34 = vld [vmem:[%s2264_s12 + $0x2c2] sm:$0x1] }
 0x170   : > { %v983_v35 = vld [vmem:[%s2264_s12 + $0x2c3] sm:$0x1]  ;;  %2004 = vst.msk [vmem:[%s2269_s15 + $0x15d] sm:$0x1] %vm1654_vm0, %v1491_v27  ;;  %2005 = vst.msk [vmem:[%s2269_s15 + $0x15e] sm:$0x1] %vm1654_vm0, %v1492_v28  ;;  %v1494_v36 = vmax.f32 %v470_v31, %v982_v33 }
 0x171   : > { %v1495_v37 = vmax.f32 %v471_v34, %v983_v35  ;;  %v472_v38 = vld [vmem:[%s2264_s12 + $0x2c4] sm:$0x1]  ;;  %v984_v39 = vld [vmem:[%s2264_s12 + $0x2c5] sm:$0x1]  ;;  %v473_v40 = vld [vmem:[%s2264_s12 + $0x2c6] sm:$0x1] }
 0x172   : > { %2006 = vst.msk [vmem:[%s2269_s15 + $0x15f] sm:$0x1] %vm1654_vm0, %v1493_v32  ;;  %v1496_v41 = vmax.f32 %v472_v38, %v984_v39  ;;  %v985_v42 = vld [vmem:[%s2264_s12 + $0x2c7] sm:$0x1]  ;;  %v474_v43 = vld [vmem:[%s2264_s12 + $0x2c8] sm:$0x1] }
 0x173   : > { %v986_v44 = vld [vmem:[%s2264_s12 + $0x2c9] sm:$0x1]  ;;  %2007 = vst.msk [vmem:[%s2269_s15 + $0x160] sm:$0x1] %vm1654_vm0, %v1494_v36  ;;  %2008 = vst.msk [vmem:[%s2269_s15 + $0x161] sm:$0x1] %vm1654_vm0, %v1495_v37  ;;  %v1497_v45 = vmax.f32 %v473_v40, %v985_v42 }
 0x174   : > { %v1498_v46 = vmax.f32 %v474_v43, %v986_v44  ;;  %v475_v47 = vld [vmem:[%s2264_s12 + $0x2ca] sm:$0x1]  ;;  %v987_v48 = vld [vmem:[%s2264_s12 + $0x2cb] sm:$0x1]  ;;  %v476_v49 = vld [vmem:[%s2264_s12 + $0x2cc] sm:$0x1] }
 0x175   : > { %2009 = vst.msk [vmem:[%s2269_s15 + $0x162] sm:$0x1] %vm1654_vm0, %v1496_v41  ;;  %v1499_v50 = vmax.f32 %v475_v47, %v987_v48  ;;  %v988_v51 = vld [vmem:[%s2264_s12 + $0x2cd] sm:$0x1]  ;;  %v477_v52 = vld [vmem:[%s2264_s12 + $0x2ce] sm:$0x1] }
 0x176   : > { %v989_v53 = vld [vmem:[%s2264_s12 + $0x2cf] sm:$0x1]  ;;  %2010 = vst.msk [vmem:[%s2269_s15 + $0x163] sm:$0x1] %vm1654_vm0, %v1497_v45  ;;  %2011 = vst.msk [vmem:[%s2269_s15 + $0x164] sm:$0x1] %vm1654_vm0, %v1498_v46  ;;  %v1500_v54 = vmax.f32 %v476_v49, %v988_v51 }
 0x177   : > { %v1501_v55 = vmax.f32 %v477_v52, %v989_v53  ;;  %v478_v56 = vld [vmem:[%s2264_s12 + $0x2d0] sm:$0x1]  ;;  %v990_v57 = vld [vmem:[%s2264_s12 + $0x2d1] sm:$0x1]  ;;  %v479_v58 = vld [vmem:[%s2264_s12 + $0x2d2] sm:$0x1] }
 0x178   : > { %2012 = vst.msk [vmem:[%s2269_s15 + $0x165] sm:$0x1] %vm1654_vm0, %v1499_v50  ;;  %v1502_v59 = vmax.f32 %v478_v56, %v990_v57  ;;  %v991_v60 = vld [vmem:[%s2264_s12 + $0x2d3] sm:$0x1]  ;;  %v480_v61 = vld [vmem:[%s2264_s12 + $0x2d4] sm:$0x1] }
 0x179   : > { %v992_v62 = vld [vmem:[%s2264_s12 + $0x2d5] sm:$0x1]  ;;  %2013 = vst.msk [vmem:[%s2269_s15 + $0x166] sm:$0x1] %vm1654_vm0, %v1500_v54  ;;  %2014 = vst.msk [vmem:[%s2269_s15 + $0x167] sm:$0x1] %vm1654_vm0, %v1501_v55  ;;  %v1503_v63 = vmax.f32 %v479_v58, %v991_v60 }
 0x17a   : > { %v1504_v0 = vmax.f32 %v480_v61, %v992_v62  ;;  %v481_v1 = vld [vmem:[%s2264_s12 + $0x2d6] sm:$0x1]  ;;  %v993_v2 = vld [vmem:[%s2264_s12 + $0x2d7] sm:$0x1]  ;;  %v482_v3 = vld [vmem:[%s2264_s12 + $0x2d8] sm:$0x1] }
 0x17b   : > { %2015 = vst.msk [vmem:[%s2269_s15 + $0x168] sm:$0x1] %vm1654_vm0, %v1502_v59  ;;  %v1505_v4 = vmax.f32 %v481_v1, %v993_v2  ;;  %v994_v5 = vld [vmem:[%s2264_s12 + $0x2d9] sm:$0x1]  ;;  %v483_v6 = vld [vmem:[%s2264_s12 + $0x2da] sm:$0x1] }
 0x17c   : > { %v995_v7 = vld [vmem:[%s2264_s12 + $0x2db] sm:$0x1]  ;;  %2016 = vst.msk [vmem:[%s2269_s15 + $0x169] sm:$0x1] %vm1654_vm0, %v1503_v63  ;;  %2017 = vst.msk [vmem:[%s2269_s15 + $0x16a] sm:$0x1] %vm1654_vm0, %v1504_v0  ;;  %v1506_v8 = vmax.f32 %v482_v3, %v994_v5 }
 0x17d   : > { %v1507_v9 = vmax.f32 %v483_v6, %v995_v7  ;;  %v484_v10 = vld [vmem:[%s2264_s12 + $0x2dc] sm:$0x1]  ;;  %v996_v11 = vld [vmem:[%s2264_s12 + $0x2dd] sm:$0x1]  ;;  %v485_v12 = vld [vmem:[%s2264_s12 + $0x2de] sm:$0x1] }
 0x17e   : > { %2018 = vst.msk [vmem:[%s2269_s15 + $0x16b] sm:$0x1] %vm1654_vm0, %v1505_v4  ;;  %v1508_v13 = vmax.f32 %v484_v10, %v996_v11  ;;  %v997_v14 = vld [vmem:[%s2264_s12 + $0x2df] sm:$0x1]  ;;  %v486_v15 = vld [vmem:[%s2264_s12 + $0x2e0] sm:$0x1] }
 0x17f   : > { %v998_v16 = vld [vmem:[%s2264_s12 + $0x2e1] sm:$0x1]  ;;  %2019 = vst.msk [vmem:[%s2269_s15 + $0x16c] sm:$0x1] %vm1654_vm0, %v1506_v8  ;;  %2020 = vst.msk [vmem:[%s2269_s15 + $0x16d] sm:$0x1] %vm1654_vm0, %v1507_v9  ;;  %v1509_v17 = vmax.f32 %v485_v12, %v997_v14 }
 0x180   : > { %v1510_v18 = vmax.f32 %v486_v15, %v998_v16  ;;  %v487_v19 = vld [vmem:[%s2264_s12 + $0x2e2] sm:$0x1]  ;;  %v999_v20 = vld [vmem:[%s2264_s12 + $0x2e3] sm:$0x1]  ;;  %v488_v21 = vld [vmem:[%s2264_s12 + $0x2e4] sm:$0x1] }
 0x181   : > { %2021 = vst.msk [vmem:[%s2269_s15 + $0x16e] sm:$0x1] %vm1654_vm0, %v1508_v13  ;;  %v1511_v22 = vmax.f32 %v487_v19, %v999_v20  ;;  %v1000_v23 = vld [vmem:[%s2264_s12 + $0x2e5] sm:$0x1]  ;;  %v489_v24 = vld [vmem:[%s2264_s12 + $0x2e6] sm:$0x1] }
 0x182   : > { %v1001_v25 = vld [vmem:[%s2264_s12 + $0x2e7] sm:$0x1]  ;;  %2022 = vst.msk [vmem:[%s2269_s15 + $0x16f] sm:$0x1] %vm1654_vm0, %v1509_v17  ;;  %2023 = vst.msk [vmem:[%s2269_s15 + $0x170] sm:$0x1] %vm1654_vm0, %v1510_v18  ;;  %v1512_v26 = vmax.f32 %v488_v21, %v1000_v23 }
 0x183   : > { %v1513_v27 = vmax.f32 %v489_v24, %v1001_v25  ;;  %v490_v28 = vld [vmem:[%s2264_s12 + $0x2e8] sm:$0x1]  ;;  %v1002_v29 = vld [vmem:[%s2264_s12 + $0x2e9] sm:$0x1]  ;;  %v491_v30 = vld [vmem:[%s2264_s12 + $0x2ea] sm:$0x1] }
 0x184   : > { %2024 = vst.msk [vmem:[%s2269_s15 + $0x171] sm:$0x1] %vm1654_vm0, %v1511_v22  ;;  %v1514_v31 = vmax.f32 %v490_v28, %v1002_v29  ;;  %v1003_v32 = vld [vmem:[%s2264_s12 + $0x2eb] sm:$0x1]  ;;  %v492_v33 = vld [vmem:[%s2264_s12 + $0x2ec] sm:$0x1] }
 0x185   : > { %v1004_v34 = vld [vmem:[%s2264_s12 + $0x2ed] sm:$0x1]  ;;  %2025 = vst.msk [vmem:[%s2269_s15 + $0x172] sm:$0x1] %vm1654_vm0, %v1512_v26  ;;  %2026 = vst.msk [vmem:[%s2269_s15 + $0x173] sm:$0x1] %vm1654_vm0, %v1513_v27  ;;  %v1515_v35 = vmax.f32 %v491_v30, %v1003_v32 }
 0x186   : > { %v1516_v36 = vmax.f32 %v492_v33, %v1004_v34  ;;  %v493_v37 = vld [vmem:[%s2264_s12 + $0x2ee] sm:$0x1]  ;;  %v1005_v38 = vld [vmem:[%s2264_s12 + $0x2ef] sm:$0x1]  ;;  %v494_v39 = vld [vmem:[%s2264_s12 + $0x2f0] sm:$0x1] }
 0x187   : > { %2027 = vst.msk [vmem:[%s2269_s15 + $0x174] sm:$0x1] %vm1654_vm0, %v1514_v31  ;;  %v1517_v40 = vmax.f32 %v493_v37, %v1005_v38  ;;  %v1006_v41 = vld [vmem:[%s2264_s12 + $0x2f1] sm:$0x1]  ;;  %v495_v42 = vld [vmem:[%s2264_s12 + $0x2f2] sm:$0x1] }
 0x188   : > { %v1007_v43 = vld [vmem:[%s2264_s12 + $0x2f3] sm:$0x1]  ;;  %2028 = vst.msk [vmem:[%s2269_s15 + $0x175] sm:$0x1] %vm1654_vm0, %v1515_v35  ;;  %2029 = vst.msk [vmem:[%s2269_s15 + $0x176] sm:$0x1] %vm1654_vm0, %v1516_v36  ;;  %v1518_v44 = vmax.f32 %v494_v39, %v1006_v41 }
 0x189   : > { %v1519_v45 = vmax.f32 %v495_v42, %v1007_v43  ;;  %v496_v46 = vld [vmem:[%s2264_s12 + $0x2f4] sm:$0x1]  ;;  %v1008_v47 = vld [vmem:[%s2264_s12 + $0x2f5] sm:$0x1]  ;;  %v497_v48 = vld [vmem:[%s2264_s12 + $0x2f6] sm:$0x1] }
 0x18a   : > { %2030 = vst.msk [vmem:[%s2269_s15 + $0x177] sm:$0x1] %vm1654_vm0, %v1517_v40  ;;  %v1520_v49 = vmax.f32 %v496_v46, %v1008_v47  ;;  %v1009_v50 = vld [vmem:[%s2264_s12 + $0x2f7] sm:$0x1]  ;;  %v498_v51 = vld [vmem:[%s2264_s12 + $0x2f8] sm:$0x1] }
 0x18b   : > { %v1010_v52 = vld [vmem:[%s2264_s12 + $0x2f9] sm:$0x1]  ;;  %2031 = vst.msk [vmem:[%s2269_s15 + $0x178] sm:$0x1] %vm1654_vm0, %v1518_v44  ;;  %2032 = vst.msk [vmem:[%s2269_s15 + $0x179] sm:$0x1] %vm1654_vm0, %v1519_v45  ;;  %v1521_v53 = vmax.f32 %v497_v48, %v1009_v50 }
 0x18c   : > { %v1522_v54 = vmax.f32 %v498_v51, %v1010_v52  ;;  %v499_v55 = vld [vmem:[%s2264_s12 + $0x2fa] sm:$0x1]  ;;  %v1011_v56 = vld [vmem:[%s2264_s12 + $0x2fb] sm:$0x1]  ;;  %v500_v57 = vld [vmem:[%s2264_s12 + $0x2fc] sm:$0x1] }
 0x18d   : > { %2033 = vst.msk [vmem:[%s2269_s15 + $0x17a] sm:$0x1] %vm1654_vm0, %v1520_v49  ;;  %v1523_v58 = vmax.f32 %v499_v55, %v1011_v56  ;;  %v1012_v59 = vld [vmem:[%s2264_s12 + $0x2fd] sm:$0x1]  ;;  %v501_v60 = vld [vmem:[%s2264_s12 + $0x2fe] sm:$0x1] }
 0x18e   : > { %v1013_v61 = vld [vmem:[%s2264_s12 + $0x2ff] sm:$0x1]  ;;  %2034 = vst.msk [vmem:[%s2269_s15 + $0x17b] sm:$0x1] %vm1654_vm0, %v1521_v53  ;;  %2035 = vst.msk [vmem:[%s2269_s15 + $0x17c] sm:$0x1] %vm1654_vm0, %v1522_v54  ;;  %v1524_v62 = vmax.f32 %v500_v57, %v1012_v59 }
 0x18f   : > { %v1525_v63 = vmax.f32 %v501_v60, %v1013_v61  ;;  %v502_v0 = vld [vmem:[%s2264_s12 + $0x300] sm:$0x1]  ;;  %v1014_v1 = vld [vmem:[%s2264_s12 + $0x301] sm:$0x1]  ;;  %v503_v2 = vld [vmem:[%s2264_s12 + $0x302] sm:$0x1] }
 0x190   : > { %2036 = vst.msk [vmem:[%s2269_s15 + $0x17d] sm:$0x1] %vm1654_vm0, %v1523_v58  ;;  %v1526_v3 = vmax.f32 %v502_v0, %v1014_v1  ;;  %v1015_v4 = vld [vmem:[%s2264_s12 + $0x303] sm:$0x1]  ;;  %v504_v5 = vld [vmem:[%s2264_s12 + $0x304] sm:$0x1] }
 0x191   : > { %v1016_v6 = vld [vmem:[%s2264_s12 + $0x305] sm:$0x1]  ;;  %2037 = vst.msk [vmem:[%s2269_s15 + $0x17e] sm:$0x1] %vm1654_vm0, %v1524_v62  ;;  %2038 = vst.msk [vmem:[%s2269_s15 + $0x17f] sm:$0x1] %vm1654_vm0, %v1525_v63  ;;  %v1527_v7 = vmax.f32 %v503_v2, %v1015_v4 }
 0x192   : > { %v1528_v8 = vmax.f32 %v504_v5, %v1016_v6  ;;  %v505_v9 = vld [vmem:[%s2264_s12 + $0x306] sm:$0x1]  ;;  %v1017_v10 = vld [vmem:[%s2264_s12 + $0x307] sm:$0x1]  ;;  %v506_v11 = vld [vmem:[%s2264_s12 + $0x308] sm:$0x1] }
 0x193   : > { %2039 = vst.msk [vmem:[%s2269_s15 + $0x180] sm:$0x1] %vm1654_vm0, %v1526_v3  ;;  %v1529_v12 = vmax.f32 %v505_v9, %v1017_v10  ;;  %v1018_v13 = vld [vmem:[%s2264_s12 + $0x309] sm:$0x1]  ;;  %v507_v14 = vld [vmem:[%s2264_s12 + $0x30a] sm:$0x1] }
 0x194   : > { %v1019_v15 = vld [vmem:[%s2264_s12 + $0x30b] sm:$0x1]  ;;  %2040 = vst.msk [vmem:[%s2269_s15 + $0x181] sm:$0x1] %vm1654_vm0, %v1527_v7  ;;  %2041 = vst.msk [vmem:[%s2269_s15 + $0x182] sm:$0x1] %vm1654_vm0, %v1528_v8  ;;  %v1530_v16 = vmax.f32 %v506_v11, %v1018_v13 }
 0x195   : > { %v1531_v17 = vmax.f32 %v507_v14, %v1019_v15  ;;  %v508_v18 = vld [vmem:[%s2264_s12 + $0x30c] sm:$0x1]  ;;  %v1020_v19 = vld [vmem:[%s2264_s12 + $0x30d] sm:$0x1]  ;;  %v509_v20 = vld [vmem:[%s2264_s12 + $0x30e] sm:$0x1] }
 0x196   : > { %2042 = vst.msk [vmem:[%s2269_s15 + $0x183] sm:$0x1] %vm1654_vm0, %v1529_v12  ;;  %v1532_v21 = vmax.f32 %v508_v18, %v1020_v19  ;;  %v1021_v22 = vld [vmem:[%s2264_s12 + $0x30f] sm:$0x1]  ;;  %v510_v23 = vld [vmem:[%s2264_s12 + $0x310] sm:$0x1] }
 0x197   : > { %v1022_v24 = vld [vmem:[%s2264_s12 + $0x311] sm:$0x1]  ;;  %2043 = vst.msk [vmem:[%s2269_s15 + $0x184] sm:$0x1] %vm1654_vm0, %v1530_v16  ;;  %2044 = vst.msk [vmem:[%s2269_s15 + $0x185] sm:$0x1] %vm1654_vm0, %v1531_v17  ;;  %v1533_v25 = vmax.f32 %v509_v20, %v1021_v22 }
 0x198   : > { %v1534_v26 = vmax.f32 %v510_v23, %v1022_v24  ;;  %v511_v27 = vld [vmem:[%s2264_s12 + $0x312] sm:$0x1]  ;;  %v1023_v28 = vld [vmem:[%s2264_s12 + $0x313] sm:$0x1]  ;;  %v512_v29 = vld [vmem:[%s2264_s12 + $0x314] sm:$0x1] }
 0x199   : > { %2045 = vst.msk [vmem:[%s2269_s15 + $0x186] sm:$0x1] %vm1654_vm0, %v1532_v21  ;;  %v1535_v30 = vmax.f32 %v511_v27, %v1023_v28  ;;  %v1024_v31 = vld [vmem:[%s2264_s12 + $0x315] sm:$0x1]  ;;  %v513_v32 = vld [vmem:[%s2264_s12 + $0x316] sm:$0x1] }
 0x19a   : > { %v1025_v33 = vld [vmem:[%s2264_s12 + $0x317] sm:$0x1]  ;;  %2046 = vst.msk [vmem:[%s2269_s15 + $0x187] sm:$0x1] %vm1654_vm0, %v1533_v25  ;;  %2047 = vst.msk [vmem:[%s2269_s15 + $0x188] sm:$0x1] %vm1654_vm0, %v1534_v26  ;;  %v1536_v34 = vmax.f32 %v512_v29, %v1024_v31 }
 0x19b   : > { %v1537_v35 = vmax.f32 %v513_v32, %v1025_v33  ;;  %v514_v36 = vld [vmem:[%s2264_s12 + $0x318] sm:$0x1]  ;;  %v1026_v37 = vld [vmem:[%s2264_s12 + $0x319] sm:$0x1]  ;;  %v515_v38 = vld [vmem:[%s2264_s12 + $0x31a] sm:$0x1] }
 0x19c   : > { %2048 = vst.msk [vmem:[%s2269_s15 + $0x189] sm:$0x1] %vm1654_vm0, %v1535_v30  ;;  %v1538_v39 = vmax.f32 %v514_v36, %v1026_v37  ;;  %v1027_v40 = vld [vmem:[%s2264_s12 + $0x31b] sm:$0x1]  ;;  %v516_v41 = vld [vmem:[%s2264_s12 + $0x31c] sm:$0x1] }
 0x19d   : > { %v1028_v42 = vld [vmem:[%s2264_s12 + $0x31d] sm:$0x1]  ;;  %2049 = vst.msk [vmem:[%s2269_s15 + $0x18a] sm:$0x1] %vm1654_vm0, %v1536_v34  ;;  %2050 = vst.msk [vmem:[%s2269_s15 + $0x18b] sm:$0x1] %vm1654_vm0, %v1537_v35  ;;  %v1539_v43 = vmax.f32 %v515_v38, %v1027_v40 }
 0x19e   : > { %v1540_v44 = vmax.f32 %v516_v41, %v1028_v42  ;;  %v517_v45 = vld [vmem:[%s2264_s12 + $0x31e] sm:$0x1]  ;;  %v1029_v46 = vld [vmem:[%s2264_s12 + $0x31f] sm:$0x1]  ;;  %v518_v47 = vld [vmem:[%s2264_s12 + $0x320] sm:$0x1] }
 0x19f   : > { %2051 = vst.msk [vmem:[%s2269_s15 + $0x18c] sm:$0x1] %vm1654_vm0, %v1538_v39  ;;  %v1541_v48 = vmax.f32 %v517_v45, %v1029_v46  ;;  %v1030_v49 = vld [vmem:[%s2264_s12 + $0x321] sm:$0x1]  ;;  %v519_v50 = vld [vmem:[%s2264_s12 + $0x322] sm:$0x1] }
 0x1a0   : > { %v1031_v51 = vld [vmem:[%s2264_s12 + $0x323] sm:$0x1]  ;;  %2052 = vst.msk [vmem:[%s2269_s15 + $0x18d] sm:$0x1] %vm1654_vm0, %v1539_v43  ;;  %2053 = vst.msk [vmem:[%s2269_s15 + $0x18e] sm:$0x1] %vm1654_vm0, %v1540_v44  ;;  %v1542_v52 = vmax.f32 %v518_v47, %v1030_v49 }
 0x1a1   : > { %v1543_v53 = vmax.f32 %v519_v50, %v1031_v51  ;;  %v520_v54 = vld [vmem:[%s2264_s12 + $0x324] sm:$0x1]  ;;  %v1032_v55 = vld [vmem:[%s2264_s12 + $0x325] sm:$0x1]  ;;  %v521_v56 = vld [vmem:[%s2264_s12 + $0x326] sm:$0x1] }
 0x1a2   : > { %2054 = vst.msk [vmem:[%s2269_s15 + $0x18f] sm:$0x1] %vm1654_vm0, %v1541_v48  ;;  %v1544_v57 = vmax.f32 %v520_v54, %v1032_v55  ;;  %v1033_v58 = vld [vmem:[%s2264_s12 + $0x327] sm:$0x1]  ;;  %v522_v59 = vld [vmem:[%s2264_s12 + $0x328] sm:$0x1] }
 0x1a3   : > { %v1034_v60 = vld [vmem:[%s2264_s12 + $0x329] sm:$0x1]  ;;  %2055 = vst.msk [vmem:[%s2269_s15 + $0x190] sm:$0x1] %vm1654_vm0, %v1542_v52  ;;  %2056 = vst.msk [vmem:[%s2269_s15 + $0x191] sm:$0x1] %vm1654_vm0, %v1543_v53  ;;  %v1545_v61 = vmax.f32 %v521_v56, %v1033_v58 }
 0x1a4   : > { %v1546_v62 = vmax.f32 %v522_v59, %v1034_v60  ;;  %v523_v63 = vld [vmem:[%s2264_s12 + $0x32a] sm:$0x1]  ;;  %v1035_v0 = vld [vmem:[%s2264_s12 + $0x32b] sm:$0x1]  ;;  %v524_v1 = vld [vmem:[%s2264_s12 + $0x32c] sm:$0x1] }
 0x1a5   : > { %2057 = vst.msk [vmem:[%s2269_s15 + $0x192] sm:$0x1] %vm1654_vm0, %v1544_v57  ;;  %v1547_v2 = vmax.f32 %v523_v63, %v1035_v0  ;;  %v1036_v3 = vld [vmem:[%s2264_s12 + $0x32d] sm:$0x1]  ;;  %v525_v4 = vld [vmem:[%s2264_s12 + $0x32e] sm:$0x1] }
 0x1a6   : > { %v1037_v5 = vld [vmem:[%s2264_s12 + $0x32f] sm:$0x1]  ;;  %2058 = vst.msk [vmem:[%s2269_s15 + $0x193] sm:$0x1] %vm1654_vm0, %v1545_v61  ;;  %2059 = vst.msk [vmem:[%s2269_s15 + $0x194] sm:$0x1] %vm1654_vm0, %v1546_v62  ;;  %v1548_v6 = vmax.f32 %v524_v1, %v1036_v3 }
 0x1a7   : > { %v1549_v7 = vmax.f32 %v525_v4, %v1037_v5  ;;  %v526_v8 = vld [vmem:[%s2264_s12 + $0x330] sm:$0x1]  ;;  %v1038_v9 = vld [vmem:[%s2264_s12 + $0x331] sm:$0x1]  ;;  %v527_v10 = vld [vmem:[%s2264_s12 + $0x332] sm:$0x1] }
 0x1a8   : > { %2060 = vst.msk [vmem:[%s2269_s15 + $0x195] sm:$0x1] %vm1654_vm0, %v1547_v2  ;;  %v1550_v11 = vmax.f32 %v526_v8, %v1038_v9  ;;  %v1039_v12 = vld [vmem:[%s2264_s12 + $0x333] sm:$0x1]  ;;  %v528_v13 = vld [vmem:[%s2264_s12 + $0x334] sm:$0x1] }
 0x1a9   : > { %v1040_v14 = vld [vmem:[%s2264_s12 + $0x335] sm:$0x1]  ;;  %2061 = vst.msk [vmem:[%s2269_s15 + $0x196] sm:$0x1] %vm1654_vm0, %v1548_v6  ;;  %2062 = vst.msk [vmem:[%s2269_s15 + $0x197] sm:$0x1] %vm1654_vm0, %v1549_v7  ;;  %v1551_v15 = vmax.f32 %v527_v10, %v1039_v12 }
 0x1aa   : > { %v1552_v16 = vmax.f32 %v528_v13, %v1040_v14  ;;  %v529_v17 = vld [vmem:[%s2264_s12 + $0x336] sm:$0x1]  ;;  %v1041_v18 = vld [vmem:[%s2264_s12 + $0x337] sm:$0x1]  ;;  %v530_v19 = vld [vmem:[%s2264_s12 + $0x338] sm:$0x1] }
 0x1ab   : > { %2063 = vst.msk [vmem:[%s2269_s15 + $0x198] sm:$0x1] %vm1654_vm0, %v1550_v11  ;;  %v1553_v20 = vmax.f32 %v529_v17, %v1041_v18  ;;  %v1042_v21 = vld [vmem:[%s2264_s12 + $0x339] sm:$0x1]  ;;  %v531_v22 = vld [vmem:[%s2264_s12 + $0x33a] sm:$0x1] }
 0x1ac   : > { %v1043_v23 = vld [vmem:[%s2264_s12 + $0x33b] sm:$0x1]  ;;  %2064 = vst.msk [vmem:[%s2269_s15 + $0x199] sm:$0x1] %vm1654_vm0, %v1551_v15  ;;  %2065 = vst.msk [vmem:[%s2269_s15 + $0x19a] sm:$0x1] %vm1654_vm0, %v1552_v16  ;;  %v1554_v24 = vmax.f32 %v530_v19, %v1042_v21 }
 0x1ad   : > { %v1555_v25 = vmax.f32 %v531_v22, %v1043_v23  ;;  %v532_v26 = vld [vmem:[%s2264_s12 + $0x33c] sm:$0x1]  ;;  %v1044_v27 = vld [vmem:[%s2264_s12 + $0x33d] sm:$0x1]  ;;  %v533_v28 = vld [vmem:[%s2264_s12 + $0x33e] sm:$0x1] }
 0x1ae   : > { %2066 = vst.msk [vmem:[%s2269_s15 + $0x19b] sm:$0x1] %vm1654_vm0, %v1553_v20  ;;  %v1556_v29 = vmax.f32 %v532_v26, %v1044_v27  ;;  %v1045_v30 = vld [vmem:[%s2264_s12 + $0x33f] sm:$0x1]  ;;  %v534_v31 = vld [vmem:[%s2264_s12 + $0x340] sm:$0x1] }
 0x1af   : > { %v1046_v32 = vld [vmem:[%s2264_s12 + $0x341] sm:$0x1]  ;;  %2067 = vst.msk [vmem:[%s2269_s15 + $0x19c] sm:$0x1] %vm1654_vm0, %v1554_v24  ;;  %2068 = vst.msk [vmem:[%s2269_s15 + $0x19d] sm:$0x1] %vm1654_vm0, %v1555_v25  ;;  %v1557_v33 = vmax.f32 %v533_v28, %v1045_v30 }
 0x1b0   : > { %v1558_v34 = vmax.f32 %v534_v31, %v1046_v32  ;;  %v535_v35 = vld [vmem:[%s2264_s12 + $0x342] sm:$0x1]  ;;  %v1047_v36 = vld [vmem:[%s2264_s12 + $0x343] sm:$0x1]  ;;  %v536_v37 = vld [vmem:[%s2264_s12 + $0x344] sm:$0x1] }
 0x1b1   : > { %2069 = vst.msk [vmem:[%s2269_s15 + $0x19e] sm:$0x1] %vm1654_vm0, %v1556_v29  ;;  %v1559_v38 = vmax.f32 %v535_v35, %v1047_v36  ;;  %v1048_v39 = vld [vmem:[%s2264_s12 + $0x345] sm:$0x1]  ;;  %v537_v40 = vld [vmem:[%s2264_s12 + $0x346] sm:$0x1] }
 0x1b2   : > { %v1049_v41 = vld [vmem:[%s2264_s12 + $0x347] sm:$0x1]  ;;  %2070 = vst.msk [vmem:[%s2269_s15 + $0x19f] sm:$0x1] %vm1654_vm0, %v1557_v33  ;;  %2071 = vst.msk [vmem:[%s2269_s15 + $0x1a0] sm:$0x1] %vm1654_vm0, %v1558_v34  ;;  %v1560_v42 = vmax.f32 %v536_v37, %v1048_v39 }
 0x1b3   : > { %v1561_v43 = vmax.f32 %v537_v40, %v1049_v41  ;;  %v538_v44 = vld [vmem:[%s2264_s12 + $0x348] sm:$0x1]  ;;  %v1050_v45 = vld [vmem:[%s2264_s12 + $0x349] sm:$0x1]  ;;  %v539_v46 = vld [vmem:[%s2264_s12 + $0x34a] sm:$0x1] }
 0x1b4   : > { %2072 = vst.msk [vmem:[%s2269_s15 + $0x1a1] sm:$0x1] %vm1654_vm0, %v1559_v38  ;;  %v1562_v47 = vmax.f32 %v538_v44, %v1050_v45  ;;  %v1051_v48 = vld [vmem:[%s2264_s12 + $0x34b] sm:$0x1]  ;;  %v540_v49 = vld [vmem:[%s2264_s12 + $0x34c] sm:$0x1] }
 0x1b5   : > { %v1052_v50 = vld [vmem:[%s2264_s12 + $0x34d] sm:$0x1]  ;;  %2073 = vst.msk [vmem:[%s2269_s15 + $0x1a2] sm:$0x1] %vm1654_vm0, %v1560_v42  ;;  %2074 = vst.msk [vmem:[%s2269_s15 + $0x1a3] sm:$0x1] %vm1654_vm0, %v1561_v43  ;;  %v1563_v51 = vmax.f32 %v539_v46, %v1051_v48 }
 0x1b6   : > { %v1564_v52 = vmax.f32 %v540_v49, %v1052_v50  ;;  %v541_v53 = vld [vmem:[%s2264_s12 + $0x34e] sm:$0x1]  ;;  %v1053_v54 = vld [vmem:[%s2264_s12 + $0x34f] sm:$0x1]  ;;  %v542_v55 = vld [vmem:[%s2264_s12 + $0x350] sm:$0x1] }
 0x1b7   : > { %2075 = vst.msk [vmem:[%s2269_s15 + $0x1a4] sm:$0x1] %vm1654_vm0, %v1562_v47  ;;  %v1565_v56 = vmax.f32 %v541_v53, %v1053_v54  ;;  %v1054_v57 = vld [vmem:[%s2264_s12 + $0x351] sm:$0x1]  ;;  %v543_v58 = vld [vmem:[%s2264_s12 + $0x352] sm:$0x1] }
 0x1b8   : > { %v1055_v59 = vld [vmem:[%s2264_s12 + $0x353] sm:$0x1]  ;;  %2076 = vst.msk [vmem:[%s2269_s15 + $0x1a5] sm:$0x1] %vm1654_vm0, %v1563_v51  ;;  %2077 = vst.msk [vmem:[%s2269_s15 + $0x1a6] sm:$0x1] %vm1654_vm0, %v1564_v52  ;;  %v1566_v60 = vmax.f32 %v542_v55, %v1054_v57 }
 0x1b9   : > { %v1567_v61 = vmax.f32 %v543_v58, %v1055_v59  ;;  %v544_v62 = vld [vmem:[%s2264_s12 + $0x354] sm:$0x1]  ;;  %v1056_v63 = vld [vmem:[%s2264_s12 + $0x355] sm:$0x1]  ;;  %v545_v0 = vld [vmem:[%s2264_s12 + $0x356] sm:$0x1] }
 0x1ba   : > { %2078 = vst.msk [vmem:[%s2269_s15 + $0x1a7] sm:$0x1] %vm1654_vm0, %v1565_v56  ;;  %v1568_v1 = vmax.f32 %v544_v62, %v1056_v63  ;;  %v1057_v2 = vld [vmem:[%s2264_s12 + $0x357] sm:$0x1]  ;;  %v546_v3 = vld [vmem:[%s2264_s12 + $0x358] sm:$0x1] }
 0x1bb   : > { %v1058_v4 = vld [vmem:[%s2264_s12 + $0x359] sm:$0x1]  ;;  %2079 = vst.msk [vmem:[%s2269_s15 + $0x1a8] sm:$0x1] %vm1654_vm0, %v1566_v60  ;;  %2080 = vst.msk [vmem:[%s2269_s15 + $0x1a9] sm:$0x1] %vm1654_vm0, %v1567_v61  ;;  %v1569_v5 = vmax.f32 %v545_v0, %v1057_v2 }
 0x1bc   : > { %v1570_v6 = vmax.f32 %v546_v3, %v1058_v4  ;;  %v547_v7 = vld [vmem:[%s2264_s12 + $0x35a] sm:$0x1]  ;;  %v1059_v8 = vld [vmem:[%s2264_s12 + $0x35b] sm:$0x1]  ;;  %v548_v9 = vld [vmem:[%s2264_s12 + $0x35c] sm:$0x1] }
 0x1bd   : > { %2081 = vst.msk [vmem:[%s2269_s15 + $0x1aa] sm:$0x1] %vm1654_vm0, %v1568_v1  ;;  %v1571_v10 = vmax.f32 %v547_v7, %v1059_v8  ;;  %v1060_v11 = vld [vmem:[%s2264_s12 + $0x35d] sm:$0x1]  ;;  %v549_v12 = vld [vmem:[%s2264_s12 + $0x35e] sm:$0x1] }
 0x1be   : > { %v1061_v13 = vld [vmem:[%s2264_s12 + $0x35f] sm:$0x1]  ;;  %2082 = vst.msk [vmem:[%s2269_s15 + $0x1ab] sm:$0x1] %vm1654_vm0, %v1569_v5  ;;  %2083 = vst.msk [vmem:[%s2269_s15 + $0x1ac] sm:$0x1] %vm1654_vm0, %v1570_v6  ;;  %v1572_v14 = vmax.f32 %v548_v9, %v1060_v11 }
 0x1bf   : > { %v1573_v15 = vmax.f32 %v549_v12, %v1061_v13  ;;  %v550_v16 = vld [vmem:[%s2264_s12 + $0x360] sm:$0x1]  ;;  %v1062_v17 = vld [vmem:[%s2264_s12 + $0x361] sm:$0x1]  ;;  %v551_v18 = vld [vmem:[%s2264_s12 + $0x362] sm:$0x1] }
 0x1c0   : > { %2084 = vst.msk [vmem:[%s2269_s15 + $0x1ad] sm:$0x1] %vm1654_vm0, %v1571_v10  ;;  %v1574_v19 = vmax.f32 %v550_v16, %v1062_v17  ;;  %v1063_v20 = vld [vmem:[%s2264_s12 + $0x363] sm:$0x1]  ;;  %v552_v21 = vld [vmem:[%s2264_s12 + $0x364] sm:$0x1] }
 0x1c1   : > { %v1064_v22 = vld [vmem:[%s2264_s12 + $0x365] sm:$0x1]  ;;  %2085 = vst.msk [vmem:[%s2269_s15 + $0x1ae] sm:$0x1] %vm1654_vm0, %v1572_v14  ;;  %2086 = vst.msk [vmem:[%s2269_s15 + $0x1af] sm:$0x1] %vm1654_vm0, %v1573_v15  ;;  %v1575_v23 = vmax.f32 %v551_v18, %v1063_v20 }
 0x1c2   : > { %v1576_v24 = vmax.f32 %v552_v21, %v1064_v22  ;;  %v553_v25 = vld [vmem:[%s2264_s12 + $0x366] sm:$0x1]  ;;  %v1065_v26 = vld [vmem:[%s2264_s12 + $0x367] sm:$0x1]  ;;  %v554_v27 = vld [vmem:[%s2264_s12 + $0x368] sm:$0x1] }
 0x1c3   : > { %2087 = vst.msk [vmem:[%s2269_s15 + $0x1b0] sm:$0x1] %vm1654_vm0, %v1574_v19  ;;  %v1577_v28 = vmax.f32 %v553_v25, %v1065_v26  ;;  %v1066_v29 = vld [vmem:[%s2264_s12 + $0x369] sm:$0x1]  ;;  %v555_v30 = vld [vmem:[%s2264_s12 + $0x36a] sm:$0x1] }
 0x1c4   : > { %v1067_v31 = vld [vmem:[%s2264_s12 + $0x36b] sm:$0x1]  ;;  %2088 = vst.msk [vmem:[%s2269_s15 + $0x1b1] sm:$0x1] %vm1654_vm0, %v1575_v23  ;;  %2089 = vst.msk [vmem:[%s2269_s15 + $0x1b2] sm:$0x1] %vm1654_vm0, %v1576_v24  ;;  %v1578_v32 = vmax.f32 %v554_v27, %v1066_v29 }
 0x1c5   : > { %v1579_v33 = vmax.f32 %v555_v30, %v1067_v31  ;;  %v556_v34 = vld [vmem:[%s2264_s12 + $0x36c] sm:$0x1]  ;;  %v1068_v35 = vld [vmem:[%s2264_s12 + $0x36d] sm:$0x1]  ;;  %v557_v36 = vld [vmem:[%s2264_s12 + $0x36e] sm:$0x1] }
 0x1c6   : > { %2090 = vst.msk [vmem:[%s2269_s15 + $0x1b3] sm:$0x1] %vm1654_vm0, %v1577_v28  ;;  %v1580_v37 = vmax.f32 %v556_v34, %v1068_v35  ;;  %v1069_v38 = vld [vmem:[%s2264_s12 + $0x36f] sm:$0x1]  ;;  %v558_v39 = vld [vmem:[%s2264_s12 + $0x370] sm:$0x1] }
 0x1c7   : > { %v1070_v40 = vld [vmem:[%s2264_s12 + $0x371] sm:$0x1]  ;;  %2091 = vst.msk [vmem:[%s2269_s15 + $0x1b4] sm:$0x1] %vm1654_vm0, %v1578_v32  ;;  %2092 = vst.msk [vmem:[%s2269_s15 + $0x1b5] sm:$0x1] %vm1654_vm0, %v1579_v33  ;;  %v1581_v41 = vmax.f32 %v557_v36, %v1069_v38 }
 0x1c8   : > { %v1582_v42 = vmax.f32 %v558_v39, %v1070_v40  ;;  %v559_v43 = vld [vmem:[%s2264_s12 + $0x372] sm:$0x1]  ;;  %v1071_v44 = vld [vmem:[%s2264_s12 + $0x373] sm:$0x1]  ;;  %v560_v45 = vld [vmem:[%s2264_s12 + $0x374] sm:$0x1] }
 0x1c9   : > { %2093 = vst.msk [vmem:[%s2269_s15 + $0x1b6] sm:$0x1] %vm1654_vm0, %v1580_v37  ;;  %v1583_v46 = vmax.f32 %v559_v43, %v1071_v44  ;;  %v1072_v47 = vld [vmem:[%s2264_s12 + $0x375] sm:$0x1]  ;;  %v561_v48 = vld [vmem:[%s2264_s12 + $0x376] sm:$0x1] }
 0x1ca   : > { %v1073_v49 = vld [vmem:[%s2264_s12 + $0x377] sm:$0x1]  ;;  %2094 = vst.msk [vmem:[%s2269_s15 + $0x1b7] sm:$0x1] %vm1654_vm0, %v1581_v41  ;;  %2095 = vst.msk [vmem:[%s2269_s15 + $0x1b8] sm:$0x1] %vm1654_vm0, %v1582_v42  ;;  %v1584_v50 = vmax.f32 %v560_v45, %v1072_v47 }
 0x1cb   : > { %v1585_v51 = vmax.f32 %v561_v48, %v1073_v49  ;;  %v562_v52 = vld [vmem:[%s2264_s12 + $0x378] sm:$0x1]  ;;  %v1074_v53 = vld [vmem:[%s2264_s12 + $0x379] sm:$0x1]  ;;  %v563_v54 = vld [vmem:[%s2264_s12 + $0x37a] sm:$0x1] }
 0x1cc   : > { %2096 = vst.msk [vmem:[%s2269_s15 + $0x1b9] sm:$0x1] %vm1654_vm0, %v1583_v46  ;;  %v1586_v55 = vmax.f32 %v562_v52, %v1074_v53  ;;  %v1075_v56 = vld [vmem:[%s2264_s12 + $0x37b] sm:$0x1]  ;;  %v564_v57 = vld [vmem:[%s2264_s12 + $0x37c] sm:$0x1] }
 0x1cd   : > { %v1076_v58 = vld [vmem:[%s2264_s12 + $0x37d] sm:$0x1]  ;;  %2097 = vst.msk [vmem:[%s2269_s15 + $0x1ba] sm:$0x1] %vm1654_vm0, %v1584_v50  ;;  %2098 = vst.msk [vmem:[%s2269_s15 + $0x1bb] sm:$0x1] %vm1654_vm0, %v1585_v51  ;;  %v1587_v59 = vmax.f32 %v563_v54, %v1075_v56 }
 0x1ce   : > { %v1588_v60 = vmax.f32 %v564_v57, %v1076_v58  ;;  %v565_v61 = vld [vmem:[%s2264_s12 + $0x37e] sm:$0x1]  ;;  %v1077_v62 = vld [vmem:[%s2264_s12 + $0x37f] sm:$0x1]  ;;  %v566_v63 = vld [vmem:[%s2264_s12 + $0x380] sm:$0x1] }
 0x1cf   : > { %2099 = vst.msk [vmem:[%s2269_s15 + $0x1bc] sm:$0x1] %vm1654_vm0, %v1586_v55  ;;  %v1589_v0 = vmax.f32 %v565_v61, %v1077_v62  ;;  %v1078_v1 = vld [vmem:[%s2264_s12 + $0x381] sm:$0x1]  ;;  %v567_v2 = vld [vmem:[%s2264_s12 + $0x382] sm:$0x1] }
 0x1d0   : > { %v1079_v3 = vld [vmem:[%s2264_s12 + $0x383] sm:$0x1]  ;;  %2100 = vst.msk [vmem:[%s2269_s15 + $0x1bd] sm:$0x1] %vm1654_vm0, %v1587_v59  ;;  %2101 = vst.msk [vmem:[%s2269_s15 + $0x1be] sm:$0x1] %vm1654_vm0, %v1588_v60  ;;  %v1590_v4 = vmax.f32 %v566_v63, %v1078_v1 }
 0x1d1   : > { %v1591_v5 = vmax.f32 %v567_v2, %v1079_v3  ;;  %v568_v6 = vld [vmem:[%s2264_s12 + $0x384] sm:$0x1]  ;;  %v1080_v7 = vld [vmem:[%s2264_s12 + $0x385] sm:$0x1]  ;;  %v569_v8 = vld [vmem:[%s2264_s12 + $0x386] sm:$0x1] }
 0x1d2   : > { %2102 = vst.msk [vmem:[%s2269_s15 + $0x1bf] sm:$0x1] %vm1654_vm0, %v1589_v0  ;;  %v1592_v9 = vmax.f32 %v568_v6, %v1080_v7  ;;  %v1081_v10 = vld [vmem:[%s2264_s12 + $0x387] sm:$0x1]  ;;  %v570_v11 = vld [vmem:[%s2264_s12 + $0x388] sm:$0x1] }
 0x1d3   : > { %v1082_v12 = vld [vmem:[%s2264_s12 + $0x389] sm:$0x1]  ;;  %2103 = vst.msk [vmem:[%s2269_s15 + $0x1c0] sm:$0x1] %vm1654_vm0, %v1590_v4  ;;  %2104 = vst.msk [vmem:[%s2269_s15 + $0x1c1] sm:$0x1] %vm1654_vm0, %v1591_v5  ;;  %v1593_v13 = vmax.f32 %v569_v8, %v1081_v10 }
 0x1d4   : > { %v1594_v14 = vmax.f32 %v570_v11, %v1082_v12  ;;  %v571_v15 = vld [vmem:[%s2264_s12 + $0x38a] sm:$0x1]  ;;  %v1083_v16 = vld [vmem:[%s2264_s12 + $0x38b] sm:$0x1]  ;;  %v572_v17 = vld [vmem:[%s2264_s12 + $0x38c] sm:$0x1] }
 0x1d5   : > { %2105 = vst.msk [vmem:[%s2269_s15 + $0x1c2] sm:$0x1] %vm1654_vm0, %v1592_v9  ;;  %v1595_v18 = vmax.f32 %v571_v15, %v1083_v16  ;;  %v1084_v19 = vld [vmem:[%s2264_s12 + $0x38d] sm:$0x1]  ;;  %v573_v20 = vld [vmem:[%s2264_s12 + $0x38e] sm:$0x1] }
 0x1d6   : > { %v1085_v21 = vld [vmem:[%s2264_s12 + $0x38f] sm:$0x1]  ;;  %2106 = vst.msk [vmem:[%s2269_s15 + $0x1c3] sm:$0x1] %vm1654_vm0, %v1593_v13  ;;  %2107 = vst.msk [vmem:[%s2269_s15 + $0x1c4] sm:$0x1] %vm1654_vm0, %v1594_v14  ;;  %v1596_v22 = vmax.f32 %v572_v17, %v1084_v19 }
 0x1d7   : > { %v1597_v23 = vmax.f32 %v573_v20, %v1085_v21  ;;  %v574_v24 = vld [vmem:[%s2264_s12 + $0x390] sm:$0x1]  ;;  %v1086_v25 = vld [vmem:[%s2264_s12 + $0x391] sm:$0x1]  ;;  %v575_v26 = vld [vmem:[%s2264_s12 + $0x392] sm:$0x1] }
 0x1d8   : > { %2108 = vst.msk [vmem:[%s2269_s15 + $0x1c5] sm:$0x1] %vm1654_vm0, %v1595_v18  ;;  %v1598_v27 = vmax.f32 %v574_v24, %v1086_v25  ;;  %v1087_v28 = vld [vmem:[%s2264_s12 + $0x393] sm:$0x1]  ;;  %v576_v29 = vld [vmem:[%s2264_s12 + $0x394] sm:$0x1] }
 0x1d9   : > { %v1088_v30 = vld [vmem:[%s2264_s12 + $0x395] sm:$0x1]  ;;  %2109 = vst.msk [vmem:[%s2269_s15 + $0x1c6] sm:$0x1] %vm1654_vm0, %v1596_v22  ;;  %2110 = vst.msk [vmem:[%s2269_s15 + $0x1c7] sm:$0x1] %vm1654_vm0, %v1597_v23  ;;  %v1599_v31 = vmax.f32 %v575_v26, %v1087_v28 }
 0x1da   : > { %v1600_v32 = vmax.f32 %v576_v29, %v1088_v30  ;;  %v577_v33 = vld [vmem:[%s2264_s12 + $0x396] sm:$0x1]  ;;  %v1089_v34 = vld [vmem:[%s2264_s12 + $0x397] sm:$0x1]  ;;  %v578_v35 = vld [vmem:[%s2264_s12 + $0x398] sm:$0x1] }
 0x1db   : > { %2111 = vst.msk [vmem:[%s2269_s15 + $0x1c8] sm:$0x1] %vm1654_vm0, %v1598_v27  ;;  %v1601_v36 = vmax.f32 %v577_v33, %v1089_v34  ;;  %v1090_v37 = vld [vmem:[%s2264_s12 + $0x399] sm:$0x1]  ;;  %v579_v38 = vld [vmem:[%s2264_s12 + $0x39a] sm:$0x1] }
 0x1dc   : > { %v1091_v39 = vld [vmem:[%s2264_s12 + $0x39b] sm:$0x1]  ;;  %2112 = vst.msk [vmem:[%s2269_s15 + $0x1c9] sm:$0x1] %vm1654_vm0, %v1599_v31  ;;  %2113 = vst.msk [vmem:[%s2269_s15 + $0x1ca] sm:$0x1] %vm1654_vm0, %v1600_v32  ;;  %v1602_v40 = vmax.f32 %v578_v35, %v1090_v37 }
 0x1dd   : > { %v1603_v41 = vmax.f32 %v579_v38, %v1091_v39  ;;  %v580_v42 = vld [vmem:[%s2264_s12 + $0x39c] sm:$0x1]  ;;  %v1092_v43 = vld [vmem:[%s2264_s12 + $0x39d] sm:$0x1]  ;;  %v581_v44 = vld [vmem:[%s2264_s12 + $0x39e] sm:$0x1] }
 0x1de   : > { %2114 = vst.msk [vmem:[%s2269_s15 + $0x1cb] sm:$0x1] %vm1654_vm0, %v1601_v36  ;;  %v1604_v45 = vmax.f32 %v580_v42, %v1092_v43  ;;  %v1093_v46 = vld [vmem:[%s2264_s12 + $0x39f] sm:$0x1]  ;;  %v582_v47 = vld [vmem:[%s2264_s12 + $0x3a0] sm:$0x1] }
 0x1df   : > { %v1094_v48 = vld [vmem:[%s2264_s12 + $0x3a1] sm:$0x1]  ;;  %2115 = vst.msk [vmem:[%s2269_s15 + $0x1cc] sm:$0x1] %vm1654_vm0, %v1602_v40  ;;  %2116 = vst.msk [vmem:[%s2269_s15 + $0x1cd] sm:$0x1] %vm1654_vm0, %v1603_v41  ;;  %v1605_v49 = vmax.f32 %v581_v44, %v1093_v46 }
 0x1e0   : > { %v1606_v50 = vmax.f32 %v582_v47, %v1094_v48  ;;  %v583_v51 = vld [vmem:[%s2264_s12 + $0x3a2] sm:$0x1]  ;;  %v1095_v52 = vld [vmem:[%s2264_s12 + $0x3a3] sm:$0x1]  ;;  %v584_v53 = vld [vmem:[%s2264_s12 + $0x3a4] sm:$0x1] }
 0x1e1   : > { %2117 = vst.msk [vmem:[%s2269_s15 + $0x1ce] sm:$0x1] %vm1654_vm0, %v1604_v45  ;;  %v1607_v54 = vmax.f32 %v583_v51, %v1095_v52  ;;  %v1096_v55 = vld [vmem:[%s2264_s12 + $0x3a5] sm:$0x1]  ;;  %v585_v56 = vld [vmem:[%s2264_s12 + $0x3a6] sm:$0x1] }
 0x1e2   : > { %v1097_v57 = vld [vmem:[%s2264_s12 + $0x3a7] sm:$0x1]  ;;  %2118 = vst.msk [vmem:[%s2269_s15 + $0x1cf] sm:$0x1] %vm1654_vm0, %v1605_v49  ;;  %2119 = vst.msk [vmem:[%s2269_s15 + $0x1d0] sm:$0x1] %vm1654_vm0, %v1606_v50  ;;  %v1608_v58 = vmax.f32 %v584_v53, %v1096_v55 }
 0x1e3   : > { %v1609_v59 = vmax.f32 %v585_v56, %v1097_v57  ;;  %v586_v60 = vld [vmem:[%s2264_s12 + $0x3a8] sm:$0x1]  ;;  %v1098_v61 = vld [vmem:[%s2264_s12 + $0x3a9] sm:$0x1]  ;;  %v587_v62 = vld [vmem:[%s2264_s12 + $0x3aa] sm:$0x1] }
 0x1e4   : > { %2120 = vst.msk [vmem:[%s2269_s15 + $0x1d1] sm:$0x1] %vm1654_vm0, %v1607_v54  ;;  %v1610_v63 = vmax.f32 %v586_v60, %v1098_v61  ;;  %v1099_v0 = vld [vmem:[%s2264_s12 + $0x3ab] sm:$0x1]  ;;  %v588_v1 = vld [vmem:[%s2264_s12 + $0x3ac] sm:$0x1] }
 0x1e5   : > { %v1100_v2 = vld [vmem:[%s2264_s12 + $0x3ad] sm:$0x1]  ;;  %2121 = vst.msk [vmem:[%s2269_s15 + $0x1d2] sm:$0x1] %vm1654_vm0, %v1608_v58  ;;  %2122 = vst.msk [vmem:[%s2269_s15 + $0x1d3] sm:$0x1] %vm1654_vm0, %v1609_v59  ;;  %v1611_v3 = vmax.f32 %v587_v62, %v1099_v0 }
 0x1e6   : > { %v1612_v4 = vmax.f32 %v588_v1, %v1100_v2  ;;  %v589_v5 = vld [vmem:[%s2264_s12 + $0x3ae] sm:$0x1]  ;;  %v1101_v6 = vld [vmem:[%s2264_s12 + $0x3af] sm:$0x1]  ;;  %v590_v7 = vld [vmem:[%s2264_s12 + $0x3b0] sm:$0x1] }
 0x1e7   : > { %2123 = vst.msk [vmem:[%s2269_s15 + $0x1d4] sm:$0x1] %vm1654_vm0, %v1610_v63  ;;  %v1613_v8 = vmax.f32 %v589_v5, %v1101_v6  ;;  %v1102_v9 = vld [vmem:[%s2264_s12 + $0x3b1] sm:$0x1]  ;;  %v591_v10 = vld [vmem:[%s2264_s12 + $0x3b2] sm:$0x1] }
 0x1e8   : > { %v1103_v11 = vld [vmem:[%s2264_s12 + $0x3b3] sm:$0x1]  ;;  %2124 = vst.msk [vmem:[%s2269_s15 + $0x1d5] sm:$0x1] %vm1654_vm0, %v1611_v3  ;;  %2125 = vst.msk [vmem:[%s2269_s15 + $0x1d6] sm:$0x1] %vm1654_vm0, %v1612_v4  ;;  %v1614_v12 = vmax.f32 %v590_v7, %v1102_v9 }
 0x1e9   : > { %v1615_v13 = vmax.f32 %v591_v10, %v1103_v11  ;;  %v592_v14 = vld [vmem:[%s2264_s12 + $0x3b4] sm:$0x1]  ;;  %v1104_v15 = vld [vmem:[%s2264_s12 + $0x3b5] sm:$0x1]  ;;  %v593_v16 = vld [vmem:[%s2264_s12 + $0x3b6] sm:$0x1] }
 0x1ea   : > { %2126 = vst.msk [vmem:[%s2269_s15 + $0x1d7] sm:$0x1] %vm1654_vm0, %v1613_v8  ;;  %v1616_v17 = vmax.f32 %v592_v14, %v1104_v15  ;;  %v1105_v18 = vld [vmem:[%s2264_s12 + $0x3b7] sm:$0x1]  ;;  %v594_v19 = vld [vmem:[%s2264_s12 + $0x3b8] sm:$0x1] }
 0x1eb   : > { %v1106_v20 = vld [vmem:[%s2264_s12 + $0x3b9] sm:$0x1]  ;;  %2127 = vst.msk [vmem:[%s2269_s15 + $0x1d8] sm:$0x1] %vm1654_vm0, %v1614_v12  ;;  %2128 = vst.msk [vmem:[%s2269_s15 + $0x1d9] sm:$0x1] %vm1654_vm0, %v1615_v13  ;;  %v1617_v21 = vmax.f32 %v593_v16, %v1105_v18 }
 0x1ec   : > { %v1618_v22 = vmax.f32 %v594_v19, %v1106_v20  ;;  %v595_v23 = vld [vmem:[%s2264_s12 + $0x3ba] sm:$0x1]  ;;  %v1107_v24 = vld [vmem:[%s2264_s12 + $0x3bb] sm:$0x1]  ;;  %v596_v25 = vld [vmem:[%s2264_s12 + $0x3bc] sm:$0x1] }
 0x1ed   : > { %2129 = vst.msk [vmem:[%s2269_s15 + $0x1da] sm:$0x1] %vm1654_vm0, %v1616_v17  ;;  %v1619_v26 = vmax.f32 %v595_v23, %v1107_v24  ;;  %v1108_v27 = vld [vmem:[%s2264_s12 + $0x3bd] sm:$0x1]  ;;  %v597_v28 = vld [vmem:[%s2264_s12 + $0x3be] sm:$0x1] }
 0x1ee   : > { %v1109_v29 = vld [vmem:[%s2264_s12 + $0x3bf] sm:$0x1]  ;;  %2130 = vst.msk [vmem:[%s2269_s15 + $0x1db] sm:$0x1] %vm1654_vm0, %v1617_v21  ;;  %2131 = vst.msk [vmem:[%s2269_s15 + $0x1dc] sm:$0x1] %vm1654_vm0, %v1618_v22  ;;  %v1620_v30 = vmax.f32 %v596_v25, %v1108_v27 }
 0x1ef   : > { %v1621_v31 = vmax.f32 %v597_v28, %v1109_v29  ;;  %v598_v32 = vld [vmem:[%s2264_s12 + $0x3c0] sm:$0x1]  ;;  %v1110_v33 = vld [vmem:[%s2264_s12 + $0x3c1] sm:$0x1]  ;;  %v599_v34 = vld [vmem:[%s2264_s12 + $0x3c2] sm:$0x1] }
 0x1f0   : > { %2132 = vst.msk [vmem:[%s2269_s15 + $0x1dd] sm:$0x1] %vm1654_vm0, %v1619_v26  ;;  %v1622_v35 = vmax.f32 %v598_v32, %v1110_v33  ;;  %v1111_v36 = vld [vmem:[%s2264_s12 + $0x3c3] sm:$0x1]  ;;  %v600_v37 = vld [vmem:[%s2264_s12 + $0x3c4] sm:$0x1] }
 0x1f1   : > { %v1112_v38 = vld [vmem:[%s2264_s12 + $0x3c5] sm:$0x1]  ;;  %2133 = vst.msk [vmem:[%s2269_s15 + $0x1de] sm:$0x1] %vm1654_vm0, %v1620_v30  ;;  %2134 = vst.msk [vmem:[%s2269_s15 + $0x1df] sm:$0x1] %vm1654_vm0, %v1621_v31  ;;  %v1623_v39 = vmax.f32 %v599_v34, %v1111_v36 }
 0x1f2   : > { %v1624_v40 = vmax.f32 %v600_v37, %v1112_v38  ;;  %v601_v41 = vld [vmem:[%s2264_s12 + $0x3c6] sm:$0x1]  ;;  %v1113_v42 = vld [vmem:[%s2264_s12 + $0x3c7] sm:$0x1]  ;;  %v602_v43 = vld [vmem:[%s2264_s12 + $0x3c8] sm:$0x1] }
 0x1f3   : > { %2135 = vst.msk [vmem:[%s2269_s15 + $0x1e0] sm:$0x1] %vm1654_vm0, %v1622_v35  ;;  %v1625_v44 = vmax.f32 %v601_v41, %v1113_v42  ;;  %v1114_v45 = vld [vmem:[%s2264_s12 + $0x3c9] sm:$0x1]  ;;  %v603_v46 = vld [vmem:[%s2264_s12 + $0x3ca] sm:$0x1] }
 0x1f4   : > { %v1115_v47 = vld [vmem:[%s2264_s12 + $0x3cb] sm:$0x1]  ;;  %2136 = vst.msk [vmem:[%s2269_s15 + $0x1e1] sm:$0x1] %vm1654_vm0, %v1623_v39  ;;  %2137 = vst.msk [vmem:[%s2269_s15 + $0x1e2] sm:$0x1] %vm1654_vm0, %v1624_v40  ;;  %v1626_v48 = vmax.f32 %v602_v43, %v1114_v45 }
 0x1f5   : > { %v1627_v49 = vmax.f32 %v603_v46, %v1115_v47  ;;  %v604_v50 = vld [vmem:[%s2264_s12 + $0x3cc] sm:$0x1]  ;;  %v1116_v51 = vld [vmem:[%s2264_s12 + $0x3cd] sm:$0x1]  ;;  %v605_v52 = vld [vmem:[%s2264_s12 + $0x3ce] sm:$0x1] }
 0x1f6   : > { %2138 = vst.msk [vmem:[%s2269_s15 + $0x1e3] sm:$0x1] %vm1654_vm0, %v1625_v44  ;;  %v1628_v53 = vmax.f32 %v604_v50, %v1116_v51  ;;  %v1117_v54 = vld [vmem:[%s2264_s12 + $0x3cf] sm:$0x1]  ;;  %v606_v55 = vld [vmem:[%s2264_s12 + $0x3d0] sm:$0x1] }
 0x1f7   : > { %v1118_v56 = vld [vmem:[%s2264_s12 + $0x3d1] sm:$0x1]  ;;  %2139 = vst.msk [vmem:[%s2269_s15 + $0x1e4] sm:$0x1] %vm1654_vm0, %v1626_v48  ;;  %2140 = vst.msk [vmem:[%s2269_s15 + $0x1e5] sm:$0x1] %vm1654_vm0, %v1627_v49  ;;  %v1629_v57 = vmax.f32 %v605_v52, %v1117_v54 }
 0x1f8   : > { %v1630_v58 = vmax.f32 %v606_v55, %v1118_v56  ;;  %v607_v59 = vld [vmem:[%s2264_s12 + $0x3d2] sm:$0x1]  ;;  %v1119_v60 = vld [vmem:[%s2264_s12 + $0x3d3] sm:$0x1]  ;;  %v608_v61 = vld [vmem:[%s2264_s12 + $0x3d4] sm:$0x1] }
 0x1f9   : > { %2141 = vst.msk [vmem:[%s2269_s15 + $0x1e6] sm:$0x1] %vm1654_vm0, %v1628_v53  ;;  %v1631_v62 = vmax.f32 %v607_v59, %v1119_v60  ;;  %v1120_v63 = vld [vmem:[%s2264_s12 + $0x3d5] sm:$0x1]  ;;  %v609_v0 = vld [vmem:[%s2264_s12 + $0x3d6] sm:$0x1] }
 0x1fa   : > { %v1121_v1 = vld [vmem:[%s2264_s12 + $0x3d7] sm:$0x1]  ;;  %2142 = vst.msk [vmem:[%s2269_s15 + $0x1e7] sm:$0x1] %vm1654_vm0, %v1629_v57  ;;  %2143 = vst.msk [vmem:[%s2269_s15 + $0x1e8] sm:$0x1] %vm1654_vm0, %v1630_v58  ;;  %v1632_v2 = vmax.f32 %v608_v61, %v1120_v63 }
 0x1fb   : > { %v1633_v3 = vmax.f32 %v609_v0, %v1121_v1  ;;  %v610_v4 = vld [vmem:[%s2264_s12 + $0x3d8] sm:$0x1]  ;;  %v1122_v5 = vld [vmem:[%s2264_s12 + $0x3d9] sm:$0x1]  ;;  %v611_v6 = vld [vmem:[%s2264_s12 + $0x3da] sm:$0x1] }
 0x1fc   : > { %2144 = vst.msk [vmem:[%s2269_s15 + $0x1e9] sm:$0x1] %vm1654_vm0, %v1631_v62  ;;  %v1634_v7 = vmax.f32 %v610_v4, %v1122_v5  ;;  %v1123_v8 = vld [vmem:[%s2264_s12 + $0x3db] sm:$0x1]  ;;  %v612_v9 = vld [vmem:[%s2264_s12 + $0x3dc] sm:$0x1] }
 0x1fd   : > { %v1124_v10 = vld [vmem:[%s2264_s12 + $0x3dd] sm:$0x1]  ;;  %2145 = vst.msk [vmem:[%s2269_s15 + $0x1ea] sm:$0x1] %vm1654_vm0, %v1632_v2  ;;  %2146 = vst.msk [vmem:[%s2269_s15 + $0x1eb] sm:$0x1] %vm1654_vm0, %v1633_v3  ;;  %v1635_v11 = vmax.f32 %v611_v6, %v1123_v8 }
 0x1fe   : > { %v1636_v12 = vmax.f32 %v612_v9, %v1124_v10  ;;  %v613_v13 = vld [vmem:[%s2264_s12 + $0x3de] sm:$0x1]  ;;  %v1125_v14 = vld [vmem:[%s2264_s12 + $0x3df] sm:$0x1]  ;;  %v614_v15 = vld [vmem:[%s2264_s12 + $0x3e0] sm:$0x1] }
 0x1ff   : > { %2147 = vst.msk [vmem:[%s2269_s15 + $0x1ec] sm:$0x1] %vm1654_vm0, %v1634_v7  ;;  %v1637_v16 = vmax.f32 %v613_v13, %v1125_v14  ;;  %v1126_v17 = vld [vmem:[%s2264_s12 + $0x3e1] sm:$0x1]  ;;  %v615_v18 = vld [vmem:[%s2264_s12 + $0x3e2] sm:$0x1] }
 0x200   : > { %v1127_v19 = vld [vmem:[%s2264_s12 + $0x3e3] sm:$0x1]  ;;  %2148 = vst.msk [vmem:[%s2269_s15 + $0x1ed] sm:$0x1] %vm1654_vm0, %v1635_v11  ;;  %2149 = vst.msk [vmem:[%s2269_s15 + $0x1ee] sm:$0x1] %vm1654_vm0, %v1636_v12  ;;  %v1638_v20 = vmax.f32 %v614_v15, %v1126_v17 }
 0x201   : > { %v1639_v21 = vmax.f32 %v615_v18, %v1127_v19  ;;  %v616_v22 = vld [vmem:[%s2264_s12 + $0x3e4] sm:$0x1]  ;;  %v1128_v23 = vld [vmem:[%s2264_s12 + $0x3e5] sm:$0x1]  ;;  %v617_v24 = vld [vmem:[%s2264_s12 + $0x3e6] sm:$0x1] }
 0x202   : > { %2150 = vst.msk [vmem:[%s2269_s15 + $0x1ef] sm:$0x1] %vm1654_vm0, %v1637_v16  ;;  %v1640_v25 = vmax.f32 %v616_v22, %v1128_v23  ;;  %v1129_v26 = vld [vmem:[%s2264_s12 + $0x3e7] sm:$0x1]  ;;  %v618_v27 = vld [vmem:[%s2264_s12 + $0x3e8] sm:$0x1] }
 0x203   : > { %v1130_v28 = vld [vmem:[%s2264_s12 + $0x3e9] sm:$0x1]  ;;  %2151 = vst.msk [vmem:[%s2269_s15 + $0x1f0] sm:$0x1] %vm1654_vm0, %v1638_v20  ;;  %2152 = vst.msk [vmem:[%s2269_s15 + $0x1f1] sm:$0x1] %vm1654_vm0, %v1639_v21  ;;  %v1641_v29 = vmax.f32 %v617_v24, %v1129_v26 }
 0x204   : > { %v1642_v30 = vmax.f32 %v618_v27, %v1130_v28  ;;  %v619_v31 = vld [vmem:[%s2264_s12 + $0x3ea] sm:$0x1]  ;;  %v1131_v32 = vld [vmem:[%s2264_s12 + $0x3eb] sm:$0x1]  ;;  %v620_v33 = vld [vmem:[%s2264_s12 + $0x3ec] sm:$0x1] }
 0x205   : > { %2153 = vst.msk [vmem:[%s2269_s15 + $0x1f2] sm:$0x1] %vm1654_vm0, %v1640_v25  ;;  %v1643_v34 = vmax.f32 %v619_v31, %v1131_v32  ;;  %v1132_v35 = vld [vmem:[%s2264_s12 + $0x3ed] sm:$0x1]  ;;  %v621_v36 = vld [vmem:[%s2264_s12 + $0x3ee] sm:$0x1] }
 0x206   : > { %v1133_v37 = vld [vmem:[%s2264_s12 + $0x3ef] sm:$0x1]  ;;  %2154 = vst.msk [vmem:[%s2269_s15 + $0x1f3] sm:$0x1] %vm1654_vm0, %v1641_v29  ;;  %2155 = vst.msk [vmem:[%s2269_s15 + $0x1f4] sm:$0x1] %vm1654_vm0, %v1642_v30  ;;  %v1644_v38 = vmax.f32 %v620_v33, %v1132_v35 }
 0x207   : > { %v1645_v39 = vmax.f32 %v621_v36, %v1133_v37  ;;  %v622_v40 = vld [vmem:[%s2264_s12 + $0x3f0] sm:$0x1]  ;;  %v1134_v41 = vld [vmem:[%s2264_s12 + $0x3f1] sm:$0x1]  ;;  %v623_v42 = vld [vmem:[%s2264_s12 + $0x3f2] sm:$0x1] }
 0x208   : > { %2156 = vst.msk [vmem:[%s2269_s15 + $0x1f5] sm:$0x1] %vm1654_vm0, %v1643_v34  ;;  %v1646_v43 = vmax.f32 %v622_v40, %v1134_v41  ;;  %v1135_v44 = vld [vmem:[%s2264_s12 + $0x3f3] sm:$0x1]  ;;  %v624_v45 = vld [vmem:[%s2264_s12 + $0x3f4] sm:$0x1] }
 0x209   : > { %v1136_v46 = vld [vmem:[%s2264_s12 + $0x3f5] sm:$0x1]  ;;  %2157 = vst.msk [vmem:[%s2269_s15 + $0x1f6] sm:$0x1] %vm1654_vm0, %v1644_v38  ;;  %2158 = vst.msk [vmem:[%s2269_s15 + $0x1f7] sm:$0x1] %vm1654_vm0, %v1645_v39  ;;  %v1647_v47 = vmax.f32 %v623_v42, %v1135_v44 }
 0x20a   : > { %v1648_v48 = vmax.f32 %v624_v45, %v1136_v46  ;;  %v625_v49 = vld [vmem:[%s2264_s12 + $0x3f6] sm:$0x1]  ;;  %v1137_v50 = vld [vmem:[%s2264_s12 + $0x3f7] sm:$0x1]  ;;  %v626_v51 = vld [vmem:[%s2264_s12 + $0x3f8] sm:$0x1] }
 0x20b   : > { %2159 = vst.msk [vmem:[%s2269_s15 + $0x1f8] sm:$0x1] %vm1654_vm0, %v1646_v43  ;;  %v1649_v52 = vmax.f32 %v625_v49, %v1137_v50  ;;  %v1138_v53 = vld [vmem:[%s2264_s12 + $0x3f9] sm:$0x1]  ;;  %v627_v54 = vld [vmem:[%s2264_s12 + $0x3fa] sm:$0x1] }
 0x20c   : > { %v1139_v55 = vld [vmem:[%s2264_s12 + $0x3fb] sm:$0x1]  ;;  %2160 = vst.msk [vmem:[%s2269_s15 + $0x1f9] sm:$0x1] %vm1654_vm0, %v1647_v47  ;;  %2161 = vst.msk [vmem:[%s2269_s15 + $0x1fa] sm:$0x1] %vm1654_vm0, %v1648_v48  ;;  %v1650_v56 = vmax.f32 %v626_v51, %v1138_v53 }
 0x20d   : > { %v1651_v57 = vmax.f32 %v627_v54, %v1139_v55  ;;  %v628_v58 = vld [vmem:[%s2264_s12 + $0x3fc] sm:$0x1]  ;;  %v1140_v59 = vld [vmem:[%s2264_s12 + $0x3fd] sm:$0x1]  ;;  %v629_v60 = vld [vmem:[%s2264_s12 + $0x3fe] sm:$0x1] }
 0x20e   : > { %2162 = vst.msk [vmem:[%s2269_s15 + $0x1fb] sm:$0x1] %vm1654_vm0, %v1649_v52  ;;  %v1652_v61 = vmax.f32 %v628_v58, %v1140_v59  ;;  %v1141_v62 = vld [vmem:[%s2264_s12 + $0x3ff] sm:$0x1]  ;;  %2163 = vst.msk [vmem:[%s2269_s15 + $0x1fc] sm:$0x1] %vm1654_vm0, %v1650_v56 }
 0x20f   : > { %2164 = vst.msk [vmem:[%s2269_s15 + $0x1fd] sm:$0x1] %vm1654_vm0, %v1651_v57  ;;  %v1653_v63 = vmax.f32 %v629_v60, %v1141_v62 }
 0x210   : > { %2165 = vst.msk [vmem:[%s2269_s15 + $0x1fe] sm:$0x1] %vm1654_vm0, %v1652_v61 }
 0x211   : > { %2166 = vst.msk [vmem:[%s2269_s15 + $0x1ff] sm:$0x1] %vm1654_vm0, %v1653_v63 }
 0x212 PF: > { %s11_s6 = sadd.s32 1, %s2241_s6  }
 0x213   : > { %p8_p4 = scmp.ge.s32.totalorder %s11_s6, 4  }
 0x215   :  { %10 = sbr.rel (!%p8_p4) target bundleno = 1 (0x1), region = 54 }

// kernel: down3d_forward.10
= control target key start
LH: loop header
LB: loop body
LE: loop exit
PB: predicated region body
PF: predicated region fallthrough
CT: control target
= control target key end

     0   :  { %s1561_s12 = smov 0   ;;  %s2023_s0 = inlined_call_operand.vmem [shape: f32[1024,108], index: 0, kind: input, shape index: {}]   ;;  %s2024_s1 = inlined_call_operand.vmem [shape: f32[108,128], index: 1, kind: input, shape index: {}]   ;;  %s2025_s2 = inlined_call_operand.vmem [shape: f32[1024,128], index: 2, kind: output, shape index: {0}]   ;;  %s2026_s3 = inlined_call_operand.vmem [shape: f32[2,2,128], index: 3, kind: output, shape index: {1}]  }
   0x1 LB: > { %s1567_s13 = sadd.s32 4294967295, %s1538_s12   ;;  %p1204_p0 = scmp.ge.s32.totalorder %s1538_s12, 1  ;;  %s1538_s12 = sphi %s1561_s12, %s14_s12  }
   0x2   : > { %p141_p1 = scmp.lt.s32.totalorder %s1538_s12, 3 }
   0x4   : > { %p142_p2 = pnand %p1204_p0, %p141_p1 }
   0x5   : > { %v249_v0 = vld [vmem:[%s2024_s1] sm:$0xff] (!%p142_p2)  ;;  %v250_v1 = vld [vmem:[%s2024_s1 + $0x8] sm:$0xff] (!%p142_p2)  ;;  %v251_v2 = vld [vmem:[%s2024_s1 + $0x10] sm:$0xff] (!%p142_p2)  ;;  %s1205_s20 = sshll.u32 (!%p142_p2), %s1567_s13, 6  ;;  %vm263_vm0 = vcmask (!%p142_p2), 883712   ;;  %vm456_vm1 = vcmask (!%p142_p2), 1043456  }
   0x6   : > { %145 = sbr.rel (%p142_p2) target bundleno = 392 (0x188), region = 28  ;;  %v1479_v3 = vpack.c.bf16 (!%p142_p2), %v250_v1, %v249_v0  ;;  %v252_v4 = vld [vmem:[%s2024_s1 + $0x18] sm:$0xff] (!%p142_p2)  ;;  %p170_p3 = scmp.lt.s32.totalorder (!%p142_p2), %s1205_s20, 127  ;;  %v253_v6 = vld [vmem:[%s2024_s1 + $0x20] sm:$0xff] (!%p142_p2)  ;;  %v254_v7 = vld [vmem:[%s2024_s1 + $0x28] sm:$0xff] (!%p142_p2)  ;;  %vm1540_vm2 = vmmov (!%p142_p2), 1  }
   0x7   : > { %v1483_v5 = vpack.c.bf16 (!%p142_p2), %v252_v4, %v251_v2  ;;  %v1487_v8 = vpack.c.bf16 (!%p142_p2), %v254_v7, %v253_v6  ;;  %v255_v9 = vld [vmem:[%s2024_s1 + $0x30] sm:$0xff] (!%p142_p2)  ;;  %v256_v10 = vld [vmem:[%s2024_s1 + $0x38] sm:$0xff] (!%p142_p2)  ;;  %v257_v13 = vld [vmem:[%s2024_s1 + $0x40] sm:$0xff] (!%p142_p2)  ;;  %p181_p4 = scmp.lt.s32.totalorder (!%p142_p2), %s1567_s13, 1 }
   0x8   : > { %1480 = vmatprep.subr.bf16.mxu0 (!%p142_p2), %v1479_v3  ;;  %1509 = vmatprep.subr.bf16.mxu1 (!%p142_p2), %v1479_v3  ;;  %v1491_v12 = vpack.c.bf16 (!%p142_p2), %v256_v10, %v255_v9  ;;  %v258_v14 = vld [vmem:[%s2024_s1 + $0x48] sm:$0xff] (!%p142_p2)  ;;  %v259_v16 = vld [vmem:[%s2024_s1 + $0x50] sm:$0xff] (!%p142_p2)  ;;  %v260_v17 = vld [vmem:[%s2024_s1 + $0x58] sm:$0xff] (!%p142_p2) }
   0x9   : > { %1482 = vmatpush3.bf16.msra.mxu0 (!%p142_p2), %v1479_v3  ;;  %1516 = vmatpush3.bf16.msra.mxu1 (!%p142_p2), %v1479_v3  ;;  %v1495_v15 = vpack.c.bf16 (!%p142_p2), %v258_v14, %v257_v13  ;;  %v1499_v18 = vpack.c.bf16 (!%p142_p2), %v260_v17, %v259_v16  ;;  %v261_v20 = vld [vmem:[%s2024_s1 + $0x60] sm:$0xff] (!%p142_p2)  ;;  %v262_v21 = vld [vmem:[%s2024_s1 + $0x68] sm:$0xf] (!%p142_p2)  ;;  %vm1504_vm3 = vmpackc.low (!%p142_p2), %vm456_vm1, %vm1540_vm2 }
   0xa   : > { %1484 = vmatprep.subr.bf16.mxu0 (!%p142_p2), %v1483_v5  ;;  %1510 = vmatprep.subr.bf16.mxu1 (!%p142_p2), %v1483_v5  ;;  %v1503_v22 = vpack.c.bf16 (!%p142_p2), %v262_v21, %v261_v20 }
   0xd   : > { %s2028_s20 = smov (!%p170_p3, %s1205_s20), 127  ;;  %1486 = vmatpush3.bf16.msra.mxu0 %v1483_v5  ;;  %1517 = vmatpush3.bf16.msra.mxu1 %v1483_v5  ;;  %s2030_s13 = smov (!%p181_p4, %s1567_s13), 1 }
   0xe   : > { %s1206_s27 = sshll.u32 %s2028_s20, 3  ;;  %1488 = vmatprep.subr.bf16.mxu0 %v1487_v8  ;;  %1511 = vmatprep.subr.bf16.mxu1 %v1487_v8  ;;  %s1209_s20 = sshll.u32 %s2030_s13, 1 }
   0xf   : > { %s1604_s7 = scalar_lea.vmem %s2023_s0, %s1206_s27  ;;  %s1757_s25 = scalar_lea.vmem %s2025_s2, %s1206_s27 }
  0x10   : > { %v185_v11 = vld [vmem:[%s1604_s7] sm:$0xff]  ;;  %v186_v23 = vld [vmem:[%s1604_s7 + $0x8] sm:$0xff]  ;;  %v187_v24 = vld [vmem:[%s1604_s7 + $0x10] sm:$0xff]  ;;  %s184_s28 = scalar_lea.vmem %s2026_s3, %s1209_s20 }
  0x11   : > { %1383 = vmatprep.mubr.msk.f32.mxu0 %vm263_vm0, %v185_v11  ;;  %1490 = vmatpush3.bf16.msra.mxu0 %v1487_v8  ;;  %v217_v19 = vld [vmem:[%s1604_s7 + $0x100] sm:$0xff]  ;;  %v218_v25 = vld [vmem:[%s1604_s7 + $0x108] sm:$0xff]  ;;  %v219_v26 = vld [vmem:[%s1604_s7 + $0x110] sm:$0xff] }
  0x12   : > { %1492 = vmatprep.subr.bf16.mxu0 %v1491_v12  ;;  %1518 = vmatpush3.bf16.msra.mxu1 %v1487_v8  ;;  %v188_v27 = vld [vmem:[%s1604_s7 + $0x18] sm:$0xff]  ;;  %v189_v28 = vld [vmem:[%s1604_s7 + $0x20] sm:$0xff]  ;;  %v190_v31 = vld [vmem:[%s1604_s7 + $0x28] sm:$0xff] }
  0x13   : > { %1512 = vmatprep.subr.bf16.mxu1 %v1491_v12  ;;  %1431 = vmatprep.mubr.msk.f32.mxu1 %vm263_vm0, %v217_v19  ;;  %v220_v29 = vld [vmem:[%s1604_s7 + $0x118] sm:$0xff]  ;;  %v221_v30 = vld [vmem:[%s1604_s7 + $0x120] sm:$0xff]  ;;  %v191_v32 = vld [vmem:[%s1604_s7 + $0x30] sm:$0xff] }
  0x14   : > { %v222_v33 = vld [vmem:[%s1604_s7 + $0x128] sm:$0xff]  ;;  %v223_v34 = vld [vmem:[%s1604_s7 + $0x130] sm:$0xff]  ;;  %v192_v35 = vld [vmem:[%s1604_s7 + $0x38] sm:$0xff] }
  0x15   : > { %1494 = vmatpush3.bf16.msra.mxu0 %v1491_v12  ;;  %v193_v36 = vld [vmem:[%s1604_s7 + $0x40] sm:$0xff]  ;;  %v224_v37 = vld [vmem:[%s1604_s7 + $0x138] sm:$0xff]  ;;  %v194_v39 = vld [vmem:[%s1604_s7 + $0x48] sm:$0xff] }
  0x16   : > { %1496 = vmatprep.subr.bf16.mxu0 %v1495_v15  ;;  %1519 = vmatpush3.bf16.msra.mxu1 %v1491_v12  ;;  %v225_v38 = vld [vmem:[%s1604_s7 + $0x140] sm:$0xff]  ;;  %v195_v40 = vld [vmem:[%s1604_s7 + $0x50] sm:$0xff]  ;;  %v226_v41 = vld [vmem:[%s1604_s7 + $0x148] sm:$0xff] }
  0x17   : > { %1513 = vmatprep.subr.bf16.mxu1 %v1495_v15  ;;  %v227_v42 = vld [vmem:[%s1604_s7 + $0x150] sm:$0xff]  ;;  %v196_v43 = vld [vmem:[%s1604_s7 + $0x58] sm:$0xff]  ;;  %v197_v44 = vld [vmem:[%s1604_s7 + $0x60] sm:$0xff] }
  0x18   : > { %v228_v45 = vld [vmem:[%s1604_s7 + $0x158] sm:$0xff]  ;;  %v229_v46 = vld [vmem:[%s1604_s7 + $0x160] sm:$0xff]  ;;  %v198_v47 = vld [vmem:[%s1604_s7 + $0x68] sm:$0xff] }
  0x19   : > { %1498 = vmatpush3.bf16.msra.mxu0 %v1495_v15  ;;  %v199_v48 = vld [vmem:[%s1604_s7 + $0x70] sm:$0xff]  ;;  %v230_v49 = vld [vmem:[%s1604_s7 + $0x168] sm:$0xff]  ;;  %v200_v51 = vld [vmem:[%s1604_s7 + $0x78] sm:$0xff] }
  0x1a   : > { %1500 = vmatprep.subr.bf16.mxu0 %v1499_v18  ;;  %1520 = vmatpush3.bf16.msra.mxu1 %v1495_v15  ;;  %v231_v50 = vld [vmem:[%s1604_s7 + $0x170] sm:$0xff]  ;;  %v201_v52 = vld [vmem:[%s1604_s7 + $0x80] sm:$0xff]  ;;  %v232_v53 = vld [vmem:[%s1604_s7 + $0x178] sm:$0xff] }
  0x1b   : > { %1514 = vmatprep.subr.bf16.mxu1 %v1499_v18  ;;  %v233_v54 = vld [vmem:[%s1604_s7 + $0x180] sm:$0xff]  ;;  %v202_v55 = vld [vmem:[%s1604_s7 + $0x88] sm:$0xff]  ;;  %v203_v56 = vld [vmem:[%s1604_s7 + $0x90] sm:$0xff] }
  0x1c   : > { %v234_v57 = vld [vmem:[%s1604_s7 + $0x188] sm:$0xff]  ;;  %v235_v58 = vld [vmem:[%s1604_s7 + $0x190] sm:$0xff]  ;;  %v204_v59 = vld [vmem:[%s1604_s7 + $0x98] sm:$0xff] }
  0x1d   : > { %1502 = vmatpush3.bf16.msra.mxu0 %v1499_v18  ;;  %v205_v60 = vld [vmem:[%s1604_s7 + $0xa0] sm:$0xff]  ;;  %v236_v61 = vld [vmem:[%s1604_s7 + $0x198] sm:$0xff]  ;;  %v206_v63 = vld [vmem:[%s1604_s7 + $0xa8] sm:$0xff] }
  0x1e   : > { %1505 = vmatprep.subr.msk.bf16.mxu0 %vm1504_vm3, %v1503_v22  ;;  %1521 = vmatpush3.bf16.msra.mxu1 %v1499_v18  ;;  %v237_v62 = vld [vmem:[%s1604_s7 + $0x1a0] sm:$0xff]  ;;  %v207_v0 = vld [vmem:[%s1604_s7 + $0xb0] sm:$0xff]  ;;  %v238_v1 = vld [vmem:[%s1604_s7 + $0x1a8] sm:$0xff] }
  0x1f   : > { %1515 = vmatprep.subr.msk.bf16.mxu1 %vm1504_vm3, %v1503_v22  ;;  %v239_v2 = vld [vmem:[%s1604_s7 + $0x1b0] sm:$0xff]  ;;  %v208_v3 = vld [vmem:[%s1604_s7 + $0xb8] sm:$0xff]  ;;  %v209_v4 = vld [vmem:[%s1604_s7 + $0xc0] sm:$0xff] }
  0x20   : > { %v240_v5 = vld [vmem:[%s1604_s7 + $0x1b8] sm:$0xff]  ;;  %v241_v6 = vld [vmem:[%s1604_s7 + $0x1c0] sm:$0xff]  ;;  %v210_v7 = vld [vmem:[%s1604_s7 + $0xc8] sm:$0xff] }
  0x21   : > { %1508 = vmatpush3.bf16.msk.msra.mxu0 %vm1504_vm3, %v1503_v22  ;;  %v211_v8 = vld [vmem:[%s1604_s7 + $0xd0] sm:$0xff]  ;;  %v242_v9 = vld [vmem:[%s1604_s7 + $0x1c8] sm:$0xff]  ;;  %v212_v11 = vld [vmem:[%s1604_s7 + $0xd8] sm:$0xff] }
  0x22   : > { %1522 = vmatpush3.bf16.msk.msra.mxu1 %vm1504_vm3, %v1503_v22  ;;  %v243_v10 = vld [vmem:[%s1604_s7 + $0x1d0] sm:$0xff]  ;;  %v213_v12 = vld [vmem:[%s1604_s7 + $0xe0] sm:$0xff]  ;;  %v244_v13 = vld [vmem:[%s1604_s7 + $0x1d8] sm:$0xff] }
  0x23   : > { %v245_v14 = vld [vmem:[%s1604_s7 + $0x1e0] sm:$0xff]  ;;  %v214_v15 = vld [vmem:[%s1604_s7 + $0xe8] sm:$0xff]  ;;  %v215_v16 = vld [vmem:[%s1604_s7 + $0xf0] sm:$0xff] }
  0x24   : > { %1384 = vmatmul.mubr.msk.f32.vlgmr.msra.gmra.mrb[0].mxu0 %vm263_vm0, %v186_v23  ;;  %v246_v17 = vld [vmem:[%s1604_s7 + $0x1e8] sm:$0xff]  ;;  %v247_v18 = vld [vmem:[%s1604_s7 + $0x1f0] sm:$0xff]  ;;  %v216_v19 = vld [vmem:[%s1604_s7 + $0xf8] sm:$0xff] }
  0x25   : > { %1386 = vmatprep.mubr.msk.f32.mxu0 %vm263_vm0, %v187_v24  ;;  %1432 = vmatmul.mubr.msk.f32.vlgmr.msra.gmra.mrb[0].mxu1 %vm263_vm0, %v218_v25  ;;  %v248_v20 = vld [vmem:[%s1604_s7 + $0x1f8] sm:$0xff] }
  0x26   : > { %1434 = vmatprep.mubr.msk.f32.mxu1 %vm263_vm0, %v219_v26 }
  0x28   : > { %1387 = vmatmul.mubr.msk.f32.gmra.mrb[2].mxu0 %vm263_vm0, %v188_v27 }
  0x29   : > { %1389 = vmatprep.mubr.msk.f32.mxu0 %vm263_vm0, %v189_v28  ;;  %1435 = vmatmul.mubr.msk.f32.gmra.mrb[2].mxu1 %vm263_vm0, %v220_v29 }
  0x2a   : > { %1437 = vmatprep.mubr.msk.f32.mxu1 %vm263_vm0, %v221_v30 }
  0x2c   : > { %1390 = vmatmul.mubr.msk.f32.gmra.mrb[4].mxu0 %vm263_vm0, %v190_v31 }
  0x2d   : > { %1392 = vmatprep.mubr.msk.f32.mxu0 %vm263_vm0, %v191_v32  ;;  %1438 = vmatmul.mubr.msk.f32.gmra.mrb[4].mxu1 %vm263_vm0, %v222_v33 }
  0x2e   : > { %1440 = vmatprep.mubr.msk.f32.mxu1 %vm263_vm0, %v223_v34 }
  0x30   : > { %1393 = vmatmul.mubr.msk.f32.gmra.mrb[6].mxu0 %vm263_vm0, %v192_v35 }
  0x31   : > { %1395 = vmatprep.mubr.msk.f32.mxu0 %vm263_vm0, %v193_v36  ;;  %1441 = vmatmul.mubr.msk.f32.gmra.mrb[6].mxu1 %vm263_vm0, %v224_v37 }
  0x32   : > { %1443 = vmatprep.mubr.msk.f32.mxu1 %vm263_vm0, %v225_v38 }
  0x34   : > { %1396 = vmatmul.mubr.msk.f32.gmra.mrb[8].mxu0 %vm263_vm0, %v194_v39 }
  0x35   : > { %1398 = vmatprep.mubr.msk.f32.mxu0 %vm263_vm0, %v195_v40  ;;  %1444 = vmatmul.mubr.msk.f32.gmra.mrb[8].mxu1 %vm263_vm0, %v226_v41 }
  0x36   : > { %1446 = vmatprep.mubr.msk.f32.mxu1 %vm263_vm0, %v227_v42 }
  0x38   : > { %1399 = vmatmul.mubr.msk.f32.gmra.mrb[10].mxu0 %vm263_vm0, %v196_v43 }
  0x39   : > { %1401 = vmatprep.mubr.msk.f32.mxu0 %vm263_vm0, %v197_v44  ;;  %1447 = vmatmul.mubr.msk.f32.gmra.mrb[10].mxu1 %vm263_vm0, %v228_v45 }
  0x3a   : > { %1449 = vmatprep.mubr.msk.f32.mxu1 %vm263_vm0, %v229_v46 }
  0x3c   : > { %1402 = vmatmul.mubr.msk.f32.gmra.mrb[12].mxu0 %vm263_vm0, %v198_v47 }
  0x3d   : > { %1404 = vmatprep.mubr.msk.f32.mxu0 %vm263_vm0, %v199_v48  ;;  %1450 = vmatmul.mubr.msk.f32.gmra.mrb[12].mxu1 %vm263_vm0, %v230_v49 }
  0x3e   : > { %1452 = vmatprep.mubr.msk.f32.mxu1 %vm263_vm0, %v231_v50 }
  0x40   : > { %1405 = vmatmul.mubr.msk.f32.gmra.mrb[14].mxu0 %vm263_vm0, %v200_v51 }
  0x41   : > { %1407 = vmatprep.mubr.msk.f32.mxu0 %vm263_vm0, %v201_v52  ;;  %1453 = vmatmul.mubr.msk.f32.gmra.mrb[14].mxu1 %vm263_vm0, %v232_v53 }
  0x42   : > { %1455 = vmatprep.mubr.msk.f32.mxu1 %vm263_vm0, %v233_v54 }
  0x44   : > { %1408 = vmatmul.mubr.msk.f32.gmra.mrb[16].mxu0 %vm263_vm0, %v202_v55 }
  0x45   : > { %1410 = vmatprep.mubr.msk.f32.mxu0 %vm263_vm0, %v203_v56  ;;  %1456 = vmatmul.mubr.msk.f32.gmra.mrb[16].mxu1 %vm263_vm0, %v234_v57 }
  0x46   : > { %1458 = vmatprep.mubr.msk.f32.mxu1 %vm263_vm0, %v235_v58 }
  0x48   : > { %1411 = vmatmul.mubr.msk.f32.gmra.mrb[18].mxu0 %vm263_vm0, %v204_v59 }
  0x49   : > { %1413 = vmatprep.mubr.msk.f32.mxu0 %vm263_vm0, %v205_v60  ;;  %1459 = vmatmul.mubr.msk.f32.gmra.mrb[18].mxu1 %vm263_vm0, %v236_v61 }
  0x4a   : > { %1461 = vmatprep.mubr.msk.f32.mxu1 %vm263_vm0, %v237_v62 }
  0x4c   : > { %1414 = vmatmul.mubr.msk.f32.gmra.mrb[20].mxu0 %vm263_vm0, %v206_v63 }
  0x4d   : > { %1416 = vmatprep.mubr.msk.f32.mxu0 %vm263_vm0, %v207_v0  ;;  %1462 = vmatmul.mubr.msk.f32.gmra.mrb[20].mxu1 %vm263_vm0, %v238_v1 }
  0x4e   : > { %1464 = vmatprep.mubr.msk.f32.mxu1 %vm263_vm0, %v239_v2 }
  0x50   : > { %1417 = vmatmul.mubr.msk.f32.gmra.mrb[22].mxu0 %vm263_vm0, %v208_v3 }
  0x51   : > { %1419 = vmatprep.mubr.msk.f32.mxu0 %vm263_vm0, %v209_v4  ;;  %1465 = vmatmul.mubr.msk.f32.gmra.mrb[22].mxu1 %vm263_vm0, %v240_v5 }
  0x52   : > { %1467 = vmatprep.mubr.msk.f32.mxu1 %vm263_vm0, %v241_v6 }
  0x54   : > { %1420 = vmatmul.mubr.msk.f32.gmra.mrb[24].mxu0 %vm263_vm0, %v210_v7 }
  0x55   : > { %1422 = vmatprep.mubr.msk.f32.mxu0 %vm263_vm0, %v211_v8  ;;  %1468 = vmatmul.mubr.msk.f32.gmra.mrb[24].mxu1 %vm263_vm0, %v242_v9 }
  0x56   : > { %1470 = vmatprep.mubr.msk.f32.mxu1 %vm263_vm0, %v243_v10 }
  0x58   : > { %1423 = vmatmul.mubr.msk.f32.gmra.mrb[26].mxu0 %vm263_vm0, %v212_v11 }
  0x59   : > { %1425 = vmatprep.mubr.msk.f32.mxu0 %vm263_vm0, %v213_v12  ;;  %1471 = vmatmul.mubr.msk.f32.gmra.mrb[26].mxu1 %vm263_vm0, %v244_v13 }
  0x5a   : > { %1473 = vmatprep.mubr.msk.f32.mxu1 %vm263_vm0, %v245_v14 }
  0x5c   : > { %1426 = vmatmul.mubr.msk.f32.gmra.mrb[28].mxu0 %vm263_vm0, %v214_v15 }
  0x5d   : > { %1428 = vmatprep.mubr.msk.f32.mxu0 %vm263_vm0, %v215_v16  ;;  %1474 = vmatmul.mubr.msk.f32.gmra.mrb[28].mxu1 %vm263_vm0, %v246_v17 }
  0x5e   : > { %1476 = vmatprep.mubr.msk.f32.mxu1 %vm263_vm0, %v247_v18 }
  0x60   : > { %1429 = vmatmul.mubr.msk.f32.gmra.mrb[30].mxu0 %vm263_vm0, %v216_v19 }
  0x61   : > { %1477 = vmatmul.mubr.msk.f32.gmra.mrb[30].mxu1 %vm263_vm0, %v248_v20 }
  0xf7   : > { %v1385_v21 = vpop.f32.mrb[0].mxu0 }
  0xf8   : > { %846 = vst [vmem:[%s1757_s25 + $0x8] sm:$0xff] %v1385_v21  ;;  %v980_v22 = vmul.f32 %v1385_v21, %v1385_v21  ;;  %v526_v23 = vpop.f32.mrb[1].mxu0  ;;  %v1760_v24 = vpop.f32.mrb[0].mxu1 }
  0xf9   : > { %845 = vst [vmem:[%s1757_s25] sm:$0xff] %v526_v23  ;;  %v909_v25 = vadd.f32 %v1385_v21, %v526_v23  ;;  %v979_v26 = vmul.f32 %v526_v23, %v526_v23  ;;  %878 = vst [vmem:[%s1757_s25 + $0x108] sm:$0xff] %v1760_v24  ;;  %v1765_v27 = vpop.f32.mrb[1].mxu1 }
  0xfa   : > { %877 = vst [vmem:[%s1757_s25 + $0x100] sm:$0xff] %v1765_v27 }
  0xfb   : > { %v1043_v28 = vadd.f32 %v980_v22, %v979_v26  ;;  %v1388_v29 = vpop.f32.mrb[2].mxu0 }
  0xfc   : > { %848 = vst [vmem:[%s1757_s25 + $0x18] sm:$0xff] %v1388_v29  ;;  %v536_v30 = vpop.f32.mrb[3].mxu0  ;;  %v1770_v31 = vpop.f32.mrb[2].mxu1  ;;  %v982_v35 = vmul.f32 %v1388_v29, %v1388_v29 }
  0xfd   : > { %847 = vst [vmem:[%s1757_s25 + $0x10] sm:$0xff] %v536_v30  ;;  %v910_v32 = vadd.f32 %v909_v25, %v536_v30  ;;  %v981_v33 = vmul.f32 %v536_v30, %v536_v30  ;;  %880 = vst [vmem:[%s1757_s25 + $0x118] sm:$0xff] %v1770_v31  ;;  %v1775_v34 = vpop.f32.mrb[3].mxu1 }
  0xfe   : > { %879 = vst [vmem:[%s1757_s25 + $0x110] sm:$0xff] %v1775_v34 }
  0xff   : > { %v1044_v36 = vadd.f32 %v1043_v28, %v981_v33  ;;  %v1391_v37 = vpop.f32.mrb[4].mxu0  ;;  %v911_v38 = vadd.f32 %v1388_v29, %v910_v32 }
 0x100   : > { %850 = vst [vmem:[%s1757_s25 + $0x28] sm:$0xff] %v1391_v37  ;;  %v546_v39 = vpop.f32.mrb[5].mxu0  ;;  %v1780_v40 = vpop.f32.mrb[4].mxu1  ;;  %v984_v45 = vmul.f32 %v1391_v37, %v1391_v37 }
 0x101   : > { %849 = vst [vmem:[%s1757_s25 + $0x20] sm:$0xff] %v546_v39  ;;  %v912_v41 = vadd.f32 %v911_v38, %v546_v39  ;;  %v983_v42 = vmul.f32 %v546_v39, %v546_v39  ;;  %v1045_v43 = vadd.f32 %v1044_v36, %v982_v35  ;;  %882 = vst [vmem:[%s1757_s25 + $0x128] sm:$0xff] %v1780_v40  ;;  %v1785_v44 = vpop.f32.mrb[5].mxu1 }
 0x102   : > { %881 = vst [vmem:[%s1757_s25 + $0x120] sm:$0xff] %v1785_v44 }
 0x103   : > { %v1046_v46 = vadd.f32 %v1045_v43, %v983_v42  ;;  %v1394_v47 = vpop.f32.mrb[6].mxu0  ;;  %v913_v48 = vadd.f32 %v1391_v37, %v912_v41 }
 0x104   : > { %852 = vst [vmem:[%s1757_s25 + $0x38] sm:$0xff] %v1394_v47  ;;  %v556_v49 = vpop.f32.mrb[7].mxu0  ;;  %v1790_v50 = vpop.f32.mrb[6].mxu1  ;;  %v986_v55 = vmul.f32 %v1394_v47, %v1394_v47 }
 0x105   : > { %851 = vst [vmem:[%s1757_s25 + $0x30] sm:$0xff] %v556_v49  ;;  %v914_v51 = vadd.f32 %v913_v48, %v556_v49  ;;  %v985_v52 = vmul.f32 %v556_v49, %v556_v49  ;;  %v1047_v53 = vadd.f32 %v1046_v46, %v984_v45  ;;  %884 = vst [vmem:[%s1757_s25 + $0x138] sm:$0xff] %v1790_v50  ;;  %v1795_v54 = vpop.f32.mrb[7].mxu1 }
 0x106   : > { %883 = vst [vmem:[%s1757_s25 + $0x130] sm:$0xff] %v1795_v54 }
 0x107   : > { %v1048_v56 = vadd.f32 %v1047_v53, %v985_v52  ;;  %v1397_v57 = vpop.f32.mrb[8].mxu0  ;;  %v915_v58 = vadd.f32 %v1394_v47, %v914_v51 }
 0x108   : > { %854 = vst [vmem:[%s1757_s25 + $0x48] sm:$0xff] %v1397_v57  ;;  %v566_v59 = vpop.f32.mrb[9].mxu0  ;;  %v1800_v60 = vpop.f32.mrb[8].mxu1  ;;  %v988_v1 = vmul.f32 %v1397_v57, %v1397_v57 }
 0x109   : > { %853 = vst [vmem:[%s1757_s25 + $0x40] sm:$0xff] %v566_v59  ;;  %v916_v61 = vadd.f32 %v915_v58, %v566_v59  ;;  %v987_v62 = vmul.f32 %v566_v59, %v566_v59  ;;  %v1049_v63 = vadd.f32 %v1048_v56, %v986_v55  ;;  %886 = vst [vmem:[%s1757_s25 + $0x148] sm:$0xff] %v1800_v60  ;;  %v1805_v0 = vpop.f32.mrb[9].mxu1 }
 0x10a   : > { %885 = vst [vmem:[%s1757_s25 + $0x140] sm:$0xff] %v1805_v0 }
 0x10b   : > { %v1050_v2 = vadd.f32 %v1049_v63, %v987_v62  ;;  %v1400_v3 = vpop.f32.mrb[10].mxu0  ;;  %v917_v4 = vadd.f32 %v1397_v57, %v916_v61 }
 0x10c   : > { %856 = vst [vmem:[%s1757_s25 + $0x58] sm:$0xff] %v1400_v3  ;;  %v576_v5 = vpop.f32.mrb[11].mxu0  ;;  %v1810_v6 = vpop.f32.mrb[10].mxu1  ;;  %v990_v11 = vmul.f32 %v1400_v3, %v1400_v3 }
 0x10d   : > { %855 = vst [vmem:[%s1757_s25 + $0x50] sm:$0xff] %v576_v5  ;;  %v918_v7 = vadd.f32 %v917_v4, %v576_v5  ;;  %v989_v8 = vmul.f32 %v576_v5, %v576_v5  ;;  %v1051_v9 = vadd.f32 %v1050_v2, %v988_v1  ;;  %888 = vst [vmem:[%s1757_s25 + $0x158] sm:$0xff] %v1810_v6  ;;  %v1815_v10 = vpop.f32.mrb[11].mxu1 }
 0x10e   : > { %887 = vst [vmem:[%s1757_s25 + $0x150] sm:$0xff] %v1815_v10 }
 0x10f   : > { %v1052_v12 = vadd.f32 %v1051_v9, %v989_v8  ;;  %v1403_v13 = vpop.f32.mrb[12].mxu0  ;;  %v919_v14 = vadd.f32 %v1400_v3, %v918_v7 }
 0x110   : > { %858 = vst [vmem:[%s1757_s25 + $0x68] sm:$0xff] %v1403_v13  ;;  %v586_v15 = vpop.f32.mrb[13].mxu0  ;;  %v1820_v16 = vpop.f32.mrb[12].mxu1  ;;  %v992_v21 = vmul.f32 %v1403_v13, %v1403_v13 }
 0x111   : > { %857 = vst [vmem:[%s1757_s25 + $0x60] sm:$0xff] %v586_v15  ;;  %v920_v17 = vadd.f32 %v919_v14, %v586_v15  ;;  %v991_v18 = vmul.f32 %v586_v15, %v586_v15  ;;  %v1053_v19 = vadd.f32 %v1052_v12, %v990_v11  ;;  %890 = vst [vmem:[%s1757_s25 + $0x168] sm:$0xff] %v1820_v16  ;;  %v1825_v20 = vpop.f32.mrb[13].mxu1 }
 0x112   : > { %889 = vst [vmem:[%s1757_s25 + $0x160] sm:$0xff] %v1825_v20 }
 0x113   : > { %v1054_v22 = vadd.f32 %v1053_v19, %v991_v18  ;;  %v1406_v23 = vpop.f32.mrb[14].mxu0  ;;  %v921_v25 = vadd.f32 %v1403_v13, %v920_v17 }
 0x114   : > { %860 = vst [vmem:[%s1757_s25 + $0x78] sm:$0xff] %v1406_v23  ;;  %v596_v26 = vpop.f32.mrb[15].mxu0  ;;  %v1830_v28 = vpop.f32.mrb[14].mxu1  ;;  %v994_v35 = vmul.f32 %v1406_v23, %v1406_v23 }
 0x115   : > { %859 = vst [vmem:[%s1757_s25 + $0x70] sm:$0xff] %v596_v26  ;;  %v922_v29 = vadd.f32 %v921_v25, %v596_v26  ;;  %v993_v30 = vmul.f32 %v596_v26, %v596_v26  ;;  %v1055_v32 = vadd.f32 %v1054_v22, %v992_v21  ;;  %892 = vst [vmem:[%s1757_s25 + $0x178] sm:$0xff] %v1830_v28  ;;  %v1835_v33 = vpop.f32.mrb[15].mxu1 }
 0x116   : > { %891 = vst [vmem:[%s1757_s25 + $0x170] sm:$0xff] %v1835_v33 }
 0x117   : > { %v1056_v36 = vadd.f32 %v1055_v32, %v993_v30  ;;  %v1409_v37 = vpop.f32.mrb[16].mxu0  ;;  %v923_v38 = vadd.f32 %v1406_v23, %v922_v29 }
 0x118   : > { %862 = vst [vmem:[%s1757_s25 + $0x88] sm:$0xff] %v1409_v37  ;;  %v606_v39 = vpop.f32.mrb[17].mxu0  ;;  %v1840_v41 = vpop.f32.mrb[16].mxu1  ;;  %v996_v47 = vmul.f32 %v1409_v37, %v1409_v37 }
 0x119   : > { %861 = vst [vmem:[%s1757_s25 + $0x80] sm:$0xff] %v606_v39  ;;  %v924_v42 = vadd.f32 %v923_v38, %v606_v39  ;;  %v995_v43 = vmul.f32 %v606_v39, %v606_v39  ;;  %v1057_v45 = vadd.f32 %v1056_v36, %v994_v35  ;;  %894 = vst [vmem:[%s1757_s25 + $0x188] sm:$0xff] %v1840_v41  ;;  %v1845_v46 = vpop.f32.mrb[17].mxu1 }
 0x11a   : > { %893 = vst [vmem:[%s1757_s25 + $0x180] sm:$0xff] %v1845_v46 }
 0x11b   : > { %v1058_v48 = vadd.f32 %v1057_v45, %v995_v43  ;;  %v1412_v49 = vpop.f32.mrb[18].mxu0  ;;  %v925_v51 = vadd.f32 %v1409_v37, %v924_v42 }
 0x11c   : > { %864 = vst [vmem:[%s1757_s25 + $0x98] sm:$0xff] %v1412_v49  ;;  %v616_v52 = vpop.f32.mrb[19].mxu0  ;;  %v1850_v53 = vpop.f32.mrb[18].mxu1  ;;  %v998_v59 = vmul.f32 %v1412_v49, %v1412_v49 }
 0x11d   : > { %863 = vst [vmem:[%s1757_s25 + $0x90] sm:$0xff] %v616_v52  ;;  %v926_v55 = vadd.f32 %v925_v51, %v616_v52  ;;  %v997_v56 = vmul.f32 %v616_v52, %v616_v52  ;;  %v1059_v57 = vadd.f32 %v1058_v48, %v996_v47  ;;  %896 = vst [vmem:[%s1757_s25 + $0x198] sm:$0xff] %v1850_v53  ;;  %v1855_v58 = vpop.f32.mrb[19].mxu1 }
 0x11e   : > { %895 = vst [vmem:[%s1757_s25 + $0x190] sm:$0xff] %v1855_v58 }
 0x11f   : > { %v1060_v61 = vadd.f32 %v1059_v57, %v997_v56  ;;  %v1415_v62 = vpop.f32.mrb[20].mxu0  ;;  %v927_v63 = vadd.f32 %v1412_v49, %v926_v55 }
 0x120   : > { %866 = vst [vmem:[%s1757_s25 + $0xa8] sm:$0xff] %v1415_v62  ;;  %v626_v1 = vpop.f32.mrb[21].mxu0  ;;  %v1860_v2 = vpop.f32.mrb[20].mxu1  ;;  %v1000_v8 = vmul.f32 %v1415_v62, %v1415_v62 }
 0x121   : > { %865 = vst [vmem:[%s1757_s25 + $0xa0] sm:$0xff] %v626_v1  ;;  %v928_v3 = vadd.f32 %v927_v63, %v626_v1  ;;  %v999_v4 = vmul.f32 %v626_v1, %v626_v1  ;;  %v1061_v5 = vadd.f32 %v1060_v61, %v998_v59  ;;  %898 = vst [vmem:[%s1757_s25 + $0x1a8] sm:$0xff] %v1860_v2  ;;  %v1865_v7 = vpop.f32.mrb[21].mxu1 }
 0x122   : > { %897 = vst [vmem:[%s1757_s25 + $0x1a0] sm:$0xff] %v1865_v7 }
 0x123   : > { %v1062_v9 = vadd.f32 %v1061_v5, %v999_v4  ;;  %v1418_v11 = vpop.f32.mrb[22].mxu0  ;;  %v929_v12 = vadd.f32 %v1415_v62, %v928_v3 }
 0x124   : > { %868 = vst [vmem:[%s1757_s25 + $0xb8] sm:$0xff] %v1418_v11  ;;  %v636_v13 = vpop.f32.mrb[23].mxu0  ;;  %v1870_v14 = vpop.f32.mrb[22].mxu1  ;;  %v1002_v21 = vmul.f32 %v1418_v11, %v1418_v11 }
 0x125   : > { %867 = vst [vmem:[%s1757_s25 + $0xb0] sm:$0xff] %v636_v13  ;;  %v930_v15 = vadd.f32 %v929_v12, %v636_v13  ;;  %v1001_v17 = vmul.f32 %v636_v13, %v636_v13  ;;  %v1063_v18 = vadd.f32 %v1062_v9, %v1000_v8  ;;  %900 = vst [vmem:[%s1757_s25 + $0x1b8] sm:$0xff] %v1870_v14  ;;  %v1875_v19 = vpop.f32.mrb[23].mxu1 }
 0x126   : > { %899 = vst [vmem:[%s1757_s25 + $0x1b0] sm:$0xff] %v1875_v19 }
 0x127   : > { %v1064_v22 = vadd.f32 %v1063_v18, %v1001_v17  ;;  %v1421_v23 = vpop.f32.mrb[24].mxu0  ;;  %v931_v25 = vadd.f32 %v1418_v11, %v930_v15 }
 0x128   : > { %870 = vst [vmem:[%s1757_s25 + $0xc8] sm:$0xff] %v1421_v23  ;;  %v646_v26 = vpop.f32.mrb[25].mxu0  ;;  %v1880_v29 = vpop.f32.mrb[24].mxu1  ;;  %v1004_v37 = vmul.f32 %v1421_v23, %v1421_v23 }
 0x129   : > { %869 = vst [vmem:[%s1757_s25 + $0xc0] sm:$0xff] %v646_v26  ;;  %v932_v30 = vadd.f32 %v931_v25, %v646_v26  ;;  %v1003_v32 = vmul.f32 %v646_v26, %v646_v26  ;;  %v1065_v35 = vadd.f32 %v1064_v22, %v1002_v21  ;;  %902 = vst [vmem:[%s1757_s25 + $0x1c8] sm:$0xff] %v1880_v29  ;;  %v1885_v36 = vpop.f32.mrb[25].mxu1 }
 0x12a   : > { %901 = vst [vmem:[%s1757_s25 + $0x1c0] sm:$0xff] %v1885_v36  ;;  %v1011_v25 = vmul.f32 %v1765_v27, %v1765_v27 }
 0x12b   : > { %v1066_v38 = vadd.f32 %v1065_v35, %v1003_v32  ;;  %v1424_v39 = vpop.f32.mrb[26].mxu0  ;;  %v933_v42 = vadd.f32 %v1421_v23, %v932_v30  ;;  %v1012_v32 = vmul.f32 %v1760_v24, %v1760_v24 }
 0x12c   : > { %872 = vst [vmem:[%s1757_s25 + $0xd8] sm:$0xff] %v1424_v39  ;;  %v656_v43 = vpop.f32.mrb[27].mxu0  ;;  %v1890_v45 = vpop.f32.mrb[26].mxu1  ;;  %v1006_v52 = vmul.f32 %v1424_v39, %v1424_v39 }
 0x12d   : > { %871 = vst [vmem:[%s1757_s25 + $0xd0] sm:$0xff] %v656_v43  ;;  %v934_v47 = vadd.f32 %v933_v42, %v656_v43  ;;  %v1005_v48 = vmul.f32 %v656_v43, %v656_v43  ;;  %v1067_v49 = vadd.f32 %v1066_v38, %v1004_v37  ;;  %904 = vst [vmem:[%s1757_s25 + $0x1d8] sm:$0xff] %v1890_v45  ;;  %v1895_v51 = vpop.f32.mrb[27].mxu1 }
 0x12e   : > { %903 = vst [vmem:[%s1757_s25 + $0x1d0] sm:$0xff] %v1895_v51  ;;  %v1013_v38 = vmul.f32 %v1775_v34, %v1775_v34  ;;  %v1014_v43 = vmul.f32 %v1770_v31, %v1770_v31 }
 0x12f   : > { %v1068_v55 = vadd.f32 %v1067_v49, %v1005_v48  ;;  %v1427_v56 = vpop.f32.mrb[28].mxu0  ;;  %v935_v57 = vadd.f32 %v1424_v39, %v934_v47 }
 0x130   : > { %874 = vst [vmem:[%s1757_s25 + $0xe8] sm:$0xff] %v1427_v56  ;;  %v666_v59 = vpop.f32.mrb[29].mxu0  ;;  %v1900_v61 = vpop.f32.mrb[28].mxu1  ;;  %v1008_v4 = vmul.f32 %v1427_v56, %v1427_v56 }
 0x131   : > { %873 = vst [vmem:[%s1757_s25 + $0xe0] sm:$0xff] %v666_v59  ;;  %v936_v62 = vadd.f32 %v935_v57, %v666_v59  ;;  %v1007_v63 = vmul.f32 %v666_v59, %v666_v59  ;;  %v1069_v1 = vadd.f32 %v1068_v55, %v1006_v52  ;;  %906 = vst [vmem:[%s1757_s25 + $0x1e8] sm:$0xff] %v1900_v61  ;;  %v1905_v3 = vpop.f32.mrb[29].mxu1 }
 0x132   : > { %905 = vst [vmem:[%s1757_s25 + $0x1e0] sm:$0xff] %v1905_v3 }
 0x133   : > { %v1070_v5 = vadd.f32 %v1069_v1, %v1007_v63  ;;  %v1430_v8 = vpop.f32.mrb[30].mxu0  ;;  %v937_v9 = vadd.f32 %v1427_v56, %v936_v62 }
 0x134   : > { %876 = vst [vmem:[%s1757_s25 + $0xf8] sm:$0xff] %v1430_v8  ;;  %v676_v11 = vpop.f32.mrb[31].mxu0  ;;  %v1910_v12 = vpop.f32.mrb[30].mxu1  ;;  %v1010_v21 = vmul.f32 %v1430_v8, %v1430_v8 }
 0x135   : > { %875 = vst [vmem:[%s1757_s25 + $0xf0] sm:$0xff] %v676_v11  ;;  %v938_v13 = vadd.f32 %v937_v9, %v676_v11  ;;  %v1009_v15 = vmul.f32 %v676_v11, %v676_v11  ;;  %v1071_v17 = vadd.f32 %v1070_v5, %v1008_v4  ;;  %908 = vst [vmem:[%s1757_s25 + $0x1f8] sm:$0xff] %v1910_v12  ;;  %v1915_v18 = vpop.f32.mrb[31].mxu1 }
 0x136   : > { %907 = vst [vmem:[%s1757_s25 + $0x1f0] sm:$0xff] %v1915_v18 }
 0x137   : > { %v939_v22 = vadd.f32 %v1430_v8, %v938_v13  ;;  %v1072_v23 = vadd.f32 %v1071_v17, %v1009_v15 }
 0x139   : > { %v1073_v26 = vadd.f32 %v1072_v23, %v1010_v21  ;;  %v940_v30 = vadd.f32 %v939_v22, %v1765_v27  ;;  %v1015_v27 = vmul.f32 %v1785_v44, %v1785_v44 }
 0x13b   : > { %v1074_v35 = vadd.f32 %v1073_v26, %v1011_v25  ;;  %v941_v37 = vadd.f32 %v1760_v24, %v940_v30  ;;  %v1016_v24 = vmul.f32 %v1780_v40, %v1780_v40 }
 0x13d   : > { %v942_v39 = vadd.f32 %v941_v37, %v1775_v34  ;;  %v1075_v42 = vadd.f32 %v1074_v35, %v1012_v32  ;;  %v1017_v34 = vmul.f32 %v1795_v54, %v1795_v54 }
 0x13f   : > { %v1076_v47 = vadd.f32 %v1075_v42, %v1013_v38  ;;  %v943_v48 = vadd.f32 %v1770_v31, %v942_v39  ;;  %v1018_v31 = vmul.f32 %v1790_v50, %v1790_v50 }
 0x141   : > { %v944_v49 = vadd.f32 %v943_v48, %v1785_v44  ;;  %v1077_v52 = vadd.f32 %v1076_v47, %v1014_v43  ;;  %v1019_v44 = vmul.f32 %v1805_v0, %v1805_v0 }
 0x143   : > { %v1078_v55 = vadd.f32 %v1077_v52, %v1015_v27  ;;  %v945_v56 = vadd.f32 %v1780_v40, %v944_v49  ;;  %v1020_v40 = vmul.f32 %v1800_v60, %v1800_v60 }
 0x145   : > { %v946_v57 = vadd.f32 %v945_v56, %v1795_v54  ;;  %v1079_v59 = vadd.f32 %v1078_v55, %v1016_v24  ;;  %v1021_v54 = vmul.f32 %v1815_v10, %v1815_v10 }
 0x147   : > { %v1080_v62 = vadd.f32 %v1079_v59, %v1017_v34  ;;  %v947_v63 = vadd.f32 %v1790_v50, %v946_v57  ;;  %v1022_v50 = vmul.f32 %v1810_v6, %v1810_v6 }
 0x149   : > { %v948_v1 = vadd.f32 %v947_v63, %v1805_v0  ;;  %v1081_v4 = vadd.f32 %v1080_v62, %v1018_v31  ;;  %v1023_v0 = vmul.f32 %v1825_v20, %v1825_v20 }
 0x14b   : > { %v1082_v5 = vadd.f32 %v1081_v4, %v1019_v44  ;;  %v949_v8 = vadd.f32 %v1800_v60, %v948_v1  ;;  %v1024_v60 = vmul.f32 %v1820_v16, %v1820_v16 }
 0x14d   : > { %v950_v9 = vadd.f32 %v949_v8, %v1815_v10  ;;  %v1083_v11 = vadd.f32 %v1082_v5, %v1020_v40  ;;  %v1025_v10 = vmul.f32 %v1835_v33, %v1835_v33  ;;  %v1039_v40 = vmul.f32 %v1905_v3, %v1905_v3 }
 0x14e   : > { %v1040_v8 = vmul.f32 %v1900_v61, %v1900_v61 }
 0x14f   : > { %v1084_v13 = vadd.f32 %v1083_v11, %v1021_v54  ;;  %v951_v15 = vadd.f32 %v1810_v6, %v950_v9  ;;  %v1026_v6 = vmul.f32 %v1830_v28, %v1830_v28  ;;  %v1041_v9 = vmul.f32 %v1915_v18, %v1915_v18 }
 0x151   : > { %v952_v17 = vadd.f32 %v951_v15, %v1825_v20  ;;  %v1085_v21 = vadd.f32 %v1084_v13, %v1022_v50  ;;  %v1027_v20 = vmul.f32 %v1845_v46, %v1845_v46 }
 0x153   : > { %v1086_v22 = vadd.f32 %v1085_v21, %v1023_v0  ;;  %v953_v23 = vadd.f32 %v1820_v16, %v952_v17  ;;  %v1028_v16 = vmul.f32 %v1840_v41, %v1840_v41 }
 0x155   : > { %v954_v25 = vadd.f32 %v953_v23, %v1835_v33  ;;  %v1087_v26 = vadd.f32 %v1086_v22, %v1024_v60  ;;  %v1029_v33 = vmul.f32 %v1855_v58, %v1855_v58 }
 0x157   : > { %v1088_v30 = vadd.f32 %v1087_v26, %v1025_v10  ;;  %v955_v32 = vadd.f32 %v1830_v28, %v954_v25  ;;  %v1030_v28 = vmul.f32 %v1850_v53, %v1850_v53 }
 0x159   : > { %v956_v35 = vadd.f32 %v955_v32, %v1845_v46  ;;  %v1089_v37 = vadd.f32 %v1088_v30, %v1026_v6  ;;  %v1031_v46 = vmul.f32 %v1865_v7, %v1865_v7 }
 0x15b   : > { %v1090_v38 = vadd.f32 %v1089_v37, %v1027_v20  ;;  %v957_v39 = vadd.f32 %v1840_v41, %v956_v35  ;;  %v1032_v41 = vmul.f32 %v1860_v2, %v1860_v2 }
 0x15d   : > { %v958_v42 = vadd.f32 %v957_v39, %v1855_v58  ;;  %v1091_v43 = vadd.f32 %v1090_v38, %v1028_v16  ;;  %v1033_v58 = vmul.f32 %v1875_v19, %v1875_v19 }
 0x15f   : > { %v1092_v47 = vadd.f32 %v1091_v43, %v1029_v33  ;;  %v959_v48 = vadd.f32 %v1850_v53, %v958_v42  ;;  %v1034_v53 = vmul.f32 %v1870_v14, %v1870_v14 }
 0x161   : > { %v960_v27 = vadd.f32 %v959_v48, %v1865_v7  ;;  %v1093_v49 = vadd.f32 %v1092_v47, %v1030_v28  ;;  %v1035_v7 = vmul.f32 %v1885_v36, %v1885_v36 }
 0x163   : > { %v1094_v52 = vadd.f32 %v1093_v49, %v1031_v46  ;;  %v961_v24 = vadd.f32 %v1860_v2, %v960_v27  ;;  %v1036_v2 = vmul.f32 %v1880_v29, %v1880_v29 }
 0x165   : > { %v962_v55 = vadd.f32 %v961_v24, %v1875_v19  ;;  %v1095_v56 = vadd.f32 %v1094_v52, %v1032_v41  ;;  %v1037_v19 = vmul.f32 %v1895_v51, %v1895_v51 }
 0x167   : > { %v1096_v34 = vadd.f32 %v1095_v56, %v1033_v58  ;;  %v963_v57 = vadd.f32 %v1870_v14, %v962_v55  ;;  %v1038_v14 = vmul.f32 %v1890_v45, %v1890_v45 }
 0x169   : > { %v964_v59 = vadd.f32 %v963_v57, %v1885_v36  ;;  %v1097_v31 = vadd.f32 %v1096_v34, %v1034_v53 }
 0x16b   : > { %v1098_v62 = vadd.f32 %v1097_v31, %v1035_v7  ;;  %v965_v63 = vadd.f32 %v1880_v29, %v964_v59 }
 0x16d   : > { %v966_v44 = vadd.f32 %v965_v63, %v1895_v51  ;;  %v1099_v1 = vadd.f32 %v1098_v62, %v1036_v2 }
 0x16f   : > { %v1100_v4 = vadd.f32 %v1099_v1, %v1037_v19  ;;  %v967_v36 = vadd.f32 %v1890_v45, %v966_v44  ;;  %v1042_v45 = vmul.f32 %v1910_v12, %v1910_v12 }
 0x171   : > { %v968_v5 = vadd.f32 %v967_v36, %v1905_v3  ;;  %v1101_v29 = vadd.f32 %v1100_v4, %v1038_v14 }
 0x173   : > { %v1102_v54 = vadd.f32 %v1101_v29, %v1039_v40  ;;  %v969_v51 = vadd.f32 %v1900_v61, %v968_v5 }
 0x175   : > { %v970_v11 = vadd.f32 %v969_v51, %v1915_v18  ;;  %v1103_v50 = vadd.f32 %v1102_v54, %v1040_v8 }
 0x177   : > { %v971_v13 = vadd.f32 %v1910_v12, %v970_v11  ;;  %v1104_v3 = vadd.f32 %v1103_v50, %v1041_v9 }
 0x179   : > { %v972_v15 = vrot.slane %v971_v13, 4  ;;  %v1105_v0 = vadd.f32 %v1104_v3, %v1042_v45 }
 0x17b   : > { %v973_v17 = vadd.f32 %v972_v15, %v971_v13  ;;  %v1106_v21 = vrot.slane %v1105_v0, 4 }
 0x17d   : > { %v974_v60 = vrot.slane %v973_v17, 2  ;;  %v1107_v61 = vadd.f32 %v1106_v21, %v1105_v0 }
 0x17f   : > { %v975_v22 = vadd.f32 %v974_v60, %v973_v17  ;;  %v1108_v23 = vrot.slane %v1107_v61, 2 }
 0x181   : > { %v976_v10 = vrot.slane %v975_v22, 1  ;;  %v1109_v18 = vadd.f32 %v1108_v23, %v1107_v61 }
 0x183   : > { %v977_v25 = vadd.f32 %v976_v10, %v975_v22  ;;  %v1110_v26 = vrot.slane %v1109_v18, 1 }
 0x185   : > { %978 = vst [vmem:[%s184_s28] sm:$0x1] %v977_v25  ;;  %v1111_v12 = vadd.f32 %v1110_v26, %v1109_v18 }
 0x187   : > { %1112 = vst [vmem:[%s184_s28 + $0x1] sm:$0x1] %v1111_v12 }
 0x188 PF: > { %s14_s12 = sadd.s32 1, %s1538_s12  }
 0x189   : > { %p11_p5 = scmp.ge.s32.totalorder %s14_s12, 4  }
 0x18b   :  { %13 = sbr.rel (!%p11_p5) target bundleno = 1 (0x1), region = 70 }

// kernel: down3d_forward.11
= control target key start
LH: loop header
LB: loop body
LE: loop exit
PB: predicated region body
PF: predicated region fallthrough
CT: control target
= control target key end

     0   :  { %s613_s12 = smov 0   ;;  %s900_s0 = inlined_call_operand.vmem [shape: f32[1024,128], index: 0, kind: input, shape index: {}]   ;;  %s901_s1 = inlined_call_operand.vmem [shape: f32[1,128], index: 1, kind: input, shape index: {}]   ;;  %s902_s2 = inlined_call_operand.vmem [shape: f32[1,128], index: 2, kind: input, shape index: {}]   ;;  %s903_s3 = inlined_call_operand.vmem [shape: f32[1024,128], index: 3, kind: output, shape index: {}]  }
   0x1 LB: > { %s564_s13 = sadd.s32 4294967295, %s591_s12   ;;  %p568_p0 = scmp.ge.s32.totalorder %s591_s12, 1  ;;  %s591_s12 = sphi %s613_s12, %s13_s12  }
   0x2   : > { %p138_p1 = scmp.lt.s32.totalorder %s591_s12, 3 }
   0x4   : > { %p139_p2 = pnand %p568_p0, %p138_p1 }
   0x5   : > { %s569_s14 = sshll.u32 (!%p139_p2), %s564_s13, 6  ;;  %v624_v0 = vld [vmem:[%s901_s1] ss:$0 sm:$0xff] (!%p139_p2) }
   0x6   : > { %142 = sbr.rel (%p139_p2) target bundleno = 70 (0x46), region = 32  ;;  %p163_p3 = scmp.lt.s32.totalorder (!%p139_p2), %s569_s14, 127  ;;  %v634_v1 = vld [vmem:[%s902_s2] ss:$0 sm:$0xff] (!%p139_p2) }
   0xd   : > { %s905_s14 = smov (!%p163_p3, %s569_s14), 127 }
   0xe   : > { %s570_s15 = sshll.u32 %s905_s14, 3 }
   0xf   : > { %s629_s20 = scalar_lea.vmem %s900_s0, %s570_s15  ;;  %s657_s25 = scalar_lea.vmem %s903_s3, %s570_s15 }
  0x10   : > { %v174_v2 = vld [vmem:[%s629_s20] sm:$0xff]  ;;  %v175_v3 = vld [vmem:[%s629_s20 + $0x8] sm:$0xff]  ;;  %v176_v4 = vld [vmem:[%s629_s20 + $0x10] sm:$0xff] }
  0x11   : > { %v245_v5 = vmul.f32 %v624_v0, %v174_v2  ;;  %v246_v6 = vmul.f32 %v624_v0, %v175_v3  ;;  %v247_v7 = vmul.f32 %v624_v0, %v176_v4  ;;  %v177_v8 = vld [vmem:[%s629_s20 + $0x18] sm:$0xff]  ;;  %v178_v9 = vld [vmem:[%s629_s20 + $0x20] sm:$0xff]  ;;  %v179_v10 = vld [vmem:[%s629_s20 + $0x28] sm:$0xff] }
  0x12   : > { %v248_v11 = vmul.f32 %v624_v0, %v177_v8  ;;  %v249_v12 = vmul.f32 %v624_v0, %v178_v9  ;;  %v250_v13 = vmul.f32 %v624_v0, %v179_v10  ;;  %v180_v14 = vld [vmem:[%s629_s20 + $0x30] sm:$0xff]  ;;  %v181_v15 = vld [vmem:[%s629_s20 + $0x38] sm:$0xff]  ;;  %v182_v24 = vld [vmem:[%s629_s20 + $0x40] sm:$0xff] }
  0x13   : > { %v316_v16 = vadd.f32 %v634_v1, %v245_v5  ;;  %v317_v17 = vadd.f32 %v634_v1, %v246_v6  ;;  %v318_v18 = vadd.f32 %v634_v1, %v247_v7  ;;  %v251_v19 = vmul.f32 %v624_v0, %v180_v14  ;;  %v183_v25 = vld [vmem:[%s629_s20 + $0x48] sm:$0xff]  ;;  %v184_v26 = vld [vmem:[%s629_s20 + $0x50] sm:$0xff]  ;;  %v185_v31 = vld [vmem:[%s629_s20 + $0x58] sm:$0xff] }
  0x14   : > { %v319_v20 = vadd.f32 %v634_v1, %v248_v11  ;;  %v320_v21 = vadd.f32 %v634_v1, %v249_v12  ;;  %v321_v22 = vadd.f32 %v634_v1, %v250_v13  ;;  %v252_v23 = vmul.f32 %v624_v0, %v181_v15  ;;  %v186_v32 = vld [vmem:[%s629_s20 + $0x60] sm:$0xff]  ;;  %v187_v33 = vld [vmem:[%s629_s20 + $0x68] sm:$0xff]  ;;  %v188_v38 = vld [vmem:[%s629_s20 + $0x70] sm:$0xff] }
  0x15   : > { %v380_v27 = vmax.f32 %v316_v16, 0.0  ;;  %v381_v28 = vmax.f32 %v317_v17, 0.0  ;;  %v382_v29 = vmax.f32 %v318_v18, 0.0  ;;  %v322_v30 = vadd.f32 %v634_v1, %v251_v19  ;;  %v189_v43 = vld [vmem:[%s629_s20 + $0x78] sm:$0xff]  ;;  %v190_v56 = vld [vmem:[%s629_s20 + $0x80] sm:$0xff]  ;;  %v191_v57 = vld [vmem:[%s629_s20 + $0x88] sm:$0xff] }
  0x16   : > { %v383_v34 = vmax.f32 %v319_v20, 0.0  ;;  %v384_v35 = vmax.f32 %v320_v21, 0.0  ;;  %v385_v36 = vmax.f32 %v321_v22, 0.0  ;;  %v323_v37 = vadd.f32 %v634_v1, %v252_v23  ;;  %v192_v58 = vld [vmem:[%s629_s20 + $0x90] sm:$0xff]  ;;  %v193_v63 = vld [vmem:[%s629_s20 + $0x98] sm:$0xff]  ;;  %v194_v2 = vld [vmem:[%s629_s20 + $0xa0] sm:$0xff] }
  0x17   : > { %444 = vst [vmem:[%s657_s25] sm:$0xff] %v380_v27  ;;  %445 = vst [vmem:[%s657_s25 + $0x8] sm:$0xff] %v381_v28  ;;  %v386_v39 = vmax.f32 %v322_v30, 0.0  ;;  %v253_v40 = vmul.f32 %v624_v0, %v182_v24  ;;  %v254_v41 = vmul.f32 %v624_v0, %v183_v25  ;;  %v255_v42 = vmul.f32 %v624_v0, %v184_v26  ;;  %v195_v3 = vld [vmem:[%s629_s20 + $0xa8] sm:$0xff]  ;;  %v196_v8 = vld [vmem:[%s629_s20 + $0xb0] sm:$0xff] }
  0x18   : > { %446 = vst [vmem:[%s657_s25 + $0x10] sm:$0xff] %v382_v29  ;;  %447 = vst [vmem:[%s657_s25 + $0x18] sm:$0xff] %v383_v34  ;;  %v387_v44 = vmax.f32 %v323_v37, 0.0  ;;  %v256_v45 = vmul.f32 %v624_v0, %v185_v31  ;;  %v257_v46 = vmul.f32 %v624_v0, %v186_v32  ;;  %v258_v47 = vmul.f32 %v624_v0, %v187_v33  ;;  %v197_v13 = vld [vmem:[%s629_s20 + $0xb8] sm:$0xff]  ;;  %v198_v26 = vld [vmem:[%s629_s20 + $0xc0] sm:$0xff] }
  0x19   : > { %448 = vst [vmem:[%s657_s25 + $0x20] sm:$0xff] %v384_v35  ;;  %449 = vst [vmem:[%s657_s25 + $0x28] sm:$0xff] %v385_v36  ;;  %v324_v48 = vadd.f32 %v634_v1, %v253_v40  ;;  %v325_v49 = vadd.f32 %v634_v1, %v254_v41  ;;  %v326_v50 = vadd.f32 %v634_v1, %v255_v42  ;;  %v199_v27 = vld [vmem:[%s629_s20 + $0xc8] sm:$0xff]  ;;  %v200_v28 = vld [vmem:[%s629_s20 + $0xd0] sm:$0xff] }
  0x1a   : > { %450 = vst [vmem:[%s657_s25 + $0x30] sm:$0xff] %v386_v39  ;;  %v259_v51 = vmul.f32 %v624_v0, %v188_v38  ;;  %451 = vst [vmem:[%s657_s25 + $0x38] sm:$0xff] %v387_v44  ;;  %v327_v52 = vadd.f32 %v634_v1, %v256_v45  ;;  %v328_v53 = vadd.f32 %v634_v1, %v257_v46  ;;  %v201_v33 = vld [vmem:[%s629_s20 + $0xd8] sm:$0xff]  ;;  %v202_v34 = vld [vmem:[%s629_s20 + $0xe0] sm:$0xff] }
  0x1b   : > { %v329_v54 = vadd.f32 %v634_v1, %v258_v47  ;;  %v260_v55 = vmul.f32 %v624_v0, %v189_v43  ;;  %v388_v59 = vmax.f32 %v324_v48, 0.0  ;;  %v389_v60 = vmax.f32 %v325_v49, 0.0  ;;  %v203_v35 = vld [vmem:[%s629_s20 + $0xe8] sm:$0xff]  ;;  %v204_v40 = vld [vmem:[%s629_s20 + $0xf0] sm:$0xff]  ;;  %v205_v45 = vld [vmem:[%s629_s20 + $0xf8] sm:$0xff] }
  0x1c   : > { %v390_v61 = vmax.f32 %v326_v50, 0.0  ;;  %v330_v62 = vadd.f32 %v634_v1, %v259_v51  ;;  %v391_v4 = vmax.f32 %v327_v52, 0.0  ;;  %v392_v5 = vmax.f32 %v328_v53, 0.0 }
  0x1d   : > { %v393_v6 = vmax.f32 %v329_v54, 0.0  ;;  %v331_v7 = vadd.f32 %v634_v1, %v260_v55  ;;  %452 = vst [vmem:[%s657_s25 + $0x40] sm:$0xff] %v388_v59  ;;  %453 = vst [vmem:[%s657_s25 + $0x48] sm:$0xff] %v389_v60  ;;  %v261_v10 = vmul.f32 %v624_v0, %v190_v56  ;;  %v262_v11 = vmul.f32 %v624_v0, %v191_v57  ;;  %v207_v59 = vld [vmem:[%s629_s20 + $0x108] sm:$0xff]  ;;  %v208_v60 = vld [vmem:[%s629_s20 + $0x110] sm:$0xff] }
  0x1e   : > { %454 = vst [vmem:[%s657_s25 + $0x50] sm:$0xff] %v390_v61  ;;  %v394_v9 = vmax.f32 %v330_v62, 0.0  ;;  %v263_v12 = vmul.f32 %v624_v0, %v192_v58  ;;  %455 = vst [vmem:[%s657_s25 + $0x58] sm:$0xff] %v391_v4  ;;  %v264_v15 = vmul.f32 %v624_v0, %v193_v63  ;;  %v265_v16 = vmul.f32 %v624_v0, %v194_v2  ;;  %v206_v58 = vld [vmem:[%s629_s20 + $0x100] sm:$0xff] }
  0x1f   : > { %456 = vst [vmem:[%s657_s25 + $0x60] sm:$0xff] %v392_v5  ;;  %457 = vst [vmem:[%s657_s25 + $0x68] sm:$0xff] %v393_v6  ;;  %v395_v14 = vmax.f32 %v331_v7, 0.0  ;;  %v266_v17 = vmul.f32 %v624_v0, %v195_v3  ;;  %v332_v18 = vadd.f32 %v634_v1, %v261_v10  ;;  %v333_v19 = vadd.f32 %v634_v1, %v262_v11  ;;  %v209_v3 = vld [vmem:[%s629_s20 + $0x118] sm:$0xff]  ;;  %v210_v4 = vld [vmem:[%s629_s20 + $0x120] sm:$0xff] }
  0x20   : > { %458 = vst [vmem:[%s657_s25 + $0x70] sm:$0xff] %v394_v9  ;;  %v334_v20 = vadd.f32 %v634_v1, %v263_v12  ;;  %v267_v21 = vmul.f32 %v624_v0, %v196_v8  ;;  %v335_v22 = vadd.f32 %v634_v1, %v264_v15  ;;  %v336_v23 = vadd.f32 %v634_v1, %v265_v16  ;;  %v211_v5 = vld [vmem:[%s629_s20 + $0x128] sm:$0xff]  ;;  %v212_v10 = vld [vmem:[%s629_s20 + $0x130] sm:$0xff]  ;;  %v213_v15 = vld [vmem:[%s629_s20 + $0x138] sm:$0xff] }
  0x21   : > { %459 = vst [vmem:[%s657_s25 + $0x78] sm:$0xff] %v395_v14  ;;  %v337_v24 = vadd.f32 %v634_v1, %v266_v17  ;;  %v268_v25 = vmul.f32 %v624_v0, %v197_v13  ;;  %v396_v29 = vmax.f32 %v332_v18, 0.0  ;;  %v397_v30 = vmax.f32 %v333_v19, 0.0 }
  0x22   : > { %v398_v31 = vmax.f32 %v334_v20, 0.0  ;;  %v338_v32 = vadd.f32 %v634_v1, %v267_v21  ;;  %v399_v36 = vmax.f32 %v335_v22, 0.0  ;;  %v400_v37 = vmax.f32 %v336_v23, 0.0 }
  0x23   : > { %v401_v38 = vmax.f32 %v337_v24, 0.0  ;;  %v339_v39 = vadd.f32 %v634_v1, %v268_v25  ;;  %460 = vst [vmem:[%s657_s25 + $0x80] sm:$0xff] %v396_v29  ;;  %461 = vst [vmem:[%s657_s25 + $0x88] sm:$0xff] %v397_v30  ;;  %v269_v42 = vmul.f32 %v624_v0, %v198_v26  ;;  %v270_v43 = vmul.f32 %v624_v0, %v199_v27  ;;  %v215_v29 = vld [vmem:[%s629_s20 + $0x148] sm:$0xff]  ;;  %v216_v30 = vld [vmem:[%s629_s20 + $0x150] sm:$0xff] }
  0x24   : > { %462 = vst [vmem:[%s657_s25 + $0x90] sm:$0xff] %v398_v31  ;;  %v402_v41 = vmax.f32 %v338_v32, 0.0  ;;  %v271_v44 = vmul.f32 %v624_v0, %v200_v28  ;;  %463 = vst [vmem:[%s657_s25 + $0x98] sm:$0xff] %v399_v36  ;;  %v272_v47 = vmul.f32 %v624_v0, %v201_v33  ;;  %v273_v48 = vmul.f32 %v624_v0, %v202_v34  ;;  %v214_v28 = vld [vmem:[%s629_s20 + $0x140] sm:$0xff] }
  0x25   : > { %464 = vst [vmem:[%s657_s25 + $0xa0] sm:$0xff] %v400_v37  ;;  %465 = vst [vmem:[%s657_s25 + $0xa8] sm:$0xff] %v401_v38  ;;  %v403_v46 = vmax.f32 %v339_v39, 0.0  ;;  %v274_v49 = vmul.f32 %v624_v0, %v203_v35  ;;  %v340_v50 = vadd.f32 %v634_v1, %v269_v42  ;;  %v341_v51 = vadd.f32 %v634_v1, %v270_v43  ;;  %v217_v35 = vld [vmem:[%s629_s20 + $0x158] sm:$0xff]  ;;  %v218_v36 = vld [vmem:[%s629_s20 + $0x160] sm:$0xff] }
  0x26   : > { %466 = vst [vmem:[%s657_s25 + $0xb0] sm:$0xff] %v402_v41  ;;  %v342_v52 = vadd.f32 %v634_v1, %v271_v44  ;;  %v275_v53 = vmul.f32 %v624_v0, %v204_v40  ;;  %v343_v54 = vadd.f32 %v634_v1, %v272_v47  ;;  %v344_v55 = vadd.f32 %v634_v1, %v273_v48  ;;  %v219_v37 = vld [vmem:[%s629_s20 + $0x168] sm:$0xff]  ;;  %v220_v42 = vld [vmem:[%s629_s20 + $0x170] sm:$0xff]  ;;  %v221_v47 = vld [vmem:[%s629_s20 + $0x178] sm:$0xff] }
  0x27   : > { %467 = vst [vmem:[%s657_s25 + $0xb8] sm:$0xff] %v403_v46  ;;  %v345_v56 = vadd.f32 %v634_v1, %v274_v49  ;;  %v276_v57 = vmul.f32 %v624_v0, %v205_v45  ;;  %v404_v61 = vmax.f32 %v340_v50, 0.0  ;;  %v405_v62 = vmax.f32 %v341_v51, 0.0 }
  0x28   : > { %v406_v63 = vmax.f32 %v342_v52, 0.0  ;;  %v346_v2 = vadd.f32 %v634_v1, %v275_v53  ;;  %v407_v6 = vmax.f32 %v343_v54, 0.0  ;;  %v408_v7 = vmax.f32 %v344_v55, 0.0 }
  0x29   : > { %v409_v8 = vmax.f32 %v345_v56, 0.0  ;;  %v347_v9 = vadd.f32 %v634_v1, %v276_v57  ;;  %468 = vst [vmem:[%s657_s25 + $0xc0] sm:$0xff] %v404_v61  ;;  %469 = vst [vmem:[%s657_s25 + $0xc8] sm:$0xff] %v405_v62  ;;  %v277_v12 = vmul.f32 %v624_v0, %v206_v58  ;;  %v278_v13 = vmul.f32 %v624_v0, %v207_v59  ;;  %v223_v61 = vld [vmem:[%s629_s20 + $0x188] sm:$0xff]  ;;  %v224_v62 = vld [vmem:[%s629_s20 + $0x190] sm:$0xff] }
  0x2a   : > { %470 = vst [vmem:[%s657_s25 + $0xd0] sm:$0xff] %v406_v63  ;;  %v410_v11 = vmax.f32 %v346_v2, 0.0  ;;  %v279_v14 = vmul.f32 %v624_v0, %v208_v60  ;;  %471 = vst [vmem:[%s657_s25 + $0xd8] sm:$0xff] %v407_v6  ;;  %v280_v17 = vmul.f32 %v624_v0, %v209_v3  ;;  %v281_v18 = vmul.f32 %v624_v0, %v210_v4  ;;  %v222_v60 = vld [vmem:[%s629_s20 + $0x180] sm:$0xff] }
  0x2b   : > { %472 = vst [vmem:[%s657_s25 + $0xe0] sm:$0xff] %v408_v7  ;;  %473 = vst [vmem:[%s657_s25 + $0xe8] sm:$0xff] %v409_v8  ;;  %v411_v16 = vmax.f32 %v347_v9, 0.0  ;;  %v282_v19 = vmul.f32 %v624_v0, %v211_v5  ;;  %v348_v20 = vadd.f32 %v634_v1, %v277_v12  ;;  %v349_v21 = vadd.f32 %v634_v1, %v278_v13  ;;  %v225_v5 = vld [vmem:[%s629_s20 + $0x198] sm:$0xff]  ;;  %v226_v6 = vld [vmem:[%s629_s20 + $0x1a0] sm:$0xff] }
  0x2c   : > { %474 = vst [vmem:[%s657_s25 + $0xf0] sm:$0xff] %v410_v11  ;;  %v350_v22 = vadd.f32 %v634_v1, %v279_v14  ;;  %v283_v23 = vmul.f32 %v624_v0, %v212_v10  ;;  %v351_v24 = vadd.f32 %v634_v1, %v280_v17  ;;  %v352_v25 = vadd.f32 %v634_v1, %v281_v18  ;;  %v227_v7 = vld [vmem:[%s629_s20 + $0x1a8] sm:$0xff]  ;;  %v228_v12 = vld [vmem:[%s629_s20 + $0x1b0] sm:$0xff]  ;;  %v229_v17 = vld [vmem:[%s629_s20 + $0x1b8] sm:$0xff] }
  0x2d   : > { %475 = vst [vmem:[%s657_s25 + $0xf8] sm:$0xff] %v411_v16  ;;  %v353_v26 = vadd.f32 %v634_v1, %v282_v19  ;;  %v284_v27 = vmul.f32 %v624_v0, %v213_v15  ;;  %v412_v31 = vmax.f32 %v348_v20, 0.0  ;;  %v413_v32 = vmax.f32 %v349_v21, 0.0 }
  0x2e   : > { %v414_v33 = vmax.f32 %v350_v22, 0.0  ;;  %v354_v34 = vadd.f32 %v634_v1, %v283_v23  ;;  %v415_v38 = vmax.f32 %v351_v24, 0.0  ;;  %v416_v39 = vmax.f32 %v352_v25, 0.0 }
  0x2f   : > { %v417_v40 = vmax.f32 %v353_v26, 0.0  ;;  %v355_v41 = vadd.f32 %v634_v1, %v284_v27  ;;  %476 = vst [vmem:[%s657_s25 + $0x100] sm:$0xff] %v412_v31  ;;  %477 = vst [vmem:[%s657_s25 + $0x108] sm:$0xff] %v413_v32  ;;  %v285_v44 = vmul.f32 %v624_v0, %v214_v28  ;;  %v286_v45 = vmul.f32 %v624_v0, %v215_v29  ;;  %v231_v31 = vld [vmem:[%s629_s20 + $0x1c8] sm:$0xff]  ;;  %v232_v32 = vld [vmem:[%s629_s20 + $0x1d0] sm:$0xff] }
  0x30   : > { %478 = vst [vmem:[%s657_s25 + $0x110] sm:$0xff] %v414_v33  ;;  %v418_v43 = vmax.f32 %v354_v34, 0.0  ;;  %v287_v46 = vmul.f32 %v624_v0, %v216_v30  ;;  %479 = vst [vmem:[%s657_s25 + $0x118] sm:$0xff] %v415_v38  ;;  %v288_v49 = vmul.f32 %v624_v0, %v217_v35  ;;  %v289_v50 = vmul.f32 %v624_v0, %v218_v36  ;;  %v230_v30 = vld [vmem:[%s629_s20 + $0x1c0] sm:$0xff] }
  0x31   : > { %480 = vst [vmem:[%s657_s25 + $0x120] sm:$0xff] %v416_v39  ;;  %481 = vst [vmem:[%s657_s25 + $0x128] sm:$0xff] %v417_v40  ;;  %v419_v48 = vmax.f32 %v355_v41, 0.0  ;;  %v290_v51 = vmul.f32 %v624_v0, %v219_v37  ;;  %v356_v52 = vadd.f32 %v634_v1, %v285_v44  ;;  %v357_v53 = vadd.f32 %v634_v1, %v286_v45  ;;  %v233_v37 = vld [vmem:[%s629_s20 + $0x1d8] sm:$0xff]  ;;  %v234_v38 = vld [vmem:[%s629_s20 + $0x1e0] sm:$0xff] }
  0x32   : > { %482 = vst [vmem:[%s657_s25 + $0x130] sm:$0xff] %v418_v43  ;;  %v358_v54 = vadd.f32 %v634_v1, %v287_v46  ;;  %v291_v55 = vmul.f32 %v624_v0, %v220_v42  ;;  %v359_v56 = vadd.f32 %v634_v1, %v288_v49  ;;  %v360_v57 = vadd.f32 %v634_v1, %v289_v50  ;;  %v235_v39 = vld [vmem:[%s629_s20 + $0x1e8] sm:$0xff]  ;;  %v236_v44 = vld [vmem:[%s629_s20 + $0x1f0] sm:$0xff]  ;;  %v237_v49 = vld [vmem:[%s629_s20 + $0x1f8] sm:$0xff] }
  0x33   : > { %483 = vst [vmem:[%s657_s25 + $0x138] sm:$0xff] %v419_v48  ;;  %v361_v58 = vadd.f32 %v634_v1, %v290_v51  ;;  %v292_v59 = vmul.f32 %v624_v0, %v221_v47  ;;  %v420_v63 = vmax.f32 %v356_v52, 0.0  ;;  %v421_v2 = vmax.f32 %v357_v53, 0.0 }
  0x34   : > { %v422_v3 = vmax.f32 %v358_v54, 0.0  ;;  %v362_v4 = vadd.f32 %v634_v1, %v291_v55  ;;  %v423_v8 = vmax.f32 %v359_v56, 0.0  ;;  %v424_v9 = vmax.f32 %v360_v57, 0.0 }
  0x35   : > { %v425_v10 = vmax.f32 %v361_v58, 0.0  ;;  %v363_v11 = vadd.f32 %v634_v1, %v292_v59  ;;  %484 = vst [vmem:[%s657_s25 + $0x140] sm:$0xff] %v420_v63  ;;  %485 = vst [vmem:[%s657_s25 + $0x148] sm:$0xff] %v421_v2  ;;  %v293_v14 = vmul.f32 %v624_v0, %v222_v60  ;;  %v294_v15 = vmul.f32 %v624_v0, %v223_v61 }
  0x36   : > { %486 = vst [vmem:[%s657_s25 + $0x150] sm:$0xff] %v422_v3  ;;  %v426_v13 = vmax.f32 %v362_v4, 0.0  ;;  %v295_v16 = vmul.f32 %v624_v0, %v224_v62  ;;  %487 = vst [vmem:[%s657_s25 + $0x158] sm:$0xff] %v423_v8  ;;  %v296_v19 = vmul.f32 %v624_v0, %v225_v5  ;;  %v297_v20 = vmul.f32 %v624_v0, %v226_v6 }
  0x37   : > { %488 = vst [vmem:[%s657_s25 + $0x160] sm:$0xff] %v424_v9  ;;  %489 = vst [vmem:[%s657_s25 + $0x168] sm:$0xff] %v425_v10  ;;  %v427_v18 = vmax.f32 %v363_v11, 0.0  ;;  %v298_v21 = vmul.f32 %v624_v0, %v227_v7  ;;  %v364_v22 = vadd.f32 %v634_v1, %v293_v14  ;;  %v365_v23 = vadd.f32 %v634_v1, %v294_v15 }
  0x38   : > { %490 = vst [vmem:[%s657_s25 + $0x170] sm:$0xff] %v426_v13  ;;  %v366_v24 = vadd.f32 %v634_v1, %v295_v16  ;;  %v299_v25 = vmul.f32 %v624_v0, %v228_v12  ;;  %v367_v26 = vadd.f32 %v634_v1, %v296_v19  ;;  %v368_v27 = vadd.f32 %v634_v1, %v297_v20 }
  0x39   : > { %491 = vst [vmem:[%s657_s25 + $0x178] sm:$0xff] %v427_v18  ;;  %v369_v28 = vadd.f32 %v634_v1, %v298_v21  ;;  %v300_v29 = vmul.f32 %v624_v0, %v229_v17  ;;  %v428_v33 = vmax.f32 %v364_v22, 0.0  ;;  %v429_v34 = vmax.f32 %v365_v23, 0.0 }
  0x3a   : > { %v430_v35 = vmax.f32 %v366_v24, 0.0  ;;  %v370_v36 = vadd.f32 %v634_v1, %v299_v25  ;;  %v431_v40 = vmax.f32 %v367_v26, 0.0  ;;  %v432_v41 = vmax.f32 %v368_v27, 0.0 }
  0x3b   : > { %v433_v42 = vmax.f32 %v369_v28, 0.0  ;;  %v371_v43 = vadd.f32 %v634_v1, %v300_v29  ;;  %492 = vst [vmem:[%s657_s25 + $0x180] sm:$0xff] %v428_v33  ;;  %493 = vst [vmem:[%s657_s25 + $0x188] sm:$0xff] %v429_v34  ;;  %v301_v46 = vmul.f32 %v624_v0, %v230_v30  ;;  %v302_v47 = vmul.f32 %v624_v0, %v231_v31 }
  0x3c   : > { %494 = vst [vmem:[%s657_s25 + $0x190] sm:$0xff] %v430_v35  ;;  %v434_v45 = vmax.f32 %v370_v36, 0.0  ;;  %v303_v48 = vmul.f32 %v624_v0, %v232_v32  ;;  %495 = vst [vmem:[%s657_s25 + $0x198] sm:$0xff] %v431_v40  ;;  %v304_v51 = vmul.f32 %v624_v0, %v233_v37  ;;  %v305_v52 = vmul.f32 %v624_v0, %v234_v38 }
  0x3d   : > { %496 = vst [vmem:[%s657_s25 + $0x1a0] sm:$0xff] %v432_v41  ;;  %497 = vst [vmem:[%s657_s25 + $0x1a8] sm:$0xff] %v433_v42  ;;  %v435_v50 = vmax.f32 %v371_v43, 0.0  ;;  %v306_v53 = vmul.f32 %v624_v0, %v235_v39  ;;  %v372_v54 = vadd.f32 %v634_v1, %v301_v46  ;;  %v373_v55 = vadd.f32 %v634_v1, %v302_v47 }
  0x3e   : > { %498 = vst [vmem:[%s657_s25 + $0x1b0] sm:$0xff] %v434_v45  ;;  %v374_v56 = vadd.f32 %v634_v1, %v303_v48  ;;  %v307_v57 = vmul.f32 %v624_v0, %v236_v44  ;;  %v375_v58 = vadd.f32 %v634_v1, %v304_v51  ;;  %v376_v59 = vadd.f32 %v634_v1, %v305_v52 }
  0x3f   : > { %499 = vst [vmem:[%s657_s25 + $0x1b8] sm:$0xff] %v435_v50  ;;  %v377_v60 = vadd.f32 %v634_v1, %v306_v53  ;;  %v308_v61 = vmul.f32 %v624_v0, %v237_v49  ;;  %v436_v62 = vmax.f32 %v372_v54, 0.0  ;;  %v437_v63 = vmax.f32 %v373_v55, 0.0 }
  0x40   : > { %v438_v2 = vmax.f32 %v374_v56, 0.0  ;;  %v378_v3 = vadd.f32 %v634_v1, %v307_v57  ;;  %v439_v4 = vmax.f32 %v375_v58, 0.0  ;;  %v440_v5 = vmax.f32 %v376_v59, 0.0 }
  0x41   : > { %v441_v6 = vmax.f32 %v377_v60, 0.0  ;;  %v379_v7 = vadd.f32 %v634_v1, %v308_v61  ;;  %500 = vst [vmem:[%s657_s25 + $0x1c0] sm:$0xff] %v436_v62  ;;  %501 = vst [vmem:[%s657_s25 + $0x1c8] sm:$0xff] %v437_v63 }
  0x42   : > { %502 = vst [vmem:[%s657_s25 + $0x1d0] sm:$0xff] %v438_v2  ;;  %v442_v8 = vmax.f32 %v378_v3, 0.0  ;;  %503 = vst [vmem:[%s657_s25 + $0x1d8] sm:$0xff] %v439_v4 }
  0x43   : > { %504 = vst [vmem:[%s657_s25 + $0x1e0] sm:$0xff] %v440_v5  ;;  %505 = vst [vmem:[%s657_s25 + $0x1e8] sm:$0xff] %v441_v6  ;;  %v443_v0 = vmax.f32 %v379_v7, 0.0 }
  0x44   : > { %506 = vst [vmem:[%s657_s25 + $0x1f0] sm:$0xff] %v442_v8 }
  0x45   : > { %507 = vst [vmem:[%s657_s25 + $0x1f8] sm:$0xff] %v443_v0 }
  0x46 PF: > { %s13_s12 = sadd.s32 1, %s591_s12  }
  0x47   : > { %p10_p4 = scmp.ge.s32.totalorder %s13_s12, 4  }
  0x49   :  { %12 = sbr.rel (!%p10_p4) target bundleno = 1 (0x1), region = 62 }

// kernel: down3d_forward.12
= control target key start
LH: loop header
LB: loop body
LE: loop exit
PB: predicated region body
PF: predicated region fallthrough
CT: control target
= control target key end

     0   :  { %s1461_s12 = smov 0   ;;  %s2049_s0 = inlined_call_operand.vmem [shape: f32[1024,216], index: 0, kind: input, shape index: {}]   ;;  %s2050_s1 = inlined_call_operand.vmem [shape: f32[216,128], index: 1, kind: input, shape index: {}]   ;;  %s2051_s2 = inlined_call_operand.vmem [shape: f32[1024,128], index: 2, kind: output, shape index: {0}]   ;;  %s2052_s3 = inlined_call_operand.vmem [shape: f32[2,2,128], index: 3, kind: output, shape index: {1}]  }
   0x1 LB: > { %s1467_s13 = sadd.s32 4294967295, %s1437_s12   ;;  %p1280_p0 = scmp.ge.s32.totalorder %s1437_s12, 1  ;;  %s1437_s12 = sphi %s1461_s12, %s14_s12  }
   0x2   : > { %p142_p1 = scmp.lt.s32.totalorder %s1437_s12, 3 }
   0x4   : > { %p143_p2 = pnand %p1280_p0, %p142_p1 }
   0x5   : > { %v316_v0 = vld [vmem:[%s2050_s1] sm:$0xff] (!%p143_p2)  ;;  %v317_v1 = vld [vmem:[%s2050_s1 + $0x8] sm:$0xff] (!%p143_p2)  ;;  %v318_v2 = vld [vmem:[%s2050_s1 + $0x10] sm:$0xff] (!%p143_p2)  ;;  %s1281_s20 = sshll.u32 (!%p143_p2), %s1467_s13, 6  ;;  %v1439_v3 = vmov (!%p143_p2), 0.0|0.0   ;;  %vm343_vm0 = vcmask (!%p143_p2), 719872  }
   0x6   : > { %146 = sbr.rel (%p143_p2) target bundleno = 478 (0x1de), region = 28  ;;  %1354 = vmatprep.subr.bf16.mxu0 (!%p143_p2), %v1439_v3  ;;  %v1355_v4 = vpack.c.bf16 (!%p143_p2), %v317_v1, %v316_v0  ;;  %v319_v5 = vld [vmem:[%s2050_s1 + $0x18] sm:$0xff] (!%p143_p2)  ;;  %p172_p3 = scmp.lt.s32.totalorder (!%p143_p2), %s1281_s20, 127  ;;  %1393 = vmatprep.subr.bf16.mxu1 (!%p143_p2), %v1439_v3  ;;  %v320_v7 = vld [vmem:[%s2050_s1 + $0x20] sm:$0xff] (!%p143_p2)  ;;  %v321_v8 = vld [vmem:[%s2050_s1 + $0x28] sm:$0xff] (!%p143_p2)  ;;  %v1440_v42 = vmov (!%p143_p2), 0.0  }
   0x7   : > { %v1358_v6 = vpack.c.bf16 (!%p143_p2), %v319_v5, %v318_v2  ;;  %v1361_v9 = vpack.c.bf16 (!%p143_p2), %v321_v8, %v320_v7  ;;  %v322_v10 = vld [vmem:[%s2050_s1 + $0x30] sm:$0xff] (!%p143_p2)  ;;  %v323_v11 = vld [vmem:[%s2050_s1 + $0x38] sm:$0xff] (!%p143_p2)  ;;  %v324_v14 = vld [vmem:[%s2050_s1 + $0x40] sm:$0xff] (!%p143_p2)  ;;  %p184_p4 = scmp.lt.s32.totalorder (!%p143_p2), %s1467_s13, 1 }
   0x8   : > { %1356 = vmatpush1.bf16.msra.mxu0 (!%p143_p2), %v1355_v4  ;;  %1407 = vmatpush1.bf16.msra.mxu1 (!%p143_p2), %v1355_v4  ;;  %v1364_v13 = vpack.c.bf16 (!%p143_p2), %v323_v11, %v322_v10  ;;  %v325_v15 = vld [vmem:[%s2050_s1 + $0x48] sm:$0xff] (!%p143_p2)  ;;  %v326_v17 = vld [vmem:[%s2050_s1 + $0x50] sm:$0xff] (!%p143_p2)  ;;  %v327_v18 = vld [vmem:[%s2050_s1 + $0x58] sm:$0xff] (!%p143_p2) }
   0x9   : > { %1357 = vmatprep.subr.bf16.mxu0 (!%p143_p2), %v1439_v3  ;;  %1394 = vmatprep.subr.bf16.mxu1 (!%p143_p2), %v1439_v3  ;;  %v1367_v16 = vpack.c.bf16 (!%p143_p2), %v325_v15, %v324_v14  ;;  %v1370_v19 = vpack.c.bf16 (!%p143_p2), %v327_v18, %v326_v17  ;;  %v328_v21 = vld [vmem:[%s2050_s1 + $0x60] sm:$0xff] (!%p143_p2)  ;;  %v329_v22 = vld [vmem:[%s2050_s1 + $0x68] sm:$0xff] (!%p143_p2)  ;;  %v330_v24 = vld [vmem:[%s2050_s1 + $0x70] sm:$0xff] (!%p143_p2) }
   0xa   : > { %v1373_v23 = vpack.c.bf16 (!%p143_p2), %v329_v22, %v328_v21  ;;  %v331_v25 = vld [vmem:[%s2050_s1 + $0x78] sm:$0xff] (!%p143_p2)  ;;  %v332_v27 = vld [vmem:[%s2050_s1 + $0x80] sm:$0xff] (!%p143_p2)  ;;  %v333_v28 = vld [vmem:[%s2050_s1 + $0x88] sm:$0xff] (!%p143_p2) }
   0xb   : > { %v1376_v26 = vpack.c.bf16 (!%p143_p2), %v331_v25, %v330_v24  ;;  %v1379_v29 = vpack.c.bf16 (!%p143_p2), %v333_v28, %v332_v27  ;;  %v334_v30 = vld [vmem:[%s2050_s1 + $0x90] sm:$0xff] (!%p143_p2)  ;;  %v335_v31 = vld [vmem:[%s2050_s1 + $0x98] sm:$0xff] (!%p143_p2)  ;;  %v336_v33 = vld [vmem:[%s2050_s1 + $0xa0] sm:$0xff] (!%p143_p2) }
   0xc   : > { %1359 = vmatpush1.bf16.msra.mxu0 (!%p143_p2), %v1358_v6  ;;  %1408 = vmatpush1.bf16.msra.mxu1 (!%p143_p2), %v1358_v6  ;;  %v1382_v32 = vpack.c.bf16 (!%p143_p2), %v335_v31, %v334_v30  ;;  %v337_v34 = vld [vmem:[%s2050_s1 + $0xa8] sm:$0xff] (!%p143_p2)  ;;  %v338_v36 = vld [vmem:[%s2050_s1 + $0xb0] sm:$0xff] (!%p143_p2)  ;;  %v339_v37 = vld [vmem:[%s2050_s1 + $0xb8] sm:$0xff] (!%p143_p2) }
   0xd   : > { %s2054_s20 = smov (!%p172_p3, %s1281_s20), 127  ;;  %1360 = vmatprep.subr.bf16.mxu0 %v1439_v3  ;;  %1395 = vmatprep.subr.bf16.mxu1 %v1439_v3  ;;  %v1385_v35 = vpack.c.bf16 %v337_v34, %v336_v33  ;;  %v1388_v38 = vpack.c.bf16 %v339_v37, %v338_v36  ;;  %v340_v39 = vld [vmem:[%s2050_s1 + $0xc0] sm:$0xff]  ;;  %v341_v40 = vld [vmem:[%s2050_s1 + $0xc8] sm:$0xff]  ;;  %v342_v43 = vld [vmem:[%s2050_s1 + $0xd0] sm:$0xff]  ;;  %s2056_s13 = smov (!%p184_p4, %s1467_s13), 1 }
   0xe   : > { %s1353_s27 = sshll.u32 %s2054_s20, 4  ;;  %v1391_v41 = vpack.c.bf16 %v341_v40, %v340_v39  ;;  %s1285_s26 = sshll.u32 %s2054_s20, 3 }
   0xf   : > { %s1500_s30 = scalar_lea.vmem %s2049_s0, %s1353_s27  ;;  %s1783_s29 = scalar_lea.vmem %s2051_s2, %s1285_s26 }
  0x10   : > { %v189_v12 = vld [vmem:[%s1500_s30 + $0x8] sm:$0xff]  ;;  %1362 = vmatpush1.bf16.msra.mxu0 %v1361_v9  ;;  %1409 = vmatpush1.bf16.msra.mxu1 %v1361_v9  ;;  %v188_v44 = vld [vmem:[%s1500_s30] sm:$0xff]  ;;  %v191_v46 = vld [vmem:[%s1500_s30 + $0x18] sm:$0xff]  ;;  %s1286_s20 = sshll.u32 %s2056_s13, 1 }
  0x11   : > { %1287 = vmatprep.mubr.msk.f32.mxu0 %vm343_vm0, %v189_v12  ;;  %1363 = vmatprep.subr.bf16.mxu0 %v1439_v3  ;;  %v253_v20 = vld [vmem:[%s1500_s30 + $0x208] sm:$0xff]  ;;  %v252_v45 = vld [vmem:[%s1500_s30 + $0x200] sm:$0xff]  ;;  %v255_v47 = vld [vmem:[%s1500_s30 + $0x218] sm:$0xff]  ;;  %s187_s5 = scalar_lea.vmem %s2052_s3, %s1286_s20 }
  0x12   : > { %1396 = vmatprep.subr.bf16.mxu1 %v1439_v3  ;;  %1319 = vmatprep.mubr.msk.f32.mxu1 %vm343_vm0, %v253_v20  ;;  %v190_v48 = vld [vmem:[%s1500_s30 + $0x10] sm:$0xff]  ;;  %v193_v50 = vld [vmem:[%s1500_s30 + $0x28] sm:$0xff]  ;;  %v192_v52 = vld [vmem:[%s1500_s30 + $0x20] sm:$0xff] }
  0x13   : > { %v254_v49 = vld [vmem:[%s1500_s30 + $0x210] sm:$0xff]  ;;  %v257_v51 = vld [vmem:[%s1500_s30 + $0x228] sm:$0xff]  ;;  %v256_v53 = vld [vmem:[%s1500_s30 + $0x220] sm:$0xff] }
  0x14   : > { %1365 = vmatpush1.bf16.msra.mxu0 %v1364_v13  ;;  %1410 = vmatpush1.bf16.msra.mxu1 %v1364_v13  ;;  %v195_v54 = vld [vmem:[%s1500_s30 + $0x38] sm:$0xff]  ;;  %v194_v56 = vld [vmem:[%s1500_s30 + $0x30] sm:$0xff]  ;;  %v197_v58 = vld [vmem:[%s1500_s30 + $0x48] sm:$0xff] }
  0x15   : > { %1366 = vmatprep.subr.bf16.mxu0 %v1439_v3  ;;  %1397 = vmatprep.subr.bf16.mxu1 %v1439_v3  ;;  %v259_v55 = vld [vmem:[%s1500_s30 + $0x238] sm:$0xff]  ;;  %v258_v57 = vld [vmem:[%s1500_s30 + $0x230] sm:$0xff]  ;;  %v261_v59 = vld [vmem:[%s1500_s30 + $0x248] sm:$0xff] }
  0x16   : > { %v196_v60 = vld [vmem:[%s1500_s30 + $0x40] sm:$0xff]  ;;  %v199_v62 = vld [vmem:[%s1500_s30 + $0x58] sm:$0xff]  ;;  %v198_v0 = vld [vmem:[%s1500_s30 + $0x50] sm:$0xff] }
  0x17   : > { %v260_v61 = vld [vmem:[%s1500_s30 + $0x240] sm:$0xff]  ;;  %v263_v63 = vld [vmem:[%s1500_s30 + $0x258] sm:$0xff]  ;;  %v262_v1 = vld [vmem:[%s1500_s30 + $0x250] sm:$0xff] }
  0x18   : > { %1368 = vmatpush1.bf16.msra.mxu0 %v1367_v16  ;;  %1411 = vmatpush1.bf16.msra.mxu1 %v1367_v16  ;;  %v201_v2 = vld [vmem:[%s1500_s30 + $0x68] sm:$0xff]  ;;  %v200_v4 = vld [vmem:[%s1500_s30 + $0x60] sm:$0xff]  ;;  %v203_v6 = vld [vmem:[%s1500_s30 + $0x78] sm:$0xff] }
  0x19   : > { %1369 = vmatprep.subr.bf16.mxu0 %v1439_v3  ;;  %1398 = vmatprep.subr.bf16.mxu1 %v1439_v3  ;;  %v264_v5 = vld [vmem:[%s1500_s30 + $0x260] sm:$0xff]  ;;  %v267_v7 = vld [vmem:[%s1500_s30 + $0x278] sm:$0xff]  ;;  %v202_v8 = vld [vmem:[%s1500_s30 + $0x70] sm:$0xff] }
  0x1a   : > { %v266_v9 = vld [vmem:[%s1500_s30 + $0x270] sm:$0xff]  ;;  %v205_v10 = vld [vmem:[%s1500_s30 + $0x88] sm:$0xff]  ;;  %v204_v12 = vld [vmem:[%s1500_s30 + $0x80] sm:$0xff] }
  0x1b   : > { %v269_v11 = vld [vmem:[%s1500_s30 + $0x288] sm:$0xff]  ;;  %v268_v13 = vld [vmem:[%s1500_s30 + $0x280] sm:$0xff]  ;;  %v207_v14 = vld [vmem:[%s1500_s30 + $0x98] sm:$0xff] }
  0x1c   : > { %1371 = vmatpush1.bf16.msra.mxu0 %v1370_v19  ;;  %1412 = vmatpush1.bf16.msra.mxu1 %v1370_v19  ;;  %v271_v15 = vld [vmem:[%s1500_s30 + $0x298] sm:$0xff]  ;;  %v206_v16 = vld [vmem:[%s1500_s30 + $0x90] sm:$0xff]  ;;  %v209_v18 = vld [vmem:[%s1500_s30 + $0xa8] sm:$0xff] }
  0x1d   : > { %1372 = vmatprep.subr.bf16.mxu0 %v1439_v3  ;;  %1399 = vmatprep.subr.bf16.mxu1 %v1439_v3  ;;  %v270_v17 = vld [vmem:[%s1500_s30 + $0x290] sm:$0xff]  ;;  %v273_v19 = vld [vmem:[%s1500_s30 + $0x2a8] sm:$0xff]  ;;  %v208_v20 = vld [vmem:[%s1500_s30 + $0xa0] sm:$0xff] }
  0x1e   : > { %v272_v21 = vld [vmem:[%s1500_s30 + $0x2a0] sm:$0xff]  ;;  %v211_v22 = vld [vmem:[%s1500_s30 + $0xb8] sm:$0xff]  ;;  %v210_v24 = vld [vmem:[%s1500_s30 + $0xb0] sm:$0xff] }
  0x1f   : > { %v274_v25 = vld [vmem:[%s1500_s30 + $0x2b0] sm:$0xff]  ;;  %v277_v27 = vld [vmem:[%s1500_s30 + $0x2c8] sm:$0xff]  ;;  %v212_v28 = vld [vmem:[%s1500_s30 + $0xc0] sm:$0xff] }
  0x20   : > { %1374 = vmatpush1.bf16.msra.mxu0 %v1373_v23  ;;  %1413 = vmatpush1.bf16.msra.mxu1 %v1373_v23  ;;  %v275_v23 = vld [vmem:[%s1500_s30 + $0x2b8] sm:$0xff]  ;;  %v278_v33 = vld [vmem:[%s1500_s30 + $0x2d0] sm:$0xff]  ;;  %v217_v34 = vld [vmem:[%s1500_s30 + $0xe8] sm:$0xff] }
  0x21   : > { %1375 = vmatprep.subr.bf16.mxu0 %v1439_v3  ;;  %1400 = vmatprep.subr.bf16.mxu1 %v1439_v3  ;;  %v215_v30 = vld [vmem:[%s1500_s30 + $0xd8] sm:$0xff]  ;;  %v216_v36 = vld [vmem:[%s1500_s30 + $0xe0] sm:$0xff]  ;;  %v218_v40 = vld [vmem:[%s1500_s30 + $0xf0] sm:$0xff] }
  0x22   : > { %v279_v31 = vld [vmem:[%s1500_s30 + $0x2d8] sm:$0xff]  ;;  %v280_v37 = vld [vmem:[%s1500_s30 + $0x2e0] sm:$0xff] }
  0x23   : > { %v283_v39 = vld [vmem:[%s1500_s30 + $0x2f8] sm:$0xff] }
  0x24   : > { %1377 = vmatpush1.bf16.msra.mxu0 %v1376_v26  ;;  %1414 = vmatpush1.bf16.msra.mxu1 %v1376_v26  ;;  %v213_v26 = vld [vmem:[%s1500_s30 + $0xc8] sm:$0xff] }
  0x25   : > { %1378 = vmatprep.subr.bf16.mxu0 %v1439_v3  ;;  %1401 = vmatprep.subr.bf16.mxu1 %v1439_v3 }
  0x28   : > { %1380 = vmatpush1.bf16.msra.mxu0 %v1379_v29  ;;  %1415 = vmatpush1.bf16.msra.mxu1 %v1379_v29  ;;  %v276_v29 = vld [vmem:[%s1500_s30 + $0x2c0] sm:$0xff] }
  0x29   : > { %1381 = vmatprep.subr.bf16.mxu0 %v1439_v3  ;;  %1402 = vmatprep.subr.bf16.mxu1 %v1439_v3 }
  0x2c   : > { %1383 = vmatpush1.bf16.msra.mxu0 %v1382_v32  ;;  %1416 = vmatpush1.bf16.msra.mxu1 %v1382_v32  ;;  %v214_v32 = vld [vmem:[%s1500_s30 + $0xd0] sm:$0xff] }
  0x2d   : > { %1384 = vmatprep.subr.bf16.mxu0 %v1439_v3  ;;  %1403 = vmatprep.subr.bf16.mxu1 %v1439_v3 }
  0x30   : > { %1386 = vmatpush1.bf16.msra.mxu0 %v1385_v35  ;;  %1417 = vmatpush1.bf16.msra.mxu1 %v1385_v35  ;;  %v281_v35 = vld [vmem:[%s1500_s30 + $0x2e8] sm:$0xff] }
  0x31   : > { %1387 = vmatprep.subr.bf16.mxu0 %v1439_v3  ;;  %1404 = vmatprep.subr.bf16.mxu1 %v1439_v3 }
  0x34   : > { %1389 = vmatpush1.bf16.msra.mxu0 %v1388_v38  ;;  %1418 = vmatpush1.bf16.msra.mxu1 %v1388_v38  ;;  %v219_v38 = vld [vmem:[%s1500_s30 + $0xf8] sm:$0xff] }
  0x35   : > { %1390 = vmatprep.subr.bf16.mxu0 %v1439_v3  ;;  %1405 = vmatprep.subr.bf16.mxu1 %v1439_v3  ;;  %v265_v3 = vld [vmem:[%s1500_s30 + $0x268] sm:$0xff] }
  0x38   : > { %1392 = vmatpush1.bf16.msra.mxu0 %v1391_v41  ;;  %1419 = vmatpush1.bf16.msra.mxu1 %v1391_v41  ;;  %v282_v41 = vld [vmem:[%s1500_s30 + $0x2f0] sm:$0xff] }
  0x39   : > { %588 = vmatprep.subr.mxu0 %v1440_v42  ;;  %1406 = vmatprep.subr.mxu1 %v1440_v42  ;;  %v221_v42 = vld [vmem:[%s1500_s30 + $0x108] sm:$0xff] }
  0x3c   : > { %589 = vmatpush1.msra.mxu0 %v342_v43  ;;  %1420 = vmatpush1.msra.mxu1 %v342_v43  ;;  %v285_v43 = vld [vmem:[%s1500_s30 + $0x308] sm:$0xff] }
  0x3d   : > { %601 = vmatmul.mubr.f32.vlgmr.msra.gmra.mrb[0].mxu0 %v188_v44  ;;  %761 = vmatmul.mubr.f32.vlgmr.msra.gmra.mrb[0].mxu1 %v252_v45  ;;  %v220_v44 = vld [vmem:[%s1500_s30 + $0x100] sm:$0xff] }
  0x3e   : > { %1288 = vmatprep.mubr.msk.f32.mxu0 %vm343_vm0, %v191_v46  ;;  %1320 = vmatprep.mubr.msk.f32.mxu1 %vm343_vm0, %v255_v47  ;;  %v284_v45 = vld [vmem:[%s1500_s30 + $0x300] sm:$0xff]  ;;  %v223_v46 = vld [vmem:[%s1500_s30 + $0x118] sm:$0xff] }
  0x3f   : > { %v287_v47 = vld [vmem:[%s1500_s30 + $0x318] sm:$0xff] }
  0x41   : > { %606 = vmatmul.mubr.f32.gmra.mrb[2].mxu0 %v190_v48  ;;  %766 = vmatmul.mubr.f32.gmra.mrb[2].mxu1 %v254_v49  ;;  %v222_v48 = vld [vmem:[%s1500_s30 + $0x110] sm:$0xff] }
  0x42   : > { %1289 = vmatprep.mubr.msk.f32.mxu0 %vm343_vm0, %v193_v50  ;;  %1321 = vmatprep.mubr.msk.f32.mxu1 %vm343_vm0, %v257_v51  ;;  %v286_v49 = vld [vmem:[%s1500_s30 + $0x310] sm:$0xff]  ;;  %v225_v50 = vld [vmem:[%s1500_s30 + $0x128] sm:$0xff] }
  0x43   : > { %v289_v51 = vld [vmem:[%s1500_s30 + $0x328] sm:$0xff] }
  0x45   : > { %611 = vmatmul.mubr.f32.gmra.mrb[4].mxu0 %v192_v52  ;;  %771 = vmatmul.mubr.f32.gmra.mrb[4].mxu1 %v256_v53  ;;  %v224_v52 = vld [vmem:[%s1500_s30 + $0x120] sm:$0xff] }
  0x46   : > { %1290 = vmatprep.mubr.msk.f32.mxu0 %vm343_vm0, %v195_v54  ;;  %1322 = vmatprep.mubr.msk.f32.mxu1 %vm343_vm0, %v259_v55  ;;  %v288_v53 = vld [vmem:[%s1500_s30 + $0x320] sm:$0xff]  ;;  %v227_v54 = vld [vmem:[%s1500_s30 + $0x138] sm:$0xff] }
  0x47   : > { %v291_v55 = vld [vmem:[%s1500_s30 + $0x338] sm:$0xff] }
  0x49   : > { %616 = vmatmul.mubr.f32.gmra.mrb[6].mxu0 %v194_v56  ;;  %776 = vmatmul.mubr.f32.gmra.mrb[6].mxu1 %v258_v57  ;;  %v226_v56 = vld [vmem:[%s1500_s30 + $0x130] sm:$0xff] }
  0x4a   : > { %1291 = vmatprep.mubr.msk.f32.mxu0 %vm343_vm0, %v197_v58  ;;  %1323 = vmatprep.mubr.msk.f32.mxu1 %vm343_vm0, %v261_v59  ;;  %v290_v57 = vld [vmem:[%s1500_s30 + $0x330] sm:$0xff]  ;;  %v229_v58 = vld [vmem:[%s1500_s30 + $0x148] sm:$0xff] }
  0x4b   : > { %v293_v59 = vld [vmem:[%s1500_s30 + $0x348] sm:$0xff] }
  0x4d   : > { %621 = vmatmul.mubr.f32.gmra.mrb[8].mxu0 %v196_v60  ;;  %781 = vmatmul.mubr.f32.gmra.mrb[8].mxu1 %v260_v61  ;;  %v228_v60 = vld [vmem:[%s1500_s30 + $0x140] sm:$0xff] }
  0x4e   : > { %1292 = vmatprep.mubr.msk.f32.mxu0 %vm343_vm0, %v199_v62  ;;  %1324 = vmatprep.mubr.msk.f32.mxu1 %vm343_vm0, %v263_v63  ;;  %v292_v61 = vld [vmem:[%s1500_s30 + $0x340] sm:$0xff]  ;;  %v231_v62 = vld [vmem:[%s1500_s30 + $0x158] sm:$0xff] }
  0x4f   : > { %v295_v63 = vld [vmem:[%s1500_s30 + $0x358] sm:$0xff] }
  0x51   : > { %626 = vmatmul.mubr.f32.gmra.mrb[10].mxu0 %v198_v0  ;;  %786 = vmatmul.mubr.f32.gmra.mrb[10].mxu1 %v262_v1  ;;  %v230_v0 = vld [vmem:[%s1500_s30 + $0x150] sm:$0xff] }
  0x52   : > { %1293 = vmatprep.mubr.msk.f32.mxu0 %vm343_vm0, %v201_v2  ;;  %1325 = vmatprep.mubr.msk.f32.mxu1 %vm343_vm0, %v265_v3  ;;  %v294_v1 = vld [vmem:[%s1500_s30 + $0x350] sm:$0xff]  ;;  %v233_v2 = vld [vmem:[%s1500_s30 + $0x168] sm:$0xff] }
  0x53   : > { %v297_v3 = vld [vmem:[%s1500_s30 + $0x368] sm:$0xff] }
  0x55   : > { %631 = vmatmul.mubr.f32.gmra.mrb[12].mxu0 %v200_v4  ;;  %791 = vmatmul.mubr.f32.gmra.mrb[12].mxu1 %v264_v5  ;;  %v232_v4 = vld [vmem:[%s1500_s30 + $0x160] sm:$0xff] }
  0x56   : > { %1294 = vmatprep.mubr.msk.f32.mxu0 %vm343_vm0, %v203_v6  ;;  %1326 = vmatprep.mubr.msk.f32.mxu1 %vm343_vm0, %v267_v7  ;;  %v296_v5 = vld [vmem:[%s1500_s30 + $0x360] sm:$0xff]  ;;  %v235_v6 = vld [vmem:[%s1500_s30 + $0x178] sm:$0xff] }
  0x57   : > { %v299_v7 = vld [vmem:[%s1500_s30 + $0x378] sm:$0xff] }
  0x59   : > { %636 = vmatmul.mubr.f32.gmra.mrb[14].mxu0 %v202_v8  ;;  %796 = vmatmul.mubr.f32.gmra.mrb[14].mxu1 %v266_v9  ;;  %v234_v8 = vld [vmem:[%s1500_s30 + $0x170] sm:$0xff] }
  0x5a   : > { %1295 = vmatprep.mubr.msk.f32.mxu0 %vm343_vm0, %v205_v10  ;;  %1327 = vmatprep.mubr.msk.f32.mxu1 %vm343_vm0, %v269_v11  ;;  %v298_v9 = vld [vmem:[%s1500_s30 + $0x370] sm:$0xff]  ;;  %v237_v10 = vld [vmem:[%s1500_s30 + $0x188] sm:$0xff] }
  0x5b   : > { %v301_v11 = vld [vmem:[%s1500_s30 + $0x388] sm:$0xff] }
  0x5d   : > { %641 = vmatmul.mubr.f32.gmra.mrb[16].mxu0 %v204_v12  ;;  %801 = vmatmul.mubr.f32.gmra.mrb[16].mxu1 %v268_v13  ;;  %v236_v12 = vld [vmem:[%s1500_s30 + $0x180] sm:$0xff] }
  0x5e   : > { %1296 = vmatprep.mubr.msk.f32.mxu0 %vm343_vm0, %v207_v14  ;;  %1328 = vmatprep.mubr.msk.f32.mxu1 %vm343_vm0, %v271_v15  ;;  %v300_v13 = vld [vmem:[%s1500_s30 + $0x380] sm:$0xff]  ;;  %v239_v14 = vld [vmem:[%s1500_s30 + $0x198] sm:$0xff] }
  0x5f   : > { %v303_v15 = vld [vmem:[%s1500_s30 + $0x398] sm:$0xff] }
  0x61   : > { %646 = vmatmul.mubr.f32.gmra.mrb[18].mxu0 %v206_v16  ;;  %806 = vmatmul.mubr.f32.gmra.mrb[18].mxu1 %v270_v17  ;;  %v238_v16 = vld [vmem:[%s1500_s30 + $0x190] sm:$0xff] }
  0x62   : > { %1297 = vmatprep.mubr.msk.f32.mxu0 %vm343_vm0, %v209_v18  ;;  %1329 = vmatprep.mubr.msk.f32.mxu1 %vm343_vm0, %v273_v19  ;;  %v302_v17 = vld [vmem:[%s1500_s30 + $0x390] sm:$0xff]  ;;  %v241_v18 = vld [vmem:[%s1500_s30 + $0x1a8] sm:$0xff] }
  0x63   : > { %v305_v19 = vld [vmem:[%s1500_s30 + $0x3a8] sm:$0xff] }
  0x65   : > { %651 = vmatmul.mubr.f32.gmra.mrb[20].mxu0 %v208_v20  ;;  %811 = vmatmul.mubr.f32.gmra.mrb[20].mxu1 %v272_v21  ;;  %v240_v20 = vld [vmem:[%s1500_s30 + $0x1a0] sm:$0xff] }
  0x66   : > { %1298 = vmatprep.mubr.msk.f32.mxu0 %vm343_vm0, %v211_v22  ;;  %1330 = vmatprep.mubr.msk.f32.mxu1 %vm343_vm0, %v275_v23  ;;  %v304_v21 = vld [vmem:[%s1500_s30 + $0x3a0] sm:$0xff]  ;;  %v243_v22 = vld [vmem:[%s1500_s30 + $0x1b8] sm:$0xff] }
  0x67   : > { %v307_v23 = vld [vmem:[%s1500_s30 + $0x3b8] sm:$0xff] }
  0x69   : > { %656 = vmatmul.mubr.f32.gmra.mrb[22].mxu0 %v210_v24  ;;  %816 = vmatmul.mubr.f32.gmra.mrb[22].mxu1 %v274_v25  ;;  %v242_v24 = vld [vmem:[%s1500_s30 + $0x1b0] sm:$0xff] }
  0x6a   : > { %1299 = vmatprep.mubr.msk.f32.mxu0 %vm343_vm0, %v213_v26  ;;  %1331 = vmatprep.mubr.msk.f32.mxu1 %vm343_vm0, %v277_v27  ;;  %v306_v25 = vld [vmem:[%s1500_s30 + $0x3b0] sm:$0xff]  ;;  %v245_v26 = vld [vmem:[%s1500_s30 + $0x1c8] sm:$0xff] }
  0x6b   : > { %v309_v27 = vld [vmem:[%s1500_s30 + $0x3c8] sm:$0xff] }
  0x6d   : > { %661 = vmatmul.mubr.f32.gmra.mrb[24].mxu0 %v212_v28  ;;  %821 = vmatmul.mubr.f32.gmra.mrb[24].mxu1 %v276_v29  ;;  %v244_v28 = vld [vmem:[%s1500_s30 + $0x1c0] sm:$0xff] }
  0x6e   : > { %1300 = vmatprep.mubr.msk.f32.mxu0 %vm343_vm0, %v215_v30  ;;  %1332 = vmatprep.mubr.msk.f32.mxu1 %vm343_vm0, %v279_v31  ;;  %v308_v29 = vld [vmem:[%s1500_s30 + $0x3c0] sm:$0xff]  ;;  %v247_v30 = vld [vmem:[%s1500_s30 + $0x1d8] sm:$0xff] }
  0x6f   : > { %v311_v31 = vld [vmem:[%s1500_s30 + $0x3d8] sm:$0xff] }
  0x71   : > { %666 = vmatmul.mubr.f32.gmra.mrb[26].mxu0 %v214_v32  ;;  %826 = vmatmul.mubr.f32.gmra.mrb[26].mxu1 %v278_v33  ;;  %v246_v32 = vld [vmem:[%s1500_s30 + $0x1d0] sm:$0xff] }
  0x72   : > { %1301 = vmatprep.mubr.msk.f32.mxu0 %vm343_vm0, %v217_v34  ;;  %1333 = vmatprep.mubr.msk.f32.mxu1 %vm343_vm0, %v281_v35  ;;  %v310_v33 = vld [vmem:[%s1500_s30 + $0x3d0] sm:$0xff]  ;;  %v249_v34 = vld [vmem:[%s1500_s30 + $0x1e8] sm:$0xff] }
  0x73   : > { %v313_v35 = vld [vmem:[%s1500_s30 + $0x3e8] sm:$0xff] }
  0x75   : > { %671 = vmatmul.mubr.f32.gmra.mrb[28].mxu0 %v216_v36  ;;  %831 = vmatmul.mubr.f32.gmra.mrb[28].mxu1 %v280_v37  ;;  %v248_v36 = vld [vmem:[%s1500_s30 + $0x1e0] sm:$0xff] }
  0x76   : > { %1302 = vmatprep.mubr.msk.f32.mxu0 %vm343_vm0, %v219_v38  ;;  %1334 = vmatprep.mubr.msk.f32.mxu1 %vm343_vm0, %v283_v39  ;;  %v312_v37 = vld [vmem:[%s1500_s30 + $0x3e0] sm:$0xff]  ;;  %v251_v38 = vld [vmem:[%s1500_s30 + $0x1f8] sm:$0xff] }
  0x77   : > { %v315_v39 = vld [vmem:[%s1500_s30 + $0x3f8] sm:$0xff] }
  0x79   : > { %676 = vmatmul.mubr.f32.gmra.mrb[30].mxu0 %v218_v40  ;;  %836 = vmatmul.mubr.f32.gmra.mrb[30].mxu1 %v282_v41  ;;  %v250_v40 = vld [vmem:[%s1500_s30 + $0x1f0] sm:$0xff] }
  0x7a   : > { %1303 = vmatprep.mubr.msk.f32.mxu0 %vm343_vm0, %v221_v42  ;;  %1335 = vmatprep.mubr.msk.f32.mxu1 %vm343_vm0, %v285_v43  ;;  %v314_v41 = vld [vmem:[%s1500_s30 + $0x3f0] sm:$0xff] }
  0x7d   : > { %681 = vmatmul.mubr.f32.gmra.mrb[32].mxu0 %v220_v44  ;;  %841 = vmatmul.mubr.f32.gmra.mrb[32].mxu1 %v284_v45 }
  0x7e   : > { %1304 = vmatprep.mubr.msk.f32.mxu0 %vm343_vm0, %v223_v46  ;;  %1336 = vmatprep.mubr.msk.f32.mxu1 %vm343_vm0, %v287_v47 }
  0x81   : > { %686 = vmatmul.mubr.f32.gmra.mrb[34].mxu0 %v222_v48  ;;  %846 = vmatmul.mubr.f32.gmra.mrb[34].mxu1 %v286_v49 }
  0x82   : > { %1305 = vmatprep.mubr.msk.f32.mxu0 %vm343_vm0, %v225_v50  ;;  %1337 = vmatprep.mubr.msk.f32.mxu1 %vm343_vm0, %v289_v51 }
  0x85   : > { %691 = vmatmul.mubr.f32.gmra.mrb[36].mxu0 %v224_v52  ;;  %851 = vmatmul.mubr.f32.gmra.mrb[36].mxu1 %v288_v53 }
  0x86   : > { %1306 = vmatprep.mubr.msk.f32.mxu0 %vm343_vm0, %v227_v54  ;;  %1338 = vmatprep.mubr.msk.f32.mxu1 %vm343_vm0, %v291_v55 }
  0x89   : > { %696 = vmatmul.mubr.f32.gmra.mrb[38].mxu0 %v226_v56  ;;  %856 = vmatmul.mubr.f32.gmra.mrb[38].mxu1 %v290_v57 }
  0x8a   : > { %1307 = vmatprep.mubr.msk.f32.mxu0 %vm343_vm0, %v229_v58  ;;  %1339 = vmatprep.mubr.msk.f32.mxu1 %vm343_vm0, %v293_v59 }
  0x8d   : > { %701 = vmatmul.mubr.f32.gmra.mrb[40].mxu0 %v228_v60  ;;  %861 = vmatmul.mubr.f32.gmra.mrb[40].mxu1 %v292_v61 }
  0x8e   : > { %1308 = vmatprep.mubr.msk.f32.mxu0 %vm343_vm0, %v231_v62  ;;  %1340 = vmatprep.mubr.msk.f32.mxu1 %vm343_vm0, %v295_v63 }
  0x91   : > { %706 = vmatmul.mubr.f32.gmra.mrb[42].mxu0 %v230_v0  ;;  %866 = vmatmul.mubr.f32.gmra.mrb[42].mxu1 %v294_v1 }
  0x92   : > { %1309 = vmatprep.mubr.msk.f32.mxu0 %vm343_vm0, %v233_v2  ;;  %1341 = vmatprep.mubr.msk.f32.mxu1 %vm343_vm0, %v297_v3 }
  0x95   : > { %711 = vmatmul.mubr.f32.gmra.mrb[44].mxu0 %v232_v4  ;;  %871 = vmatmul.mubr.f32.gmra.mrb[44].mxu1 %v296_v5 }
  0x96   : > { %1310 = vmatprep.mubr.msk.f32.mxu0 %vm343_vm0, %v235_v6  ;;  %1342 = vmatprep.mubr.msk.f32.mxu1 %vm343_vm0, %v299_v7 }
  0x99   : > { %716 = vmatmul.mubr.f32.gmra.mrb[46].mxu0 %v234_v8  ;;  %876 = vmatmul.mubr.f32.gmra.mrb[46].mxu1 %v298_v9 }
  0x9a   : > { %1311 = vmatprep.mubr.msk.f32.mxu0 %vm343_vm0, %v237_v10  ;;  %1343 = vmatprep.mubr.msk.f32.mxu1 %vm343_vm0, %v301_v11 }
  0x9d   : > { %721 = vmatmul.mubr.f32.gmra.mrb[48].mxu0 %v236_v12  ;;  %881 = vmatmul.mubr.f32.gmra.mrb[48].mxu1 %v300_v13 }
  0x9e   : > { %1312 = vmatprep.mubr.msk.f32.mxu0 %vm343_vm0, %v239_v14  ;;  %1344 = vmatprep.mubr.msk.f32.mxu1 %vm343_vm0, %v303_v15 }
  0xa1   : > { %726 = vmatmul.mubr.f32.gmra.mrb[50].mxu0 %v238_v16  ;;  %886 = vmatmul.mubr.f32.gmra.mrb[50].mxu1 %v302_v17 }
  0xa2   : > { %1313 = vmatprep.mubr.msk.f32.mxu0 %vm343_vm0, %v241_v18  ;;  %1345 = vmatprep.mubr.msk.f32.mxu1 %vm343_vm0, %v305_v19 }
  0xa5   : > { %731 = vmatmul.mubr.f32.gmra.mrb[52].mxu0 %v240_v20  ;;  %891 = vmatmul.mubr.f32.gmra.mrb[52].mxu1 %v304_v21 }
  0xa6   : > { %1314 = vmatprep.mubr.msk.f32.mxu0 %vm343_vm0, %v243_v22  ;;  %1346 = vmatprep.mubr.msk.f32.mxu1 %vm343_vm0, %v307_v23 }
  0xa9   : > { %736 = vmatmul.mubr.f32.gmra.mrb[54].mxu0 %v242_v24  ;;  %896 = vmatmul.mubr.f32.gmra.mrb[54].mxu1 %v306_v25 }
  0xaa   : > { %1315 = vmatprep.mubr.msk.f32.mxu0 %vm343_vm0, %v245_v26  ;;  %1347 = vmatprep.mubr.msk.f32.mxu1 %vm343_vm0, %v309_v27 }
  0xad   : > { %741 = vmatmul.mubr.f32.gmra.mrb[56].mxu0 %v244_v28  ;;  %901 = vmatmul.mubr.f32.gmra.mrb[56].mxu1 %v308_v29 }
  0xae   : > { %1316 = vmatprep.mubr.msk.f32.mxu0 %vm343_vm0, %v247_v30  ;;  %1348 = vmatprep.mubr.msk.f32.mxu1 %vm343_vm0, %v311_v31 }
  0xb1   : > { %746 = vmatmul.mubr.f32.gmra.mrb[58].mxu0 %v246_v32  ;;  %906 = vmatmul.mubr.f32.gmra.mrb[58].mxu1 %v310_v33 }
  0xb2   : > { %1317 = vmatprep.mubr.msk.f32.mxu0 %vm343_vm0, %v249_v34  ;;  %1349 = vmatprep.mubr.msk.f32.mxu1 %vm343_vm0, %v313_v35 }
  0xb5   : > { %751 = vmatmul.mubr.f32.gmra.mrb[60].mxu0 %v248_v36  ;;  %911 = vmatmul.mubr.f32.gmra.mrb[60].mxu1 %v312_v37 }
  0xb6   : > { %1318 = vmatprep.mubr.msk.f32.mxu0 %vm343_vm0, %v251_v38  ;;  %1350 = vmatprep.mubr.msk.f32.mxu1 %vm343_vm0, %v315_v39 }
  0xb9   : > { %756 = vmatmul.mubr.f32.gmra.mrb[62].mxu0 %v250_v40  ;;  %916 = vmatmul.mubr.f32.gmra.mrb[62].mxu1 %v314_v41 }
 0x110   : > { %v602_v42 = vpop.f32.mrb[0].mxu0  ;;  %v1785_v43 = vpop.f32.mrb[0].mxu1 }
 0x111   : > { %921 = vst [vmem:[%s1783_s29] sm:$0xff] %v602_v42  ;;  %v604_v44 = vpop.f32.mrb[1].mxu0  ;;  %953 = vst [vmem:[%s1783_s29 + $0x100] sm:$0xff] %v1785_v43  ;;  %v764_v45 = vpop.f32.mrb[1].mxu1  ;;  %v1055_v48 = vmul.f32 %v602_v42, %v602_v42 }
 0x114   : > { %v607_v46 = vpop.f32.mrb[2].mxu0  ;;  %v1790_v47 = vpop.f32.mrb[2].mxu1 }
 0x115   : > { %922 = vst [vmem:[%s1783_s29 + $0x8] sm:$0xff] %v607_v46  ;;  %v985_v49 = vadd.f32 %v607_v46, %v602_v42  ;;  %v1056_v50 = vmul.f32 %v607_v46, %v607_v46  ;;  %v609_v51 = vpop.f32.mrb[3].mxu0  ;;  %954 = vst [vmem:[%s1783_s29 + $0x108] sm:$0xff] %v1790_v47  ;;  %v769_v52 = vpop.f32.mrb[3].mxu1 }
 0x117   : > { %v1119_v53 = vadd.f32 %v1056_v50, %v1055_v48 }
 0x118   : > { %v612_v54 = vpop.f32.mrb[4].mxu0  ;;  %v1795_v55 = vpop.f32.mrb[4].mxu1 }
 0x119   : > { %923 = vst [vmem:[%s1783_s29 + $0x10] sm:$0xff] %v612_v54  ;;  %v986_v56 = vadd.f32 %v985_v49, %v612_v54  ;;  %v1057_v57 = vmul.f32 %v612_v54, %v612_v54  ;;  %v614_v58 = vpop.f32.mrb[5].mxu0  ;;  %955 = vst [vmem:[%s1783_s29 + $0x110] sm:$0xff] %v1795_v55  ;;  %v774_v59 = vpop.f32.mrb[5].mxu1 }
 0x11b   : > { %v1120_v60 = vadd.f32 %v1119_v53, %v1057_v57 }
 0x11c   : > { %v617_v61 = vpop.f32.mrb[6].mxu0  ;;  %v1800_v62 = vpop.f32.mrb[6].mxu1 }
 0x11d   : > { %924 = vst [vmem:[%s1783_s29 + $0x18] sm:$0xff] %v617_v61  ;;  %v987_v63 = vadd.f32 %v986_v56, %v617_v61  ;;  %v1058_v0 = vmul.f32 %v617_v61, %v617_v61  ;;  %v619_v1 = vpop.f32.mrb[7].mxu0  ;;  %956 = vst [vmem:[%s1783_s29 + $0x118] sm:$0xff] %v1800_v62  ;;  %v779_v2 = vpop.f32.mrb[7].mxu1 }
 0x11f   : > { %v1121_v3 = vadd.f32 %v1120_v60, %v1058_v0 }
 0x120   : > { %v622_v4 = vpop.f32.mrb[8].mxu0  ;;  %v1805_v5 = vpop.f32.mrb[8].mxu1 }
 0x121   : > { %925 = vst [vmem:[%s1783_s29 + $0x20] sm:$0xff] %v622_v4  ;;  %v988_v6 = vadd.f32 %v987_v63, %v622_v4  ;;  %v1059_v7 = vmul.f32 %v622_v4, %v622_v4  ;;  %v624_v8 = vpop.f32.mrb[9].mxu0  ;;  %957 = vst [vmem:[%s1783_s29 + $0x120] sm:$0xff] %v1805_v5  ;;  %v784_v9 = vpop.f32.mrb[9].mxu1 }
 0x123   : > { %v1122_v10 = vadd.f32 %v1121_v3, %v1059_v7 }
 0x124   : > { %v627_v11 = vpop.f32.mrb[10].mxu0  ;;  %v1810_v12 = vpop.f32.mrb[10].mxu1 }
 0x125   : > { %926 = vst [vmem:[%s1783_s29 + $0x28] sm:$0xff] %v627_v11  ;;  %v989_v13 = vadd.f32 %v988_v6, %v627_v11  ;;  %v1060_v14 = vmul.f32 %v627_v11, %v627_v11  ;;  %v629_v15 = vpop.f32.mrb[11].mxu0  ;;  %958 = vst [vmem:[%s1783_s29 + $0x128] sm:$0xff] %v1810_v12  ;;  %v789_v16 = vpop.f32.mrb[11].mxu1 }
 0x127   : > { %v1123_v17 = vadd.f32 %v1122_v10, %v1060_v14 }
 0x128   : > { %v632_v18 = vpop.f32.mrb[12].mxu0  ;;  %v1815_v19 = vpop.f32.mrb[12].mxu1 }
 0x129   : > { %927 = vst [vmem:[%s1783_s29 + $0x30] sm:$0xff] %v632_v18  ;;  %v990_v20 = vadd.f32 %v989_v13, %v632_v18  ;;  %v1061_v21 = vmul.f32 %v632_v18, %v632_v18  ;;  %v634_v22 = vpop.f32.mrb[13].mxu0  ;;  %959 = vst [vmem:[%s1783_s29 + $0x130] sm:$0xff] %v1815_v19  ;;  %v794_v23 = vpop.f32.mrb[13].mxu1 }
 0x12b   : > { %v1124_v24 = vadd.f32 %v1123_v17, %v1061_v21 }
 0x12c   : > { %v637_v25 = vpop.f32.mrb[14].mxu0  ;;  %v1820_v26 = vpop.f32.mrb[14].mxu1 }
 0x12d   : > { %928 = vst [vmem:[%s1783_s29 + $0x38] sm:$0xff] %v637_v25  ;;  %v991_v27 = vadd.f32 %v990_v20, %v637_v25  ;;  %v1062_v28 = vmul.f32 %v637_v25, %v637_v25  ;;  %v639_v29 = vpop.f32.mrb[15].mxu0  ;;  %960 = vst [vmem:[%s1783_s29 + $0x138] sm:$0xff] %v1820_v26  ;;  %v799_v30 = vpop.f32.mrb[15].mxu1 }
 0x12f   : > { %v1125_v31 = vadd.f32 %v1124_v24, %v1062_v28 }
 0x130   : > { %v642_v32 = vpop.f32.mrb[16].mxu0  ;;  %v1825_v33 = vpop.f32.mrb[16].mxu1 }
 0x131   : > { %929 = vst [vmem:[%s1783_s29 + $0x40] sm:$0xff] %v642_v32  ;;  %v992_v34 = vadd.f32 %v991_v27, %v642_v32  ;;  %v1063_v35 = vmul.f32 %v642_v32, %v642_v32  ;;  %v644_v36 = vpop.f32.mrb[17].mxu0  ;;  %961 = vst [vmem:[%s1783_s29 + $0x140] sm:$0xff] %v1825_v33  ;;  %v804_v37 = vpop.f32.mrb[17].mxu1 }
 0x133   : > { %v1126_v38 = vadd.f32 %v1125_v31, %v1063_v35 }
 0x134   : > { %v647_v39 = vpop.f32.mrb[18].mxu0  ;;  %v1830_v40 = vpop.f32.mrb[18].mxu1 }
 0x135   : > { %930 = vst [vmem:[%s1783_s29 + $0x48] sm:$0xff] %v647_v39  ;;  %v993_v41 = vadd.f32 %v992_v34, %v647_v39  ;;  %v1064_v42 = vmul.f32 %v647_v39, %v647_v39  ;;  %v649_v44 = vpop.f32.mrb[19].mxu0  ;;  %962 = vst [vmem:[%s1783_s29 + $0x148] sm:$0xff] %v1830_v40  ;;  %v809_v45 = vpop.f32.mrb[19].mxu1 }
 0x137   : > { %v1127_v46 = vadd.f32 %v1126_v38, %v1064_v42 }
 0x138   : > { %v652_v48 = vpop.f32.mrb[20].mxu0  ;;  %v1835_v49 = vpop.f32.mrb[20].mxu1 }
 0x139   : > { %931 = vst [vmem:[%s1783_s29 + $0x50] sm:$0xff] %v652_v48  ;;  %v994_v50 = vadd.f32 %v993_v41, %v652_v48  ;;  %v1065_v51 = vmul.f32 %v652_v48, %v652_v48  ;;  %v654_v52 = vpop.f32.mrb[21].mxu0  ;;  %963 = vst [vmem:[%s1783_s29 + $0x150] sm:$0xff] %v1835_v49  ;;  %v814_v53 = vpop.f32.mrb[21].mxu1 }
 0x13b   : > { %v1128_v54 = vadd.f32 %v1127_v46, %v1065_v51 }
 0x13c   : > { %v657_v56 = vpop.f32.mrb[22].mxu0  ;;  %v1840_v57 = vpop.f32.mrb[22].mxu1 }
 0x13d   : > { %932 = vst [vmem:[%s1783_s29 + $0x58] sm:$0xff] %v657_v56  ;;  %v995_v58 = vadd.f32 %v994_v50, %v657_v56  ;;  %v1066_v59 = vmul.f32 %v657_v56, %v657_v56  ;;  %v659_v60 = vpop.f32.mrb[23].mxu0  ;;  %964 = vst [vmem:[%s1783_s29 + $0x158] sm:$0xff] %v1840_v57  ;;  %v819_v61 = vpop.f32.mrb[23].mxu1 }
 0x13f   : > { %v1129_v63 = vadd.f32 %v1128_v54, %v1066_v59 }
 0x140   : > { %v662_v0 = vpop.f32.mrb[24].mxu0  ;;  %v1845_v1 = vpop.f32.mrb[24].mxu1 }
 0x141   : > { %933 = vst [vmem:[%s1783_s29 + $0x60] sm:$0xff] %v662_v0  ;;  %v996_v2 = vadd.f32 %v995_v58, %v662_v0  ;;  %v1067_v3 = vmul.f32 %v662_v0, %v662_v0  ;;  %v664_v4 = vpop.f32.mrb[25].mxu0  ;;  %965 = vst [vmem:[%s1783_s29 + $0x160] sm:$0xff] %v1845_v1  ;;  %v824_v6 = vpop.f32.mrb[25].mxu1 }
 0x143   : > { %v1130_v7 = vadd.f32 %v1129_v63, %v1067_v3 }
 0x144   : > { %v667_v8 = vpop.f32.mrb[26].mxu0  ;;  %v1850_v9 = vpop.f32.mrb[26].mxu1 }
 0x145   : > { %934 = vst [vmem:[%s1783_s29 + $0x68] sm:$0xff] %v667_v8  ;;  %v997_v10 = vadd.f32 %v996_v2, %v667_v8  ;;  %v1068_v11 = vmul.f32 %v667_v8, %v667_v8  ;;  %v669_v13 = vpop.f32.mrb[27].mxu0  ;;  %966 = vst [vmem:[%s1783_s29 + $0x168] sm:$0xff] %v1850_v9  ;;  %v829_v14 = vpop.f32.mrb[27].mxu1 }
 0x147   : > { %v1131_v15 = vadd.f32 %v1130_v7, %v1068_v11 }
 0x148   : > { %v672_v16 = vpop.f32.mrb[28].mxu0  ;;  %v1855_v17 = vpop.f32.mrb[28].mxu1 }
 0x149   : > { %935 = vst [vmem:[%s1783_s29 + $0x70] sm:$0xff] %v672_v16  ;;  %v998_v18 = vadd.f32 %v997_v10, %v672_v16  ;;  %v1069_v20 = vmul.f32 %v672_v16, %v672_v16  ;;  %v674_v21 = vpop.f32.mrb[29].mxu0  ;;  %967 = vst [vmem:[%s1783_s29 + $0x170] sm:$0xff] %v1855_v17  ;;  %v834_v22 = vpop.f32.mrb[29].mxu1 }
 0x14b   : > { %v1132_v23 = vadd.f32 %v1131_v15, %v1069_v20 }
 0x14c   : > { %v677_v24 = vpop.f32.mrb[30].mxu0  ;;  %v1860_v25 = vpop.f32.mrb[30].mxu1 }
 0x14d   : > { %936 = vst [vmem:[%s1783_s29 + $0x78] sm:$0xff] %v677_v24  ;;  %v999_v27 = vadd.f32 %v998_v18, %v677_v24  ;;  %v1070_v28 = vmul.f32 %v677_v24, %v677_v24  ;;  %v679_v29 = vpop.f32.mrb[31].mxu0  ;;  %968 = vst [vmem:[%s1783_s29 + $0x178] sm:$0xff] %v1860_v25  ;;  %v839_v30 = vpop.f32.mrb[31].mxu1 }
 0x14f   : > { %v1133_v31 = vadd.f32 %v1132_v23, %v1070_v28 }
 0x150   : > { %v682_v32 = vpop.f32.mrb[32].mxu0  ;;  %v1865_v34 = vpop.f32.mrb[32].mxu1 }
 0x151   : > { %937 = vst [vmem:[%s1783_s29 + $0x80] sm:$0xff] %v682_v32  ;;  %v1000_v35 = vadd.f32 %v999_v27, %v682_v32  ;;  %v1071_v36 = vmul.f32 %v682_v32, %v682_v32  ;;  %v684_v37 = vpop.f32.mrb[33].mxu0  ;;  %969 = vst [vmem:[%s1783_s29 + $0x180] sm:$0xff] %v1865_v34  ;;  %v844_v38 = vpop.f32.mrb[33].mxu1 }
 0x153   : > { %v1134_v39 = vadd.f32 %v1133_v31, %v1071_v36 }
 0x154   : > { %v687_v41 = vpop.f32.mrb[34].mxu0  ;;  %v1870_v42 = vpop.f32.mrb[34].mxu1 }
 0x155   : > { %938 = vst [vmem:[%s1783_s29 + $0x88] sm:$0xff] %v687_v41  ;;  %v1001_v44 = vadd.f32 %v1000_v35, %v687_v41  ;;  %v1072_v45 = vmul.f32 %v687_v41, %v687_v41  ;;  %v689_v46 = vpop.f32.mrb[35].mxu0  ;;  %970 = vst [vmem:[%s1783_s29 + $0x188] sm:$0xff] %v1870_v42  ;;  %v849_v48 = vpop.f32.mrb[35].mxu1 }
 0x157   : > { %v1135_v50 = vadd.f32 %v1134_v39, %v1072_v45 }
 0x158   : > { %v692_v51 = vpop.f32.mrb[36].mxu0  ;;  %v1875_v52 = vpop.f32.mrb[36].mxu1 }
 0x159   : > { %939 = vst [vmem:[%s1783_s29 + $0x90] sm:$0xff] %v692_v51  ;;  %v1002_v53 = vadd.f32 %v1001_v44, %v692_v51  ;;  %v1073_v54 = vmul.f32 %v692_v51, %v692_v51  ;;  %v694_v56 = vpop.f32.mrb[37].mxu0  ;;  %971 = vst [vmem:[%s1783_s29 + $0x190] sm:$0xff] %v1875_v52  ;;  %v854_v58 = vpop.f32.mrb[37].mxu1 }
 0x15b   : > { %v1136_v59 = vadd.f32 %v1135_v50, %v1073_v54 }
 0x15c   : > { %v697_v60 = vpop.f32.mrb[38].mxu0  ;;  %v1880_v61 = vpop.f32.mrb[38].mxu1 }
 0x15d   : > { %940 = vst [vmem:[%s1783_s29 + $0x98] sm:$0xff] %v697_v60  ;;  %v1003_v63 = vadd.f32 %v1002_v53, %v697_v60  ;;  %v1074_v0 = vmul.f32 %v697_v60, %v697_v60  ;;  %v699_v2 = vpop.f32.mrb[39].mxu0  ;;  %972 = vst [vmem:[%s1783_s29 + $0x198] sm:$0xff] %v1880_v61  ;;  %v859_v3 = vpop.f32.mrb[39].mxu1 }
 0x15f   : > { %v1137_v4 = vadd.f32 %v1136_v59, %v1074_v0 }
 0x160   : > { %v702_v6 = vpop.f32.mrb[40].mxu0  ;;  %v1885_v7 = vpop.f32.mrb[40].mxu1 }
 0x161   : > { %941 = vst [vmem:[%s1783_s29 + $0xa0] sm:$0xff] %v702_v6  ;;  %v1004_v8 = vadd.f32 %v1003_v63, %v702_v6  ;;  %v1075_v10 = vmul.f32 %v702_v6, %v702_v6  ;;  %v704_v11 = vpop.f32.mrb[41].mxu0  ;;  %973 = vst [vmem:[%s1783_s29 + $0x1a0] sm:$0xff] %v1885_v7  ;;  %v864_v13 = vpop.f32.mrb[41].mxu1 }
 0x163   : > { %v1138_v14 = vadd.f32 %v1137_v4, %v1075_v10 }
 0x164   : > { %v707_v15 = vpop.f32.mrb[42].mxu0  ;;  %v1890_v16 = vpop.f32.mrb[42].mxu1 }
 0x165   : > { %942 = vst [vmem:[%s1783_s29 + $0xa8] sm:$0xff] %v707_v15  ;;  %v1005_v18 = vadd.f32 %v1004_v8, %v707_v15  ;;  %v1076_v20 = vmul.f32 %v707_v15, %v707_v15  ;;  %v709_v21 = vpop.f32.mrb[43].mxu0  ;;  %974 = vst [vmem:[%s1783_s29 + $0x1a8] sm:$0xff] %v1890_v16  ;;  %v869_v22 = vpop.f32.mrb[43].mxu1 }
 0x167   : > { %v1139_v23 = vadd.f32 %v1138_v14, %v1076_v20 }
 0x168   : > { %v712_v24 = vpop.f32.mrb[44].mxu0  ;;  %v1895_v27 = vpop.f32.mrb[44].mxu1 }
 0x169   : > { %943 = vst [vmem:[%s1783_s29 + $0xb0] sm:$0xff] %v712_v24  ;;  %v1006_v28 = vadd.f32 %v1005_v18, %v712_v24  ;;  %v1077_v29 = vmul.f32 %v712_v24, %v712_v24  ;;  %v714_v30 = vpop.f32.mrb[45].mxu0  ;;  %975 = vst [vmem:[%s1783_s29 + $0x1b0] sm:$0xff] %v1895_v27  ;;  %v874_v31 = vpop.f32.mrb[45].mxu1 }
 0x16b   : > { %v1140_v32 = vadd.f32 %v1139_v23, %v1077_v29 }
 0x16c   : > { %v717_v35 = vpop.f32.mrb[46].mxu0  ;;  %v1900_v36 = vpop.f32.mrb[46].mxu1 }
 0x16d   : > { %944 = vst [vmem:[%s1783_s29 + $0xb8] sm:$0xff] %v717_v35  ;;  %v1007_v37 = vadd.f32 %v1006_v28, %v717_v35  ;;  %v1078_v38 = vmul.f32 %v717_v35, %v717_v35  ;;  %v719_v39 = vpop.f32.mrb[47].mxu0  ;;  %976 = vst [vmem:[%s1783_s29 + $0x1b8] sm:$0xff] %v1900_v36  ;;  %v879_v41 = vpop.f32.mrb[47].mxu1 }
 0x16f   : > { %v1141_v44 = vadd.f32 %v1140_v32, %v1078_v38 }
 0x170   : > { %v722_v45 = vpop.f32.mrb[48].mxu0  ;;  %v1905_v46 = vpop.f32.mrb[48].mxu1 }
 0x171   : > { %945 = vst [vmem:[%s1783_s29 + $0xc0] sm:$0xff] %v722_v45  ;;  %v1008_v48 = vadd.f32 %v1007_v37, %v722_v45  ;;  %v1079_v50 = vmul.f32 %v722_v45, %v722_v45  ;;  %v724_v51 = vpop.f32.mrb[49].mxu0  ;;  %977 = vst [vmem:[%s1783_s29 + $0x1c0] sm:$0xff] %v1905_v46  ;;  %v884_v53 = vpop.f32.mrb[49].mxu1 }
 0x173   : > { %v1142_v54 = vadd.f32 %v1141_v44, %v1079_v50 }
 0x174   : > { %v727_v56 = vpop.f32.mrb[50].mxu0  ;;  %v1910_v58 = vpop.f32.mrb[50].mxu1 }
 0x175   : > { %946 = vst [vmem:[%s1783_s29 + $0xc8] sm:$0xff] %v727_v56  ;;  %v1009_v59 = vadd.f32 %v1008_v48, %v727_v56  ;;  %v1080_v60 = vmul.f32 %v727_v56, %v727_v56  ;;  %v729_v63 = vpop.f32.mrb[51].mxu0  ;;  %978 = vst [vmem:[%s1783_s29 + $0x1c8] sm:$0xff] %v1910_v58  ;;  %v889_v0 = vpop.f32.mrb[51].mxu1 }
 0x177   : > { %v1143_v2 = vadd.f32 %v1142_v54, %v1080_v60 }
 0x178   : > { %v732_v3 = vpop.f32.mrb[52].mxu0  ;;  %v1915_v4 = vpop.f32.mrb[52].mxu1 }
 0x179   : > { %947 = vst [vmem:[%s1783_s29 + $0xd0] sm:$0xff] %v732_v3  ;;  %v1010_v6 = vadd.f32 %v1009_v59, %v732_v3  ;;  %v1081_v8 = vmul.f32 %v732_v3, %v732_v3  ;;  %v734_v10 = vpop.f32.mrb[53].mxu0  ;;  %979 = vst [vmem:[%s1783_s29 + $0x1d0] sm:$0xff] %v1915_v4  ;;  %v894_v11 = vpop.f32.mrb[53].mxu1 }
 0x17a   : > { %v1087_v10 = vmul.f32 %v1785_v43, %v1785_v43 }
 0x17b   : > { %v1144_v13 = vadd.f32 %v1143_v2, %v1081_v8 }
 0x17c   : > { %v737_v14 = vpop.f32.mrb[54].mxu0  ;;  %v1920_v15 = vpop.f32.mrb[54].mxu1 }
 0x17d   : > { %948 = vst [vmem:[%s1783_s29 + $0xd8] sm:$0xff] %v737_v14  ;;  %v1011_v18 = vadd.f32 %v1010_v6, %v737_v14  ;;  %v1082_v20 = vmul.f32 %v737_v14, %v737_v14  ;;  %v739_v21 = vpop.f32.mrb[55].mxu0  ;;  %980 = vst [vmem:[%s1783_s29 + $0x1d8] sm:$0xff] %v1920_v15  ;;  %v899_v22 = vpop.f32.mrb[55].mxu1  ;;  %v1088_v14 = vmul.f32 %v1790_v47, %v1790_v47 }
 0x17e   : > { %v1089_v21 = vmul.f32 %v1795_v55, %v1795_v55 }
 0x17f   : > { %v1145_v23 = vadd.f32 %v1144_v13, %v1082_v20 }
 0x180   : > { %v742_v24 = vpop.f32.mrb[56].mxu0  ;;  %v1925_v28 = vpop.f32.mrb[56].mxu1 }
 0x181   : > { %949 = vst [vmem:[%s1783_s29 + $0xe0] sm:$0xff] %v742_v24  ;;  %v1012_v29 = vadd.f32 %v1011_v18, %v742_v24  ;;  %v1083_v30 = vmul.f32 %v742_v24, %v742_v24  ;;  %v744_v31 = vpop.f32.mrb[57].mxu0  ;;  %981 = vst [vmem:[%s1783_s29 + $0x1e0] sm:$0xff] %v1925_v28  ;;  %v904_v32 = vpop.f32.mrb[57].mxu1  ;;  %v1090_v24 = vmul.f32 %v1800_v62, %v1800_v62 }
 0x183   : > { %v1146_v35 = vadd.f32 %v1145_v23, %v1083_v30 }
 0x184   : > { %v747_v37 = vpop.f32.mrb[58].mxu0  ;;  %v1930_v38 = vpop.f32.mrb[58].mxu1 }
 0x185   : > { %950 = vst [vmem:[%s1783_s29 + $0xe8] sm:$0xff] %v747_v37  ;;  %v1013_v39 = vadd.f32 %v1012_v29, %v747_v37  ;;  %v1084_v41 = vmul.f32 %v747_v37, %v747_v37  ;;  %v749_v44 = vpop.f32.mrb[59].mxu0  ;;  %982 = vst [vmem:[%s1783_s29 + $0x1e8] sm:$0xff] %v1930_v38  ;;  %v909_v45 = vpop.f32.mrb[59].mxu1 }
 0x187   : > { %v1147_v48 = vadd.f32 %v1146_v35, %v1084_v41 }
 0x188   : > { %v752_v50 = vpop.f32.mrb[60].mxu0  ;;  %v1935_v51 = vpop.f32.mrb[60].mxu1 }
 0x189   : > { %951 = vst [vmem:[%s1783_s29 + $0xf0] sm:$0xff] %v752_v50  ;;  %v1014_v53 = vadd.f32 %v1013_v39, %v752_v50  ;;  %v1085_v54 = vmul.f32 %v752_v50, %v752_v50  ;;  %v754_v56 = vpop.f32.mrb[61].mxu0  ;;  %983 = vst [vmem:[%s1783_s29 + $0x1f0] sm:$0xff] %v1935_v51  ;;  %v914_v59 = vpop.f32.mrb[61].mxu1 }
 0x18b   : > { %v1148_v60 = vadd.f32 %v1147_v48, %v1085_v54 }
 0x18c   : > { %v757_v63 = vpop.f32.mrb[62].mxu0  ;;  %v1940_v0 = vpop.f32.mrb[62].mxu1 }
 0x18d   : > { %952 = vst [vmem:[%s1783_s29 + $0xf8] sm:$0xff] %v757_v63  ;;  %v1015_v2 = vadd.f32 %v1014_v53, %v757_v63  ;;  %v1086_v3 = vmul.f32 %v757_v63, %v757_v63  ;;  %v759_v6 = vpop.f32.mrb[63].mxu0  ;;  %984 = vst [vmem:[%s1783_s29 + $0x1f8] sm:$0xff] %v1940_v0  ;;  %v919_v8 = vpop.f32.mrb[63].mxu1 }
 0x18f   : > { %v1016_v11 = vadd.f32 %v1015_v2, %v1785_v43  ;;  %v1149_v13 = vadd.f32 %v1148_v60, %v1086_v3  ;;  %v1091_v43 = vmul.f32 %v1805_v5, %v1805_v5 }
 0x191   : > { %v1017_v18 = vadd.f32 %v1016_v11, %v1790_v47  ;;  %v1150_v20 = vadd.f32 %v1149_v13, %v1087_v10  ;;  %v1092_v47 = vmul.f32 %v1810_v12, %v1810_v12 }
 0x193   : > { %v1018_v22 = vadd.f32 %v1017_v18, %v1795_v55  ;;  %v1151_v23 = vadd.f32 %v1150_v20, %v1088_v14  ;;  %v1093_v55 = vmul.f32 %v1815_v19, %v1815_v19  ;;  %v1103_v18 = vmul.f32 %v1865_v34, %v1865_v34 }
 0x195   : > { %v1019_v29 = vadd.f32 %v1018_v22, %v1800_v62  ;;  %v1152_v30 = vadd.f32 %v1151_v23, %v1089_v21  ;;  %v1094_v62 = vmul.f32 %v1820_v26, %v1820_v26  ;;  %v1104_v22 = vmul.f32 %v1870_v42, %v1870_v42 }
 0x197   : > { %v1020_v31 = vadd.f32 %v1019_v29, %v1805_v5  ;;  %v1153_v32 = vadd.f32 %v1152_v30, %v1090_v24  ;;  %v1095_v5 = vmul.f32 %v1825_v33, %v1825_v33  ;;  %v1105_v24 = vmul.f32 %v1875_v52, %v1875_v52 }
 0x198   : > { %v1106_v30 = vmul.f32 %v1880_v61, %v1880_v61 }
 0x199   : > { %v1021_v35 = vadd.f32 %v1020_v31, %v1810_v12  ;;  %v1154_v37 = vadd.f32 %v1153_v32, %v1091_v43  ;;  %v1096_v12 = vmul.f32 %v1830_v40, %v1830_v40  ;;  %v1107_v31 = vmul.f32 %v1885_v7, %v1885_v7 }
 0x19b   : > { %v1022_v39 = vadd.f32 %v1021_v35, %v1815_v19  ;;  %v1155_v41 = vadd.f32 %v1154_v37, %v1092_v47  ;;  %v1097_v19 = vmul.f32 %v1835_v49, %v1835_v49  ;;  %v1108_v47 = vmul.f32 %v1890_v16, %v1890_v16 }
 0x19c   : > { %v1109_v37 = vmul.f32 %v1895_v27, %v1895_v27 }
 0x19d   : > { %v1023_v44 = vadd.f32 %v1022_v39, %v1820_v26  ;;  %v1156_v45 = vadd.f32 %v1155_v41, %v1093_v55  ;;  %v1098_v26 = vmul.f32 %v1840_v57, %v1840_v57  ;;  %v1110_v39 = vmul.f32 %v1900_v36, %v1900_v36 }
 0x19f   : > { %v1157_v48 = vadd.f32 %v1156_v45, %v1094_v62  ;;  %v1024_v50 = vadd.f32 %v1023_v44, %v1825_v33  ;;  %v1099_v33 = vmul.f32 %v1845_v1, %v1845_v1  ;;  %v1111_v62 = vmul.f32 %v1905_v46, %v1905_v46 }
 0x1a0   : > { %v1112_v45 = vmul.f32 %v1910_v58, %v1910_v58 }
 0x1a1   : > { %v1025_v53 = vadd.f32 %v1024_v50, %v1830_v40  ;;  %v1158_v54 = vadd.f32 %v1157_v48, %v1095_v5  ;;  %v1100_v40 = vmul.f32 %v1850_v9, %v1850_v9  ;;  %v1113_v48 = vmul.f32 %v1915_v4, %v1915_v4 }
 0x1a3   : > { %v1026_v56 = vadd.f32 %v1025_v53, %v1835_v49  ;;  %v1159_v59 = vadd.f32 %v1158_v54, %v1096_v12  ;;  %v1101_v49 = vmul.f32 %v1855_v17, %v1855_v17  ;;  %v1114_v12 = vmul.f32 %v1920_v15, %v1920_v15 }
 0x1a5   : > { %v1027_v60 = vadd.f32 %v1026_v56, %v1840_v57  ;;  %v1160_v63 = vadd.f32 %v1159_v59, %v1097_v19  ;;  %v1102_v57 = vmul.f32 %v1860_v25, %v1860_v25  ;;  %v1116_v56 = vmul.f32 %v1930_v38, %v1930_v38 }
 0x1a7   : > { %v1028_v2 = vadd.f32 %v1027_v60, %v1845_v1  ;;  %v1161_v3 = vadd.f32 %v1160_v63, %v1098_v26  ;;  %v1117_v26 = vmul.f32 %v1935_v51, %v1935_v51 }
 0x1a9   : > { %v1029_v6 = vadd.f32 %v1028_v2, %v1850_v9  ;;  %v1162_v8 = vadd.f32 %v1161_v3, %v1099_v33 }
 0x1ab   : > { %v1030_v10 = vadd.f32 %v1029_v6, %v1855_v17  ;;  %v1163_v11 = vadd.f32 %v1162_v8, %v1100_v40 }
 0x1ad   : > { %v1031_v13 = vadd.f32 %v1030_v10, %v1860_v25  ;;  %v1164_v14 = vadd.f32 %v1163_v11, %v1101_v49 }
 0x1af   : > { %v1032_v1 = vadd.f32 %v1031_v13, %v1865_v34  ;;  %v1165_v20 = vadd.f32 %v1164_v14, %v1102_v57 }
 0x1b1   : > { %v1166_v9 = vadd.f32 %v1165_v20, %v1103_v18  ;;  %v1033_v21 = vadd.f32 %v1032_v1, %v1870_v42 }
 0x1b3   : > { %v1167_v17 = vadd.f32 %v1166_v9, %v1104_v22  ;;  %v1034_v23 = vadd.f32 %v1033_v21, %v1875_v52 }
 0x1b5   : > { %v1168_v25 = vadd.f32 %v1167_v17, %v1105_v24  ;;  %v1035_v29 = vadd.f32 %v1034_v23, %v1880_v61 }
 0x1b7   : > { %v1169_v34 = vadd.f32 %v1168_v25, %v1106_v30  ;;  %v1036_v43 = vadd.f32 %v1035_v29, %v1885_v7 }
 0x1b9   : > { %v1170_v32 = vadd.f32 %v1169_v34, %v1107_v31  ;;  %v1037_v42 = vadd.f32 %v1036_v43, %v1890_v16 }
 0x1bb   : > { %v1171_v35 = vadd.f32 %v1170_v32, %v1108_v47  ;;  %v1038_v52 = vadd.f32 %v1037_v42, %v1895_v27 }
 0x1bd   : > { %v1172_v55 = vadd.f32 %v1171_v35, %v1109_v37  ;;  %v1039_v61 = vadd.f32 %v1038_v52, %v1900_v36 }
 0x1bf   : > { %v1173_v41 = vadd.f32 %v1172_v55, %v1110_v39  ;;  %v1040_v7 = vadd.f32 %v1039_v61, %v1905_v46 }
 0x1c1   : > { %v1174_v44 = vadd.f32 %v1173_v41, %v1111_v62  ;;  %v1041_v16 = vadd.f32 %v1040_v7, %v1910_v58  ;;  %v1115_v58 = vmul.f32 %v1925_v28, %v1925_v28 }
 0x1c3   : > { %v1175_v5 = vadd.f32 %v1174_v44, %v1112_v45  ;;  %v1042_v27 = vadd.f32 %v1041_v16, %v1915_v4 }
 0x1c5   : > { %v1176_v36 = vadd.f32 %v1175_v5, %v1113_v48  ;;  %v1043_v50 = vadd.f32 %v1042_v27, %v1920_v15  ;;  %v1118_v15 = vmul.f32 %v1940_v0, %v1940_v0 }
 0x1c7   : > { %v1177_v46 = vadd.f32 %v1176_v36, %v1114_v12  ;;  %v1044_v53 = vadd.f32 %v1043_v50, %v1925_v28 }
 0x1c9   : > { %v1178_v54 = vadd.f32 %v1177_v46, %v1115_v58  ;;  %v1045_v19 = vadd.f32 %v1044_v53, %v1930_v38 }
 0x1cb   : > { %v1179_v4 = vadd.f32 %v1178_v54, %v1116_v56  ;;  %v1046_v59 = vadd.f32 %v1045_v19, %v1935_v51 }
 0x1cd   : > { %v1180_v60 = vadd.f32 %v1179_v4, %v1117_v26  ;;  %v1047_v63 = vadd.f32 %v1046_v59, %v1940_v0 }
 0x1cf   : > { %v1048_v28 = vrot.slane %v1047_v63, 4  ;;  %v1181_v33 = vadd.f32 %v1180_v60, %v1118_v15 }
 0x1d1   : > { %v1049_v2 = vadd.f32 %v1048_v28, %v1047_v63  ;;  %v1182_v3 = vrot.slane %v1181_v33, 4 }
 0x1d3   : > { %v1050_v40 = vrot.slane %v1049_v2, 2  ;;  %v1183_v38 = vadd.f32 %v1182_v3, %v1181_v33 }
 0x1d5   : > { %v1051_v6 = vadd.f32 %v1050_v40, %v1049_v2  ;;  %v1184_v8 = vrot.slane %v1183_v38, 2 }
 0x1d7   : > { %v1052_v49 = vrot.slane %v1051_v6, 1  ;;  %v1185_v10 = vadd.f32 %v1184_v8, %v1183_v38 }
 0x1d9   : > { %v1053_v51 = vadd.f32 %v1052_v49, %v1051_v6  ;;  %v1186_v11 = vrot.slane %v1185_v10, 1 }
 0x1db   : > { %1054 = vst [vmem:[%s187_s5] sm:$0x1] %v1053_v51  ;;  %v1187_v0 = vadd.f32 %v1186_v11, %v1185_v10 }
 0x1dd   : > { %1188 = vst [vmem:[%s187_s5 + $0x1] sm:$0x1] %v1187_v0 }
 0x1de PF: > { %s14_s12 = sadd.s32 1, %s1437_s12  }
 0x1df   : > { %p11_p5 = scmp.ge.s32.totalorder %s14_s12, 4  }
 0x1e1   :  { %13 = sbr.rel (!%p11_p5) target bundleno = 1 (0x1), region = 70 }

</bundles_post_ra>
